<compile_context>
chip_gen: v7x
topology: tpu7x:2x2x1
jax: 0.10.0
libtpu: 0.0.40
codegen_flags: <defaults>
</compile_context>

<pallas_src>
import jax
import jax.numpy as jnp
from jax.experimental import pallas as pl
from jax.experimental.pallas import tpu as pltpu

_C0 = 16    # 16-aligned column offset of the interior inside the padded scratch
_HALO = 16  # halo block width on each side (kept 16-aligned for unmasked stores)


def convblock_kernel(x1_ref, w1_ref, w2_ref, s1_ref, b1_ref, s2_ref, b2_ref,
                     out_ref, pad2_scr, h2_scr, rows_scr):
    B, Hh, Wh, Cp = out_ref.shape
    H, W = 2 * Hh, 2 * Wh
    M = B * H * W
    Kp1 = x1_ref.shape[3]
    Wt = pad2_scr.shape[2]
    dt = pad2_scr.dtype

    # ---- zero the halo of conv2's padded scratch (aligned block stores) -----
    # Re-done every step (cheap); a one-time pl.when(program_id == 0) init
    # would be wrong when the "parallel" batch axis is sharded across cores.
    pad2_scr[:, 0:1, :, :] = jnp.zeros((B, 1, Wt, Cp), dt)              # top
    pad2_scr[:, H + 1:H + 2, :, :] = jnp.zeros((B, 1, Wt, Cp), dt)      # bottom
    pad2_scr[:, 1:H + 1, 0:_C0, :] = jnp.zeros((B, H, _C0, Cp), dt)     # left
    pad2_scr[:, 1:H + 1, _C0 + W:_C0 + W + _HALO, :] = (
        jnp.zeros((B, H, _HALO, Cp), dt))                               # right

    # ---- conv1: single im2col MXU matmul + BN1 + ReLU ------------------------
    a1 = jnp.dot(x1_ref[...].reshape(M, Kp1), w1_ref[...],
                 preferred_element_type=jnp.float32)
    h1 = jnp.maximum(a1 * s1_ref[...] + b1_ref[...], 0.0)
    pad2_scr[:, 1:H + 1, _C0:_C0 + W, :] = h1.reshape(B, H, W, Cp).astype(dt)

    # ---- conv2: 3 im2col-fused matmuls (one per kernel row) ------------------
    # TODO(synk): the kw=0/2 windows are 1-sublane-offset reads (relayout);
    # pltpu.roll(slab, +/-1, axis=2) would put that shift on the XLU, but a
    # sublane rotate of packed bf16 is not reliably lowered, so the portable
    # unaligned-slice form is kept.
    acc2 = None
    for kh in range(3):
        win = jnp.concatenate(
            [pad2_scr[:, kh:kh + H, _C0 - 1 + kw:_C0 - 1 + kw + W, :]
             for kw in range(3)],
            axis=-1)                                   # (B,H,W,3*Cp) lane-dense
        d = jnp.dot(win.reshape(M, 3 * Cp), w2_ref[kh],
                    preferred_element_type=jnp.float32)
        acc2 = d if acc2 is None else acc2 + d

    # BN2 + ReLU; the 2x2-avg-pool 1/4 factor is pre-folded into s2/b2.
    h2 = jnp.maximum(acc2 * s2_ref[...] + b2_ref[...], 0.0)

    # ---- 2x2 average pooling via strided VMEM reads (no aliasing) ------------
    # TODO(synk): only pool_type='avg' (the forward default) is implemented;
    # 'max' / 'avg+max' would follow the same strided-read pattern.
    h2_scr[...] = h2.reshape(B, H, W, Cp)
    rows_scr[...] = (h2_scr[:, pl.ds(0, Hh, stride=2), :, :]
                     + h2_scr[:, pl.ds(1, Hh, stride=2), :, :])
    out_ref[...] = (rows_scr[:, :, pl.ds(0, Wh, stride=2), :]
                    + rows_scr[:, :, pl.ds(1, Wh, stride=2), :])


def _round_up(v, m):
    return ((v + m - 1) // m) * m


def _images_per_step(n, max_b=8):
    """Largest divisor of n (<= max_b) that still leaves >= 2 grid steps."""
    if n < 2:
        return 1
    best = 1
    for b in range(1, min(n, max_b) + 1):
        if n % b == 0 and n // b >= 2:
            best = b
    return best


def _im2col_3x3(x_nhwc, k_pad):
    """(N,H,W,Cin) -> (N,H,W,k_pad): 3x3 'SAME' patches, K zero-padded."""
    n, h, w, cin = x_nhwc.shape
    xp = jnp.pad(x_nhwc, ((0, 0), (1, 1), (1, 1), (0, 0)))
    cols = [xp[:, kh:kh + h, kw:kw + w, :] for kh in range(3) for kw in range(3)]
    patches = jnp.concatenate(cols, axis=-1)                 # (N,H,W,9*Cin)
    return jnp.pad(patches, ((0, 0), (0, 0), (0, 0), (0, k_pad - 9 * cin)))


def conv_block_forward(x_nchw, w1, w2, bn1_scale, bn1_bias, bn2_scale, bn2_bias,
                       pool_size=(2, 2), pool_type="avg"):
    assert pool_type == "avg" and tuple(pool_size) == (2, 2)
    N, Cin, H, W = x_nchw.shape
    assert H % 2 == 0 and W % 16 == 0
    Cout = w1.shape[-1]
    Hh, Wh = H // 2, W // 2
    Cp = _round_up(Cout, 128)          # lane-dense output channels
    Kp1 = _round_up(9 * Cin, 128)      # lane-dense conv1 im2col K
    B = _images_per_step(N)
    Wt = W + 2 * _C0

    # NCHW -> NHWC; conv1 im2col built wrapper-side (input is tiny); bf16 MXU.
    x = jnp.transpose(x_nchw, (0, 2, 3, 1)).astype(jnp.bfloat16)
    x1 = _im2col_3x3(x, Kp1)                                  # (N,H,W,Kp1)

    # conv1 weight as one (Kp1, Cp) matrix; padded rows/cols are zero.
    w1m = jnp.pad(w1.reshape(9 * Cin, Cout),
                  ((0, Kp1 - 9 * Cin), (0, Cp - Cout))).astype(jnp.bfloat16)

    # conv2 weights as three per-kh (3*Cp, Cp) im2col matrices ([kw0|kw1|kw2]).
    w2p = jnp.pad(w2, ((0, 0), (0, 0), (0, Cp - Cout), (0, Cp - Cout)))
    w2p = w2p.reshape(3, 3 * Cp, Cp).astype(jnp.bfloat16)

    def _pad_vec(v, scale=1.0):
        return jnp.pad(v.astype(jnp.float32) * scale, (0, Cp - Cout)).reshape(1, Cp)

    s1, b1 = _pad_vec(bn1_scale), _pad_vec(bn1_bias)
    s2, b2 = _pad_vec(bn2_scale, 0.25), _pad_vec(bn2_bias, 0.25)  # pool folded

    grid_spec = pltpu.PrefetchScalarGridSpec(
        num_scalar_prefetch=0,
        grid=(N // B,),
        in_specs=[
            pl.BlockSpec((B, H, W, Kp1), lambda n: (n, 0, 0, 0)),
            pl.BlockSpec((Kp1, Cp), lambda n: (0, 0)),
            pl.BlockSpec((3, 3 * Cp, Cp), lambda n: (0, 0, 0)),
            pl.BlockSpec((1, Cp), lambda n: (0, 0)),
            pl.BlockSpec((1, Cp), lambda n: (0, 0)),
            pl.BlockSpec((1, Cp), lambda n: (0, 0)),
            pl.BlockSpec((1, Cp), lambda n: (0, 0)),
        ],
        out_specs=pl.BlockSpec((B, Hh, Wh, Cp), lambda n: (n, 0, 0, 0)),
        scratch_shapes=[
            pltpu.VMEM((B, H + 2, Wt, Cp), jnp.bfloat16),  # padded conv1 output
            pltpu.VMEM((B, H, W, Cp), jnp.float32),        # conv2 activations
            pltpu.VMEM((B, Hh, W, Cp), jnp.float32),       # row-pooled partial
        ],
    )

    out_nhwc = pl.pallas_call(
        convblock_kernel,
        out_shape=jax.ShapeDtypeStruct((N, Hh, Wh, Cp), jnp.float32),
        grid_spec=grid_spec,
        compiler_params=pltpu.CompilerParams(
            dimension_semantics=("parallel",)),
    )(x1, w1m, w2p, s1, b1, s2, b2)

    # Strip the channel padding and return NCHW like the PyTorch module.
    return jnp.transpose(out_nhwc[..., :Cout], (0, 3, 1, 2))


if __name__ == "__main__":
    N, Cin, Cout, H, W = 4, 4, 8, 16, 16
    key = jax.random.PRNGKey(0)
    kx, k1, k2 = jax.random.split(key, 3)

    # Input in PyTorch NCHW convention.
    x = jax.random.normal(kx, (N, Cin, H, W), jnp.float32)

    # Deterministic Xavier-uniform conv weights (HWIO layout), no bias.
    bnd1 = (6.0 / (Cin * 9 + Cout * 9)) ** 0.5
    w1 = jax.random.uniform(k1, (3, 3, Cin, Cout), jnp.float32, -bnd1, bnd1)
    bnd2 = (6.0 / (Cout * 9 + Cout * 9)) ** 0.5
    w2 = jax.random.uniform(k2, (3, 3, Cout, Cout), jnp.float32, -bnd2, bnd2)

    # BatchNorm2d init from the module: weight=1, bias=0; inference with
    # running_mean=0, running_var=1, eps=1e-5 -> pure affine scale/shift.
    eps = 1e-5
    bn1_scale = jnp.ones((Cout,), jnp.float32) / jnp.sqrt(1.0 + eps)
    bn1_bias = jnp.zeros((Cout,), jnp.float32)
    bn2_scale = jnp.ones((Cout,), jnp.float32) / jnp.sqrt(1.0 + eps)
    bn2_bias = jnp.zeros((Cout,), jnp.float32)

    out = conv_block_forward(x, w1, w2, bn1_scale, bn1_bias, bn2_scale, bn2_bias)
    out = jax.block_until_ready(out)

    # Pure-JAX f32 reference (kernel uses bf16 MXU inputs -> loose tolerance).
    xh = jnp.transpose(x, (0, 2, 3, 1))

    def conv(a, w):
        return jax.lax.conv_general_dilated(
            a, w, (1, 1), "SAME", dimension_numbers=("NHWC", "HWIO", "NHWC"))

    r = jnp.maximum(conv(xh, w1) * bn1_scale + bn1_bias, 0.0)
    r = jnp.maximum(conv(r, w2) * bn2_scale + bn2_bias, 0.0)
    r = r.reshape(N, H // 2, 2, W // 2, 2, Cout).mean(axis=(2, 4))
    r = jnp.transpose(r, (0, 3, 1, 2))

    assert out.shape == (N, Cout, H // 2, W // 2)
    max_err = float(jnp.abs(out - r).max())
    assert jnp.allclose(out, r, atol=5e-2, rtol=5e-2), max_err
    print("KERNEL_OK")
</pallas_src>

<mosaic_0001>
module attributes {stable_mosaic.version = 11 : i64} {
  func.func @convblock_kernel(%arg0: i32, %arg1: memref<2x16x16x128xbf16, #tpu.memory_space<vmem>>, %arg2: memref<128x128xbf16, #tpu.memory_space<vmem>>, %arg3: memref<3x384x128xbf16, #tpu.memory_space<vmem>>, %arg4: memref<1x128xf32, #tpu.memory_space<vmem>>, %arg5: memref<1x128xf32, #tpu.memory_space<vmem>>, %arg6: memref<1x128xf32, #tpu.memory_space<vmem>>, %arg7: memref<1x128xf32, #tpu.memory_space<vmem>>, %arg8: memref<2x8x8x128xf32, #tpu.memory_space<vmem>>, %arg9: memref<2x18x48x128xbf16, #tpu.memory_space<vmem>>, %arg10: memref<2x16x16x128xf32, #tpu.memory_space<vmem>>, %arg11: memref<2x8x16x128xf32, #tpu.memory_space<vmem>>) attributes {dimension_semantics = [#tpu.dimension_semantics<parallel>], iteration_bounds = array<i64: 2>, scalar_prefetch = 0 : i64, scratch_operands = 3 : i64, tpu.core_type = #tpu.core_type<tc>, window_params = [{transform_indices = @transform_0, window_bounds = array<i64: 2, 16, 16, 128>}, {pipeline_mode = #tpu.pipeline_mode<synchronous>, transform_indices = @transform_1, window_bounds = array<i64: 128, 128>}, {pipeline_mode = #tpu.pipeline_mode<synchronous>, transform_indices = @transform_2, window_bounds = array<i64: 3, 384, 128>}, {pipeline_mode = #tpu.pipeline_mode<synchronous>, transform_indices = @transform_3, window_bounds = array<i64: 1, 128>}, {pipeline_mode = #tpu.pipeline_mode<synchronous>, transform_indices = @transform_4, window_bounds = array<i64: 1, 128>}, {pipeline_mode = #tpu.pipeline_mode<synchronous>, transform_indices = @transform_5, window_bounds = array<i64: 1, 128>}, {pipeline_mode = #tpu.pipeline_mode<synchronous>, transform_indices = @transform_6, window_bounds = array<i64: 1, 128>}, {transform_indices = @transform_7, window_bounds = array<i64: 2, 8, 8, 128>}]} {
    %cst = arith.constant 0.000000e+00 : bf16
    %0 = vector.broadcast %cst : bf16 to vector<2x1x48x128xbf16>
    %c0 = arith.constant 0 : index
    %c0_0 = arith.constant 0 : index
    %c0_1 = arith.constant 0 : index
    %c0_2 = arith.constant 0 : index
    %1 = vector.load %arg9[%c0, %c0_0, %c0_1, %c0_2] : memref<2x18x48x128xbf16, #tpu.memory_space<vmem>>, vector<2x1x48x128xbf16>
    tpu.vector_store %arg9[%c0, %c0_0, %c0_1, %c0_2], %0 {strides = array<i32>} : memref<2x18x48x128xbf16, #tpu.memory_space<vmem>>, vector<2x1x48x128xbf16>,
    %cst_3 = arith.constant 0.000000e+00 : bf16
    %2 = vector.broadcast %cst_3 : bf16 to vector<2x1x48x128xbf16>
    %c0_4 = arith.constant 0 : index
    %c17 = arith.constant 17 : index
    %c0_5 = arith.constant 0 : index
    %c0_6 = arith.constant 0 : index
    %3 = vector.load %arg9[%c0_4, %c17, %c0_5, %c0_6] : memref<2x18x48x128xbf16, #tpu.memory_space<vmem>>, vector<2x1x48x128xbf16>
    tpu.vector_store %arg9[%c0_4, %c17, %c0_5, %c0_6], %2 {strides = array<i32>} : memref<2x18x48x128xbf16, #tpu.memory_space<vmem>>, vector<2x1x48x128xbf16>,
    %cst_7 = arith.constant 0.000000e+00 : bf16
    %4 = vector.broadcast %cst_7 : bf16 to vector<2x16x16x128xbf16>
    %c0_8 = arith.constant 0 : index
    %c1 = arith.constant 1 : index
    %c0_9 = arith.constant 0 : index
    %c0_10 = arith.constant 0 : index
    %5 = vector.load %arg9[%c0_8, %c1, %c0_9, %c0_10] : memref<2x18x48x128xbf16, #tpu.memory_space<vmem>>, vector<2x16x16x128xbf16>
    tpu.vector_store %arg9[%c0_8, %c1, %c0_9, %c0_10], %4 {strides = array<i32>} : memref<2x18x48x128xbf16, #tpu.memory_space<vmem>>, vector<2x16x16x128xbf16>,
    %cst_11 = arith.constant 0.000000e+00 : bf16
    %6 = vector.broadcast %cst_11 : bf16 to vector<2x16x16x128xbf16>
    %c0_12 = arith.constant 0 : index
    %c1_13 = arith.constant 1 : index
    %c32 = arith.constant 32 : index
    %c0_14 = arith.constant 0 : index
    %7 = vector.load %arg9[%c0_12, %c1_13, %c32, %c0_14] : memref<2x18x48x128xbf16, #tpu.memory_space<vmem>>, vector<2x16x16x128xbf16>
    tpu.vector_store %arg9[%c0_12, %c1_13, %c32, %c0_14], %6 {strides = array<i32>} : memref<2x18x48x128xbf16, #tpu.memory_space<vmem>>, vector<2x16x16x128xbf16>,
    %c0_15 = arith.constant 0 : index
    %c0_16 = arith.constant 0 : index
    %c0_17 = arith.constant 0 : index
    %c0_18 = arith.constant 0 : index
    %8 = vector.load %arg1[%c0_15, %c0_16, %c0_17, %c0_18] : memref<2x16x16x128xbf16, #tpu.memory_space<vmem>>, vector<2x16x16x128xbf16>
    %9 = vector.shape_cast %8 : vector<2x16x16x128xbf16> to vector<512x128xbf16>
    %c0_19 = arith.constant 0 : index
    %c0_20 = arith.constant 0 : index
    %10 = vector.load %arg2[%c0_19, %c0_20] : memref<128x128xbf16, #tpu.memory_space<vmem>>, vector<128x128xbf16>
    %cst_21 = arith.constant dense<0.000000e+00> : vector<512x128xf32>
    %11 = tpu.matmul %9, %10, %cst_21 {dimension_numbers = #tpu.dot_dimension_numbers<[1], [0], [0], [1], [0, 0, 1, 1], [], []>} : vector<512x128xbf16>, vector<128x128xbf16>, vector<512x128xf32> -> vector<512x128xf32>
    %c0_22 = arith.constant 0 : index
    %c0_23 = arith.constant 0 : index
    %12 = vector.load %arg4[%c0_22, %c0_23] : memref<1x128xf32, #tpu.memory_space<vmem>>, vector<1x128xf32>
    %13 = vector.broadcast %12 : vector<1x128xf32> to vector<512x128xf32>
    %14 = arith.mulf %11, %13 : vector<512x128xf32>
    %c0_24 = arith.constant 0 : index
    %c0_25 = arith.constant 0 : index
    %15 = vector.load %arg5[%c0_24, %c0_25] : memref<1x128xf32, #tpu.memory_space<vmem>>, vector<1x128xf32>
    %16 = vector.broadcast %15 : vector<1x128xf32> to vector<512x128xf32>
    %17 = arith.addf %14, %16 : vector<512x128xf32>
    %cst_26 = arith.constant 0.000000e+00 : f32
    %18 = vector.broadcast %cst_26 : f32 to vector<512x128xf32>
    %19 = arith.maximumf %17, %18 : vector<512x128xf32>
    %20 = vector.shape_cast %19 : vector<512x128xf32> to vector<2x16x16x128xf32>
    %21 = arith.truncf %20 : vector<2x16x16x128xf32> to vector<2x16x16x128xbf16>
    %c0_27 = arith.constant 0 : index
    %c1_28 = arith.constant 1 : index
    %c16 = arith.constant 16 : index
    %c0_29 = arith.constant 0 : index
    %22 = vector.load %arg9[%c0_27, %c1_28, %c16, %c0_29] : memref<2x18x48x128xbf16, #tpu.memory_space<vmem>>, vector<2x16x16x128xbf16>
    tpu.vector_store %arg9[%c0_27, %c1_28, %c16, %c0_29], %21 {strides = array<i32>} : memref<2x18x48x128xbf16, #tpu.memory_space<vmem>>, vector<2x16x16x128xbf16>,
    %c0_30 = arith.constant 0 : index
    %c0_31 = arith.constant 0 : index
    %c15 = arith.constant 15 : index
    %c0_32 = arith.constant 0 : index
    %23 = vector.load %arg9[%c0_30, %c0_31, %c15, %c0_32] : memref<2x18x48x128xbf16, #tpu.memory_space<vmem>>, vector<2x16x16x128xbf16>
    %c0_33 = arith.constant 0 : index
    %c0_34 = arith.constant 0 : index
    %c16_35 = arith.constant 16 : index
    %c0_36 = arith.constant 0 : index
    %24 = vector.load %arg9[%c0_33, %c0_34, %c16_35, %c0_36] : memref<2x18x48x128xbf16, #tpu.memory_space<vmem>>, vector<2x16x16x128xbf16>
    %c0_37 = arith.constant 0 : index
    %c0_38 = arith.constant 0 : index
    %c17_39 = arith.constant 17 : index
    %c0_40 = arith.constant 0 : index
    %25 = vector.load %arg9[%c0_37, %c0_38, %c17_39, %c0_40] : memref<2x18x48x128xbf16, #tpu.memory_space<vmem>>, vector<2x16x16x128xbf16>
    %26 = tpu.concatenate %23, %24, %25 in 3 : vector<2x16x16x128xbf16>, vector<2x16x16x128xbf16>, vector<2x16x16x128xbf16> -> vector<2x16x16x384xbf16>
    %27 = vector.shape_cast %26 : vector<2x16x16x384xbf16> to vector<512x384xbf16>
    %c0_41 = arith.constant 0 : index
    %c0_42 = arith.constant 0 : index
    %c0_43 = arith.constant 0 : index
    %28 = vector.load %arg3[%c0_41, %c0_42, %c0_43] : memref<3x384x128xbf16, #tpu.memory_space<vmem>>, vector<1x384x128xbf16>
    %29 = vector.shape_cast %28 : vector<1x384x128xbf16> to vector<384x128xbf16>
    %cst_44 = arith.constant dense<0.000000e+00> : vector<512x128xf32>
    %30 = tpu.matmul %27, %29, %cst_44 {dimension_numbers = #tpu.dot_dimension_numbers<[1], [0], [0], [1], [0, 0, 1, 1], [], []>} : vector<512x384xbf16>, vector<384x128xbf16>, vector<512x128xf32> -> vector<512x128xf32>
    %c0_45 = arith.constant 0 : index
    %c1_46 = arith.constant 1 : index
    %c15_47 = arith.constant 15 : index
    %c0_48 = arith.constant 0 : index
    %31 = vector.load %arg9[%c0_45, %c1_46, %c15_47, %c0_48] : memref<2x18x48x128xbf16, #tpu.memory_space<vmem>>, vector<2x16x16x128xbf16>
    %c0_49 = arith.constant 0 : index
    %c1_50 = arith.constant 1 : index
    %c16_51 = arith.constant 16 : index
    %c0_52 = arith.constant 0 : index
    %32 = vector.load %arg9[%c0_49, %c1_50, %c16_51, %c0_52] : memref<2x18x48x128xbf16, #tpu.memory_space<vmem>>, vector<2x16x16x128xbf16>
    %c0_53 = arith.constant 0 : index
    %c1_54 = arith.constant 1 : index
    %c17_55 = arith.constant 17 : index
    %c0_56 = arith.constant 0 : index
    %33 = vector.load %arg9[%c0_53, %c1_54, %c17_55, %c0_56] : memref<2x18x48x128xbf16, #tpu.memory_space<vmem>>, vector<2x16x16x128xbf16>
    %34 = tpu.concatenate %31, %32, %33 in 3 : vector<2x16x16x128xbf16>, vector<2x16x16x128xbf16>, vector<2x16x16x128xbf16> -> vector<2x16x16x384xbf16>
    %35 = vector.shape_cast %34 : vector<2x16x16x384xbf16> to vector<512x384xbf16>
    %c1_57 = arith.constant 1 : index
    %c0_58 = arith.constant 0 : index
    %c0_59 = arith.constant 0 : index
    %36 = vector.load %arg3[%c1_57, %c0_58, %c0_59] : memref<3x384x128xbf16, #tpu.memory_space<vmem>>, vector<1x384x128xbf16>
    %37 = vector.shape_cast %36 : vector<1x384x128xbf16> to vector<384x128xbf16>
    %cst_60 = arith.constant dense<0.000000e+00> : vector<512x128xf32>
    %38 = tpu.matmul %35, %37, %cst_60 {dimension_numbers = #tpu.dot_dimension_numbers<[1], [0], [0], [1], [0, 0, 1, 1], [], []>} : vector<512x384xbf16>, vector<384x128xbf16>, vector<512x128xf32> -> vector<512x128xf32>
    %39 = arith.addf %30, %38 : vector<512x128xf32>
    %c0_61 = arith.constant 0 : index
    %c2 = arith.constant 2 : index
    %c15_62 = arith.constant 15 : index
    %c0_63 = arith.constant 0 : index
    %40 = vector.load %arg9[%c0_61, %c2, %c15_62, %c0_63] : memref<2x18x48x128xbf16, #tpu.memory_space<vmem>>, vector<2x16x16x128xbf16>
    %c0_64 = arith.constant 0 : index
    %c2_65 = arith.constant 2 : index
    %c16_66 = arith.constant 16 : index
    %c0_67 = arith.constant 0 : index
    %41 = vector.load %arg9[%c0_64, %c2_65, %c16_66, %c0_67] : memref<2x18x48x128xbf16, #tpu.memory_space<vmem>>, vector<2x16x16x128xbf16>
    %c0_68 = arith.constant 0 : index
    %c2_69 = arith.constant 2 : index
    %c17_70 = arith.constant 17 : index
    %c0_71 = arith.constant 0 : index
    %42 = vector.load %arg9[%c0_68, %c2_69, %c17_70, %c0_71] : memref<2x18x48x128xbf16, #tpu.memory_space<vmem>>, vector<2x16x16x128xbf16>
    %43 = tpu.concatenate %40, %41, %42 in 3 : vector<2x16x16x128xbf16>, vector<2x16x16x128xbf16>, vector<2x16x16x128xbf16> -> vector<2x16x16x384xbf16>
    %44 = vector.shape_cast %43 : vector<2x16x16x384xbf16> to vector<512x384xbf16>
    %c2_72 = arith.constant 2 : index
    %c0_73 = arith.constant 0 : index
    %c0_74 = arith.constant 0 : index
    %45 = vector.load %arg3[%c2_72, %c0_73, %c0_74] : memref<3x384x128xbf16, #tpu.memory_space<vmem>>, vector<1x384x128xbf16>
    %46 = vector.shape_cast %45 : vector<1x384x128xbf16> to vector<384x128xbf16>
    %cst_75 = arith.constant dense<0.000000e+00> : vector<512x128xf32>
    %47 = tpu.matmul %44, %46, %cst_75 {dimension_numbers = #tpu.dot_dimension_numbers<[1], [0], [0], [1], [0, 0, 1, 1], [], []>} : vector<512x384xbf16>, vector<384x128xbf16>, vector<512x128xf32> -> vector<512x128xf32>
    %48 = arith.addf %39, %47 : vector<512x128xf32>
    %c0_76 = arith.constant 0 : index
    %c0_77 = arith.constant 0 : index
    %49 = vector.load %arg6[%c0_76, %c0_77] : memref<1x128xf32, #tpu.memory_space<vmem>>, vector<1x128xf32>
    %50 = vector.broadcast %49 : vector<1x128xf32> to vector<512x128xf32>
    %51 = arith.mulf %48, %50 : vector<512x128xf32>
    %c0_78 = arith.constant 0 : index
    %c0_79 = arith.constant 0 : index
    %52 = vector.load %arg7[%c0_78, %c0_79] : memref<1x128xf32, #tpu.memory_space<vmem>>, vector<1x128xf32>
    %53 = vector.broadcast %52 : vector<1x128xf32> to vector<512x128xf32>
    %54 = arith.addf %51, %53 : vector<512x128xf32>
    %cst_80 = arith.constant 0.000000e+00 : f32
    %55 = vector.broadcast %cst_80 : f32 to vector<512x128xf32>
    %56 = arith.maximumf %54, %55 : vector<512x128xf32>
    %57 = vector.shape_cast %56 : vector<512x128xf32> to vector<2x16x16x128xf32>
    %c0_81 = arith.constant 0 : index
    %c0_82 = arith.constant 0 : index
    %c0_83 = arith.constant 0 : index
    %c0_84 = arith.constant 0 : index
    %58 = vector.load %arg10[%c0_81, %c0_82, %c0_83, %c0_84] : memref<2x16x16x128xf32, #tpu.memory_space<vmem>>, vector<2x16x16x128xf32>
    tpu.vector_store %arg10[%c0_81, %c0_82, %c0_83, %c0_84], %57 {strides = array<i32>} : memref<2x16x16x128xf32, #tpu.memory_space<vmem>>, vector<2x16x16x128xf32>,
    %c0_85 = arith.constant 0 : index
    %c0_86 = arith.constant 0 : index
    %c0_87 = arith.constant 0 : index
    %c0_88 = arith.constant 0 : index
    %59 = tpu.strided_load %arg10[%c0_85, %c0_86, %c0_87, %c0_88] {strides = array<i32: 1, 2, 1, 1>} : memref<2x16x16x128xf32, #tpu.memory_space<vmem>>, vector<2x8x16x128xf32>
    %c0_89 = arith.constant 0 : index
    %c1_90 = arith.constant 1 : index
    %c0_91 = arith.constant 0 : index
    %c0_92 = arith.constant 0 : index
    %60 = tpu.strided_load %arg10[%c0_89, %c1_90, %c0_91, %c0_92] {strides = array<i32: 1, 2, 1, 1>} : memref<2x16x16x128xf32, #tpu.memory_space<vmem>>, vector<2x8x16x128xf32>
    %61 = arith.addf %59, %60 : vector<2x8x16x128xf32>
    %c0_93 = arith.constant 0 : index
    %c0_94 = arith.constant 0 : index
    %c0_95 = arith.constant 0 : index
    %c0_96 = arith.constant 0 : index
    %62 = vector.load %arg11[%c0_93, %c0_94, %c0_95, %c0_96] : memref<2x8x16x128xf32, #tpu.memory_space<vmem>>, vector<2x8x16x128xf32>
    tpu.vector_store %arg11[%c0_93, %c0_94, %c0_95, %c0_96], %61 {strides = array<i32>} : memref<2x8x16x128xf32, #tpu.memory_space<vmem>>, vector<2x8x16x128xf32>,
    %c0_97 = arith.constant 0 : index
    %c0_98 = arith.constant 0 : index
    %c0_99 = arith.constant 0 : index
    %c0_100 = arith.constant 0 : index
    %63 = tpu.strided_load %arg11[%c0_97, %c0_98, %c0_99, %c0_100] {strides = array<i32: 1, 1, 2, 1>} : memref<2x8x16x128xf32, #tpu.memory_space<vmem>>, vector<2x8x8x128xf32>
    %c0_101 = arith.constant 0 : index
    %c0_102 = arith.constant 0 : index
    %c1_103 = arith.constant 1 : index
    %c0_104 = arith.constant 0 : index
    %64 = tpu.strided_load %arg11[%c0_101, %c0_102, %c1_103, %c0_104] {strides = array<i32: 1, 1, 2, 1>} : memref<2x8x16x128xf32, #tpu.memory_space<vmem>>, vector<2x8x8x128xf32>
    %65 = arith.addf %63, %64 : vector<2x8x8x128xf32>
    %c0_105 = arith.constant 0 : index
    %c0_106 = arith.constant 0 : index
    %c0_107 = arith.constant 0 : index
    %c0_108 = arith.constant 0 : index
    %66 = vector.load %arg8[%c0_105, %c0_106, %c0_107, %c0_108] : memref<2x8x8x128xf32, #tpu.memory_space<vmem>>, vector<2x8x8x128xf32>
    tpu.vector_store %arg8[%c0_105, %c0_106, %c0_107, %c0_108], %65 {strides = array<i32>} : memref<2x8x8x128xf32, #tpu.memory_space<vmem>>, vector<2x8x8x128xf32>,
    return
  }
  func.func @transform_0(%arg0: i32) -> (i32, i32, i32, i32) {
    %c0_i32 = arith.constant 0 : i32
    %c0_i32_0 = arith.constant 0 : i32
    %c0_i32_1 = arith.constant 0 : i32
    %c0_i32_2 = arith.constant 0 : i32
    return %arg0, %c0_i32, %c0_i32_0, %c0_i32_1 : i32, i32, i32, i32
  }
  func.func @transform_1(%arg0: i32) -> (i32, i32) {
    %c0_i32 = arith.constant 0 : i32
    %c0_i32_0 = arith.constant 0 : i32
    %c0_i32_1 = arith.constant 0 : i32
    return %c0_i32, %c0_i32_0 : i32, i32
  }
  func.func @transform_2(%arg0: i32) -> (i32, i32, i32) {
    %c0_i32 = arith.constant 0 : i32
    %c0_i32_0 = arith.constant 0 : i32
    %c0_i32_1 = arith.constant 0 : i32
    %c0_i32_2 = arith.constant 0 : i32
    return %c0_i32, %c0_i32_0, %c0_i32_1 : i32, i32, i32
  }
  func.func @transform_3(%arg0: i32) -> (i32, i32) {
    %c0_i32 = arith.constant 0 : i32
    %c0_i32_0 = arith.constant 0 : i32
    %c0_i32_1 = arith.constant 0 : i32
    return %c0_i32, %c0_i32_0 : i32, i32
  }
  func.func @transform_4(%arg0: i32) -> (i32, i32) {
    %c0_i32 = arith.constant 0 : i32
    %c0_i32_0 = arith.constant 0 : i32
    %c0_i32_1 = arith.constant 0 : i32
    return %c0_i32, %c0_i32_0 : i32, i32
  }
  func.func @transform_5(%arg0: i32) -> (i32, i32) {
    %c0_i32 = arith.constant 0 : i32
    %c0_i32_0 = arith.constant 0 : i32
    %c0_i32_1 = arith.constant 0 : i32
    return %c0_i32, %c0_i32_0 : i32, i32
  }
  func.func @transform_6(%arg0: i32) -> (i32, i32) {
    %c0_i32 = arith.constant 0 : i32
    %c0_i32_0 = arith.constant 0 : i32
    %c0_i32_1 = arith.constant 0 : i32
    return %c0_i32, %c0_i32_0 : i32, i32
  }
  func.func @transform_7(%arg0: i32) -> (i32, i32, i32, i32) {
    %c0_i32 = arith.constant 0 : i32
    %c0_i32_0 = arith.constant 0 : i32
    %c0_i32_1 = arith.constant 0 : i32
    %c0_i32_2 = arith.constant 0 : i32
    return %arg0, %c0_i32, %c0_i32_0, %c0_i32_1 : i32, i32, i32, i32
  }
}

</mosaic_0001>

<bundles_post_ra>
// kernel: tpu_custom_call.1
= control target key start
LH: loop header
LB: loop body
LE: loop exit
PB: predicated region body
PF: predicated region fallthrough
CT: control target
= control target key end

     0   :  { %12 = vsyncpa [#allocation6], 0  ;;  %s13332_s0 = inlined_call_operand.hbm [shape: bf16[4,16,16,128], index: 0, kind: input, shape index: {}]   ;;  %s13333_s1 = inlined_call_operand.hbm [shape: bf16[128,128], index: 1, kind: input, shape index: {}]   ;;  %s13334_s2 = inlined_call_operand.hbm [shape: bf16[3,384,128], index: 2, kind: input, shape index: {}]   ;;  %s13335_s3 = inlined_call_operand.vmem [shape: f32[1,128], index: 3, kind: input, shape index: {}]   ;;  %s13336_s4 = inlined_call_operand.vmem [shape: f32[1,128], index: 4, kind: input, shape index: {}]   ;;  %s13337_s5 = inlined_call_operand.vmem [shape: f32[1,128], index: 5, kind: input, shape index: {}]   ;;  %s13338_s6 = inlined_call_operand.vmem [shape: f32[1,128], index: 6, kind: input, shape index: {}]   ;;  %s13339_s7 = inlined_call_operand.hbm [shape: f32[4,8,8,128], index: 7, kind: output, shape index: {}]  }
   0x1   :  { %14 = vsyncpa [#allocation6 + $0x1], 0 }
   0x2   :  { %15 = vsyncpa [#allocation9], 0 }
   0x3   :  { %16 = vsyncpa [#allocation7], 0 }
   0x4   :  { %18 = vsyncpa [#allocation7 + $0x1], 0  ;;  %s10028_s24 = smov 0   ;;  %s10030_s25 = smov 0  }
   0x5   :  { %s10032_s26 = smov 0   ;;  %s10034_s27 = smov 0  }
   0x6 LB: > { %s10049_s28 = sadd.s32 4294967295, %s9977_s27   ;;  %s8971_s29 = sadd.s32 4294967294, %s9977_s27   ;;  %s9977_s27 = sphi %s10034_s27, %s13890_s27   ;;  %s9973_s26 = sphi %s10032_s26, %s13889_s26   ;;  %s9969_s25 = sphi %s10030_s25, %s13888_s25   ;;  %s9965_s24 = sphi %s10028_s24, %s13887_s24  }
   0x7   : > { %p44_p0 = scmp.ne.s32.totalorder %s9969_s25, %s9965_s24  ;;  %p13340_p1 = scmp.eq.s32.totalorder %s10049_s28, 0 }
   0x8   : > { %p200_p3 = scmp.eq.s32.totalorder %s8971_s29, 1  ;;  %p8972_p5 = scmp.ge.s32.totalorder %s9977_s27, 1 }
   0x9   : > { %p10058_p4 = por %p13340_p1, %p44_p0  ;;  %p207_p7 = scmp.lt.s32.totalorder %s9977_s27, 3 }
   0xa   : > { %p10063_p6 = por %p200_p3, %p44_p0  ;;  %s9979_s10 = smov [#allocation8]  }
   0xb   : > { %s13418_s30 = scalar_select %p10058_p4, 1, 0 }
   0xc   : > { %s13419_s8 = scalar_select %p10063_p6, 1, 0 }
   0xd   : > { %p10068_p8 = pnand %p8972_p5, %p207_p7  ;;  %s219_s11 = sshll.u32 %s9979_s10, 4  ;;  %s10072_s11 = int_to_ptr.vmem [resolvable:$true] %s219_s11 }
   0xe   : > { %s9980_s13 = smov [#allocation10]   ;;  %s9821_s17 = scalar_lea.hbm %s13333_s1, 1024 }
   0xf   : > { %p9603_p9 = pneg %p10068_p8  ;;  %s232_s14 = sshll.u32 %s9980_s13, 4  ;;  %s10083_s14 = int_to_ptr.vmem [resolvable:$true] %s232_s14 }
  0x10   : > { %p9822_p12 = scmp.ne.s32.totalorder %s13333_s1, %s9821_s17  ;;  %p9828_p5 = scmp.lt.u32.totalorder %s9821_s17, %s13333_s1 }
  0x11   : > { %p10079_p11 = pnand %p9603_p9, %p13340_p1 }
  0x13   : > { %p9823_p13 = pneg %p10079_p11 }
  0x15   : > { %p9824_p0 = pnand %p9823_p13, %p9822_p12 }
  0x17   : > { %p9825_p3 = pneg %p9824_p0 }
  0x19   : > { %p9830_p7 = pnand %p9828_p5, %p9825_p3 }
  0x1b   : > { %9833 = shalt.err (!%p9830_p7)
}
  0x1c   : > { %s9834_s22 = scalar_lea.vmem %s10072_s11, 1024  ;;  %p9842_p2 = scmp.lt.s32.totalorder %s10072_s11, %s10072_s11 }
  0x1d   : > { %p9835_p9 = scmp.ne.s32.totalorder %s10072_s11, %s9834_s22  ;;  %p9843_p12 = scmp.lt.s32.totalorder %s9834_s22, %s9834_s22 }
  0x1f   : > { %p9837_p10 = pnand %p9835_p9, %p9823_p13  ;;  %p9844_p0 = por %p9843_p12, %p9842_p2 }
  0x21   : > { %p9838_p1 = pneg %p9837_p10 }
  0x23   : > { %p9845_p6 = pnand %p9844_p0, %p9838_p1 }
  0x25   : > { %9848 = shalt.err (!%p9845_p6)
}
  0x26   : > { %s13341_s23 = smov 64   ;;  %s9982_s29 = smov 4  }
  0x27   : > { %9606 = dma.hbm_to_vmem [thread:$0]  (!%p10079_p11), %s13333_s1, 1024, %s10072_s11, [#allocation9], %s13341_s23, %s13341_s23, %s9982_s29  }
  0x28   : > { %s9849_s17 = scalar_lea.hbm %s13334_s2, 9216 }
  0x29   : > { %p9850_p1 = scmp.ne.s32.totalorder %s13334_s2, %s9849_s17  ;;  %p9856_p10 = scmp.lt.u32.totalorder %s9849_s17, %s13334_s2 }
  0x2b   : > { %p9852_p2 = pnand %p9850_p1, %p9823_p13 }
  0x2d   : > { %p9853_p6 = pneg %p9852_p2 }
  0x2f   : > { %p9858_p3 = pnand %p9856_p10, %p9853_p6 }
  0x31   : > { %9861 = shalt.err (!%p9858_p3)
}
  0x32   : > { %s9862_s11 = scalar_lea.vmem %s10083_s14, 9216  ;;  %p9870_p12 = scmp.lt.s32.totalorder %s10083_s14, %s10083_s14 }
  0x33   : > { %p9863_p5 = scmp.ne.s32.totalorder %s10083_s14, %s9862_s11  ;;  %p9871_p0 = scmp.lt.s32.totalorder %s9862_s11, %s9862_s11 }
  0x35   : > { %p9865_p7 = pnand %p9863_p5, %p9823_p13  ;;  %p9872_p1 = por %p9871_p0, %p9870_p12 }
  0x37   : > { %p9866_p9 = pneg %p9865_p7 }
  0x39   : > { %p9873_p2 = pnand %p9872_p1, %p9866_p9 }
  0x3b   : > { %9876 = shalt.err (!%p9873_p2)
}
  0x3c   : > { %9609 = dma.hbm_to_vmem [thread:$0]  (!%p10079_p11), %s13334_s2, 9216, %s10083_s14, [#allocation9], %s13341_s23, %s13341_s23, %s9982_s29  }
  0x3d   : > { %s10144_s12 = sadd.s32 1, %s9977_s27   ;;  %s31_s13 = sadd.s32 1, %s9973_s26 }
  0x3e   : > { %s28_s15 = ssub.s32 %s9977_s27, %s10144_s12  ;;  %p38_p13 = scmp.ne.s32.totalorder %s9973_s26, %s9969_s25 }
  0x3f   : > { %p29_p6 = scmp.eq.s32.totalorder %s28_s15, 0  ;;  %p39_p10 = scmp.eq.s32.totalorder %s9977_s27, 0 }
  0x40   : > { %p13422_p3 = scmp.eq.s32.totalorder %s10049_s28, 1  ;;  %p9620_p7 = scmp.lt.s32.totalorder %s9977_s27, 2 }
  0x41   : > { %s10160_s17 = scalar_select %p29_p6, %s9973_s26, %s31_s13  }
  0x42   : > { %p10154_p5 = por %p13422_p3, %p38_p13  ;;  %p40_p9 = por %p39_p10, %p38_p13 }
  0x43   : > { %s258_s18 = sand.u32 1, %s9973_s26   ;;  %s9108_s14 = sshll.u32 %s9977_s27, 12 }
  0x44   : > { %s13423_s16 = scalar_select %p10154_p5, 1, 0 }
  0x45   : > { %s8976_s19 = sshll.u32 %s258_s18, 8  ;;  %s10167_s11 = scalar_lea.hbm %s13332_s0, %s9108_s14 }
  0x46   : > { %s262_s22 = scalar_lea.vmem [#allocation5], %s8976_s19  ;;  %p10171_p11 = pnand %p9620_p7, %p40_p9 }
  0x47   : > { %s270_s10 = sshll.u32 %s262_s22, 4  ;;  %s10175_s15 = scalar_lea.sflag [#allocation6], %s258_s18  ;;  %s10169_s10 = int_to_ptr.vmem [resolvable:$true] %s270_s10 }
  0x48   : > { %s9877_s23 = scalar_lea.hbm %s10167_s11, 4096  ;;  %p9879_p0 = pneg %p10171_p11 }
  0x49   : > { %p9878_p12 = scmp.ne.s32.totalorder %s10167_s11, %s9877_s23  ;;  %s9882_s20 = scalar_lea.hbm %s13332_s0, 8192 }
  0x4a   : > { %p9883_p13 = scmp.lt.u32.totalorder %s10167_s11, %s13332_s0  ;;  %p9884_p6 = scmp.lt.u32.totalorder %s9882_s20, %s9877_s23 }
  0x4b   : > { %p9880_p1 = pnand %p9879_p0, %p9878_p12  ;;  %p9886_p3 = scmp.lt.u32.totalorder %s9877_s23, %s10167_s11 }
  0x4c   : > { %p9885_p10 = por %p9884_p6, %p9883_p13 }
  0x4d   : > { %p9881_p2 = pneg %p9880_p1 }
  0x4e   : > { %p9887_p7 = por %p9886_p3, %p9885_p10 }
  0x50   : > { %p9888_p9 = pnand %p9887_p7, %p9881_p2 }
  0x52   : > { %9891 = shalt.err (!%p9888_p9)
}
  0x53   : > { %s9892_s18 = scalar_lea.vmem %s10169_s10, 4096  ;;  %s9983_s19 = smov [#allocation5]  }
  0x54   : > { %p9893_p12 = scmp.ne.s32.totalorder %s10169_s10, %s9892_s18  ;;  %s9897_s14 = sshll.u32 %s9983_s19, 4  ;;  %s9898_s14 = int_to_ptr.vmem [resolvable:$false] %s9897_s14 }
  0x55   : > { %s9899_s21 = scalar_lea.vmem %s9898_s14, 8192  ;;  %p9900_p4 = scmp.lt.s32.totalorder %s10169_s10, %s9898_s14 }
  0x56   : > { %p9895_p1 = pnand %p9893_p12, %p9879_p0  ;;  %p9901_p13 = scmp.lt.s32.totalorder %s9899_s21, %s9892_s18 }
  0x58   : > { %p9896_p5 = pneg %p9895_p1  ;;  %p9902_p6 = por %p9901_p13, %p9900_p4 }
  0x5a   : > { %p9903_p10 = pnand %p9902_p6, %p9896_p5 }
  0x5c   : > { %9906 = shalt.err (!%p9903_p10)
}
  0x5d   : > { %s13425_s23 = smov 64   ;;  %282 = sbr.rel (%p10068_p8) target bundleno = 1393 (0x571), region = 48 }
  0x5e   : > { %9613 = dma.hbm_to_vmem [thread:$0]  (!%p10171_p11), %s10167_s11, 4096, %s10169_s10, %s10175_s15, %s13425_s23, %s13425_s23, %s9982_s29  }
  0x64   : > { %s10209_s20 = sand.u32 1, %s9969_s25   ;;  %p13426_p4 = scmp.ne.s32.totalorder %s13418_s30, 0 }
  0x65   : > { %s8981_s22 = sshll.u32 %s10209_s20, 8  ;;  %s285_s18 = scalar_lea.sflag [#allocation6], %s10209_s20 }
  0x66   : > { %s10213_s19 = scalar_lea.vmem [#allocation5], %s8981_s22 }
  0x67   : > { %9952 = dma.done.wait (%p13426_p4), %s285_s18, 4096  }
  0x68   : > { %9954 = vsyncadd (%p13426_p4), %s285_s18, 4294963200  ;;  %p13427_p5 = scmp.eq.s32.totalorder %s10049_s28, 0 }
  0x6a   : > { %9956 = dma.done.wait (%p13427_p5), [#allocation9], 10240   ;;  %p13428_p8 = pmov %p13427_p5 }
  0x6b   : > { %v9663_v0 = vld [vmem:[#allocation8] sm:$0xff]   ;;  %v9664_v1 = vld [vmem:[#allocation8 + $0x8] sm:$0xff]   ;;  %v9665_v2 = vld [vmem:[#allocation8 + $0x10] sm:$0xff]   ;;  %v9984_v9 = vmov 0   ;;  %vm1671_vm0 = vcmask 1046528   ;;  %s9110_s13 = sshll.u32 %s10049_s28, 11 }
  0x6c   : > { %9958 = vsyncadd (%p13428_p8), [#allocation9], 4294957056  ;;  %9271 = vmatprep.subr.bf16.mxu0 %v9663_v0  ;;  %v9666_v3 = vld [vmem:[#allocation8 + $0x18] sm:$0xff]   ;;  %v9671_v4 = vld [vmem:[%s10213_s19] sm:$0xff]   ;;  %4666 = vmatprep.subr.bf16.mxu1 %v9984_v9  ;;  %330 = vst [vmem:[#allocation2] sm:$0xff] %v9984_v9  ;;  %s13285_s23 = scalar_lea.hbm %s13339_s7, %s9110_s13  ;;  %s8865_s22 = scalar_lea.sflag [#allocation7], %s10209_s20 }
  0x6d   : > { %9272 = vmatpush3.bf16.msra.mxu0 %v9663_v0  ;;  %9287 = vmatprep.mubr.bf16.mxu0 %v9671_v4  ;;  %v9667_v5 = vld [vmem:[#allocation8 + $0x20] sm:$0xff]   ;;  %v9668_v6 = vld [vmem:[#allocation8 + $0x28] sm:$0xff]   ;;  %v9669_v7 = vld [vmem:[#allocation8 + $0x30] sm:$0xff]   ;;  %332 = vst [vmem:[#allocation2 + $0x10] sm:$0xff] %v9984_v9  ;;  %vm1768_vm1 = vsmask.f32 256 }
  0x6e   : > { %9273 = vmatprep.subr.bf16.mxu0 %v9664_v1  ;;  %v10224_v8 = vld [vmem:[#allocation8 + $0x38] sm:$0xff]   ;;  %333 = vst [vmem:[#allocation2 + $0x1b0] sm:$0xff] %v9984_v9  ;;  %335 = vst [vmem:[#allocation2 + $0x1c0] sm:$0xff] %v9984_v9  ;;  %v9672_v10 = vld [vmem:[%s10213_s19 + $0x8] sm:$0xff]   ;;  %p13884_p0 = scmp.ne.s32.totalorder %s13423_s16, 0  ;;  %s9985_s28 = smov [#allocation11]  }
  0x6f   : > { %337 = vst [vmem:[#allocation2 + $0x198] sm:$0xff] %v9984_v9  ;;  %339 = vst [vmem:[#allocation2 + $0x1a8] sm:$0xff] %v9984_v9  ;;  %v9673_v11 = vld [vmem:[%s10213_s19 + $0x10] sm:$0xff]   ;;  %v9674_v12 = vld [vmem:[%s10213_s19 + $0x18] sm:$0xff]  }
  0x70   : > { %340 = vst [vmem:[#allocation2 + $0x348] sm:$0xff] %v9984_v9  ;;  %342 = vst [vmem:[#allocation2 + $0x358] sm:$0xff] %v9984_v9  ;;  %v9675_v13 = vld [vmem:[%s10213_s19 + $0x20] sm:$0xff]   ;;  %v9704_v15 = vld [vmem:[#allocation10 + $0xc8] sm:$0xff]  }
  0x71   : > { %9274 = vmatpush3.bf16.msra.mxu0 %v9664_v1  ;;  %344 = vst [vmem:[#allocation2 + $0x18] sm:$0xff] %v9984_v9  ;;  %345 = vst [vmem:[#allocation2 + $0x30] sm:$0xff] %v9984_v9  ;;  %v9703_v14 = vld [vmem:[#allocation10 + $0xc0] sm:$0xff]   ;;  %v9676_v16 = vld [vmem:[%s10213_s19 + $0x28] sm:$0xff]  }
  0x72   : > { %9275 = vmatprep.subr.bf16.mxu0 %v9665_v2  ;;  %346 = vst [vmem:[#allocation2 + $0x48] sm:$0xff] %v9984_v9  ;;  %347 = vst [vmem:[#allocation2 + $0x60] sm:$0xff] %v9984_v9  ;;  %4667 = vmatpush1.bf16.msra.mxu1 %v9703_v14  ;;  %v9705_v17 = vld [vmem:[#allocation10 + $0xd0] sm:$0xff]   ;;  %v9706_v19 = vld [vmem:[#allocation10 + $0xd8] sm:$0xff]  }
  0x73   : > { %348 = vst [vmem:[#allocation2 + $0x78] sm:$0xff] %v9984_v9  ;;  %349 = vst [vmem:[#allocation2 + $0x90] sm:$0xff] %v9984_v9  ;;  %4668 = vmatprep.subr.bf16.mxu1 %v9984_v9  ;;  %v9677_v18 = vld [vmem:[%s10213_s19 + $0x30] sm:$0xff]   ;;  %v9711_v20 = vld [vmem:[#allocation10 + $0x140] sm:$0xff]  }
  0x74   : > { %350 = vst [vmem:[#allocation2 + $0xa8] sm:$0xff] %v9984_v9  ;;  %351 = vst [vmem:[#allocation2 + $0xc0] sm:$0xff] %v9984_v9  ;;  %v9678_v21 = vld [vmem:[%s10213_s19 + $0x38] sm:$0xff]   ;;  %v9707_v22 = vld [vmem:[#allocation10 + $0xe0] sm:$0xff]  }
  0x75   : > { %9276 = vmatpush3.bf16.msra.mxu0 %v9665_v2  ;;  %352 = vst [vmem:[#allocation2 + $0xd8] sm:$0xff] %v9984_v9  ;;  %353 = vst [vmem:[#allocation2 + $0xf0] sm:$0xff] %v9984_v9  ;;  %v9679_v23 = vld [vmem:[%s10213_s19 + $0x40] sm:$0xff]   ;;  %v9708_v24 = vld [vmem:[#allocation10 + $0xe8] sm:$0xff]  }
  0x76   : > { %9277 = vmatprep.subr.bf16.mxu0 %v9666_v3  ;;  %354 = vst [vmem:[#allocation2 + $0x108] sm:$0xff] %v9984_v9  ;;  %355 = vst [vmem:[#allocation2 + $0x120] sm:$0xff] %v9984_v9  ;;  %4669 = vmatpush1.bf16.msra.mxu1 %v9704_v15  ;;  %v9680_v25 = vld [vmem:[%s10213_s19 + $0x48] sm:$0xff]   ;;  %v9709_v26 = vld [vmem:[#allocation10 + $0xf0] sm:$0xff]  }
  0x77   : > { %356 = vst [vmem:[#allocation2 + $0x138] sm:$0xff] %v9984_v9  ;;  %357 = vst [vmem:[#allocation2 + $0x150] sm:$0xff] %v9984_v9  ;;  %4670 = vmatprep.subr.bf16.mxu1 %v9984_v9  ;;  %v9681_v27 = vld [vmem:[%s10213_s19 + $0x50] sm:$0xff]   ;;  %v9710_v28 = vld [vmem:[#allocation10 + $0xf8] sm:$0xff]  }
  0x78   : > { %358 = vst [vmem:[#allocation2 + $0x168] sm:$0xff] %v9984_v9  ;;  %359 = vst [vmem:[#allocation2 + $0x180] sm:$0xff] %v9984_v9  ;;  %v9682_v29 = vld [vmem:[%s10213_s19 + $0x58] sm:$0xff]   ;;  %v9683_v30 = vld [vmem:[%s10213_s19 + $0x60] sm:$0xff]  }
  0x79   : > { %9278 = vmatpush3.bf16.msra.mxu0 %v9666_v3  ;;  %360 = vst [vmem:[#allocation2 + $0x1c8] sm:$0xff] %v9984_v9  ;;  %361 = vst [vmem:[#allocation2 + $0x1e0] sm:$0xff] %v9984_v9  ;;  %v9684_v31 = vld [vmem:[%s10213_s19 + $0x68] sm:$0xff]   ;;  %v9685_v32 = vld [vmem:[%s10213_s19 + $0x70] sm:$0xff]  }
  0x7a   : > { %9279 = vmatprep.subr.bf16.mxu0 %v9667_v5  ;;  %362 = vst [vmem:[#allocation2 + $0x1f8] sm:$0xff] %v9984_v9  ;;  %363 = vst [vmem:[#allocation2 + $0x210] sm:$0xff] %v9984_v9  ;;  %4671 = vmatpush1.bf16.msra.mxu1 %v9705_v17  ;;  %v9686_v33 = vld [vmem:[%s10213_s19 + $0x78] sm:$0xff]   ;;  %v9687_v34 = vld [vmem:[%s10213_s19 + $0x80] sm:$0xff]  }
  0x7b   : > { %364 = vst [vmem:[#allocation2 + $0x228] sm:$0xff] %v9984_v9  ;;  %365 = vst [vmem:[#allocation2 + $0x240] sm:$0xff] %v9984_v9  ;;  %4672 = vmatprep.subr.bf16.mxu1 %v9984_v9  ;;  %v9688_v35 = vld [vmem:[%s10213_s19 + $0x88] sm:$0xff]   ;;  %v9689_v36 = vld [vmem:[%s10213_s19 + $0x90] sm:$0xff]  }
  0x7c   : > { %366 = vst [vmem:[#allocation2 + $0x258] sm:$0xff] %v9984_v9  ;;  %367 = vst [vmem:[#allocation2 + $0x270] sm:$0xff] %v9984_v9  ;;  %v9690_v37 = vld [vmem:[%s10213_s19 + $0x98] sm:$0xff]   ;;  %v9691_v38 = vld [vmem:[%s10213_s19 + $0xa0] sm:$0xff]  }
  0x7d   : > { %9280 = vmatpush3.bf16.msra.mxu0 %v9667_v5  ;;  %368 = vst [vmem:[#allocation2 + $0x288] sm:$0xff] %v9984_v9  ;;  %369 = vst [vmem:[#allocation2 + $0x2a0] sm:$0xff] %v9984_v9  ;;  %v9692_v39 = vld [vmem:[%s10213_s19 + $0xa8] sm:$0xff]   ;;  %v9712_v40 = vld [vmem:[#allocation10 + $0x100] sm:$0xff]  }
  0x7e   : > { %9281 = vmatprep.subr.bf16.mxu0 %v9668_v6  ;;  %370 = vst [vmem:[#allocation2 + $0x2b8] sm:$0xff] %v9984_v9  ;;  %371 = vst [vmem:[#allocation2 + $0x2d0] sm:$0xff] %v9984_v9  ;;  %4673 = vmatpush1.bf16.msra.mxu1 %v9706_v19  ;;  %v9713_v41 = vld [vmem:[#allocation10 + $0x148] sm:$0xff]   ;;  %v9693_v42 = vld [vmem:[%s10213_s19 + $0xb0] sm:$0xff]  }
  0x7f   : > { %372 = vst [vmem:[#allocation2 + $0x2e8] sm:$0xff] %v9984_v9  ;;  %373 = vst [vmem:[#allocation2 + $0x300] sm:$0xff] %v9984_v9  ;;  %4674 = vmatprep.subr.bf16.mxu1 %v9984_v9  ;;  %v9714_v43 = vld [vmem:[#allocation10 + $0x108] sm:$0xff]   ;;  %v9715_v44 = vld [vmem:[#allocation10 + $0x150] sm:$0xff]  }
  0x80   : > { %374 = vst [vmem:[#allocation2 + $0x318] sm:$0xff] %v9984_v9  ;;  %375 = vst [vmem:[#allocation2 + $0x330] sm:$0xff] %v9984_v9  ;;  %v9694_v45 = vld [vmem:[%s10213_s19 + $0xb8] sm:$0xff]   ;;  %v9716_v46 = vld [vmem:[#allocation10 + $0x110] sm:$0xff]  }
  0x81   : > { %9282 = vmatpush3.bf16.msra.mxu0 %v9668_v6  ;;  %376 = vst [vmem:[#allocation2 + $0x28] sm:$0xff] %v9984_v9  ;;  %377 = vst [vmem:[#allocation2 + $0x40] sm:$0xff] %v9984_v9  ;;  %v9717_v47 = vld [vmem:[#allocation10 + $0x158] sm:$0xff]   ;;  %v9695_v48 = vld [vmem:[%s10213_s19 + $0xc0] sm:$0xff]  }
  0x82   : > { %9283 = vmatprep.subr.bf16.mxu0 %v9669_v7  ;;  %378 = vst [vmem:[#allocation2 + $0x58] sm:$0xff] %v9984_v9  ;;  %379 = vst [vmem:[#allocation2 + $0x70] sm:$0xff] %v9984_v9  ;;  %4675 = vmatpush1.bf16.msra.mxu1 %v9707_v22  ;;  %v9718_v49 = vld [vmem:[#allocation10 + $0x118] sm:$0xff]   ;;  %v9719_v50 = vld [vmem:[#allocation10 + $0x160] sm:$0xff]  }
  0x83   : > { %380 = vst [vmem:[#allocation2 + $0x88] sm:$0xff] %v9984_v9  ;;  %381 = vst [vmem:[#allocation2 + $0xa0] sm:$0xff] %v9984_v9  ;;  %4676 = vmatprep.subr.bf16.mxu1 %v9984_v9  ;;  %v9696_v51 = vld [vmem:[%s10213_s19 + $0xc8] sm:$0xff]   ;;  %v9720_v52 = vld [vmem:[#allocation10 + $0x120] sm:$0xff]  }
  0x84   : > { %382 = vst [vmem:[#allocation2 + $0xb8] sm:$0xff] %v9984_v9  ;;  %383 = vst [vmem:[#allocation2 + $0xd0] sm:$0xff] %v9984_v9  ;;  %v9721_v53 = vld [vmem:[#allocation10 + $0x168] sm:$0xff]   ;;  %v9697_v54 = vld [vmem:[%s10213_s19 + $0xd0] sm:$0xff]  }
  0x85   : > { %9284 = vmatpush3.bf16.msra.mxu0 %v9669_v7  ;;  %384 = vst [vmem:[#allocation2 + $0xe8] sm:$0xff] %v9984_v9  ;;  %385 = vst [vmem:[#allocation2 + $0x100] sm:$0xff] %v9984_v9  ;;  %v9722_v55 = vld [vmem:[#allocation10 + $0x128] sm:$0xff]   ;;  %v9723_v56 = vld [vmem:[#allocation10 + $0x170] sm:$0xff]  }
  0x86   : > { %386 = vst [vmem:[#allocation2 + $0x118] sm:$0xff] %v9984_v9  ;;  %387 = vst [vmem:[#allocation2 + $0x130] sm:$0xff] %v9984_v9  ;;  %9285 = vmatprep.subr.bf16.mxu0 %v10224_v8  ;;  %4677 = vmatpush1.bf16.msra.mxu1 %v9708_v24  ;;  %v9698_v57 = vld [vmem:[%s10213_s19 + $0xd8] sm:$0xff]   ;;  %v9724_v58 = vld [vmem:[#allocation10 + $0x130] sm:$0xff]  }
  0x87   : > { %388 = vst [vmem:[#allocation2 + $0x148] sm:$0xff] %v9984_v9  ;;  %389 = vst [vmem:[#allocation2 + $0x160] sm:$0xff] %v9984_v9  ;;  %4678 = vmatprep.subr.bf16.mxu1 %v9984_v9  ;;  %v9725_v59 = vld [vmem:[#allocation10 + $0x178] sm:$0xff]   ;;  %v9699_v60 = vld [vmem:[%s10213_s19 + $0xe0] sm:$0xff]  }
  0x88   : > { %390 = vst [vmem:[#allocation2 + $0x178] sm:$0xff] %v9984_v9  ;;  %391 = vst [vmem:[#allocation2 + $0x190] sm:$0xff] %v9984_v9  ;;  %v9726_v61 = vld [vmem:[#allocation10 + $0x138] sm:$0xff]   ;;  %v9700_v62 = vld [vmem:[%s10213_s19 + $0xe8] sm:$0xff]  }
  0x89   : > { %392 = vst [vmem:[#allocation2 + $0x1d8] sm:$0xff] %v9984_v9  ;;  %393 = vst [vmem:[#allocation2 + $0x1f0] sm:$0xff] %v9984_v9  ;;  %9286 = vmatpush3.bf16.msra.mxu0 %v10224_v8  ;;  %v9701_v63 = vld [vmem:[%s10213_s19 + $0xf0] sm:$0xff]   ;;  %v9702_v0 = vld [vmem:[%s10213_s19 + $0xf8] sm:$0xff]   ;;  %s8984_s19 = sshll.u32 %s10209_s20, 7 }
  0x8a   : > { %394 = vst [vmem:[#allocation2 + $0x208] sm:$0xff] %v9984_v9  ;;  %395 = vst [vmem:[#allocation2 + $0x220] sm:$0xff] %v9984_v9  ;;  %9351 = vmatprep.subr.bf16.mxu0 %v9711_v20  ;;  %4679 = vmatpush1.bf16.msra.mxu1 %v9709_v26  ;;  %v10348_v1 = vld [vmem:[#allocation10 + $0x80] sm:$0xff]   ;;  %v2905_v2 = vld [vmem:[#allocation2 + $0x18] sm:$0x80]  ;;  %s12876_s30 = scalar_lea.vmem [#allocation11], %s8984_s19 }
  0x8b   : > { %396 = vst [vmem:[#allocation2 + $0x238] sm:$0xff] %v9984_v9  ;;  %397 = vst [vmem:[#allocation2 + $0x250] sm:$0xff] %v9984_v9  ;;  %4680 = vmatprep.subr.bf16.mxu1 %v9984_v9  ;;  %v2907_v3 = vld [vmem:[#allocation2 + $0x30] sm:$0x80]  ;;  %v10351_v4 = vld [vmem:[#allocation2 + $0x40] sm:$0x1] }
  0x8c   : > { %398 = vst [vmem:[#allocation2 + $0x268] sm:$0xff] %v9984_v9  ;;  %399 = vst [vmem:[#allocation2 + $0x280] sm:$0xff] %v9984_v9  ;;  %9288 = vmatmul.mubr.bf16.vlgmr.msra.gmra.mrb[0].mxu0 %v9672_v10  ;;  %v10353_v5 = vld [vmem:[#allocation2 + $0x28] sm:$0x1]  ;;  %v3386_v6 = vshrl.u32 %v2905_v2, 16  ;;  %v3417_v7 = vshrl.u32 %v2907_v3, 16 }
  0x8d   : > { %400 = vst [vmem:[#allocation2 + $0x298] sm:$0xff] %v9984_v9  ;;  %401 = vst [vmem:[#allocation2 + $0x2b0] sm:$0xff] %v9984_v9  ;;  %9291 = vmatprep.mubr.bf16.mxu0 %v9673_v11  ;;  %9352 = vmatpush3.bf16.msra.mxu0 %v9711_v20  ;;  %v2909_v8 = vld [vmem:[#allocation2 + $0x48] sm:$0x80]  ;;  %v10357_v10 = vld [vmem:[#allocation2 + $0x70] sm:$0x1] }
  0x8e   : > { %402 = vst [vmem:[#allocation2 + $0x2c8] sm:$0xff] %v9984_v9  ;;  %403 = vst [vmem:[#allocation2 + $0x2e0] sm:$0xff] %v9984_v9  ;;  %4681 = vmatpush1.bf16.msra.mxu1 %v9710_v28  ;;  %9353 = vmatprep.subr.bf16.mxu0 %v9713_v41  ;;  %v2911_v11 = vld [vmem:[#allocation2 + $0x60] sm:$0x80]  ;;  %v3293_v14 = vrot.slane %v10351_v4, 1  ;;  %v3448_v15 = vshrl.u32 %v2909_v8, 16 }
  0x8f   : > { %404 = vst [vmem:[#allocation2 + $0x2f8] sm:$0xff] %v9984_v9  ;;  %405 = vst [vmem:[#allocation2 + $0x310] sm:$0xff] %v9984_v9  ;;  %4682 = vmatprep.subr.bf16.mxu1 %v9984_v9  ;;  %v10365_v19 = vrot.slane %v3417_v7, 7  ;;  %v2915_v20 = vld [vmem:[#allocation2 + $0x90] sm:$0x80]  ;;  %s8879_s15 = sshll.u32 %s12876_s30, 4  ;;  %s13287_s15 = int_to_ptr.vmem [resolvable:$true] %s8879_s15 }
  0x90   : > { %406 = vst [vmem:[#allocation2 + $0x328] sm:$0xff] %v9984_v9  ;;  %407 = vst [vmem:[#allocation2 + $0x340] sm:$0xff] %v9984_v9  ;;  %v10369_v22 = vld [vmem:[#allocation2 + $0xa0] sm:$0x1]  ;;  %v10376_v26 = vld [vmem:[#allocation2 + $0xb8] sm:$0x1] }
  0x91   : > { %9354 = vmatpush3.bf16.msra.mxu0 %v9713_v41  ;;  %v10380_v28 = vld [vmem:[#allocation2 + $0xe8] sm:$0x1]  ;;  %s9907_s18 = scalar_lea.vmem %s13287_s15, 2048  ;;  %s9911_s19 = sshll.u32 %s9985_s28, 4  ;;  %s9912_s19 = int_to_ptr.vmem [resolvable:$false] %s9911_s19 }
  0x92   : > { %4683 = vmatpush1.bf16.msra.mxu1 %v9712_v40  ;;  %9355 = vmatprep.subr.bf16.mxu0 %v9715_v44  ;;  %p9908_p11 = scmp.ne.s32.totalorder %s13287_s15, %s9907_s18  ;;  %s9913_s9 = scalar_lea.vmem %s9912_s19, 4096 }
  0x93   : > { %4684 = vmatprep.subr.bf16.mxu1 %v9984_v9  ;;  %p9914_p7 = scmp.lt.s32.totalorder %s13287_s15, %s9912_s19  ;;  %p9915_p9 = scmp.lt.s32.totalorder %s9913_s9, %s9907_s18 }
  0x94   : > { %9292 = vmatmul.mubr.bf16.gmra.mrb[4].mxu0 %v9674_v12  ;;  %v2913_v12 = vld [vmem:[#allocation2 + $0x78] sm:$0x80]  ;;  %p9909_p2 = pnand %p9908_p11, %p13884_p0 }
  0x95   : > { %9295 = vmatprep.mubr.bf16.mxu0 %v9675_v13  ;;  %9356 = vmatpush3.bf16.msra.mxu0 %v9715_v44  ;;  %v3290_v13 = vrot.slane %v10353_v5, 1  ;;  %v3510_v24 = vshrl.u32 %v2913_v12, 16  ;;  %v10430_v12 = vld [vmem:[#allocation2 + $0x1f0] sm:$0x1]  ;;  %p9916_p12 = por %p9915_p9, %p9914_p7 }
  0x96   : > { %4685 = vmatpush1.bf16.msra.mxu1 %v9714_v43  ;;  %9357 = vmatprep.subr.bf16.mxu0 %v9717_v47  ;;  %p9910_p3 = pneg %p9909_p2 }
  0x97   : > { %4686 = vmatprep.subr.bf16.mxu1 %v9984_v9  ;;  %v10401_v41 = vrot.slane %v3510_v24, 7 }
  0x98   : > { %p9917_p1 = pnand %p9916_p12, %p9910_p3 }
  0x99   : > { %9358 = vmatpush3.bf16.msra.mxu0 %v9717_v47 }
  0x9a   : > { %4687 = vmatpush1.bf16.msra.mxu1 %v9716_v46  ;;  %9359 = vmatprep.subr.bf16.mxu0 %v9719_v50  ;;  %v10405_v46 = vld [vmem:[#allocation2 + $0x148] sm:$0x1] }
  0x9b   : > { %4688 = vmatprep.subr.bf16.mxu1 %v9984_v9 }
  0x9c   : > { %9296 = vmatmul.mubr.bf16.gmra.mrb[8].mxu0 %v9676_v16  ;;  %v10361_v16 = vrot.slane %v3386_v6, 7 }
  0x9d   : > { %9299 = vmatprep.mubr.bf16.mxu0 %v9677_v18  ;;  %9360 = vmatpush3.bf16.msra.mxu0 %v9719_v50 }
  0x9e   : > { %4689 = vmatpush1.bf16.msra.mxu1 %v9718_v49  ;;  %9361 = vmatprep.subr.bf16.mxu0 %v9721_v53 }
  0x9f   : > { %4690 = vmatprep.subr.bf16.mxu1 %v9984_v9 }
  0xa1   : > { %9362 = vmatpush3.bf16.msra.mxu0 %v9721_v53  ;;  %v10412_v53 = vld [vmem:[#allocation2 + $0x160] sm:$0x1] }
  0xa2   : > { %4691 = vmatpush1.bf16.msra.mxu1 %v9720_v52  ;;  %9363 = vmatprep.subr.bf16.mxu0 %v9723_v56 }
  0xa3   : > { %4692 = vmatprep.subr.bf16.mxu1 %v9984_v9 }
  0xa4   : > { %9300 = vmatmul.mubr.bf16.gmra.mrb[12].mxu0 %v9678_v21  ;;  %v10367_v21 = vld [vmem:[#allocation2 + $0x88] sm:$0x1] }
  0xa5   : > { %9303 = vmatprep.mubr.bf16.mxu0 %v9679_v23  ;;  %9364 = vmatpush3.bf16.msra.mxu0 %v9723_v56  ;;  %v3479_v23 = vshrl.u32 %v2911_v11, 16  ;;  %v10428_v11 = vld [vmem:[#allocation2 + $0x1d8] sm:$0x1] }
  0xa6   : > { %4693 = vmatpush1.bf16.msra.mxu1 %v9722_v55  ;;  %9365 = vmatprep.subr.bf16.mxu0 %v9725_v59 }
  0xa7   : > { %4694 = vmatprep.subr.bf16.mxu1 %v9984_v9  ;;  %v10399_v40 = vrot.slane %v3479_v23, 7 }
  0xa9   : > { %9366 = vmatpush3.bf16.msra.mxu0 %v9725_v59 }
  0xaa   : > { %4695 = vmatpush1.bf16.msra.mxu1 %v9724_v58  ;;  %5388 = vmatprep.subr.bf16.mxu0 %v9984_v9  ;;  %v2923_v58 = vld [vmem:[#allocation2 + $0xf0] sm:$0x80] }
  0xab   : > { %4696 = vmatprep.subr.bf16.mxu1 %v9984_v9  ;;  %v10355_v9 = vld [vmem:[#allocation2 + $0x58] sm:$0x1] }
  0xac   : > { %9304 = vmatmul.mubr.bf16.gmra.mrb[16].mxu0 %v9680_v25  ;;  %v3296_v17 = vrot.slane %v10355_v9, 1  ;;  %v10374_v25 = vld [vmem:[%s13335_s3] ss:$0 sm:$0xff] }
  0xad   : > { %9307 = vmatprep.mubr.bf16.mxu0 %v9681_v27  ;;  %v10378_v27 = vld [vmem:[#allocation2 + $0xd0] sm:$0x1] }
  0xae   : > { %4697 = vmatpush1.bf16.msra.mxu1 %v9726_v61 }
  0xaf   : > { %9431 = vmatprep.subr.bf16.mxu1 %v10348_v1 }
  0xb4   : > { %9308 = vmatmul.mubr.bf16.gmra.mrb[20].mxu0 %v9682_v29  ;;  %v10382_v29 = vrot.slane %v3448_v15, 7 }
  0xb5   : > { %9311 = vmatprep.mubr.bf16.mxu0 %v9683_v30  ;;  %v10384_v30 = vld [vmem:[#allocation2 + $0x100] sm:$0x1] }
  0xbc   : > { %9312 = vmatmul.mubr.bf16.gmra.mrb[24].mxu0 %v9684_v31  ;;  %v3541_v31 = vshrl.u32 %v2915_v20, 16  ;;  %v3665_v20 = vshrl.u32 %v2923_v58, 16 }
  0xbd   : > { %9315 = vmatprep.mubr.bf16.mxu0 %v9685_v32  ;;  %v2917_v32 = vld [vmem:[#allocation2 + $0xa8] sm:$0x80] }
  0xbe   : > { %v3572_v47 = vshrl.u32 %v2917_v32, 16  ;;  %v10410_v52 = vrot.slane %v3541_v31, 7 }
  0xc0   : > { %v10425_v7 = vrot.slane %v3572_v47, 7  ;;  %v10437_v47 = vld [vmem:[#allocation2 + $0x208] sm:$0x1] }
  0xc4   : > { %9316 = vmatmul.mubr.bf16.gmra.mrb[28].mxu0 %v9686_v33  ;;  %v10389_v33 = vld [vmem:[%s13336_s4] ss:$0 sm:$0xff] }
  0xc5   : > { %9319 = vmatprep.mubr.bf16.mxu0 %v9687_v34 }
  0xcc   : > { %9320 = vmatmul.mubr.bf16.gmra.mrb[32].mxu0 %v9688_v35 }
  0xcd   : > { %9323 = vmatprep.mubr.bf16.mxu0 %v9689_v36  ;;  %v10393_v36 = vld [vmem:[#allocation2 + $0x118] sm:$0x1] }
  0xd4   : > { %9324 = vmatmul.mubr.bf16.gmra.mrb[36].mxu0 %v9690_v37  ;;  %v10395_v37 = vld [vmem:[#allocation2 + $0x130] sm:$0x1] }
  0xd5   : > { %9327 = vmatprep.mubr.bf16.mxu0 %v9691_v38 }
  0xdc   : > { %9328 = vmatmul.mubr.bf16.gmra.mrb[40].mxu0 %v9692_v39 }
  0xdd   : > { %9331 = vmatprep.mubr.bf16.mxu0 %v9693_v42  ;;  %v2919_v42 = vld [vmem:[#allocation2 + $0xc0] sm:$0x80] }
  0xde   : > { %v3603_v56 = vshrl.u32 %v2919_v42, 16 }
  0xe0   : > { %v10435_v32 = vrot.slane %v3603_v56, 7 }
  0xe4   : > { %9332 = vmatmul.mubr.bf16.gmra.mrb[44].mxu0 %v9694_v45 }
  0xe5   : > { %9335 = vmatprep.mubr.bf16.mxu0 %v9695_v48 }
  0xec   : > { %9336 = vmatmul.mubr.bf16.gmra.mrb[48].mxu0 %v9696_v51 }
  0xed   : > { %9339 = vmatprep.mubr.bf16.mxu0 %v9697_v54 }
  0xf4   : > { %9340 = vmatmul.mubr.bf16.gmra.mrb[52].mxu0 %v9698_v57  ;;  %v2921_v57 = vld [vmem:[#allocation2 + $0xd8] sm:$0x80] }
  0xf5   : > { %9343 = vmatprep.mubr.bf16.mxu0 %v9699_v60  ;;  %v3634_v15 = vshrl.u32 %v2921_v57, 16 }
  0xf7   : > { %v10446_v56 = vrot.slane %v3634_v15, 7 }
  0xfc   : > { %9344 = vmatmul.mubr.bf16.gmra.mrb[56].mxu0 %v9700_v62 }
  0xfd   : > { %9347 = vmatprep.mubr.bf16.mxu0 %v9701_v63  ;;  %v10418_v63 = vld [vmem:[#allocation2 + $0x178] sm:$0x1] }
 0x104   : > { %9348 = vmatmul.mubr.bf16.gmra.mrb[60].mxu0 %v9702_v0  ;;  %v10420_v0 = vld [vmem:[#allocation2 + $0x190] sm:$0x1] }
 0x15f   : > { %v9289_v43 = vpop.f32.mrb[0].mxu0 }
 0x160   : > { %v1026_v48 = vmul.f32 %v9289_v43, %v10374_v25  ;;  %v762_v49 = vpop.f32.mrb[1].mxu0 }
 0x161   : > { %v1024_v54 = vmul.f32 %v10374_v25, %v762_v49  ;;  %v9290_v55 = vpop.f32.mrb[2].mxu0 }
 0x162   : > { %v1097_v59 = vadd.f32 %v10389_v33, %v1026_v48  ;;  %v1027_v60 = vmul.f32 %v9290_v55, %v10374_v25  ;;  %v765_v61 = vpop.f32.mrb[3].mxu0  ;;  %v10439_v48 = vld [vmem:[#allocation2 + $0x220] sm:$0x1] }
 0x163   : > { %v1095_v2 = vadd.f32 %v10389_v33, %v1024_v54  ;;  %v1025_v3 = vmul.f32 %v10374_v25, %v765_v61 }
 0x164   : > { %v1098_v8 = vadd.f32 %v10389_v33, %v1027_v60  ;;  %v1161_v42 = vmax.f32 %v1097_v59, 0.0  ;;  %v10448_v59 = vrot.slane %v3665_v20, 7 }
 0x165   : > { %v1096_v23 = vadd.f32 %v10389_v33, %v1025_v3  ;;  %v1159_v49 = vmax.f32 %v1095_v2, 0.0 }
 0x166   : > { %v1162_v43 = vmax.f32 %v1098_v8, 0.0 }
 0x167   : > { %v1160_v54 = vmax.f32 %v1096_v23, 0.0  ;;  %v9293_v55 = vpop.f32.mrb[4].mxu0 }
 0x168   : > { %v10443_v60 = vpack.c.bf16 %v1162_v43, %v1161_v42  ;;  %v1030_v61 = vmul.f32 %v9293_v55, %v10374_v25  ;;  %v778_v3 = vpop.f32.mrb[5].mxu0 }
 0x169   : > { %v10450_v8 = vpack.c.bf16 %v1160_v54, %v1159_v49  ;;  %v1028_v31 = vmul.f32 %v10374_v25, %v778_v3  ;;  %v9294_v2 = vpop.f32.mrb[6].mxu0 }
 0x16a   : > { %1256 = vst [vmem:[#allocation2 + $0x38] sm:$0xff] %v10443_v60  ;;  %v1101_v42 = vadd.f32 %v10389_v33, %v1030_v61  ;;  %v1031_v43 = vmul.f32 %v9294_v2, %v10374_v25  ;;  %v781_v55 = vpop.f32.mrb[7].mxu0  ;;  %v3292_v15 = vrot.slane %v10443_v60, 1  ;;  %v3009_v20 = vshll.u32 %v10443_v60, 16 }
 0x16b   : > { %1255 = vst [vmem:[#allocation2 + $0x20] sm:$0xff] %v10450_v8  ;;  %v1099_v49 = vadd.f32 %v10389_v33, %v1028_v31  ;;  %v1029_v54 = vmul.f32 %v10374_v25, %v781_v55  ;;  %v3289_v3 = vrot.slane %v10450_v8, 1  ;;  %v3002_v57 = vshll.u32 %v10450_v8, 16 }
 0x16c   : > { %v1165_v23 = vmax.f32 %v1101_v42, 0.0  ;;  %v1102_v61 = vadd.f32 %v10389_v33, %v1031_v43  ;;  %v3294_v2 = vsel %vm1671_vm0, %v3292_v15, %v3293_v14  ;;  %v3436_v58 = vshrl.u32 %v3292_v15, 16 }
 0x16d   : > { %v1163_v24 = vmax.f32 %v1099_v49, 0.0  ;;  %v1100_v6 = vadd.f32 %v10389_v33, %v1029_v54  ;;  %v3291_v31 = vsel %vm1671_vm0, %v3289_v3, %v3290_v13  ;;  %v3405_v55 = vshrl.u32 %v3289_v3, 16 }
 0x16e   : > { %v1166_v62 = vmax.f32 %v1102_v61, 0.0  ;;  %v3409_v51 = vshrl.u32 %v3291_v31, 16  ;;  %v3412_v50 = vshll.u32 %v3291_v31, 16  ;;  %v3438_v45 = vrot.slane %v3436_v58, 7 }
 0x16f   : > { %v1164_v42 = vmax.f32 %v1100_v6, 0.0  ;;  %v9297_v44 = vpop.f32.mrb[8].mxu0  ;;  %v3407_v43 = vrot.slane %v3405_v55, 7  ;;  %v3440_v39 = vshrl.u32 %v3294_v2, 16  ;;  %v3443_v4 = vshll.u32 %v3294_v2, 16 }
 0x170   : > { %v10473_v38 = vpack.c.bf16 %v1166_v62, %v1165_v23  ;;  %v1034_v14 = vmul.f32 %v9297_v44, %v10374_v25  ;;  %v794_v15 = vpop.f32.mrb[9].mxu0  ;;  %v3411_v49 = vrot.slane %v3409_v51, 7  ;;  %v3004_v5 = vrot.slane %v3002_v57, 1 }
 0x171   : > { %v10478_v13 = vpack.c.bf16 %v1164_v42, %v1163_v24  ;;  %v1032_v54 = vmul.f32 %v10374_v25, %v794_v15  ;;  %v9298_v3 = vpop.f32.mrb[10].mxu0  ;;  %v3442_v58 = vrot.slane %v3440_v39, 7  ;;  %v3005_v6 = vshrl.u32 %v10450_v8, 16  ;;  %v9729_v39 = vld [vmem:[#allocation10] sm:$0xff]  }
 0x172   : > { %1258 = vst [vmem:[#allocation2 + $0x68] sm:$0xff] %v10473_v38  ;;  %v1105_v62 = vadd.f32 %v10389_v33, %v1034_v14  ;;  %v1035_v23 = vmul.f32 %v9298_v3, %v10374_v25  ;;  %v797_v44 = vpop.f32.mrb[11].mxu0  ;;  %v3414_v61 = vor.u32 %v3412_v50, %v3411_v49  ;;  %v3393_v51 = vshrl.u32 %v3004_v5, 16 }
 0x173   : > { %1257 = vst [vmem:[#allocation2 + $0x50] sm:$0xff] %v10478_v13  ;;  %v1103_v24 = vadd.f32 %v10389_v33, %v1032_v54  ;;  %v1033_v2 = vmul.f32 %v10374_v25, %v797_v44  ;;  %v3445_v31 = vor.u32 %v3443_v4, %v3442_v58  ;;  %v3007_v55 = vor.u32 %v3005_v6, %v3004_v5 }
 0x174   : > { %v1169_v42 = vmax.f32 %v1105_v62, 0.0  ;;  %v1106_v15 = vadd.f32 %v10389_v33, %v1035_v23  ;;  %v3415_v35 = vsel %vm1768_vm1, %v3407_v43, %v3414_v61  ;;  %v3395_v14 = vrot.slane %v3393_v51, 7  ;;  %v9731_v61 = vld [vmem:[#allocation10 + $0x8] sm:$0xff]  }
 0x175   : > { %v1167_v34 = vmax.f32 %v1103_v24, 0.0  ;;  %v1104_v3 = vadd.f32 %v10389_v33, %v1033_v2  ;;  %9367 = vmatprep.mubr.bf16.mxu0 %v3415_v35  ;;  %v3446_v50 = vsel %vm1768_vm1, %v3438_v45, %v3445_v31  ;;  %v3397_v49 = vshrl.u32 %v3007_v55, 16  ;;  %v10501_v2 = vld [vmem:[#allocation2] sm:$0xff] }
 0x176   : > { %v1170_v18 = vmax.f32 %v1106_v15, 0.0  ;;  %9368 = vmatmul.mubr.bf16.vlgmr.msra.gmra.mrb[64].mxu0 %v3446_v50  ;;  %v3400_v54 = vshll.u32 %v3007_v55, 16  ;;  %v3389_v44 = vrot.slane %v3005_v6, 7  ;;  %v3011_v4 = vrot.slane %v3009_v20, 1 }
 0x177   : > { %v1168_v5 = vmax.f32 %v1104_v3, 0.0  ;;  %v9301_v58 = vpop.f32.mrb[12].mxu0  ;;  %v3399_v62 = vrot.slane %v3397_v49, 7  ;;  %v3012_v43 = vshrl.u32 %v10443_v60, 16  ;;  %v3295_v23 = vrot.slane %v10478_v13, 1  ;;  %5389 = vmatpush1.bf16.msra.mxu0 %v9729_v39 }
 0x178   : > { %v10496_v35 = vpack.c.bf16 %v1170_v18, %v1169_v42  ;;  %v1038_v45 = vmul.f32 %v9301_v58, %v10374_v25  ;;  %v810_v51 = vpop.f32.mrb[13].mxu0  ;;  %v3390_v6 = vor.u32 %v3389_v44, %v3002_v57  ;;  %v3424_v24 = vshrl.u32 %v3011_v4, 16  ;;  %5390 = vmatprep.subr.bf16.mxu0 %v10501_v2 }
 0x179   : > { %v10504_v31 = vpack.c.bf16 %v1168_v5, %v1167_v34  ;;  %v1036_v55 = vmul.f32 %v10374_v25, %v810_v51  ;;  %v9302_v15 = vpop.f32.mrb[14].mxu0  ;;  %v3402_v39 = vor.u32 %v3400_v54, %v3399_v62  ;;  %v3014_v3 = vor.u32 %v3012_v43, %v3011_v4  ;;  %v9728_v4 = vld [vmem:[#allocation10 + $0x88] sm:$0xff]   ;;  %v9732_v5 = vld [vmem:[#allocation10 + $0x10] sm:$0xff]  }
 0x17a   : > { %1260 = vst [vmem:[#allocation2 + $0x98] sm:$0xff] %v10496_v35  ;;  %v1109_v18 = vadd.f32 %v10389_v33, %v1038_v45  ;;  %v1039_v42 = vmul.f32 %v9302_v15, %v10374_v25  ;;  %v813_v8 = vpop.f32.mrb[15].mxu0  ;;  %v3391_v57 = vsel %vm1768_vm1, %v10361_v16, %v3390_v6  ;;  %v3426_v50 = vrot.slane %v3424_v24, 7 }
 0x17b   : > { %1259 = vst [vmem:[#allocation2 + $0x80] sm:$0xff] %v10504_v31  ;;  %v1107_v34 = vadd.f32 %v10389_v33, %v1036_v55  ;;  %v1037_v49 = vmul.f32 %v10374_v25, %v813_v8  ;;  %v3403_v54 = vsel %vm1768_vm1, %v3395_v14, %v3402_v39  ;;  %v3428_v44 = vshrl.u32 %v3014_v3, 16  ;;  %5391 = vmatpush1.bf16.msra.mxu0 %v9731_v61  ;;  %v9730_v8 = vld [vmem:[#allocation10 + $0x90] sm:$0xff]  }
 0x17c   : > { %v1173_v58 = vmax.f32 %v1109_v18, 0.0  ;;  %v1110_v62 = vadd.f32 %v10389_v33, %v1039_v42  ;;  %4698 = vmatprep.mubr.bf16.mxu1 %v3403_v54  ;;  %v3431_v45 = vshll.u32 %v3014_v3, 16  ;;  %v3297_v16 = vsel %vm1671_vm0, %v3295_v23, %v3296_v17  ;;  %5392 = vmatprep.subr.bf16.mxu0 %v10501_v2 }
 0x17d   : > { %v1171_v51 = vmax.f32 %v1107_v34, 0.0  ;;  %v1108_v6 = vadd.f32 %v10389_v33, %v1037_v49  ;;  %4699 = vmatmul.mubr.bf16.vlgmr.msra.gmra.mrb[0].mxu1 %v3391_v57  ;;  %v3430_v14 = vrot.slane %v3428_v44, 7  ;;  %v3467_v24 = vshrl.u32 %v3295_v23, 16  ;;  %v9733_v34 = vld [vmem:[#allocation10 + $0x18] sm:$0xff]  }
 0x17e   : > { %v1174_v55 = vmax.f32 %v1110_v62, 0.0  ;;  %9432 = vmatpush3.bf16.msra.mxu1 %v10348_v1  ;;  %v3471_v61 = vshrl.u32 %v3297_v16, 16  ;;  %v3474_v15 = vshll.u32 %v3297_v16, 16  ;;  %v3298_v39 = vrot.slane %v10473_v38, 1 }
 0x17f   : > { %v1172_v3 = vmax.f32 %v1108_v6, 0.0  ;;  %v9305_v18 = vpop.f32.mrb[16].mxu0  ;;  %v3433_v9 = vor.u32 %v3431_v45, %v3430_v14  ;;  %v3469_v42 = vrot.slane %v3467_v24, 7  ;;  %v3420_v17 = vrot.slane %v3012_v43, 7  ;;  %9433 = vmatprep.subr.bf16.mxu1 %v9728_v4  ;;  %5393 = vmatpush1.bf16.msra.mxu0 %v9732_v5 }
 0x180   : > { %v10524_v49 = vpack.c.bf16 %v1174_v55, %v1173_v58  ;;  %v1042_v23 = vmul.f32 %v9305_v18, %v10374_v25  ;;  %v826_v57 = vpop.f32.mrb[17].mxu0  ;;  %v3473_v54 = vrot.slane %v3471_v61, 7  ;;  %v13429_v1 = vrot.slane %v10357_v10, 1  ;;  %5394 = vmatprep.subr.bf16.mxu0 %v10501_v2 }
 0x181   : > { %v10531_v62 = vpack.c.bf16 %v1172_v3, %v1171_v51  ;;  %v1040_v43 = vmul.f32 %v10374_v25, %v826_v57  ;;  %v9306_v45 = vpop.f32.mrb[18].mxu0  ;;  %v3434_v5 = vsel %vm1768_vm1, %v3426_v50, %v3433_v9  ;;  %v3498_v16 = vshrl.u32 %v3298_v39, 16 }
 0x182   : > { %v3300_v44 = vsel %vm1671_vm0, %v3298_v39, %v13429_v1  ;;  %1262 = vst [vmem:[#allocation2 + $0xc8] sm:$0xff] %v10524_v49  ;;  %v1113_v58 = vadd.f32 %v10389_v33, %v1042_v23  ;;  %v1043_v6 = vmul.f32 %v9306_v45, %v10374_v25  ;;  %v829_v14 = vpop.f32.mrb[19].mxu0  ;;  %4706 = vmatprep.mubr.bf16.mxu1 %v3434_v5  ;;  %v9734_v39 = vld [vmem:[#allocation10 + $0x20] sm:$0xff]   ;;  %v3304_v60 = vrot.slane %v10496_v35, 1 }
 0x183   : > { %v3476_v10 = vor.u32 %v3474_v15, %v3473_v54  ;;  %v3502_v24 = vshrl.u32 %v3300_v44, 16  ;;  %9434 = vmatpush3.bf16.msra.mxu1 %v9728_v4  ;;  %1261 = vst [vmem:[#allocation2 + $0xb0] sm:$0xff] %v10531_v62  ;;  %v1111_v51 = vadd.f32 %v10389_v33, %v1040_v43  ;;  %v1041_v55 = vmul.f32 %v10374_v25, %v829_v14 }
 0x184   : > { %v3500_v61 = vrot.slane %v3498_v16, 7  ;;  %v3505_v50 = vshll.u32 %v3300_v44, 16  ;;  %9435 = vmatprep.subr.bf16.mxu1 %v9730_v8  ;;  %5395 = vmatpush1.bf16.msra.mxu0 %v9733_v34  ;;  %v1177_v3 = vmax.f32 %v1113_v58, 0.0  ;;  %v1114_v18 = vadd.f32 %v10389_v33, %v1043_v6 }
 0x185   : > { %v3477_v9 = vsel %vm1768_vm1, %v3469_v42, %v3476_v10  ;;  %v3504_v23 = vrot.slane %v3502_v24, 7  ;;  %5396 = vmatprep.subr.bf16.mxu0 %v10501_v2  ;;  %v1175_v4 = vmax.f32 %v1111_v51, 0.0  ;;  %v1112_v15 = vadd.f32 %v10389_v33, %v1041_v55 }
 0x186   : > { %9371 = vmatprep.mubr.bf16.mxu0 %v3477_v9  ;;  %v3421_v57 = vor.u32 %v3420_v17, %v3009_v20  ;;  %v3016_v54 = vshll.u32 %v10478_v13, 16  ;;  %v1178_v1 = vmax.f32 %v1114_v18, 0.0  ;;  %v3019_v44 = vshrl.u32 %v10478_v13, 16  ;;  %v9735_v20 = vld [vmem:[#allocation10 + $0x28] sm:$0xff]  }
 0x187   : > { %v3507_v34 = vor.u32 %v3505_v50, %v3504_v23  ;;  %v3301_v43 = vrot.slane %v10504_v31, 1  ;;  %9436 = vmatpush3.bf16.msra.mxu1 %v9730_v8  ;;  %v1176_v42 = vmax.f32 %v1112_v15, 0.0  ;;  %v9309_v45 = vpop.f32.mrb[20].mxu0  ;;  %v13430_v8 = vrot.slane %v10367_v21, 1 }
 0x188   : > { %v3422_v5 = vsel %vm1768_vm1, %v10365_v19, %v3421_v57  ;;  %v3018_v16 = vrot.slane %v3016_v54, 1  ;;  %5397 = vmatpush1.bf16.msra.mxu0 %v9734_v39  ;;  %v10555_v17 = vpack.c.bf16 %v1178_v1, %v1177_v3  ;;  %v1046_v6 = vmul.f32 %v9309_v45, %v10374_v25  ;;  %v842_v14 = vpop.f32.mrb[21].mxu0  ;;  %v9736_v57 = vld [vmem:[#allocation10 + $0x30] sm:$0xff]  }
 0x189   : > { %v3508_v58 = vsel %vm1768_vm1, %v3500_v61, %v3507_v34  ;;  %4707 = vmatmul.mubr.bf16.gmra.mrb[4].mxu1 %v3422_v5  ;;  %v3303_v10 = vsel %vm1671_vm0, %v3301_v43, %v13430_v8  ;;  %v10562_v19 = vpack.c.bf16 %v1176_v42, %v1175_v4  ;;  %v1044_v24 = vmul.f32 %v10374_v25, %v842_v14  ;;  %v9310_v51 = vpop.f32.mrb[22].mxu0 }
 0x18a   : > { %9372 = vmatmul.mubr.bf16.gmra.mrb[68].mxu0 %v3508_v58  ;;  %v3021_v55 = vor.u32 %v3019_v44, %v3018_v16  ;;  %v3455_v50 = vshrl.u32 %v3018_v16, 16  ;;  %5398 = vmatprep.subr.bf16.mxu0 %v10501_v2  ;;  %1264 = vst [vmem:[#allocation2 + $0xf8] sm:$0xff] %v10555_v17  ;;  %v1117_v61 = vadd.f32 %v10389_v33, %v1046_v6  ;;  %v845_v39 = vpop.f32.mrb[23].mxu0  ;;  %v3529_v3 = vshrl.u32 %v3301_v43, 16  ;;  %v9739_v6 = vld [vmem:[#allocation10 + $0x98] sm:$0xff]  }
 0x18b   : > { %v1047_v21 = vmul.f32 %v9310_v51, %v10374_v25  ;;  %v3533_v18 = vshrl.u32 %v3303_v10, 16  ;;  %1263 = vst [vmem:[#allocation2 + $0xe0] sm:$0xff] %v10562_v19  ;;  %v1115_v9 = vadd.f32 %v10389_v33, %v1044_v24  ;;  %v1045_v23 = vmul.f32 %v10374_v25, %v845_v39  ;;  %9437 = vmatprep.subr.bf16.mxu1 %v9739_v6 }
 0x18c   : > { %v3457_v4 = vrot.slane %v3455_v50, 7  ;;  %v3459_v15 = vshrl.u32 %v3021_v55, 16  ;;  %5399 = vmatpush1.bf16.msra.mxu0 %v9735_v20  ;;  %v1181_v1 = vmax.f32 %v1117_v61, 0.0  ;;  %v3462_v42 = vshll.u32 %v3021_v55, 16  ;;  %9438 = vmatpush3.bf16.msra.mxu1 %v9739_v6 }
 0x18d   : > { %v1118_v34 = vadd.f32 %v10389_v33, %v1047_v21  ;;  %v3531_v45 = vrot.slane %v3529_v3, 7  ;;  %5400 = vmatprep.subr.bf16.mxu0 %v10501_v2  ;;  %v1179_v5 = vmax.f32 %v1115_v9, 0.0  ;;  %v1116_v43 = vadd.f32 %v10389_v33, %v1045_v23  ;;  %v9737_v3 = vld [vmem:[#allocation10 + $0x38] sm:$0xff]  }
 0x18e   : > { %v3461_v16 = vrot.slane %v3459_v15, 7  ;;  %v3535_v58 = vrot.slane %v3533_v18, 7  ;;  %v3536_v8 = vshll.u32 %v3303_v10, 16  ;;  %v13431_v24 = vrot.slane %v10369_v22, 1 }
 0x18f   : > { %v1182_v14 = vmax.f32 %v1118_v34, 0.0  ;;  %v3560_v51 = vshrl.u32 %v3304_v60, 16  ;;  %v1180_v50 = vmax.f32 %v1116_v43, 0.0  ;;  %v9313_v39 = vpop.f32.mrb[24].mxu0  ;;  %v3310_v13 = vrot.slane %v10524_v49, 1 }
 0x190   : > { %v3306_v20 = vsel %vm1671_vm0, %v3304_v60, %v13431_v24  ;;  %v3464_v61 = vor.u32 %v3462_v42, %v3461_v16  ;;  %5401 = vmatpush1.bf16.msra.mxu0 %v9736_v57  ;;  %v3538_v23 = vor.u32 %v3536_v8, %v3535_v58  ;;  %v1050_v15 = vmul.f32 %v9313_v39, %v10374_v25  ;;  %v858_v10 = vpop.f32.mrb[25].mxu0 }
 0x191   : > { %v3564_v21 = vshrl.u32 %v3306_v20, 16  ;;  %v3567_v55 = vshll.u32 %v3306_v20, 16  ;;  %v10580_v9 = vpack.c.bf16 %v1182_v14, %v1181_v1  ;;  %v3562_v18 = vrot.slane %v3560_v51, 7  ;;  %5402 = vmatprep.subr.bf16.mxu0 %v10501_v2  ;;  %v9314_v57 = vpop.f32.mrb[26].mxu0 }
 0x192   : > { %v10584_v22 = vpack.c.bf16 %v1180_v50, %v1179_v5  ;;  %v3465_v60 = vsel %vm1768_vm1, %v3457_v4, %v3464_v61  ;;  %v1048_v42 = vmul.f32 %v10374_v25, %v858_v10  ;;  %v3539_v1 = vsel %vm1768_vm1, %v3531_v45, %v3538_v23  ;;  %v861_v5 = vpop.f32.mrb[27].mxu0  ;;  %v9738_v45 = vld [vmem:[#allocation10 + $0x40] sm:$0xff]  }
 0x193   : > { %v3566_v34 = vrot.slane %v3564_v21, 7  ;;  %1266 = vst [vmem:[#allocation2 + $0x128] sm:$0xff] %v10580_v9  ;;  %4714 = vmatprep.mubr.bf16.mxu1 %v3465_v60  ;;  %v1121_v43 = vadd.f32 %v10389_v33, %v1050_v15  ;;  %v1051_v16 = vmul.f32 %v9314_v57, %v10374_v25  ;;  %v3451_v58 = vrot.slane %v3019_v44, 7  ;;  %9375 = vmatprep.mubr.bf16.mxu0 %v3539_v1 }
 0x194   : > { %1265 = vst [vmem:[#allocation2 + $0x110] sm:$0xff] %v10584_v22  ;;  %v1119_v6 = vadd.f32 %v10389_v33, %v1048_v42  ;;  %v1049_v14 = vmul.f32 %v10374_v25, %v861_v5  ;;  %v3023_v8 = vshll.u32 %v10473_v38, 16  ;;  %5403 = vmatpush1.bf16.msra.mxu0 %v9737_v3  ;;  %v3026_v44 = vshrl.u32 %v10473_v38, 16 }
 0x195   : > { %v3569_v4 = vor.u32 %v3567_v55, %v3566_v34  ;;  %v1185_v24 = vmax.f32 %v1121_v43, 0.0  ;;  %v1122_v20 = vadd.f32 %v10389_v33, %v1051_v16  ;;  %v3452_v51 = vor.u32 %v3451_v58, %v3016_v54  ;;  %5404 = vmatprep.subr.bf16.mxu0 %v10501_v2 }
 0x196   : > { %v1183_v61 = vmax.f32 %v1119_v6, 0.0  ;;  %v1120_v21 = vadd.f32 %v10389_v33, %v1049_v14  ;;  %v3025_v55 = vrot.slane %v3023_v8, 1  ;;  %v3307_v23 = vrot.slane %v10531_v62, 1 }
 0x197   : > { %v3570_v50 = vsel %vm1768_vm1, %v3562_v18, %v3569_v4  ;;  %v1186_v39 = vmax.f32 %v1122_v20, 0.0  ;;  %v3453_v3 = vsel %vm1768_vm1, %v10382_v29, %v3452_v51  ;;  %v9317_v10 = vpop.f32.mrb[28].mxu0  ;;  %v3482_v60 = vrot.slane %v3026_v44, 7  ;;  %v9740_v18 = vld [vmem:[#allocation10 + $0x48] sm:$0xff]  }
 0x198   : > { %9376 = vmatmul.mubr.bf16.gmra.mrb[72].mxu0 %v3570_v50  ;;  %4715 = vmatmul.mubr.bf16.gmra.mrb[8].mxu1 %v3453_v3  ;;  %v1184_v54 = vmax.f32 %v1120_v21, 0.0  ;;  %v3028_v38 = vor.u32 %v3026_v44, %v3025_v55  ;;  %v3486_v15 = vshrl.u32 %v3025_v55, 16  ;;  %v13432_v42 = vrot.slane %v10376_v26, 1  ;;  %v874_v16 = vpop.f32.mrb[29].mxu0 }
 0x199   : > { %5405 = vmatpush1.bf16.msra.mxu0 %v9738_v45  ;;  %v10609_v34 = vpack.c.bf16 %v1186_v39, %v1185_v24  ;;  %v3591_v1 = vshrl.u32 %v3307_v23, 16  ;;  %v13433_v29 = vrot.slane %v10378_v27, 1  ;;  %v9318_v14 = vpop.f32.mrb[30].mxu0  ;;  %v3622_v20 = vshrl.u32 %v3310_v13, 16 }
 0x19a   : > { %v3309_v57 = vsel %vm1671_vm0, %v3307_v23, %v13432_v42  ;;  %5406 = vmatprep.subr.bf16.mxu0 %v10501_v2  ;;  %v10618_v58 = vpack.c.bf16 %v1184_v54, %v1183_v61  ;;  %v3488_v5 = vrot.slane %v3486_v15, 7  ;;  %v3490_v4 = vshrl.u32 %v3028_v38, 16  ;;  %v877_v51 = vpop.f32.mrb[31].mxu0  ;;  %v9741_v61 = vld [vmem:[#allocation10 + $0x50] sm:$0xff]  }
 0x19b   : > { %v3312_v43 = vsel %vm1671_vm0, %v3310_v13, %v13433_v29  ;;  %v3493_v6 = vshll.u32 %v3028_v38, 16  ;;  %1268 = vst [vmem:[#allocation2 + $0x158] sm:$0xff] %v10609_v34  ;;  %v3593_v45 = vrot.slane %v3591_v1, 7  ;;  %v3595_v26 = vshrl.u32 %v3309_v57, 16 }
 0x19c   : > { %v3598_v24 = vshll.u32 %v3309_v57, 16  ;;  %1267 = vst [vmem:[#allocation2 + $0x140] sm:$0xff] %v10618_v58  ;;  %v3492_v27 = vrot.slane %v3490_v4, 7  ;;  %v3626_v44 = vshrl.u32 %v3312_v43, 16  ;;  %v3629_v50 = vshll.u32 %v3312_v43, 16 }
 0x19d   : > { %v1054_v21 = vmul.f32 %v9317_v10, %v10374_v25  ;;  %5407 = vmatpush1.bf16.msra.mxu0 %v9740_v18  ;;  %v3597_v55 = vrot.slane %v3595_v26, 7  ;;  %v3624_v39 = vrot.slane %v3622_v20, 7  ;;  %v1052_v3 = vmul.f32 %v10374_v25, %v874_v16 }
 0x19e   : > { %v1055_v23 = vmul.f32 %v9318_v14, %v10374_v25  ;;  %5408 = vmatprep.subr.bf16.mxu0 %v10501_v2  ;;  %v3495_v54 = vor.u32 %v3493_v6, %v3492_v27  ;;  %v3628_v13 = vrot.slane %v3626_v44, 7  ;;  %v3483_v15 = vor.u32 %v3482_v60, %v3023_v8  ;;  %v9742_v6 = vld [vmem:[#allocation10 + $0x58] sm:$0xff]  }
 0x19f   : > { %v1125_v38 = vadd.f32 %v10389_v33, %v1054_v21  ;;  %v3600_v42 = vor.u32 %v3598_v24, %v3597_v55  ;;  %v1123_v57 = vadd.f32 %v10389_v33, %v1052_v3  ;;  %v1053_v18 = vmul.f32 %v10374_v25, %v877_v51  ;;  %v9321_v4 = vpop.f32.mrb[32].mxu0 }
 0x1a0   : > { %v1126_v10 = vadd.f32 %v10389_v33, %v1055_v23  ;;  %v3496_v1 = vsel %vm1768_vm1, %v3488_v5, %v3495_v54  ;;  %v3631_v29 = vor.u32 %v3629_v50, %v3628_v13  ;;  %v3484_v16 = vsel %vm1768_vm1, %v10399_v40, %v3483_v15  ;;  %v890_v24 = vpop.f32.mrb[33].mxu0  ;;  %v9743_v54 = vld [vmem:[#allocation10 + $0x60] sm:$0xff]  }
 0x1a1   : > { %v1189_v43 = vmax.f32 %v1125_v38, 0.0  ;;  %5409 = vmatpush1.bf16.msra.mxu0 %v9741_v61  ;;  %4722 = vmatprep.mubr.bf16.mxu1 %v3496_v1  ;;  %v3601_v8 = vsel %vm1768_vm1, %v3593_v45, %v3600_v42  ;;  %v1187_v60 = vmax.f32 %v1123_v57, 0.0  ;;  %v1124_v26 = vadd.f32 %v10389_v33, %v1053_v18  ;;  %v9322_v27 = vpop.f32.mrb[34].mxu0 }
 0x1a2   : > { %v1190_v14 = vmax.f32 %v1126_v10, 0.0  ;;  %5410 = vmatprep.subr.bf16.mxu0 %v10501_v2  ;;  %9379 = vmatprep.mubr.bf16.mxu0 %v3601_v8  ;;  %v3632_v5 = vsel %vm1768_vm1, %v3624_v39, %v3631_v29  ;;  %v3030_v20 = vshll.u32 %v10504_v31, 16  ;;  %v3033_v40 = vshrl.u32 %v10504_v31, 16  ;;  %v893_v61 = vpop.f32.mrb[35].mxu0 }
 0x1a3   : > { %4723 = vmatmul.mubr.bf16.gmra.mrb[12].mxu1 %v3484_v16  ;;  %v3313_v51 = vrot.slane %v10562_v19, 1  ;;  %9380 = vmatmul.mubr.bf16.gmra.mrb[76].mxu0 %v3632_v5  ;;  %v1188_v44 = vmax.f32 %v1124_v26, 0.0  ;;  %v3316_v50 = vrot.slane %v10555_v17, 1  ;;  %v1058_v21 = vmul.f32 %v9321_v4, %v10374_v25 }
 0x1a4   : > { %v10640_v45 = vpack.c.bf16 %v1190_v14, %v1189_v43  ;;  %v3032_v55 = vrot.slane %v3030_v20, 1  ;;  %v13434_v39 = vrot.slane %v10380_v28, 1  ;;  %v1056_v31 = vmul.f32 %v10374_v25, %v890_v24 }
 0x1a5   : > { %v3653_v23 = vshrl.u32 %v3313_v51, 16  ;;  %5411 = vmatpush1.bf16.msra.mxu0 %v9742_v6  ;;  %v10649_v13 = vpack.c.bf16 %v1188_v44, %v1187_v60  ;;  %v13435_v42 = vrot.slane %v10384_v30, 1  ;;  %v3684_v1 = vshrl.u32 %v3316_v50, 16 }
 0x1a6   : > { %v3315_v3 = vsel %vm1671_vm0, %v3313_v51, %v13434_v39  ;;  %1270 = vst [vmem:[#allocation2 + $0x188] sm:$0xff] %v10640_v45  ;;  %5412 = vmatprep.subr.bf16.mxu0 %v10501_v2  ;;  %v3035_v28 = vor.u32 %v3033_v40, %v3032_v55  ;;  %v3517_v10 = vshrl.u32 %v3032_v55, 16  ;;  %v1129_v4 = vadd.f32 %v10389_v33, %v1058_v21 }
 0x1a7   : > { %v3657_v38 = vshrl.u32 %v3315_v3, 16  ;;  %v3660_v15 = vshll.u32 %v3315_v3, 16  ;;  %v3318_v57 = vsel %vm1671_vm0, %v3316_v50, %v13435_v42  ;;  %v3655_v18 = vrot.slane %v3653_v23, 7  ;;  %1269 = vst [vmem:[#allocation2 + $0x170] sm:$0xff] %v10649_v13  ;;  %v9325_v30 = vpop.f32.mrb[36].mxu0  ;;  %v9744_v50 = vld [vmem:[#allocation10 + $0x68] sm:$0xff]  }
 0x1a8   : > { %v3688_v43 = vshrl.u32 %v3318_v57, 16  ;;  %v3691_v16 = vshll.u32 %v3318_v57, 16  ;;  %v3519_v6 = vrot.slane %v3517_v10, 7  ;;  %v3521_v8 = vshrl.u32 %v3035_v28, 16  ;;  %v906_v44 = vpop.f32.mrb[37].mxu0 }
 0x1a9   : > { %v3659_v29 = vrot.slane %v3657_v38, 7  ;;  %v3524_v60 = vshll.u32 %v3035_v28, 16  ;;  %v3686_v14 = vrot.slane %v3684_v1, 7  ;;  %5413 = vmatpush1.bf16.msra.mxu0 %v9743_v54  ;;  %v1193_v5 = vmax.f32 %v1129_v4, 0.0  ;;  %v9326_v23 = vpop.f32.mrb[38].mxu0 }
 0x1aa   : > { %v3690_v24 = vrot.slane %v3688_v43, 7  ;;  %v1127_v51 = vadd.f32 %v10389_v33, %v1056_v31  ;;  %5414 = vmatprep.subr.bf16.mxu0 %v10501_v2  ;;  %v3523_v55 = vrot.slane %v3521_v8, 7  ;;  %v1059_v39 = vmul.f32 %v9322_v27, %v10374_v25  ;;  %v909_v57 = vpop.f32.mrb[39].mxu0 }
 0x1ab   : > { %v3662_v26 = vor.u32 %v3660_v15, %v3659_v29  ;;  %v3513_v3 = vrot.slane %v3033_v40, 7  ;;  %v1057_v21 = vmul.f32 %v10374_v25, %v893_v61  ;;  %v3037_v15 = vshll.u32 %v10496_v35, 16  ;;  %v9745_v29 = vld [vmem:[#allocation10 + $0x70] sm:$0xff]  }
 0x1ac   : > { %v3693_v42 = vor.u32 %v3691_v16, %v3690_v24  ;;  %v1191_v54 = vmax.f32 %v1127_v51, 0.0  ;;  %v3526_v28 = vor.u32 %v3524_v60, %v3523_v55  ;;  %v1130_v31 = vadd.f32 %v10389_v33, %v1059_v39 }
 0x1ad   : > { %v3663_v38 = vsel %vm1768_vm1, %v3655_v18, %v3662_v26  ;;  %v3514_v10 = vor.u32 %v3513_v3, %v3030_v20  ;;  %v1128_v1 = vadd.f32 %v10389_v33, %v1057_v21  ;;  %v3039_v40 = vrot.slane %v3037_v15, 1  ;;  %5415 = vmatpush1.bf16.msra.mxu0 %v9744_v50 }
 0x1ae   : > { %9383 = vmatprep.mubr.bf16.mxu0 %v3663_v38  ;;  %v3694_v27 = vsel %vm1768_vm1, %v3686_v14, %v3693_v42  ;;  %v3040_v61 = vshrl.u32 %v10496_v35, 16  ;;  %v3319_v18 = vrot.slane %v10584_v22, 1  ;;  %v3527_v43 = vsel %vm1768_vm1, %v3519_v6, %v3526_v28  ;;  %5416 = vmatprep.subr.bf16.mxu0 %v10501_v2  ;;  %v9746_v28 = vld [vmem:[#allocation10 + $0x78] sm:$0xff]  }
 0x1af   : > { %9384 = vmatmul.mubr.bf16.gmra.mrb[80].mxu0 %v3694_v27  ;;  %v1194_v16 = vmax.f32 %v1130_v31, 0.0  ;;  %v3515_v20 = vsel %vm1768_vm1, %v10401_v41, %v3514_v10  ;;  %v1192_v4 = vmax.f32 %v1128_v1, 0.0  ;;  %4730 = vmatprep.mubr.bf16.mxu1 %v3527_v43  ;;  %v3548_v60 = vshrl.u32 %v3039_v40, 16  ;;  %v9329_v39 = vpop.f32.mrb[40].mxu0 }
 0x1b0   : > { %v3042_v8 = vor.u32 %v3040_v61, %v3039_v40  ;;  %v13436_v14 = vrot.slane %v10393_v36, 1  ;;  %v3715_v24 = vshrl.u32 %v3319_v18, 16  ;;  %4731 = vmatmul.mubr.bf16.gmra.mrb[16].mxu1 %v3515_v20  ;;  %v10681_v42 = vpop.f32.mrb[41].mxu0  ;;  %v1060_v31 = vmul.f32 %v10374_v25, %v906_v44 }
 0x1b1   : > { %v10677_v51 = vpack.c.bf16 %v1194_v16, %v1193_v5  ;;  %v10679_v6 = vpack.c.bf16 %v1192_v4, %v1191_v54  ;;  %v3550_v41 = vrot.slane %v3548_v60, 7  ;;  %5417 = vmatpush1.bf16.msra.mxu0 %v9745_v29  ;;  %v3322_v5 = vrot.slane %v10580_v9, 1  ;;  %v10688_v10 = vpop.f32.mrb[42].mxu0 }
 0x1b2   : > { %v3321_v26 = vsel %vm1671_vm0, %v3319_v18, %v13436_v14  ;;  %v3552_v3 = vshrl.u32 %v3042_v8, 16  ;;  %v3555_v21 = vshll.u32 %v3042_v8, 16  ;;  %v3717_v38 = vrot.slane %v3715_v24, 7  ;;  %5418 = vmatprep.subr.bf16.mxu0 %v10501_v2  ;;  %v10693_v29 = vpop.f32.mrb[43].mxu0  ;;  %v9747_v14 = vld [vmem:[#allocation10 + $0xa0] sm:$0xff]  }
 0x1b3   : > { %v3719_v50 = vshrl.u32 %v3321_v26, 16  ;;  %v3722_v55 = vshll.u32 %v3321_v26, 16  ;;  %1272 = vst [vmem:[#allocation2 + $0x1e8] sm:$0xff] %v10677_v51  ;;  %1271 = vst [vmem:[#allocation2 + $0x1d0] sm:$0xff] %v10679_v6  ;;  %v1062_v54 = vmul.f32 %v9325_v30, %v10374_v25  ;;  %v1063_v27 = vmul.f32 %v9326_v23, %v10374_v25  ;;  %9439 = vmatprep.subr.bf16.mxu1 %v9747_v14 }
 0x1b4   : > { %v3554_v1 = vrot.slane %v3552_v3, 7  ;;  %v3544_v40 = vrot.slane %v3040_v61, 7  ;;  %v1061_v18 = vmul.f32 %v10374_v25, %v909_v57  ;;  %v13437_v16 = vrot.slane %v10395_v37, 1  ;;  %9440 = vmatpush3.bf16.msra.mxu1 %v9747_v14 }
 0x1b5   : > { %v3721_v36 = vrot.slane %v3719_v50, 7  ;;  %v3746_v30 = vshrl.u32 %v3322_v5, 16  ;;  %v1133_v44 = vadd.f32 %v10389_v33, %v1062_v54  ;;  %v1131_v2 = vadd.f32 %v10389_v33, %v1060_v31  ;;  %5419 = vmatpush1.bf16.msra.mxu0 %v9746_v28 }
 0x1b6   : > { %v3324_v20 = vsel %vm1671_vm0, %v3322_v5, %v13437_v16  ;;  %v3557_v4 = vor.u32 %v3555_v21, %v3554_v1  ;;  %v1134_v57 = vadd.f32 %v10389_v33, %v1063_v27  ;;  %v3545_v50 = vor.u32 %v3544_v40, %v3037_v15 }
 0x1b7   : > { %v3724_v43 = vor.u32 %v3722_v55, %v3721_v36  ;;  %v3750_v8 = vshrl.u32 %v3324_v20, 16  ;;  %v3753_v60 = vshll.u32 %v3324_v20, 16  ;;  %v3748_v61 = vrot.slane %v3746_v30, 7  ;;  %v10708_v28 = vpop.f32.mrb[44].mxu0 }
 0x1b8   : > { %v1197_v25 = vmax.f32 %v1133_v44, 0.0  ;;  %v3558_v37 = vsel %vm1768_vm1, %v3550_v41, %v3557_v4  ;;  %v1195_v24 = vmax.f32 %v1131_v2, 0.0  ;;  %v1198_v55 = vmax.f32 %v1134_v57, 0.0  ;;  %v10714_v15 = vpop.f32.mrb[45].mxu0 }
 0x1b9   : > { %v3725_v23 = vsel %vm1768_vm1, %v3717_v38, %v3724_v43  ;;  %v3752_v26 = vrot.slane %v3750_v8, 7  ;;  %4738 = vmatprep.mubr.bf16.mxu1 %v3558_v37  ;;  %v1132_v3 = vadd.f32 %v10389_v33, %v1061_v18  ;;  %v3044_v21 = vshll.u32 %v10531_v62, 16  ;;  %v10742_v37 = vld [vmem:[%s13336_s4] ss:$0 sm:$0xff] }
 0x1ba   : > { %9387 = vmatprep.mubr.bf16.mxu0 %v3725_v23  ;;  %v3047_v38 = vshrl.u32 %v10531_v62, 16  ;;  %v3546_v41 = vsel %vm1768_vm1, %v10410_v52, %v3545_v50  ;;  %v3325_v5 = vrot.slane %v10618_v58, 1  ;;  %v3328_v35 = vrot.slane %v10609_v34, 1  ;;  %v10721_v62 = vld [vmem:[%s13335_s3] ss:$0 sm:$0xff]  ;;  %v10724_v52 = vpop.f32.mrb[46].mxu0 }
 0x1bb   : > { %v3755_v36 = vor.u32 %v3753_v60, %v3752_v26  ;;  %v10716_v54 = vpack.c.bf16 %v1198_v55, %v1197_v25  ;;  %4739 = vmatmul.mubr.bf16.gmra.mrb[20].mxu1 %v3546_v41  ;;  %v1196_v33 = vmax.f32 %v1132_v3, 0.0  ;;  %v3046_v31 = vrot.slane %v3044_v21, 1  ;;  %v10733_v16 = vpop.f32.mrb[47].mxu0 }
 0x1bc   : > { %v1066_v1 = vmul.f32 %v10721_v62, %v9329_v39  ;;  %v13438_v34 = vrot.slane %v10405_v46, 1  ;;  %v3777_v40 = vshrl.u32 %v3325_v5, 16  ;;  %v13439_v18 = vrot.slane %v10412_v53, 1 }
 0x1bd   : > { %v3756_v58 = vsel %vm1768_vm1, %v3748_v61, %v3755_v36  ;;  %1274 = vst [vmem:[#allocation2 + $0x218] sm:$0xff] %v10716_v54  ;;  %v10736_v20 = vpack.c.bf16 %v1196_v33, %v1195_v24  ;;  %v3049_v39 = vor.u32 %v3047_v38, %v3046_v31  ;;  %v3579_v30 = vshrl.u32 %v3046_v31, 16 }
 0x1be   : > { %v3327_v27 = vsel %vm1671_vm0, %v3325_v5, %v13438_v34  ;;  %v3330_v43 = vsel %vm1671_vm0, %v3328_v35, %v13439_v18  ;;  %9388 = vmatmul.mubr.bf16.gmra.mrb[84].mxu0 %v3756_v58  ;;  %v3779_v4 = vrot.slane %v3777_v40, 7  ;;  %v3808_v46 = vshrl.u32 %v3328_v35, 16 }
 0x1bf   : > { %v3781_v44 = vshrl.u32 %v3327_v27, 16  ;;  %v3784_v8 = vshll.u32 %v3327_v27, 16  ;;  %v3812_v60 = vshrl.u32 %v3330_v43, 16  ;;  %1273 = vst [vmem:[#allocation2 + $0x200] sm:$0xff] %v10736_v20  ;;  %v3581_v2 = vrot.slane %v3579_v30, 7  ;;  %v10749_v36 = vpop.f32.mrb[48].mxu0 }
 0x1c0   : > { %v3583_v53 = vshrl.u32 %v3049_v39, 16  ;;  %v3586_v23 = vshll.u32 %v3049_v39, 16  ;;  %v3810_v25 = vrot.slane %v3808_v46, 7  ;;  %v3815_v14 = vshll.u32 %v3330_v43, 16  ;;  %v10753_v31 = vpop.f32.mrb[49].mxu0 }
 0x1c1   : > { %v3783_v61 = vrot.slane %v3781_v44, 7  ;;  %v3814_v57 = vrot.slane %v3812_v60, 7  ;;  %v1137_v26 = vadd.f32 %v10742_v37, %v1066_v1  ;;  %v1064_v55 = vmul.f32 %v10721_v62, %v10681_v42  ;;  %v10758_v27 = vpop.f32.mrb[50].mxu0 }
 0x1c2   : > { %v3585_v24 = vrot.slane %v3583_v53, 7  ;;  %v1067_v3 = vmul.f32 %v10721_v62, %v10688_v10  ;;  %v3575_v35 = vrot.slane %v3047_v38, 7  ;;  %v1065_v33 = vmul.f32 %v10721_v62, %v10693_v29  ;;  %v10763_v29 = vpop.f32.mrb[51].mxu0 }
 0x1c3   : > { %v3786_v50 = vor.u32 %v3784_v8, %v3783_v61  ;;  %v3817_v41 = vor.u32 %v3815_v14, %v3814_v57  ;;  %v1201_v5 = vmax.f32 %v1137_v26, 0.0  ;;  %v1135_v34 = vadd.f32 %v10742_v37, %v1064_v55 }
 0x1c4   : > { %v3588_v58 = vor.u32 %v3586_v23, %v3585_v24  ;;  %v1138_v42 = vadd.f32 %v10742_v37, %v1067_v3  ;;  %v3576_v40 = vor.u32 %v3575_v35, %v3044_v21  ;;  %v1136_v38 = vadd.f32 %v10742_v37, %v1065_v33 }
 0x1c5   : > { %v3787_v1 = vsel %vm1768_vm1, %v3779_v4, %v3786_v50  ;;  %v3818_v10 = vsel %vm1768_vm1, %v3810_v25, %v3817_v41  ;;  %v3051_v18 = vshll.u32 %v10524_v49, 16  ;;  %v1199_v39 = vmax.f32 %v1135_v34, 0.0 }
 0x1c6   : > { %9391 = vmatprep.mubr.bf16.mxu0 %v3787_v1  ;;  %v3589_v43 = vsel %vm1768_vm1, %v3581_v2, %v3588_v58  ;;  %v1202_v30 = vmax.f32 %v1138_v42, 0.0  ;;  %v3054_v44 = vshrl.u32 %v10524_v49, 16  ;;  %v3577_v4 = vsel %vm1768_vm1, %v10425_v7, %v3576_v40 }
 0x1c7   : > { %9392 = vmatmul.mubr.bf16.gmra.mrb[88].mxu0 %v3818_v10  ;;  %4746 = vmatprep.mubr.bf16.mxu1 %v3589_v43  ;;  %v1200_v8 = vmax.f32 %v1136_v38, 0.0  ;;  %v3053_v46 = vrot.slane %v3051_v18, 1  ;;  %v3331_v21 = vrot.slane %v10649_v13, 1  ;;  %v3334_v53 = vrot.slane %v10640_v45, 1  ;;  %v10786_v24 = vpop.f32.mrb[52].mxu0 }
 0x1c8   : > { %v10770_v60 = vpack.c.bf16 %v1202_v30, %v1201_v5  ;;  %4747 = vmatmul.mubr.bf16.gmra.mrb[24].mxu1 %v3577_v4  ;;  %v1070_v2 = vmul.f32 %v10721_v62, %v10708_v28  ;;  %v1068_v23 = vmul.f32 %v10721_v62, %v10714_v15  ;;  %v13440_v7 = vrot.slane %v10418_v63, 1  ;;  %v10789_v63 = vpop.f32.mrb[53].mxu0 }
 0x1c9   : > { %v10777_v49 = vpack.c.bf16 %v1200_v8, %v1199_v39  ;;  %v3056_v61 = vor.u32 %v3054_v44, %v3053_v46  ;;  %v3610_v25 = vshrl.u32 %v3053_v46, 16  ;;  %v3839_v13 = vshrl.u32 %v3331_v21, 16  ;;  %v10791_v58 = vpop.f32.mrb[54].mxu0 }
 0x1ca   : > { %v3333_v57 = vsel %vm1671_vm0, %v3331_v21, %v13440_v7  ;;  %1276 = vst [vmem:[#allocation2 + $0x248] sm:$0xff] %v10770_v60  ;;  %v13441_v45 = vrot.slane %v10420_v0, 1  ;;  %v3870_v3 = vshrl.u32 %v3334_v53, 16  ;;  %v1141_v34 = vadd.f32 %v10742_v37, %v1070_v2  ;;  %v10795_v10 = vpop.f32.mrb[55].mxu0 }
 0x1cb   : > { %v3843_v14 = vshrl.u32 %v3333_v57, 16  ;;  %v3846_v26 = vshll.u32 %v3333_v57, 16  ;;  %1275 = vst [vmem:[#allocation2 + $0x230] sm:$0xff] %v10777_v49  ;;  %v3612_v15 = vrot.slane %v3610_v25, 7  ;;  %v3614_v50 = vshrl.u32 %v3056_v61, 16 }
 0x1cc   : > { %v3336_v28 = vsel %vm1671_vm0, %v3334_v53, %v13441_v45  ;;  %v3617_v55 = vshll.u32 %v3056_v61, 16  ;;  %v3841_v41 = vrot.slane %v3839_v13, 7  ;;  %v3872_v0 = vrot.slane %v3870_v3, 7 }
 0x1cd   : > { %v3845_v5 = vrot.slane %v3843_v14, 7  ;;  %v3874_v35 = vshrl.u32 %v3336_v28, 16  ;;  %v3877_v33 = vshll.u32 %v3336_v28, 16  ;;  %v3616_v1 = vrot.slane %v3614_v50, 7 }
 0x1ce   : > { %v1139_v42 = vadd.f32 %v10742_v37, %v1068_v23  ;;  %v1071_v43 = vmul.f32 %v10721_v62, %v10724_v52  ;;  %v3606_v39 = vrot.slane %v3054_v44, 7  ;;  %v1205_v4 = vmax.f32 %v1141_v34, 0.0 }
 0x1cf   : > { %v3848_v40 = vor.u32 %v3846_v26, %v3845_v5  ;;  %v3876_v38 = vrot.slane %v3874_v35, 7  ;;  %v3619_v30 = vor.u32 %v3617_v55, %v3616_v1  ;;  %v1069_v46 = vmul.f32 %v10721_v62, %v10733_v16  ;;  %v10811_v14 = vpop.f32.mrb[56].mxu0 }
 0x1d0   : > { %v1203_v8 = vmax.f32 %v1139_v42, 0.0  ;;  %v1142_v2 = vadd.f32 %v10742_v37, %v1071_v43  ;;  %v3607_v23 = vor.u32 %v3606_v39, %v3051_v18  ;;  %v3058_v52 = vshll.u32 %v10562_v19, 16  ;;  %v10816_v28 = vpop.f32.mrb[57].mxu0 }
 0x1d1   : > { %v3849_v21 = vsel %vm1768_vm1, %v3841_v41, %v3848_v40  ;;  %v3879_v53 = vor.u32 %v3877_v33, %v3876_v38  ;;  %v3620_v61 = vsel %vm1768_vm1, %v3612_v15, %v3619_v30  ;;  %v1140_v25 = vadd.f32 %v10742_v37, %v1069_v46  ;;  %v10825_v3 = vpop.f32.mrb[58].mxu0 }
 0x1d2   : > { %9395 = vmatprep.mubr.bf16.mxu0 %v3849_v21  ;;  %v3061_v44 = vshrl.u32 %v10562_v19, 16  ;;  %4754 = vmatprep.mubr.bf16.mxu1 %v3620_v61  ;;  %v1206_v57 = vmax.f32 %v1142_v2, 0.0  ;;  %v3608_v16 = vsel %vm1768_vm1, %v10435_v32, %v3607_v23  ;;  %v3337_v13 = vrot.slane %v10679_v6, 1 }
 0x1d3   : > { %v3880_v7 = vsel %vm1768_vm1, %v3872_v0, %v3879_v53  ;;  %4755 = vmatmul.mubr.bf16.gmra.mrb[28].mxu1 %v3608_v16  ;;  %v1204_v18 = vmax.f32 %v1140_v25, 0.0  ;;  %v3060_v26 = vrot.slane %v3058_v52, 1  ;;  %v3340_v45 = vrot.slane %v10677_v51, 1 }
 0x1d4   : > { %9396 = vmatmul.mubr.bf16.gmra.mrb[92].mxu0 %v3880_v7  ;;  %v1074_v19 = vmul.f32 %v10721_v62, %v10749_v36  ;;  %v10818_v15 = vpack.c.bf16 %v1206_v57, %v1205_v4  ;;  %v13442_v50 = vrot.slane %v10428_v11, 1  ;;  %v3901_v6 = vshrl.u32 %v3337_v13, 16  ;;  %v10829_v36 = vpop.f32.mrb[59].mxu0 }
 0x1d5   : > { %v1072_v55 = vmul.f32 %v10721_v62, %v10753_v31  ;;  %v10827_v41 = vpack.c.bf16 %v1204_v18, %v1203_v8  ;;  %v3063_v51 = vor.u32 %v3061_v44, %v3060_v26  ;;  %v3641_v5 = vshrl.u32 %v3060_v26, 16  ;;  %v9748_v8 = vld [vmem:[#allocation10 + $0xa8] sm:$0xff]  }
 0x1d6   : > { %v3339_v32 = vsel %vm1671_vm0, %v3337_v13, %v13442_v50  ;;  %1278 = vst [vmem:[#allocation2 + $0x278] sm:$0xff] %v10818_v15  ;;  %v3903_v33 = vrot.slane %v3901_v6, 7  ;;  %v13443_v11 = vrot.slane %v10430_v12, 1  ;;  %v3932_v34 = vshrl.u32 %v3340_v45, 16  ;;  %9441 = vmatprep.subr.bf16.mxu1 %v9748_v8 }
 0x1d7   : > { %v3905_v35 = vshrl.u32 %v3339_v32, 16  ;;  %v3908_v1 = vshll.u32 %v3339_v32, 16  ;;  %1277 = vst [vmem:[#allocation2 + $0x260] sm:$0xff] %v10827_v41  ;;  %v3643_v31 = vrot.slane %v3641_v5, 7  ;;  %v3645_v42 = vshrl.u32 %v3063_v51, 16  ;;  %v10842_v7 = vpop.f32.mrb[60].mxu0  ;;  %9442 = vmatpush3.bf16.msra.mxu1 %v9748_v8 }
 0x1d8   : > { %v3342_v0 = vsel %vm1671_vm0, %v3340_v45, %v13443_v11  ;;  %v3648_v40 = vshll.u32 %v3063_v51, 16  ;;  %v3934_v43 = vrot.slane %v3932_v34, 7  ;;  %v1145_v4 = vadd.f32 %v10742_v37, %v1074_v19  ;;  %v10846_v26 = vpop.f32.mrb[61].mxu0 }
 0x1d9   : > { %v3907_v38 = vrot.slane %v3905_v35, 7  ;;  %v3936_v39 = vshrl.u32 %v3342_v0, 16  ;;  %v3939_v30 = vshll.u32 %v3342_v0, 16  ;;  %v3647_v46 = vrot.slane %v3645_v42, 7 }
 0x1da   : > { %v1143_v53 = vadd.f32 %v10742_v37, %v1072_v55  ;;  %v1075_v12 = vmul.f32 %v10721_v62, %v10758_v27  ;;  %v1209_v23 = vmax.f32 %v1145_v4, 0.0  ;;  %v3637_v61 = vrot.slane %v3061_v44, 7 }
 0x1db   : > { %v3910_v21 = vor.u32 %v3908_v1, %v3907_v38  ;;  %v3938_v2 = vrot.slane %v3936_v39, 7  ;;  %v1073_v25 = vmul.f32 %v10721_v62, %v10763_v29  ;;  %v3650_v57 = vor.u32 %v3648_v40, %v3647_v46  ;;  %v10850_v29 = vpop.f32.mrb[62].mxu0 }
 0x1dc   : > { %v1207_v13 = vmax.f32 %v1143_v53, 0.0  ;;  %v1146_v18 = vadd.f32 %v10742_v37, %v1075_v12  ;;  %v3638_v45 = vor.u32 %v3637_v61, %v3058_v52  ;;  %v3065_v19 = vshll.u32 %v10555_v17, 16  ;;  %v10855_v51 = vpop.f32.mrb[63].mxu0 }
 0x1dd   : > { %v3911_v16 = vsel %vm1768_vm1, %v3903_v33, %v3910_v21  ;;  %v3941_v27 = vor.u32 %v3939_v30, %v3938_v2  ;;  %v1144_v44 = vadd.f32 %v10742_v37, %v1073_v25  ;;  %v3651_v50 = vsel %vm1768_vm1, %v3643_v31, %v3650_v57 }
 0x1de   : > { %9399 = vmatprep.mubr.bf16.mxu0 %v3911_v16  ;;  %v1210_v32 = vmax.f32 %v1146_v18, 0.0  ;;  %v3068_v6 = vshrl.u32 %v10555_v17, 16  ;;  %v3343_v55 = vrot.slane %v10736_v20, 1  ;;  %4762 = vmatprep.mubr.bf16.mxu1 %v3651_v50  ;;  %v3639_v52 = vsel %vm1768_vm1, %v10446_v56, %v3638_v45 }
 0x1df   : > { %v3942_v5 = vsel %vm1768_vm1, %v3934_v43, %v3941_v27  ;;  %v1208_v35 = vmax.f32 %v1144_v44, 0.0  ;;  %v3067_v33 = vrot.slane %v3065_v19, 1  ;;  %4763 = vmatmul.mubr.bf16.gmra.mrb[32].mxu1 %v3639_v52  ;;  %v13444_v11 = vrot.slane %v10437_v47, 1  ;;  %v2990_v52 = vld [vmem:[#allocation2 + $0x250] sm:$0x1] }
 0x1e0   : > { %9400 = vmatmul.mubr.bf16.gmra.mrb[96].mxu0 %v3942_v5  ;;  %v10860_v1 = vpack.c.bf16 %v1210_v32, %v1209_v23  ;;  %v3963_v0 = vshrl.u32 %v3343_v55, 16  ;;  %v3346_v20 = vrot.slane %v10716_v54, 1  ;;  %v13445_v43 = vrot.slane %v10439_v48, 1  ;;  %v2989_v32 = vld [vmem:[#allocation2 + $0x238] sm:$0x1] }
 0x1e1   : > { %v3345_v17 = vsel %vm1671_vm0, %v3343_v55, %v13444_v11  ;;  %v10866_v34 = vpack.c.bf16 %v1208_v35, %v1207_v13  ;;  %v3070_v31 = vor.u32 %v3068_v6, %v3067_v33  ;;  %v3672_v42 = vshrl.u32 %v3067_v33, 16 }
 0x1e2   : > { %v3967_v40 = vshrl.u32 %v3345_v17, 16  ;;  %1280 = vst [vmem:[#allocation2 + $0x2a8] sm:$0xff] %v10860_v1  ;;  %v3965_v56 = vrot.slane %v3963_v0, 7  ;;  %v3970_v38 = vshll.u32 %v3345_v17, 16  ;;  %v3348_v39 = vsel %vm1671_vm0, %v3346_v20, %v13445_v43 }
 0x1e3   : > { %v3994_v30 = vshrl.u32 %v3346_v20, 16  ;;  %1279 = vst [vmem:[#allocation2 + $0x290] sm:$0xff] %v10866_v34  ;;  %v3674_v47 = vrot.slane %v3672_v42, 7  ;;  %v3676_v4 = vshrl.u32 %v3070_v31, 16  ;;  %v3679_v8 = vshll.u32 %v3070_v31, 16 }
 0x1e4   : > { %v3969_v54 = vrot.slane %v3967_v40, 7  ;;  %v3998_v21 = vshrl.u32 %v3348_v39, 16  ;;  %v4001_v53 = vshll.u32 %v3348_v39, 16  ;;  %v1078_v12 = vmul.f32 %v10721_v62, %v10786_v24 }
 0x1e5   : > { %v3996_v46 = vrot.slane %v3994_v30, 7  ;;  %v3678_v2 = vrot.slane %v3676_v4, 7  ;;  %v1076_v48 = vmul.f32 %v10721_v62, %v10789_v63  ;;  %v1079_v61 = vmul.f32 %v10721_v62, %v10791_v58 }
 0x1e6   : > { %v3972_v23 = vor.u32 %v3970_v38, %v3969_v54  ;;  %v4000_v25 = vrot.slane %v3998_v21, 7  ;;  %v1149_v57 = vadd.f32 %v10742_v37, %v1078_v12  ;;  %v3668_v16 = vrot.slane %v3068_v6, 7  ;;  %v2925_v21 = vld [vmem:[#allocation2 + $0x108] sm:$0x80] }
 0x1e7   : > { %v1077_v13 = vmul.f32 %v10721_v62, %v10795_v10  ;;  %v3681_v18 = vor.u32 %v3679_v8, %v3678_v2  ;;  %v1147_v24 = vadd.f32 %v10742_v37, %v1076_v48  ;;  %v1150_v45 = vadd.f32 %v10742_v37, %v1079_v61 }
 0x1e8   : > { %v3973_v27 = vsel %vm1768_vm1, %v3965_v56, %v3972_v23  ;;  %v4003_v44 = vor.u32 %v4001_v53, %v4000_v25  ;;  %v1213_v63 = vmax.f32 %v1149_v57, 0.0  ;;  %v3669_v50 = vor.u32 %v3668_v16, %v3065_v19 }
 0x1e9   : > { %9403 = vmatprep.mubr.bf16.mxu0 %v3973_v27  ;;  %v1148_v58 = vadd.f32 %v10742_v37, %v1077_v13  ;;  %v3682_v55 = vsel %vm1768_vm1, %v3674_v47, %v3681_v18  ;;  %v1211_v6 = vmax.f32 %v1147_v24, 0.0  ;;  %v1214_v5 = vmax.f32 %v1150_v45, 0.0 }
 0x1ea   : > { %v3072_v10 = vshll.u32 %v10584_v22, 16  ;;  %4770 = vmatprep.mubr.bf16.mxu1 %v3682_v55  ;;  %v4004_v35 = vsel %vm1768_vm1, %v3996_v46, %v4003_v44  ;;  %v3670_v33 = vsel %vm1768_vm1, %v10448_v59, %v3669_v50  ;;  %v3075_v17 = vshrl.u32 %v10584_v22, 16  ;;  %v2991_v55 = vld [vmem:[#allocation2 + $0x268] sm:$0x1] }
 0x1eb   : > { %v1212_v11 = vmax.f32 %v1148_v58, 0.0  ;;  %9404 = vmatmul.mubr.bf16.gmra.mrb[100].mxu0 %v4004_v35  ;;  %v10892_v19 = vpack.c.bf16 %v1214_v5, %v1213_v63  ;;  %4771 = vmatmul.mubr.bf16.gmra.mrb[36].mxu1 %v3670_v33  ;;  %v3349_v20 = vrot.slane %v10777_v49, 1  ;;  %v3350_v31 = vrot.slane %v2989_v32, 1 }
 0x1ec   : > { %v3074_v0 = vrot.slane %v3072_v10, 1  ;;  %v3352_v40 = vrot.slane %v10770_v60, 1  ;;  %v3353_v56 = vrot.slane %v2990_v52, 1  ;;  %v1082_v38 = vmul.f32 %v10721_v62, %v10811_v14  ;;  %v2992_v52 = vld [vmem:[#allocation2 + $0x280] sm:$0x1] }
 0x1ed   : > { %v10895_v42 = vpack.c.bf16 %v1212_v11, %v1211_v6  ;;  %1282 = vst [vmem:[#allocation2 + $0x2d8] sm:$0xff] %v10892_v19  ;;  %v3351_v43 = vsel %vm1671_vm0, %v3349_v20, %v3350_v31  ;;  %v4025_v39 = vshrl.u32 %v3349_v20, 16  ;;  %v1080_v61 = vmul.f32 %v10721_v62, %v10816_v28 }
 0x1ee   : > { %v3077_v59 = vor.u32 %v3075_v17, %v3074_v0  ;;  %v3703_v22 = vshrl.u32 %v3074_v0, 16  ;;  %v4029_v30 = vshrl.u32 %v3351_v43, 16  ;;  %v4032_v49 = vshll.u32 %v3351_v43, 16 }
 0x1ef   : > { %1281 = vst [vmem:[#allocation2 + $0x2c0] sm:$0xff] %v10895_v42  ;;  %v3354_v47 = vsel %vm1671_vm0, %v3352_v40, %v3353_v56  ;;  %v4056_v4 = vshrl.u32 %v3352_v40, 16  ;;  %v4027_v46 = vrot.slane %v4025_v39, 7  ;;  %v1153_v48 = vadd.f32 %v10742_v37, %v1082_v38 }
 0x1f0   : > { %v3705_v8 = vrot.slane %v3703_v22, 7  ;;  %v3707_v60 = vshrl.u32 %v3077_v59, 16  ;;  %v3710_v54 = vshll.u32 %v3077_v59, 16  ;;  %v4031_v14 = vrot.slane %v4029_v30, 7  ;;  %v9749_v30 = vld [vmem:[#allocation10 + $0xb0] sm:$0xff]  }
 0x1f1   : > { %v4058_v53 = vrot.slane %v4056_v4, 7  ;;  %v4060_v12 = vshrl.u32 %v3354_v47, 16  ;;  %v4063_v2 = vshll.u32 %v3354_v47, 16  ;;  %v1083_v25 = vmul.f32 %v10721_v62, %v10825_v3  ;;  %9443 = vmatprep.subr.bf16.mxu1 %v9749_v30 }
 0x1f2   : > { %v3709_v23 = vrot.slane %v3707_v60, 7  ;;  %v4034_v57 = vor.u32 %v4032_v49, %v4031_v14  ;;  %v3696_v13 = vshrl.u32 %v2925_v21, 16  ;;  %v3699_v18 = vrot.slane %v3075_v17, 7  ;;  %v9778_v17 = vld [vmem:[#allocation2 + $0x128] sm:$0xff]  ;;  %9444 = vmatpush3.bf16.msra.mxu1 %v9749_v30 }
 0x1f3   : > { %v4062_v16 = vrot.slane %v4060_v12, 7  ;;  %v1217_v24 = vmax.f32 %v1153_v48, 0.0  ;;  %v1151_v45 = vadd.f32 %v10742_v37, %v1080_v61  ;;  %v1154_v44 = vadd.f32 %v10742_v37, %v1083_v25 }
 0x1f4   : > { %v3712_v27 = vor.u32 %v3710_v54, %v3709_v23  ;;  %v4035_v63 = vsel %vm1768_vm1, %v4027_v46, %v4034_v57  ;;  %v3698_v58 = vrot.slane %v3696_v13, 7  ;;  %v3700_v32 = vor.u32 %v3699_v18, %v3072_v10 }
 0x1f5   : > { %v4065_v50 = vor.u32 %v4063_v2, %v4062_v16  ;;  %9407 = vmatprep.mubr.bf16.mxu0 %v4035_v63  ;;  %v1215_v3 = vmax.f32 %v1151_v45, 0.0  ;;  %v1218_v6 = vmax.f32 %v1154_v44, 0.0  ;;  %v1081_v5 = vmul.f32 %v10721_v62, %v10829_v36 }
 0x1f6   : > { %v3713_v28 = vsel %vm1768_vm1, %v3705_v8, %v3712_v27  ;;  %v3701_v33 = vsel %vm1768_vm1, %v3698_v58, %v3700_v32  ;;  %v3079_v11 = vshll.u32 %v10580_v9, 16  ;;  %v3082_v0 = vshrl.u32 %v9778_v17, 16 }
 0x1f7   : > { %4778 = vmatprep.mubr.bf16.mxu1 %v3713_v28  ;;  %v4066_v35 = vsel %vm1768_vm1, %v4058_v53, %v4065_v50  ;;  %v10918_v10 = vpack.c.bf16 %v1218_v6, %v1217_v24  ;;  %v1152_v20 = vadd.f32 %v10742_v37, %v1081_v5  ;;  %v3355_v31 = vrot.slane %v10827_v41, 1  ;;  %v2927_v53 = vld [vmem:[#allocation2 + $0x120] sm:$0x80]  ;;  %v2993_v28 = vld [vmem:[#allocation2 + $0x298] sm:$0x1] }
 0x1f8   : > { %9408 = vmatmul.mubr.bf16.gmra.mrb[104].mxu0 %v4066_v35  ;;  %4779 = vmatmul.mubr.bf16.gmra.mrb[40].mxu1 %v3701_v33  ;;  %v3356_v40 = vrot.slane %v2991_v55, 1  ;;  %v3081_v36 = vrot.slane %v3079_v11, 1  ;;  %v3358_v56 = vrot.slane %v10818_v15, 1  ;;  %v3359_v38 = vrot.slane %v2992_v52, 1  ;;  %v9779_v5 = vld [vmem:[#allocation2 + $0x140] sm:$0xff] }
 0x1f9   : > { %v1086_v59 = vmul.f32 %v10721_v62, %v10842_v7  ;;  %1284 = vst [vmem:[#allocation2 + $0x308] sm:$0xff] %v10918_v10  ;;  %v1216_v9 = vmax.f32 %v1152_v20, 0.0  ;;  %v4087_v43 = vshrl.u32 %v3355_v31, 16  ;;  %v1084_v39 = vmul.f32 %v10721_v62, %v10846_v26  ;;  %v2994_v33 = vld [vmem:[#allocation2 + $0x2b0] sm:$0x1] }
 0x1fa   : > { %v3357_v22 = vsel %vm1671_vm0, %v3355_v31, %v3356_v40  ;;  %v3084_v49 = vor.u32 %v3082_v0, %v3081_v36  ;;  %v3734_v41 = vshrl.u32 %v3081_v36, 16  ;;  %v3360_v60 = vsel %vm1671_vm0, %v3358_v56, %v3359_v38 }
 0x1fb   : > { %v4091_v47 = vshrl.u32 %v3357_v22, 16  ;;  %v4094_v4 = vshll.u32 %v3357_v22, 16  ;;  %v10929_v8 = vpack.c.bf16 %v1216_v9, %v1215_v3  ;;  %v4089_v15 = vrot.slane %v4087_v43, 7  ;;  %v2929_v3 = vld [vmem:[#allocation2 + $0x138] sm:$0x80] }
 0x1fc   : > { %v4118_v7 = vshrl.u32 %v3358_v56, 16  ;;  %v3736_v54 = vrot.slane %v3734_v41, 7  ;;  %v3738_v46 = vshrl.u32 %v3084_v49, 16  ;;  %v3741_v21 = vshll.u32 %v3084_v49, 16 }
 0x1fd   : > { %v4093_v14 = vrot.slane %v4091_v47, 7  ;;  %1283 = vst [vmem:[#allocation2 + $0x2f0] sm:$0xff] %v10929_v8  ;;  %v4122_v12 = vshrl.u32 %v3360_v60, 16  ;;  %v4125_v2 = vshll.u32 %v3360_v60, 16  ;;  %v1157_v23 = vadd.f32 %v10742_v37, %v1086_v59 }
 0x1fe   : > { %v4120_v26 = vrot.slane %v4118_v7, 7  ;;  %v3740_v48 = vrot.slane %v3738_v46, 7  ;;  %v1155_v25 = vadd.f32 %v10742_v37, %v1084_v39  ;;  %v1087_v57 = vmul.f32 %v10721_v62, %v10850_v29  ;;  %v2995_v46 = vld [vmem:[#allocation2 + $0x2c8] sm:$0x1] }
 0x1ff   : > { %v4096_v61 = vor.u32 %v4094_v4, %v4093_v14  ;;  %v4124_v16 = vrot.slane %v4122_v12, 7  ;;  %v1221_v13 = vmax.f32 %v1157_v23, 0.0  ;;  %v3727_v18 = vshrl.u32 %v2927_v53, 16 }
 0x200   : > { %v3730_v27 = vrot.slane %v3082_v0, 7  ;;  %v3743_v24 = vor.u32 %v3741_v21, %v3740_v48  ;;  %v1219_v44 = vmax.f32 %v1155_v25, 0.0  ;;  %v1158_v63 = vadd.f32 %v10742_v37, %v1087_v57 }
 0x201   : > { %v4097_v45 = vsel %vm1768_vm1, %v4089_v15, %v4096_v61  ;;  %v4127_v50 = vor.u32 %v4125_v2, %v4124_v16  ;;  %v3729_v58 = vrot.slane %v3727_v18, 7  ;;  %v1085_v55 = vmul.f32 %v10721_v62, %v10855_v51  ;;  %v2996_v18 = vld [vmem:[#allocation2 + $0x2e0] sm:$0x1] }
 0x202   : > { %9411 = vmatprep.mubr.bf16.mxu0 %v4097_v45  ;;  %v3731_v32 = vor.u32 %v3730_v27, %v3079_v11  ;;  %v3744_v29 = vsel %vm1768_vm1, %v3736_v54, %v3743_v24  ;;  %v1222_v6 = vmax.f32 %v1158_v63, 0.0  ;;  %v3086_v52 = vshll.u32 %v9779_v5, 16 }
 0x203   : > { %v3089_v35 = vshrl.u32 %v9779_v5, 16  ;;  %4786 = vmatprep.mubr.bf16.mxu1 %v3744_v29  ;;  %v4128_v17 = vsel %vm1768_vm1, %v4120_v26, %v4127_v50  ;;  %v1156_v20 = vadd.f32 %v10742_v37, %v1085_v55  ;;  %v3361_v11 = vrot.slane %v10866_v34, 1  ;;  %v9780_v26 = vld [vmem:[#allocation2 + $0x158] sm:$0xff]  ;;  %v2931_v55 = vld [vmem:[#allocation2 + $0x150] sm:$0x80] }
 0x204   : > { %v3732_v0 = vsel %vm1768_vm1, %v3729_v58, %v3731_v32  ;;  %9412 = vmatmul.mubr.bf16.gmra.mrb[108].mxu0 %v4128_v17  ;;  %v10946_v62 = vpack.c.bf16 %v1222_v6, %v1221_v13  ;;  %v3088_v51 = vrot.slane %v3086_v52, 1  ;;  %v3362_v31 = vrot.slane %v2993_v28, 1 }
 0x205   : > { %4787 = vmatmul.mubr.bf16.gmra.mrb[44].mxu1 %v3732_v0  ;;  %v3364_v40 = vrot.slane %v10860_v1, 1  ;;  %v1220_v36 = vmax.f32 %v1156_v20, 0.0  ;;  %v4149_v56 = vshrl.u32 %v3361_v11, 16  ;;  %v3365_v38 = vrot.slane %v2994_v33, 1 }
 0x206   : > { %v3758_v59 = vshrl.u32 %v2929_v3, 16  ;;  %1286 = vst [vmem:[#allocation2 + $0x338] sm:$0xff] %v10946_v62  ;;  %v3091_v9 = vor.u32 %v3089_v35, %v3088_v51  ;;  %v3765_v22 = vshrl.u32 %v3088_v51, 16  ;;  %v3363_v37 = vsel %vm1671_vm0, %v3361_v11, %v3362_v31 }
 0x207   : > { %v4180_v43 = vshrl.u32 %v3364_v40, 16  ;;  %v10951_v34 = vpack.c.bf16 %v1220_v36, %v1219_v44  ;;  %v4151_v39 = vrot.slane %v4149_v56, 7  ;;  %v4153_v30 = vshrl.u32 %v3363_v37, 16 }
 0x208   : > { %v4156_v49 = vshll.u32 %v3363_v37, 16  ;;  %v3767_v41 = vrot.slane %v3765_v22, 7  ;;  %v3769_v47 = vshrl.u32 %v3091_v9, 16  ;;  %v3772_v4 = vshll.u32 %v3091_v9, 16 }
 0x209   : > { %v3366_v1 = vsel %vm1671_vm0, %v3364_v40, %v3365_v38  ;;  %1285 = vst [vmem:[#allocation2 + $0x320] sm:$0xff] %v10951_v34  ;;  %v4155_v15 = vrot.slane %v4153_v30, 7  ;;  %v4182_v60 = vrot.slane %v4180_v43, 7  ;;  %v3760_v14 = vrot.slane %v3758_v59, 7  ;;  %v2997_v40 = vld [vmem:[#allocation2 + $0x2f8] sm:$0x1] }
 0x20a   : > { %v4184_v7 = vshrl.u32 %v3366_v1, 16  ;;  %v4187_v54 = vshll.u32 %v3366_v1, 16  ;;  %v3771_v21 = vrot.slane %v3769_v47, 7  ;;  %v3761_v53 = vrot.slane %v3089_v35, 7  ;;  %v9781_v59 = vld [vmem:[#allocation2 + $0x170] sm:$0xff] }
 0x20b   : > { %v3093_v12 = vshll.u32 %v9780_v26, 16  ;;  %v4158_v2 = vor.u32 %v4156_v49, %v4155_v15  ;;  %v3096_v48 = vshrl.u32 %v9780_v26, 16  ;;  %v3367_v61 = vrot.slane %v10895_v42, 1 }
 0x20c   : > { %v4186_v23 = vrot.slane %v4184_v7, 7  ;;  %v3774_v25 = vor.u32 %v3772_v4, %v3771_v21  ;;  %v3762_v57 = vor.u32 %v3761_v53, %v3086_v52  ;;  %v3368_v13 = vrot.slane %v2995_v46, 1  ;;  %v2933_v53 = vld [vmem:[#allocation2 + $0x168] sm:$0x80] }
 0x20d   : > { %v3095_v16 = vrot.slane %v3093_v12, 1  ;;  %v4159_v27 = vsel %vm1768_vm1, %v4151_v39, %v4158_v2  ;;  %v4211_v45 = vshrl.u32 %v3367_v61, 16  ;;  %v3370_v44 = vrot.slane %v10892_v19, 1 }
 0x20e   : > { %v4189_v24 = vor.u32 %v4187_v54, %v4186_v23  ;;  %v3775_v63 = vsel %vm1768_vm1, %v3767_v41, %v3774_v25  ;;  %9415 = vmatprep.mubr.bf16.mxu0 %v4159_v27  ;;  %v3763_v50 = vsel %vm1768_vm1, %v3760_v14, %v3762_v57  ;;  %v3369_v28 = vsel %vm1671_vm0, %v3367_v61, %v3368_v13  ;;  %v9750_v25 = vld [vmem:[#allocation10 + $0xb8] sm:$0xff]  }
 0x20f   : > { %v3098_v58 = vor.u32 %v3096_v48, %v3095_v16  ;;  %v3796_v32 = vshrl.u32 %v3095_v16, 16  ;;  %4794 = vmatprep.mubr.bf16.mxu1 %v3775_v63  ;;  %v4213_v3 = vrot.slane %v4211_v45, 7  ;;  %v3371_v29 = vrot.slane %v2996_v18, 1  ;;  %9445 = vmatprep.subr.bf16.mxu1 %v9750_v25 }
 0x210   : > { %v4190_v42 = vsel %vm1768_vm1, %v4182_v60, %v4189_v24  ;;  %4795 = vmatmul.mubr.bf16.gmra.mrb[48].mxu1 %v3763_v50  ;;  %v4215_v52 = vshrl.u32 %v3369_v28, 16  ;;  %v4218_v35 = vshll.u32 %v3369_v28, 16  ;;  %v4242_v17 = vshrl.u32 %v3370_v44, 16  ;;  %v2998_v60 = vld [vmem:[#allocation2 + $0x310] sm:$0x1] }
 0x211   : > { %9416 = vmatmul.mubr.bf16.gmra.mrb[112].mxu0 %v4190_v42  ;;  %v3798_v6 = vrot.slane %v3796_v32, 7  ;;  %v3800_v5 = vshrl.u32 %v3098_v58, 16  ;;  %v3803_v19 = vshll.u32 %v3098_v58, 16  ;;  %v3372_v33 = vsel %vm1671_vm0, %v3370_v44, %v3371_v29  ;;  %v9782_v44 = vld [vmem:[#allocation2 + $0x188] sm:$0xff]  ;;  %9446 = vmatpush3.bf16.msra.mxu1 %v9750_v25 }
 0x212   : > { %v3789_v0 = vshrl.u32 %v2931_v55, 16  ;;  %v4217_v11 = vrot.slane %v4215_v52, 7  ;;  %v4246_v51 = vshrl.u32 %v3372_v33, 16  ;;  %v4249_v31 = vshll.u32 %v3372_v33, 16  ;;  %v2999_v42 = vld [vmem:[#allocation2 + $0x328] sm:$0x1] }
 0x213   : > { %v3802_v20 = vrot.slane %v3800_v5, 7  ;;  %v4244_v36 = vrot.slane %v4242_v17, 7  ;;  %v3792_v38 = vrot.slane %v3096_v48, 7  ;;  %v3100_v9 = vshll.u32 %v9781_v59, 16  ;;  %v2935_v5 = vld [vmem:[#allocation2 + $0x180] sm:$0x80] }
 0x214   : > { %v3791_v56 = vrot.slane %v3789_v0, 7  ;;  %v4220_v37 = vor.u32 %v4218_v35, %v4217_v11  ;;  %v4248_v43 = vrot.slane %v4246_v51, 7  ;;  %v3103_v39 = vshrl.u32 %v9781_v59, 16  ;;  %v3000_v0 = vld [vmem:[#allocation2 + $0x340] sm:$0x1] }
 0x215   : > { %v3805_v22 = vor.u32 %v3803_v19, %v3802_v20  ;;  %v3793_v30 = vor.u32 %v3792_v38, %v3093_v12  ;;  %v3102_v49 = vrot.slane %v3100_v9, 1  ;;  %v3373_v41 = vrot.slane %v10929_v8, 1  ;;  %v10971_v19 = vld [vmem:[#allocation2] sm:$0xff] }
 0x216   : > { %v3374_v47 = vrot.slane %v2997_v40, 1  ;;  %v4221_v1 = vsel %vm1768_vm1, %v4213_v3, %v4220_v37  ;;  %v4251_v15 = vor.u32 %v4249_v31, %v4248_v43  ;;  %v3376_v7 = vrot.slane %v10918_v10, 1  ;;  %7728 = vmatprep.subr.bf16.mxu1 %v10971_v19 }
 0x217   : > { %v3806_v4 = vsel %vm1768_vm1, %v3798_v6, %v3805_v22  ;;  %9419 = vmatprep.mubr.bf16.mxu0 %v4221_v1  ;;  %v3794_v54 = vsel %vm1768_vm1, %v3791_v56, %v3793_v30  ;;  %v3105_v46 = vor.u32 %v3103_v39, %v3102_v49  ;;  %v3827_v21 = vshrl.u32 %v3102_v49, 16 }
 0x218   : > { %4802 = vmatprep.mubr.bf16.mxu1 %v3806_v4  ;;  %v3375_v14 = vsel %vm1671_vm0, %v3373_v41, %v3374_v47  ;;  %v4252_v8 = vsel %vm1768_vm1, %v4244_v36, %v4251_v15  ;;  %v4273_v26 = vshrl.u32 %v3373_v41, 16  ;;  %v3377_v10 = vrot.slane %v2998_v60, 1 }
 0x219   : > { %4803 = vmatmul.mubr.bf16.gmra.mrb[52].mxu1 %v3794_v54  ;;  %v4277_v12 = vshrl.u32 %v3375_v14, 16  ;;  %v4280_v2 = vshll.u32 %v3375_v14, 16  ;;  %9420 = vmatmul.mubr.bf16.gmra.mrb[116].mxu0 %v4252_v8  ;;  %v3829_v23 = vrot.slane %v3827_v21, 7  ;;  %v3831_v48 = vshrl.u32 %v3105_v46, 16  ;;  %v9784_v21 = vld [vmem:[#allocation2 + $0x1d0] sm:$0xff] }
 0x21a   : > { %v3834_v61 = vshll.u32 %v3105_v46, 16  ;;  %v4275_v57 = vrot.slane %v4273_v26, 7  ;;  %v4304_v13 = vshrl.u32 %v3376_v7, 16  ;;  %v3820_v18 = vshrl.u32 %v2933_v53, 16  ;;  %v1287_v53 = vld [vmem:[#allocation2] sm:$0x80] }
 0x21b   : > { %v4279_v16 = vrot.slane %v4277_v12, 7  ;;  %v3833_v27 = vrot.slane %v3831_v48, 7  ;;  %v3378_v24 = vsel %vm1671_vm0, %v3376_v7, %v3377_v10  ;;  %v3823_v45 = vrot.slane %v3103_v39, 7 }
 0x21c   : > { %v3107_v63 = vshll.u32 %v9782_v44, 16  ;;  %v4306_v58 = vrot.slane %v4304_v13, 7  ;;  %v4308_v32 = vshrl.u32 %v3378_v24, 16  ;;  %v4311_v55 = vshll.u32 %v3378_v24, 16 }
 0x21d   : > { %v4282_v50 = vor.u32 %v4280_v2, %v4279_v16  ;;  %v3836_v28 = vor.u32 %v3834_v61, %v3833_v27  ;;  %v3822_v3 = vrot.slane %v3820_v18, 7  ;;  %v3824_v29 = vor.u32 %v3823_v45, %v3100_v9 }
 0x21e   : > { %v3109_v6 = vrot.slane %v3107_v63, 1  ;;  %v4310_v35 = vrot.slane %v4308_v32, 7  ;;  %v3110_v33 = vshrl.u32 %v9782_v44, 16  ;;  %v3379_v17 = vrot.slane %v10951_v34, 1  ;;  %v1290_v44 = vld [vmem:[#allocation2 + $0x20] sm:$0xff] }
 0x21f   : > { %v4283_v52 = vsel %vm1768_vm1, %v4275_v57, %v4282_v50  ;;  %v3837_v20 = vsel %vm1768_vm1, %v3829_v23, %v3836_v28  ;;  %v3825_v11 = vsel %vm1768_vm1, %v3822_v3, %v3824_v29  ;;  %v3380_v31 = vrot.slane %v2999_v42, 1 }
 0x220   : > { %9423 = vmatprep.mubr.bf16.mxu0 %v4283_v52  ;;  %v3858_v51 = vshrl.u32 %v3109_v6, 16  ;;  %4810 = vmatprep.mubr.bf16.mxu1 %v3837_v20  ;;  %v4313_v40 = vor.u32 %v4311_v55, %v4310_v35  ;;  %v3112_v36 = vor.u32 %v3110_v33, %v3109_v6  ;;  %v4335_v56 = vshrl.u32 %v3379_v17, 16  ;;  %v2937_v55 = vld [vmem:[#allocation2 + $0x1c8] sm:$0x80] }
 0x221   : > { %v3382_v38 = vrot.slane %v10946_v62, 1  ;;  %4811 = vmatmul.mubr.bf16.gmra.mrb[56].mxu1 %v3825_v11  ;;  %v3381_v9 = vsel %vm1671_vm0, %v3379_v17, %v3380_v31  ;;  %v3383_v22 = vrot.slane %v3000_v0, 1  ;;  %v3851_v34 = vshrl.u32 %v2935_v5, 16  ;;  %v9785_v31 = vld [vmem:[#allocation2 + $0x1e8] sm:$0xff] }
 0x222   : > { %v3860_v59 = vrot.slane %v3858_v51, 7  ;;  %v4314_v37 = vsel %vm1768_vm1, %v4306_v58, %v4313_v40  ;;  %v3862_v43 = vshrl.u32 %v3112_v36, 16  ;;  %v3865_v39 = vshll.u32 %v3112_v36, 16  ;;  %v1289_v36 = vld [vmem:[#allocation2 + $0x18] sm:$0x80] }
 0x223   : > { %v4337_v30 = vrot.slane %v4335_v56, 7  ;;  %9424 = vmatmul.mubr.bf16.gmra.mrb[120].mxu0 %v4314_v37  ;;  %v4339_v49 = vshrl.u32 %v3381_v9, 16  ;;  %v4342_v41 = vshll.u32 %v3381_v9, 16  ;;  %v3384_v47 = vsel %vm1671_vm0, %v3382_v38, %v3383_v22 }
 0x224   : > { %v4366_v4 = vshrl.u32 %v3382_v38, 16  ;;  %v3864_v1 = vrot.slane %v3862_v43, 7  ;;  %v4370_v15 = vshrl.u32 %v3384_v47, 16  ;;  %v4373_v62 = vshll.u32 %v3384_v47, 16  ;;  %v1292_v47 = vld [vmem:[#allocation2 + $0x38] sm:$0xff] }
 0x225   : > { %v3853_v60 = vrot.slane %v3851_v34, 7  ;;  %v4341_v7 = vrot.slane %v4339_v49, 7  ;;  %v3854_v46 = vrot.slane %v3110_v33, 7  ;;  %v3114_v14 = vshll.u32 %v9784_v21, 16 }
 0x226   : > { %v4368_v54 = vrot.slane %v4366_v4, 7  ;;  %v3867_v8 = vor.u32 %v3865_v39, %v3864_v1  ;;  %v4372_v26 = vrot.slane %v4370_v15, 7  ;;  %v3117_v12 = vshrl.u32 %v9784_v21, 16 }
 0x227   : > { %v1384_v2 = vshll.u32 %v10971_v19, 16  ;;  %v4344_v23 = vor.u32 %v4342_v41, %v4341_v7  ;;  %v3855_v48 = vor.u32 %v3854_v46, %v3107_v63  ;;  %v3116_v61 = vrot.slane %v3114_v14, 1 }
 0x228   : > { %v1387_v10 = vshrl.u32 %v10971_v19, 16  ;;  %v3868_v25 = vsel %vm1768_vm1, %v3860_v59, %v3867_v8  ;;  %v4375_v57 = vor.u32 %v4373_v62, %v4372_v26  ;;  %v1770_v13 = vshrl.u32 %v1287_v53, 16 }
 0x229   : > { %v1386_v16 = vrot.slane %v1384_v2, 1  ;;  %4818 = vmatprep.mubr.bf16.mxu1 %v3868_v25  ;;  %v4345_v18 = vsel %vm1768_vm1, %v4337_v30, %v4344_v23  ;;  %v3856_v27 = vsel %vm1768_vm1, %v3853_v60, %v3855_v48  ;;  %v3119_v24 = vor.u32 %v3117_v12, %v3116_v61  ;;  %v2939_v60 = vld [vmem:[#allocation2 + $0x1e0] sm:$0x80] }
 0x22a   : > { %v3889_v45 = vshrl.u32 %v3116_v61, 16  ;;  %9427 = vmatprep.mubr.bf16.mxu0 %v4345_v18  ;;  %v4376_v50 = vsel %vm1768_vm1, %v4368_v54, %v4375_v57  ;;  %4819 = vmatmul.mubr.bf16.gmra.mrb[60].mxu1 %v3856_v27  ;;  %v1772_v32 = vrot.slane %v1770_v13, 7  ;;  %v1773_v29 = vrot.slane %v1387_v10, 7  ;;  %v9751_v61 = vld [vmem:[#allocation10 + $0x200] sm:$0xff]   ;;  %v1291_v13 = vld [vmem:[#allocation2 + $0x30] sm:$0x80] }
 0x22b   : > { %v1389_v63 = vor.u32 %v1387_v10, %v1386_v16  ;;  %v1777_v58 = vshrl.u32 %v1386_v16, 16  ;;  %9428 = vmatmul.mubr.bf16.gmra.mrb[124].mxu0 %v4376_v50  ;;  %v3893_v28 = vshrl.u32 %v3119_v24, 16  ;;  %v3896_v3 = vshll.u32 %v3119_v24, 16  ;;  %v9786_v24 = vld [vmem:[#allocation2 + $0x200] sm:$0xff]  ;;  %9511 = vmatprep.subr.bf16.mxu0 %v9751_v61 }
 0x22c   : > { %v3891_v42 = vrot.slane %v3889_v45, 7  ;;  %v1391_v52 = vshll.u32 %v1290_v44, 16  ;;  %v1774_v33 = vor.u32 %v1773_v29, %v1384_v2  ;;  %v1394_v17 = vshrl.u32 %v1290_v44, 16  ;;  %v1294_v29 = vld [vmem:[#allocation2 + $0x50] sm:$0xff] }
 0x22d   : > { %v1779_v6 = vrot.slane %v1777_v58, 7  ;;  %v1781_v5 = vshrl.u32 %v1389_v63, 16  ;;  %v1784_v19 = vshll.u32 %v1389_v63, 16  ;;  %v3895_v35 = vrot.slane %v3893_v28, 7 }
 0x22e   : > { %v3882_v0 = vshrl.u32 %v2937_v55, 16  ;;  %v1393_v11 = vrot.slane %v1391_v52, 1  ;;  %v3885_v51 = vrot.slane %v3117_v12, 7  ;;  %v3121_v40 = vshll.u32 %v9785_v31, 16 }
 0x22f   : > { %v1783_v20 = vrot.slane %v1781_v5, 7  ;;  %v3898_v56 = vor.u32 %v3896_v3, %v3895_v35  ;;  %v1775_v38 = vsel %vm1768_vm1, %v1772_v32, %v1774_v33  ;;  %v3124_v9 = vshrl.u32 %v9785_v31, 16  ;;  %v2941_v35 = vld [vmem:[#allocation2 + $0x1f8] sm:$0x80] }
 0x230   : > { %v3884_v59 = vrot.slane %v3882_v0, 7  ;;  %v1396_v34 = vor.u32 %v1394_v17, %v1393_v11  ;;  %v1808_v37 = vshrl.u32 %v1393_v11, 16  ;;  %v3886_v43 = vor.u32 %v3885_v51, %v3114_v14 }
 0x231   : > { %v1786_v22 = vor.u32 %v1784_v19, %v1783_v20  ;;  %v3899_v39 = vsel %vm1768_vm1, %v3891_v42, %v3898_v56  ;;  %v3123_v30 = vrot.slane %v3121_v40, 1  ;;  %v1801_v49 = vshrl.u32 %v1289_v36, 16 }
 0x232   : > { %v1804_v41 = vrot.slane %v1394_v17, 7  ;;  %4826 = vmatprep.mubr.bf16.mxu1 %v3899_v39  ;;  %v1810_v1 = vrot.slane %v1808_v37, 7  ;;  %v1812_v15 = vshrl.u32 %v1396_v34, 16  ;;  %v1815_v62 = vshll.u32 %v1396_v34, 16 }
 0x233   : > { %v1787_v4 = vsel %vm1768_vm1, %v1779_v6, %v1786_v22  ;;  %v3887_v7 = vsel %vm1768_vm1, %v3884_v59, %v3886_v43  ;;  %v3126_v54 = vor.u32 %v3124_v9, %v3123_v30  ;;  %v3920_v46 = vshrl.u32 %v3123_v30, 16  ;;  %v1293_v43 = vld [vmem:[#allocation2 + $0x48] sm:$0x80] }
 0x234   : > { %5420 = vmatprep.mubr.bf16.mxu0 %v1787_v4  ;;  %v1803_v21 = vrot.slane %v1801_v49, 7  ;;  %v1814_v14 = vrot.slane %v1812_v15, 7  ;;  %4827 = vmatmul.mubr.bf16.gmra.mrb[64].mxu1 %v3887_v7  ;;  %v1805_v53 = vor.u32 %v1804_v41, %v1391_v52  ;;  %v1398_v8 = vshll.u32 %v1292_v47, 16  ;;  %v9787_v49 = vld [vmem:[#allocation2 + $0x218] sm:$0xff] }
 0x235   : > { %5421 = vmatmul.mubr.bf16.vlgmr.msra.gmra.mrb[128].mxu0 %v1775_v38  ;;  %v1401_v26 = vshrl.u32 %v1292_v47, 16  ;;  %v3922_v12 = vrot.slane %v3920_v46, 7  ;;  %v3924_v2 = vshrl.u32 %v3126_v54, 16  ;;  %v3927_v23 = vshll.u32 %v3126_v54, 16 }
 0x236   : > { %v3913_v48 = vshrl.u32 %v2939_v60, 16  ;;  %v1817_v10 = vor.u32 %v1815_v62, %v1814_v14  ;;  %v1806_v25 = vsel %vm1768_vm1, %v1803_v21, %v1805_v53  ;;  %v1400_v57 = vrot.slane %v1398_v8, 1  ;;  %9512 = vmatpush3.bf16.msra.mxu0 %v9751_v61  ;;  %v1296_v21 = vld [vmem:[#allocation2 + $0x68] sm:$0xff] }
 0x237   : > { %v3916_v16 = vrot.slane %v3124_v9, 7  ;;  %v3926_v18 = vrot.slane %v3924_v2, 7  ;;  %v3128_v45 = vshll.u32 %v9786_v24, 16  ;;  %v3131_v44 = vshrl.u32 %v9786_v24, 16 }
 0x238   : > { %v3915_v27 = vrot.slane %v3913_v48, 7  ;;  %v1818_v50 = vsel %vm1768_vm1, %v1810_v1, %v1817_v10  ;;  %v1403_v63 = vor.u32 %v1401_v26, %v1400_v57  ;;  %v1839_v58 = vshrl.u32 %v1400_v57, 16 }
 0x239   : > { %v3917_v32 = vor.u32 %v3916_v16, %v3121_v40  ;;  %5428 = vmatprep.mubr.bf16.mxu0 %v1818_v50  ;;  %v3929_v55 = vor.u32 %v3927_v23, %v3926_v18  ;;  %v3130_v42 = vrot.slane %v3128_v45, 1  ;;  %v1832_v28 = vshrl.u32 %v1291_v13, 16 }
 0x23a   : > { %v1835_v3 = vrot.slane %v1401_v26, 7  ;;  %v1841_v6 = vrot.slane %v1839_v58, 7  ;;  %v1843_v5 = vshrl.u32 %v1403_v63, 16  ;;  %v1846_v19 = vshll.u32 %v1403_v63, 16  ;;  %v1295_v58 = vld [vmem:[#allocation2 + $0x60] sm:$0x80] }
 0x23b   : > { %v3918_v52 = vsel %vm1768_vm1, %v3915_v27, %v3917_v32  ;;  %v3930_v33 = vsel %vm1768_vm1, %v3922_v12, %v3929_v55  ;;  %v3133_v17 = vor.u32 %v3131_v44, %v3130_v42  ;;  %v3951_v0 = vshrl.u32 %v3130_v42, 16  ;;  %v2943_v12 = vld [vmem:[#allocation2 + $0x210] sm:$0x80] }
 0x23c   : > { %v1834_v20 = vrot.slane %v1832_v28, 7  ;;  %4834 = vmatprep.mubr.bf16.mxu1 %v3930_v33  ;;  %v1845_v11 = vrot.slane %v1843_v5, 7  ;;  %v1836_v51 = vor.u32 %v1835_v3, %v1398_v8  ;;  %v1405_v31 = vshll.u32 %v1294_v29, 16  ;;  %v9788_v42 = vld [vmem:[#allocation2 + $0x230] sm:$0xff] }
 0x23d   : > { %5429 = vmatmul.mubr.bf16.gmra.mrb[132].mxu0 %v1806_v25  ;;  %v1408_v40 = vshrl.u32 %v1294_v29, 16  ;;  %4835 = vmatmul.mubr.bf16.gmra.mrb[68].mxu1 %v3918_v52  ;;  %v3953_v36 = vrot.slane %v3951_v0, 7  ;;  %v3955_v56 = vshrl.u32 %v3133_v17, 16  ;;  %v3958_v38 = vshll.u32 %v3133_v17, 16  ;;  %v1298_v0 = vld [vmem:[#allocation2 + $0x80] sm:$0xff] }
 0x23e   : > { %v3944_v59 = vshrl.u32 %v2941_v35, 16  ;;  %v1848_v9 = vor.u32 %v1846_v19, %v1845_v11  ;;  %v1837_v22 = vsel %vm1768_vm1, %v1834_v20, %v1836_v51  ;;  %v1407_v34 = vrot.slane %v1405_v31, 1 }
 0x23f   : > { %v3947_v37 = vrot.slane %v3131_v44, 7  ;;  %v3957_v39 = vrot.slane %v3955_v56, 7  ;;  %v3135_v41 = vshll.u32 %v9787_v49, 16  ;;  %v3138_v47 = vshrl.u32 %v9787_v49, 16 }
 0x240   : > { %v3946_v30 = vrot.slane %v3944_v59, 7  ;;  %v1849_v4 = vsel %vm1768_vm1, %v1841_v6, %v1848_v9  ;;  %v1410_v1 = vor.u32 %v1408_v40, %v1407_v34  ;;  %v1870_v15 = vshrl.u32 %v1407_v34, 16 }
 0x241   : > { %v3948_v62 = vor.u32 %v3947_v37, %v3128_v45  ;;  %5436 = vmatprep.mubr.bf16.mxu0 %v1849_v4  ;;  %v3960_v60 = vor.u32 %v3958_v38, %v3957_v39  ;;  %v3137_v7 = vrot.slane %v3135_v41, 1  ;;  %v1863_v54 = vshrl.u32 %v1293_v43, 16 }
 0x242   : > { %v1866_v46 = vrot.slane %v1408_v40, 7  ;;  %v1872_v14 = vrot.slane %v1870_v15, 7  ;;  %v1874_v53 = vshrl.u32 %v1410_v1, 16  ;;  %v1877_v8 = vshll.u32 %v1410_v1, 16  ;;  %v2945_v40 = vld [vmem:[#allocation2 + $0x228] sm:$0x80] }
 0x243   : > { %v3949_v26 = vsel %vm1768_vm1, %v3946_v30, %v3948_v62  ;;  %v3961_v2 = vsel %vm1768_vm1, %v3953_v36, %v3960_v60  ;;  %v3140_v23 = vor.u32 %v3138_v47, %v3137_v7  ;;  %v3982_v48 = vshrl.u32 %v3137_v7, 16  ;;  %v1297_v62 = vld [vmem:[#allocation2 + $0x78] sm:$0x80] }
 0x244   : > { %v1865_v61 = vrot.slane %v1863_v54, 7  ;;  %4842 = vmatprep.mubr.bf16.mxu1 %v3961_v2  ;;  %v1876_v10 = vrot.slane %v1874_v53, 7  ;;  %v1867_v25 = vor.u32 %v1866_v46, %v1405_v31  ;;  %v1412_v57 = vshll.u32 %v1296_v21, 16  ;;  %v9789_v46 = vld [vmem:[#allocation2 + $0x248] sm:$0xff] }
 0x245   : > { %5437 = vmatmul.mubr.bf16.gmra.mrb[136].mxu0 %v1837_v22  ;;  %v1415_v16 = vshrl.u32 %v1296_v21, 16  ;;  %4843 = vmatmul.mubr.bf16.gmra.mrb[72].mxu1 %v3949_v26  ;;  %v3984_v13 = vrot.slane %v3982_v48, 7  ;;  %v3986_v18 = vshrl.u32 %v3140_v23, 16  ;;  %v3989_v27 = vshll.u32 %v3140_v23, 16 }
 0x246   : > { %v3975_v24 = vshrl.u32 %v2943_v12, 16  ;;  %v1879_v45 = vor.u32 %v1877_v8, %v1876_v10  ;;  %v1868_v44 = vsel %vm1768_vm1, %v1865_v61, %v1867_v25  ;;  %v1414_v50 = vrot.slane %v1412_v57, 1 }
 0x247   : > { %v3978_v63 = vrot.slane %v3138_v47, 7  ;;  %v3988_v32 = vrot.slane %v3986_v18, 7  ;;  %v3142_v28 = vshll.u32 %v9788_v42, 16  ;;  %v3145_v3 = vshrl.u32 %v9788_v42, 16 }
 0x248   : > { %v3977_v55 = vrot.slane %v3975_v24, 7  ;;  %v1880_v29 = vsel %vm1768_vm1, %v1872_v14, %v1879_v45  ;;  %v1417_v6 = vor.u32 %v1415_v16, %v1414_v50  ;;  %v1901_v5 = vshrl.u32 %v1414_v50, 16  ;;  %v2947_v24 = vld [vmem:[#allocation2 + $0x240] sm:$0x80] }
 0x249   : > { %v3979_v19 = vor.u32 %v3978_v63, %v3135_v41  ;;  %5444 = vmatprep.mubr.bf16.mxu0 %v1880_v29  ;;  %v3991_v52 = vor.u32 %v3989_v27, %v3988_v32  ;;  %v3144_v35 = vrot.slane %v3142_v28, 1  ;;  %v1894_v33 = vshrl.u32 %v1295_v58, 16  ;;  %v11004_v41 = vpop.f32.mrb[64].mxu0 }
 0x24a   : > { %v1897_v17 = vrot.slane %v1415_v16, 7  ;;  %v1903_v20 = vrot.slane %v1901_v5, 7  ;;  %v1905_v11 = vshrl.u32 %v1417_v6, 16  ;;  %v1908_v51 = vshll.u32 %v1417_v6, 16  ;;  %v11007_v60 = vpop.f32.mrb[65].mxu0 }
 0x24b   : > { %v3980_v31 = vsel %vm1768_vm1, %v3977_v55, %v3979_v19  ;;  %v3992_v36 = vsel %vm1768_vm1, %v3984_v13, %v3991_v52  ;;  %v3147_v56 = vor.u32 %v3145_v3, %v3144_v35  ;;  %v4013_v38 = vshrl.u32 %v3144_v35, 16  ;;  %v11009_v53 = vpop.f32.mrb[66].mxu0 }
 0x24c   : > { %v1896_v59 = vrot.slane %v1894_v33, 7  ;;  %4850 = vmatprep.mubr.bf16.mxu1 %v3992_v36  ;;  %v1907_v9 = vrot.slane %v1905_v11, 7  ;;  %v1898_v22 = vor.u32 %v1897_v17, %v1412_v57  ;;  %v1419_v34 = vshll.u32 %v1298_v0, 16  ;;  %v11012_v23 = vpop.f32.mrb[67].mxu0  ;;  %v1300_v57 = vld [vmem:[#allocation2 + $0x98] sm:$0xff] }
 0x24d   : > { %5445 = vmatmul.mubr.bf16.gmra.mrb[140].mxu0 %v1868_v44  ;;  %v1422_v37 = vshrl.u32 %v1298_v0, 16  ;;  %4851 = vmatmul.mubr.bf16.gmra.mrb[76].mxu1 %v3980_v31  ;;  %v4015_v43 = vrot.slane %v4013_v38, 7  ;;  %v4017_v39 = vshrl.u32 %v3147_v56, 16  ;;  %v4020_v30 = vshll.u32 %v3147_v56, 16  ;;  %v1299_v0 = vld [vmem:[#allocation2 + $0x90] sm:$0x80] }
 0x24e   : > { %v4006_v49 = vshrl.u32 %v2945_v40, 16  ;;  %v1910_v47 = vor.u32 %v1908_v51, %v1907_v9  ;;  %v1899_v4 = vsel %vm1768_vm1, %v1896_v59, %v1898_v22  ;;  %v1421_v1 = vrot.slane %v1419_v34, 1  ;;  %v9790_v31 = vld [vmem:[#allocation2 + $0x260] sm:$0xff] }
 0x24f   : > { %v4009_v15 = vrot.slane %v3145_v3, 7  ;;  %v4019_v7 = vrot.slane %v4017_v39, 7  ;;  %v3149_v21 = vshll.u32 %v9789_v46, 16  ;;  %v3152_v14 = vshrl.u32 %v9789_v46, 16 }
 0x250   : > { %v4008_v54 = vrot.slane %v4006_v49, 7  ;;  %v1911_v8 = vsel %vm1768_vm1, %v1903_v20, %v1910_v47  ;;  %v1424_v26 = vor.u32 %v1422_v37, %v1421_v1  ;;  %v1932_v12 = vshrl.u32 %v1421_v1, 16 }
 0x251   : > { %v4010_v2 = vor.u32 %v4009_v15, %v3142_v28  ;;  %5452 = vmatprep.mubr.bf16.mxu0 %v1911_v8  ;;  %v4022_v48 = vor.u32 %v4020_v30, %v4019_v7  ;;  %v3151_v61 = vrot.slane %v3149_v21, 1  ;;  %v1925_v10 = vshrl.u32 %v1297_v62, 16  ;;  %v11016_v28 = vpop.f32.mrb[0].mxu1  ;;  %v11022_v30 = vld [vmem:[#allocation2 + $0xb0] sm:$0xff]  ;;  %v2949_v15 = vld [vmem:[#allocation2 + $0x258] sm:$0x80] }
 0x252   : > { %v1928_v25 = vrot.slane %v1422_v37, 7  ;;  %v1934_v16 = vrot.slane %v1932_v12, 7  ;;  %v1936_v13 = vshrl.u32 %v1424_v26, 16  ;;  %v1939_v18 = vshll.u32 %v1424_v26, 16  ;;  %v4702_v19 = vpop.f32.mrb[1].mxu1  ;;  %v9756_v12 = vld [vmem:[#allocation10 + $0x208] sm:$0xff]  }
 0x253   : > { %v4011_v27 = vsel %vm1768_vm1, %v4008_v54, %v4010_v2  ;;  %v4023_v45 = vsel %vm1768_vm1, %v4015_v43, %v4022_v48  ;;  %v3154_v44 = vor.u32 %v3152_v14, %v3151_v61  ;;  %v4044_v50 = vshrl.u32 %v3151_v61, 16  ;;  %v11019_v20 = vpop.f32.mrb[2].mxu1  ;;  %9513 = vmatprep.subr.bf16.mxu0 %v9756_v12 }
 0x254   : > { %v1927_v63 = vrot.slane %v1925_v10, 7  ;;  %4858 = vmatprep.mubr.bf16.mxu1 %v4023_v45  ;;  %v1938_v58 = vrot.slane %v1936_v13, 7  ;;  %v1929_v32 = vor.u32 %v1928_v25, %v1419_v34  ;;  %v1426_v55 = vshll.u32 %v1300_v57, 16  ;;  %v4705_v56 = vpop.f32.mrb[3].mxu1  ;;  %v9791_v45 = vld [vmem:[#allocation2 + $0x278] sm:$0xff]  ;;  %9514 = vmatpush3.bf16.msra.mxu0 %v9756_v12 }
 0x255   : > { %5453 = vmatmul.mubr.bf16.gmra.mrb[144].mxu0 %v1899_v4  ;;  %v1429_v42 = vshrl.u32 %v1300_v57, 16  ;;  %4859 = vmatmul.mubr.bf16.gmra.mrb[80].mxu1 %v4011_v27  ;;  %v4046_v3 = vrot.slane %v4044_v50, 7  ;;  %v4048_v29 = vshrl.u32 %v3154_v44, 16  ;;  %v4051_v6 = vshll.u32 %v3154_v44, 16 }
 0x256   : > { %v4037_v5 = vshrl.u32 %v2947_v24, 16  ;;  %v1941_v52 = vor.u32 %v1939_v18, %v1938_v58  ;;  %v1930_v35 = vsel %vm1768_vm1, %v1927_v63, %v1929_v32  ;;  %v1428_v33 = vrot.slane %v1426_v55, 1  ;;  %v1301_v18 = vld [vmem:[#allocation2 + $0xa8] sm:$0x80] }
 0x257   : > { %v4040_v17 = vrot.slane %v3152_v14, 7  ;;  %v4050_v11 = vrot.slane %v4048_v29, 7  ;;  %v3156_v40 = vshll.u32 %v9790_v31, 16  ;;  %v3159_v36 = vshrl.u32 %v9790_v31, 16 }
 0x258   : > { %v4039_v51 = vrot.slane %v4037_v5, 7  ;;  %v1942_v38 = vsel %vm1768_vm1, %v1934_v16, %v1941_v52  ;;  %v1431_v59 = vor.u32 %v1429_v42, %v1428_v33  ;;  %v1963_v9 = vshrl.u32 %v1428_v33, 16  ;;  %v1304_v33 = vld [vmem:[#allocation2 + $0xc8] sm:$0xff] }
 0x259   : > { %v4041_v22 = vor.u32 %v4040_v17, %v3149_v21  ;;  %5460 = vmatprep.mubr.bf16.mxu0 %v1942_v38  ;;  %v4053_v34 = vor.u32 %v4051_v6, %v4050_v11  ;;  %v3158_v37 = vrot.slane %v3156_v40, 1  ;;  %v1956_v43 = vshrl.u32 %v1299_v0, 16 }
 0x25a   : > { %v1959_v39 = vrot.slane %v1429_v42, 7  ;;  %v1965_v49 = vrot.slane %v1963_v9, 7  ;;  %v1967_v47 = vshrl.u32 %v1431_v59, 16  ;;  %v1970_v4 = vshll.u32 %v1431_v59, 16 }
 0x25b   : > { %v4042_v1 = vsel %vm1768_vm1, %v4039_v51, %v4041_v22  ;;  %v4054_v62 = vsel %vm1768_vm1, %v4046_v3, %v4053_v34  ;;  %v3161_v7 = vor.u32 %v3159_v36, %v3158_v37  ;;  %v4075_v54 = vshrl.u32 %v3158_v37, 16  ;;  %v2951_v3 = vld [vmem:[#allocation2 + $0x270] sm:$0x80] }
 0x25c   : > { %v1958_v46 = vrot.slane %v1956_v43, 7  ;;  %4866 = vmatprep.mubr.bf16.mxu1 %v4054_v62  ;;  %v1969_v21 = vrot.slane %v1967_v47, 7  ;;  %v1960_v14 = vor.u32 %v1959_v39, %v1426_v55  ;;  %v1433_v8 = vshll.u32 %v11022_v30, 16  ;;  %v11029_v63 = vpop.f32.mrb[4].mxu1 }
 0x25d   : > { %5461 = vmatmul.mubr.bf16.gmra.mrb[148].mxu0 %v1930_v35  ;;  %v1436_v26 = vshrl.u32 %v11022_v30, 16  ;;  %4867 = vmatmul.mubr.bf16.gmra.mrb[84].mxu1 %v4042_v1  ;;  %v4077_v2 = vrot.slane %v4075_v54, 7  ;;  %v4079_v48 = vshrl.u32 %v3161_v7, 16  ;;  %v4082_v61 = vshll.u32 %v3161_v7, 16  ;;  %v11032_v29 = vpop.f32.mrb[68].mxu0  ;;  %v4710_v6 = vpop.f32.mrb[5].mxu1 }
 0x25e   : > { %v4068_v10 = vshrl.u32 %v2949_v15, 16  ;;  %v1972_v25 = vor.u32 %v1970_v4, %v1969_v21  ;;  %v1961_v57 = vsel %vm1768_vm1, %v1958_v46, %v1960_v14  ;;  %v1435_v16 = vrot.slane %v1433_v8, 1  ;;  %v11034_v17 = vpop.f32.mrb[69].mxu0  ;;  %v11036_v0 = vpop.f32.mrb[6].mxu1  ;;  %v1303_v46 = vld [vmem:[#allocation2 + $0xc0] sm:$0x80] }
 0x25f   : > { %v4071_v13 = vrot.slane %v3159_v36, 7  ;;  %v4081_v27 = vrot.slane %v4079_v48, 7  ;;  %v3163_v44 = vshll.u32 %v9791_v45, 16  ;;  %v3166_v50 = vshrl.u32 %v9791_v45, 16  ;;  %v4713_v56 = vpop.f32.mrb[7].mxu1 }
 0x260   : > { %v4070_v24 = vrot.slane %v4068_v10, 7  ;;  %v1973_v58 = vsel %vm1768_vm1, %v1965_v49, %v1972_v25  ;;  %v1438_v32 = vor.u32 %v1436_v26, %v1435_v16  ;;  %v1994_v55 = vshrl.u32 %v1435_v16, 16 }
 0x261   : > { %v4072_v42 = vor.u32 %v4071_v13, %v3156_v40  ;;  %5468 = vmatprep.mubr.bf16.mxu0 %v1973_v58  ;;  %v4084_v5 = vor.u32 %v4082_v61, %v4081_v27  ;;  %v3165_v19 = vrot.slane %v3163_v44, 1  ;;  %v1987_v52 = vshrl.u32 %v1301_v18, 16  ;;  %v11039_v40 = vpop.f32.mrb[70].mxu0  ;;  %v1306_v18 = vld [vmem:[#allocation2 + $0xe0] sm:$0xff]  ;;  %v2953_v58 = vld [vmem:[#allocation2 + $0x288] sm:$0x80] }
 0x262   : > { %v1990_v35 = vrot.slane %v1436_v26, 7  ;;  %v1996_v11 = vrot.slane %v1994_v55, 7  ;;  %v1998_v51 = vshrl.u32 %v1438_v32, 16  ;;  %v2001_v31 = vshll.u32 %v1438_v32, 16  ;;  %v11042_v34 = vpop.f32.mrb[71].mxu0  ;;  %v9792_v26 = vld [vmem:[#allocation2 + $0x290] sm:$0xff] }
 0x263   : > { %v4073_v36 = vsel %vm1768_vm1, %v4070_v24, %v4072_v42  ;;  %v4085_v38 = vsel %vm1768_vm1, %v4077_v2, %v4084_v5  ;;  %v3168_v59 = vor.u32 %v3166_v50, %v3165_v19  ;;  %v4106_v9 = vshrl.u32 %v3165_v19, 16 }
 0x264   : > { %v1989_v22 = vrot.slane %v1987_v52, 7  ;;  %4874 = vmatprep.mubr.bf16.mxu1 %v4085_v38  ;;  %v2000_v37 = vrot.slane %v1998_v51, 7  ;;  %v1991_v43 = vor.u32 %v1990_v35, %v1433_v8  ;;  %v1440_v39 = vshll.u32 %v1304_v33, 16 }
 0x265   : > { %5469 = vmatmul.mubr.bf16.gmra.mrb[152].mxu0 %v1961_v57  ;;  %v1443_v30 = vshrl.u32 %v1304_v33, 16  ;;  %4875 = vmatmul.mubr.bf16.gmra.mrb[88].mxu1 %v4073_v36  ;;  %v4108_v49 = vrot.slane %v4106_v9, 7  ;;  %v4110_v47 = vshrl.u32 %v3168_v59, 16  ;;  %v4113_v4 = vshll.u32 %v3168_v59, 16  ;;  %v1305_v59 = vld [vmem:[#allocation2 + $0xd8] sm:$0x80] }
 0x266   : > { %v4099_v1 = vshrl.u32 %v2951_v3, 16  ;;  %v2003_v15 = vor.u32 %v2001_v31, %v2000_v37  ;;  %v1992_v62 = vsel %vm1768_vm1, %v1989_v22, %v1991_v43  ;;  %v1442_v7 = vrot.slane %v1440_v39, 1 }
 0x267   : > { %v4102_v54 = vrot.slane %v3166_v50, 7  ;;  %v4112_v21 = vrot.slane %v4110_v47, 7  ;;  %v3170_v12 = vshll.u32 %v9792_v26, 16  ;;  %v3173_v2 = vshrl.u32 %v9792_v26, 16 }
 0x268   : > { %v4101_v14 = vrot.slane %v4099_v1, 7  ;;  %v2004_v8 = vsel %vm1768_vm1, %v1996_v11, %v2003_v15  ;;  %v1445_v48 = vor.u32 %v1443_v30, %v1442_v7  ;;  %v2025_v61 = vshrl.u32 %v1442_v7, 16 }
 0x269   : > { %v4103_v10 = vor.u32 %v4102_v54, %v3163_v44  ;;  %5476 = vmatprep.mubr.bf16.mxu0 %v2004_v8  ;;  %v4115_v25 = vor.u32 %v4113_v4, %v4112_v21  ;;  %v3172_v57 = vrot.slane %v3170_v12, 1  ;;  %v2018_v16 = vshrl.u32 %v1303_v46, 16  ;;  %v1308_v8 = vld [vmem:[#allocation2 + $0xf8] sm:$0xff] }
 0x26a   : > { %v2021_v13 = vrot.slane %v1443_v30, 7  ;;  %v2027_v27 = vrot.slane %v2025_v61, 7  ;;  %v2029_v24 = vshrl.u32 %v1445_v48, 16  ;;  %v2032_v45 = vshll.u32 %v1445_v48, 16 }
 0x26b   : > { %v4104_v50 = vsel %vm1768_vm1, %v4101_v14, %v4103_v10  ;;  %v4116_v32 = vsel %vm1768_vm1, %v4108_v49, %v4115_v25  ;;  %v3175_v55 = vor.u32 %v3173_v2, %v3172_v57  ;;  %v4137_v42 = vshrl.u32 %v3172_v57, 16  ;;  %v11048_v51 = vpop.f32.mrb[72].mxu0  ;;  %v11051_v9 = vpop.f32.mrb[8].mxu1 }
 0x26c   : > { %v2020_v3 = vrot.slane %v2018_v16, 7  ;;  %4882 = vmatprep.mubr.bf16.mxu1 %v4116_v32  ;;  %v2031_v44 = vrot.slane %v2029_v24, 7  ;;  %v2022_v6 = vor.u32 %v2021_v13, %v1440_v39  ;;  %v1447_v5 = vshll.u32 %v1306_v18, 16  ;;  %13446 = vst [vmem:[#allocation15_spill] sm:$0xff] %v11048_v51  ;;  %v11053_v22 = vpop.f32.mrb[73].mxu0  ;;  %v9793_v39 = vld [vmem:[#allocation2 + $0x2a8] sm:$0xff] }
 0x26d   : > { %5477 = vmatmul.mubr.bf16.gmra.mrb[156].mxu0 %v1992_v62  ;;  %v1450_v19 = vshrl.u32 %v1306_v18, 16  ;;  %4883 = vmatmul.mubr.bf16.gmra.mrb[92].mxu1 %v4104_v50  ;;  %v4139_v52 = vrot.slane %v4137_v42, 7  ;;  %v4141_v35 = vshrl.u32 %v3175_v55, 16  ;;  %v4144_v33 = vshll.u32 %v3175_v55, 16  ;;  %13447 = vst [vmem:[#allocation16_spill] sm:$0xff] %v11053_v22  ;;  %v4718_v47 = vpop.f32.mrb[9].mxu1 }
 0x26e   : > { %v4130_v11 = vshrl.u32 %v2953_v58, 16  ;;  %v2034_v31 = vor.u32 %v2032_v45, %v2031_v44  ;;  %v2023_v36 = vsel %vm1768_vm1, %v2020_v3, %v2022_v6  ;;  %v1449_v56 = vrot.slane %v1447_v5, 1  ;;  %v11055_v4 = vpop.f32.mrb[74].mxu0  ;;  %v11058_v54 = vpop.f32.mrb[10].mxu1  ;;  %v2955_v16 = vld [vmem:[#allocation2 + $0x2a0] sm:$0x80] }
 0x26f   : > { %v4133_v38 = vrot.slane %v3173_v2, 7  ;;  %v4143_v37 = vrot.slane %v4141_v35, 7  ;;  %v3177_v30 = vshll.u32 %v9793_v39, 16  ;;  %v3180_v49 = vshrl.u32 %v9793_v39, 16  ;;  %13448 = vst [vmem:[#allocation17_spill] sm:$0xff] %v11055_v4  ;;  %v11060_v46 = vpop.f32.mrb[75].mxu0 }
 0x270   : > { %v4132_v43 = vrot.slane %v4130_v11, 7  ;;  %v2035_v1 = vsel %vm1768_vm1, %v2027_v27, %v2034_v31  ;;  %v1452_v15 = vor.u32 %v1450_v19, %v1449_v56  ;;  %v2056_v62 = vshrl.u32 %v1449_v56, 16  ;;  %13449 = vst [vmem:[#allocation18_spill] sm:$0xff] %v11060_v46  ;;  %v4721_v48 = vpop.f32.mrb[11].mxu1  ;;  %v9794_v31 = vld [vmem:[#allocation2 + $0x2c0] sm:$0xff] }
 0x271   : > { %v4134_v7 = vor.u32 %v4133_v38, %v3170_v12  ;;  %5484 = vmatprep.mubr.bf16.mxu0 %v2035_v1  ;;  %v4146_v21 = vor.u32 %v4144_v33, %v4143_v37  ;;  %v3179_v14 = vrot.slane %v3177_v30, 1  ;;  %v2049_v26 = vshrl.u32 %v1305_v59, 16  ;;  %v1358_v4 = vld [vmem:[#allocation2 + $0xb8] sm:$0x1] }
 0x272   : > { %v2052_v2 = vrot.slane %v1450_v19, 7  ;;  %v2058_v61 = vrot.slane %v2056_v62, 7  ;;  %v2060_v10 = vshrl.u32 %v1452_v15, 16  ;;  %v2063_v25 = vshll.u32 %v1452_v15, 16 }
 0x273   : > { %v4135_v57 = vsel %vm1768_vm1, %v4132_v43, %v4134_v7  ;;  %v4147_v13 = vsel %vm1768_vm1, %v4139_v52, %v4146_v21  ;;  %v3182_v12 = vor.u32 %v3180_v49, %v3179_v14  ;;  %v4168_v18 = vshrl.u32 %v3179_v14, 16  ;;  %v1307_v52 = vld [vmem:[#allocation2 + $0xf0] sm:$0x80]  ;;  %v2957_v43 = vld [vmem:[#allocation2 + $0x2b8] sm:$0x80] }
 0x274   : > { %v2051_v27 = vrot.slane %v2049_v26, 7  ;;  %4890 = vmatprep.mubr.bf16.mxu1 %v4147_v13  ;;  %v2062_v24 = vrot.slane %v2060_v10, 7  ;;  %v2053_v45 = vor.u32 %v2052_v2, %v1447_v5  ;;  %v1454_v50 = vshll.u32 %v1308_v8, 16 }
 0x275   : > { %5485 = vmatmul.mubr.bf16.gmra.mrb[160].mxu0 %v2023_v36  ;;  %v1457_v58 = vshrl.u32 %v1308_v8, 16  ;;  %4891 = vmatmul.mubr.bf16.gmra.mrb[96].mxu1 %v4135_v57  ;;  %v4170_v32 = vrot.slane %v4168_v18, 7  ;;  %v4172_v55 = vshrl.u32 %v3182_v12, 16  ;;  %v4175_v42 = vshll.u32 %v3182_v12, 16 }
 0x276   : > { %v4161_v3 = vshrl.u32 %v2955_v16, 16  ;;  %v2065_v44 = vor.u32 %v2063_v25, %v2062_v24  ;;  %v2054_v6 = vsel %vm1768_vm1, %v2051_v27, %v2053_v45  ;;  %v1456_v19 = vrot.slane %v1454_v50, 1  ;;  %v11066_v39 = vpop.f32.mrb[12].mxu1  ;;  %v11070_v21 = vpop.f32.mrb[76].mxu0 }
 0x277   : > { %v4164_v35 = vrot.slane %v3180_v49, 7  ;;  %v4174_v33 = vrot.slane %v4172_v55, 7  ;;  %v3184_v56 = vshll.u32 %v9794_v31, 16  ;;  %v3187_v36 = vshrl.u32 %v9794_v31, 16  ;;  %v11068_v49 = vld [vmem:[#allocation2 + $0x110] sm:$0xff]  ;;  %v4726_v7 = vpop.f32.mrb[13].mxu1 }
 0x278   : > { %v4163_v11 = vrot.slane %v4161_v3, 7  ;;  %v2066_v5 = vsel %vm1768_vm1, %v2058_v61, %v2065_v44  ;;  %v1459_v38 = vor.u32 %v1457_v58, %v1456_v19  ;;  %v2087_v59 = vshrl.u32 %v1456_v19, 16  ;;  %13450 = vst [vmem:[#allocation19_spill] sm:$0xff] %v11070_v21  ;;  %v11073_v48 = vpop.f32.mrb[14].mxu1 }
 0x279   : > { %v4165_v37 = vor.u32 %v4164_v35, %v3177_v30  ;;  %5492 = vmatprep.mubr.bf16.mxu0 %v2066_v5  ;;  %v4177_v47 = vor.u32 %v4175_v42, %v4174_v33  ;;  %v3186_v1 = vrot.slane %v3184_v56, 1  ;;  %v2080_v15 = vshrl.u32 %v1307_v52, 16  ;;  %v11075_v30 = vpop.f32.mrb[77].mxu0  ;;  %v4729_v16 = vpop.f32.mrb[15].mxu1  ;;  %v1309_v52 = vld [vmem:[#allocation2 + $0x108] sm:$0x80] }
 0x27a   : > { %v2083_v62 = vrot.slane %v1457_v58, 7  ;;  %v2089_v14 = vrot.slane %v2087_v59, 7  ;;  %v2091_v26 = vshrl.u32 %v1459_v38, 16  ;;  %v2094_v2 = vshll.u32 %v1459_v38, 16  ;;  %13451 = vst [vmem:[#allocation20_spill] sm:$0xff] %v11075_v30  ;;  %v11078_v13 = vpop.f32.mrb[78].mxu0 }
 0x27b   : > { %v4166_v8 = vsel %vm1768_vm1, %v4163_v11, %v4165_v37  ;;  %v4178_v61 = vsel %vm1768_vm1, %v4170_v32, %v4177_v47  ;;  %v3189_v10 = vor.u32 %v3187_v36, %v3186_v1  ;;  %v4199_v25 = vshrl.u32 %v3186_v1, 16  ;;  %13452 = vst [vmem:[#allocation21_spill] sm:$0xff] %v11078_v13  ;;  %v11082_v45 = vpop.f32.mrb[79].mxu0  ;;  %v9761_v5 = vld [vmem:[#allocation10 + $0x210] sm:$0xff]   ;;  %v1323_v30 = vld [vmem:[#allocation2 + $0x1e0] sm:$0x80] }
 0x27c   : > { %v2082_v57 = vrot.slane %v2080_v15, 7  ;;  %4898 = vmatprep.mubr.bf16.mxu1 %v4178_v61  ;;  %v2093_v12 = vrot.slane %v2091_v26, 7  ;;  %v2084_v18 = vor.u32 %v2083_v62, %v1454_v50  ;;  %v1461_v27 = vshll.u32 %v11068_v49, 16  ;;  %13453 = vst [vmem:[#allocation22_spill] sm:$0xff] %v11082_v45  ;;  %v9795_v50 = vld [vmem:[#allocation2 + $0x2d8] sm:$0xff]  ;;  %9515 = vmatprep.subr.bf16.mxu0 %v9761_v5 }
 0x27d   : > { %5493 = vmatmul.mubr.bf16.gmra.mrb[164].mxu0 %v2054_v6  ;;  %v1464_v24 = vshrl.u32 %v11068_v49, 16  ;;  %4899 = vmatmul.mubr.bf16.gmra.mrb[100].mxu1 %v4166_v8  ;;  %v4201_v58 = vrot.slane %v4199_v25, 7  ;;  %v4203_v55 = vshrl.u32 %v3189_v10, 16  ;;  %v4206_v32 = vshll.u32 %v3189_v10, 16  ;;  %v11086_v49 = vld [vmem:[#allocation2 + $0x128] sm:$0xff] }
 0x27e   : > { %v4192_v42 = vshrl.u32 %v2957_v43, 16  ;;  %v2096_v3 = vor.u32 %v2094_v2, %v2093_v12  ;;  %v2085_v44 = vsel %vm1768_vm1, %v2082_v57, %v2084_v18  ;;  %v1463_v19 = vrot.slane %v1461_v27, 1  ;;  %v2959_v8 = vld [vmem:[#allocation2 + $0x2d0] sm:$0x80]  ;;  %9516 = vmatpush3.bf16.msra.mxu0 %v9761_v5 }
 0x27f   : > { %v4195_v35 = vrot.slane %v3187_v36, 7  ;;  %v4205_v6 = vrot.slane %v4203_v55, 7  ;;  %v3191_v11 = vshll.u32 %v9795_v50, 16  ;;  %v3194_v31 = vshrl.u32 %v9795_v50, 16  ;;  %v9796_v5 = vld [vmem:[#allocation2 + $0x2f0] sm:$0xff] }
 0x280   : > { %v4194_v33 = vrot.slane %v4192_v42, 7  ;;  %v2097_v38 = vsel %vm1768_vm1, %v2089_v14, %v2096_v3  ;;  %v1466_v59 = vor.u32 %v1464_v24, %v1463_v19  ;;  %v2118_v37 = vshrl.u32 %v1463_v19, 16 }
 0x281   : > { %v4196_v47 = vor.u32 %v4195_v35, %v3184_v56  ;;  %5500 = vmatprep.mubr.bf16.mxu0 %v2097_v38  ;;  %v4208_v1 = vor.u32 %v4206_v32, %v4205_v6  ;;  %v3193_v43 = vrot.slane %v3191_v11, 1  ;;  %v2111_v15 = vshrl.u32 %v1309_v52, 16  ;;  %v1311_v52 = vld [vmem:[#allocation2 + $0x120] sm:$0x80] }
 0x282   : > { %v2114_v62 = vrot.slane %v1464_v24, 7  ;;  %v2120_v36 = vrot.slane %v2118_v37, 7  ;;  %v2122_v7 = vshrl.u32 %v1466_v59, 16  ;;  %v2125_v26 = vshll.u32 %v1466_v59, 16  ;;  %v11092_v18 = vpop.f32.mrb[80].mxu0 }
 0x283   : > { %v4197_v2 = vsel %vm1768_vm1, %v4194_v33, %v4196_v47  ;;  %v4209_v14 = vsel %vm1768_vm1, %v4201_v58, %v4208_v1  ;;  %v3196_v61 = vor.u32 %v3194_v31, %v3193_v43  ;;  %v4230_v10 = vshrl.u32 %v3193_v43, 16  ;;  %13454 = vst [vmem:[#allocation23_spill] sm:$0xff] %v11092_v18  ;;  %v11094_v3 = vpop.f32.mrb[81].mxu0 }
 0x284   : > { %v2113_v56 = vrot.slane %v2111_v15, 7  ;;  %4906 = vmatprep.mubr.bf16.mxu1 %v4209_v14  ;;  %v2124_v25 = vrot.slane %v2122_v7, 7  ;;  %v2115_v57 = vor.u32 %v2114_v62, %v1461_v27  ;;  %v1468_v16 = vshll.u32 %v11086_v49, 16  ;;  %13455 = vst [vmem:[#allocation24_spill] sm:$0xff] %v11094_v3  ;;  %v11097_v27 = vpop.f32.mrb[16].mxu1  ;;  %v11099_v6 = vpop.f32.mrb[82].mxu0 }
 0x285   : > { %5501 = vmatmul.mubr.bf16.gmra.mrb[168].mxu0 %v2085_v44  ;;  %v1471_v12 = vshrl.u32 %v11086_v49, 16  ;;  %4907 = vmatmul.mubr.bf16.gmra.mrb[104].mxu1 %v4197_v2  ;;  %v4232_v24 = vrot.slane %v4230_v10, 7  ;;  %v4234_v55 = vshrl.u32 %v3196_v61, 16  ;;  %v4237_v32 = vshll.u32 %v3196_v61, 16  ;;  %13456 = vst [vmem:[#allocation25_spill] sm:$0xff] %v11097_v27  ;;  %13457 = vst [vmem:[#allocation26_spill] sm:$0xff] %v11099_v6 }
 0x286   : > { %v4223_v42 = vshrl.u32 %v2959_v8, 16  ;;  %v2127_v58 = vor.u32 %v2125_v26, %v2124_v25  ;;  %v2116_v19 = vsel %vm1768_vm1, %v2113_v56, %v2115_v57  ;;  %v1470_v35 = vrot.slane %v1468_v16, 1  ;;  %v4734_v37 = vpop.f32.mrb[17].mxu1  ;;  %v11101_v47 = vpop.f32.mrb[83].mxu0  ;;  %v1314_v8 = vld [vmem:[#allocation2 + $0x140] sm:$0xff] }
 0x287   : > { %v4226_v44 = vrot.slane %v3194_v31, 7  ;;  %v4236_v33 = vrot.slane %v4234_v55, 7  ;;  %v3198_v38 = vshll.u32 %v9796_v5, 16  ;;  %v3201_v59 = vshrl.u32 %v9796_v5, 16  ;;  %13458 = vst [vmem:[#allocation27_spill] sm:$0xff] %v11101_v47  ;;  %v11104_v49 = vpop.f32.mrb[18].mxu1 }
 0x288   : > { %v4225_v50 = vrot.slane %v4223_v42, 7  ;;  %v2128_v1 = vsel %vm1768_vm1, %v2120_v36, %v2127_v58  ;;  %v1473_v43 = vor.u32 %v1471_v12, %v1470_v35  ;;  %v2149_v15 = vshrl.u32 %v1470_v35, 16  ;;  %13459 = vst [vmem:[#allocation28_spill] sm:$0xff] %v11104_v49  ;;  %v4737_v14 = vpop.f32.mrb[19].mxu1  ;;  %v2961_v57 = vld [vmem:[#allocation2 + $0x2e8] sm:$0x80] }
 0x289   : > { %v4227_v62 = vor.u32 %v4226_v44, %v3191_v11  ;;  %5508 = vmatprep.mubr.bf16.mxu0 %v2128_v1  ;;  %v4239_v31 = vor.u32 %v4237_v32, %v4236_v33  ;;  %v3200_v7 = vrot.slane %v3198_v38, 1  ;;  %v2142_v26 = vshrl.u32 %v1311_v52, 16  ;;  %v11110_v14 = vld [vmem:[#allocation2 + $0x158] sm:$0xff] }
 0x28a   : > { %v2145_v2 = vrot.slane %v1471_v12, 7  ;;  %v2151_v61 = vrot.slane %v2149_v15, 7  ;;  %v2153_v10 = vshrl.u32 %v1473_v43, 16  ;;  %v2156_v56 = vshll.u32 %v1473_v43, 16 }
 0x28b   : > { %v4228_v25 = vsel %vm1768_vm1, %v4225_v50, %v4227_v62  ;;  %v4240_v36 = vsel %vm1768_vm1, %v4232_v24, %v4239_v31  ;;  %v3203_v55 = vor.u32 %v3201_v59, %v3200_v7  ;;  %v4261_v42 = vshrl.u32 %v3200_v7, 16  ;;  %v1313_v24 = vld [vmem:[#allocation2 + $0x138] sm:$0x80]  ;;  %v9797_v31 = vld [vmem:[#allocation2 + $0x308] sm:$0xff] }
 0x28c   : > { %v2144_v11 = vrot.slane %v2142_v26, 7  ;;  %4914 = vmatprep.mubr.bf16.mxu1 %v4240_v36  ;;  %v2155_v58 = vrot.slane %v2153_v10, 7  ;;  %v2146_v32 = vor.u32 %v2145_v2, %v1468_v16  ;;  %v1475_v35 = vshll.u32 %v1314_v8, 16  ;;  %v2963_v36 = vld [vmem:[#allocation2 + $0x300] sm:$0x80] }
 0x28d   : > { %5509 = vmatmul.mubr.bf16.gmra.mrb[172].mxu0 %v2116_v19  ;;  %v1478_v44 = vshrl.u32 %v1314_v8, 16  ;;  %4915 = vmatmul.mubr.bf16.gmra.mrb[108].mxu1 %v4228_v25  ;;  %v4263_v12 = vrot.slane %v4261_v42, 7  ;;  %v4265_v52 = vshrl.u32 %v3203_v55, 16  ;;  %v4268_v33 = vshll.u32 %v3203_v55, 16 }
 0x28e   : > { %v4254_v5 = vshrl.u32 %v2961_v57, 16  ;;  %v2158_v37 = vor.u32 %v2156_v56, %v2155_v58  ;;  %v2147_v50 = vsel %vm1768_vm1, %v2144_v11, %v2146_v32  ;;  %v1477_v1 = vrot.slane %v1475_v35, 1  ;;  %v11112_v10 = vpop.f32.mrb[20].mxu1 }
 0x28f   : > { %v4257_v43 = vrot.slane %v3201_v59, 7  ;;  %v4267_v15 = vrot.slane %v4265_v52, 7  ;;  %v3205_v7 = vshll.u32 %v9797_v31, 16  ;;  %v3208_v19 = vshrl.u32 %v9797_v31, 16  ;;  %13460 = vst [vmem:[#allocation29_spill] sm:$0xff] %v11112_v10  ;;  %v4742_v55 = vpop.f32.mrb[21].mxu1 }
 0x290   : > { %v4256_v62 = vrot.slane %v4254_v5, 7  ;;  %v2159_v16 = vsel %vm1768_vm1, %v2151_v61, %v2158_v37  ;;  %v1480_v26 = vor.u32 %v1478_v44, %v1477_v1  ;;  %v2180_v2 = vshrl.u32 %v1477_v1, 16  ;;  %v11115_v61 = vpop.f32.mrb[22].mxu1  ;;  %v1315_v55 = vld [vmem:[#allocation2 + $0x150] sm:$0x80] }
 0x291   : > { %v4258_v8 = vor.u32 %v4257_v43, %v3198_v38  ;;  %5516 = vmatprep.mubr.bf16.mxu0 %v2159_v16  ;;  %v4270_v56 = vor.u32 %v4268_v33, %v4267_v15  ;;  %v3207_v25 = vrot.slane %v3205_v7, 1  ;;  %v2173_v57 = vshrl.u32 %v1313_v24, 16  ;;  %13461 = vst [vmem:[#allocation30_spill] sm:$0xff] %v11115_v61  ;;  %v11117_v52 = vpop.f32.mrb[84].mxu0  ;;  %v4745_v33 = vpop.f32.mrb[23].mxu1  ;;  %v9757_v61 = vld [vmem:[#allocation10 + $0x1a0] sm:$0xff]  }
 0x292   : > { %v2176_v59 = vrot.slane %v1478_v44, 7  ;;  %v2182_v42 = vrot.slane %v2180_v2, 7  ;;  %v2184_v11 = vshrl.u32 %v1480_v26, 16  ;;  %v2187_v58 = vshll.u32 %v1480_v26, 16  ;;  %13462 = vst [vmem:[#allocation31_spill] sm:$0xff] %v11117_v52  ;;  %v11120_v43 = vpop.f32.mrb[85].mxu0 }
 0x293   : > { %v4259_v32 = vsel %vm1768_vm1, %v4256_v62, %v4258_v8  ;;  %v4271_v38 = vsel %vm1768_vm1, %v4263_v12, %v4270_v56  ;;  %v3210_v5 = vor.u32 %v3208_v19, %v3207_v25  ;;  %v4292_v37 = vshrl.u32 %v3207_v25, 16  ;;  %13463 = vst [vmem:[#allocation32_spill] sm:$0xff] %v11120_v43  ;;  %v11124_v31 = vpop.f32.mrb[86].mxu0 }
 0x294   : > { %v2175_v1 = vrot.slane %v2173_v57, 7  ;;  %4922 = vmatprep.mubr.bf16.mxu1 %v4271_v38  ;;  %v2186_v44 = vrot.slane %v2184_v11, 7  ;;  %v2177_v24 = vor.u32 %v2176_v59, %v1475_v35  ;;  %v1482_v15 = vshll.u32 %v11110_v14, 16  ;;  %13464 = vst [vmem:[#allocation33_spill] sm:$0xff] %v11124_v31  ;;  %v11126_v8 = vpop.f32.mrb[87].mxu0  ;;  %v9798_v11 = vld [vmem:[#allocation2 + $0x320] sm:$0xff] }
 0x295   : > { %5517 = vmatmul.mubr.bf16.gmra.mrb[176].mxu0 %v2147_v50  ;;  %v1485_v62 = vshrl.u32 %v11110_v14, 16  ;;  %4923 = vmatmul.mubr.bf16.gmra.mrb[112].mxu1 %v4259_v32  ;;  %v4294_v16 = vrot.slane %v4292_v37, 7  ;;  %v4296_v26 = vshrl.u32 %v3210_v5, 16  ;;  %v4299_v12 = vshll.u32 %v3210_v5, 16  ;;  %13465 = vst [vmem:[#allocation34_spill] sm:$0xff] %v11126_v8 }
 0x296   : > { %v4285_v2 = vshrl.u32 %v2963_v36, 16  ;;  %v2189_v56 = vor.u32 %v2187_v58, %v2186_v44  ;;  %v2178_v25 = vsel %vm1768_vm1, %v2175_v1, %v2177_v24  ;;  %v1484_v57 = vrot.slane %v1482_v15, 1  ;;  %v1318_v44 = vld [vmem:[#allocation2 + $0x170] sm:$0xff] }
 0x297   : > { %v4288_v50 = vrot.slane %v3208_v19, 7  ;;  %v4298_v35 = vrot.slane %v4296_v26, 7  ;;  %v3212_v38 = vshll.u32 %v9798_v11, 16  ;;  %v3215_v14 = vshrl.u32 %v9798_v11, 16 }
 0x298   : > { %v4287_v59 = vrot.slane %v4285_v2, 7  ;;  %v2190_v33 = vsel %vm1768_vm1, %v2182_v42, %v2189_v56  ;;  %v1487_v32 = vor.u32 %v1485_v62, %v1484_v57  ;;  %v2211_v37 = vshrl.u32 %v1484_v57, 16  ;;  %v2965_v2 = vld [vmem:[#allocation2 + $0x318] sm:$0x80] }
 0x299   : > { %v4289_v31 = vor.u32 %v4288_v50, %v3205_v7  ;;  %5524 = vmatprep.mubr.bf16.mxu0 %v2190_v33  ;;  %v4301_v36 = vor.u32 %v4299_v12, %v4298_v35  ;;  %v3214_v5 = vrot.slane %v3212_v38, 1  ;;  %v2204_v52 = vshrl.u32 %v1315_v55, 16 }
 0x29a   : > { %v2207_v58 = vrot.slane %v1485_v62, 7  ;;  %v2213_v1 = vrot.slane %v2211_v37, 7  ;;  %v2215_v24 = vshrl.u32 %v1487_v32, 16  ;;  %v2218_v19 = vshll.u32 %v1487_v32, 16  ;;  %v11131_v8 = vpop.f32.mrb[88].mxu0 }
 0x29b   : > { %v4290_v26 = vsel %vm1768_vm1, %v4287_v59, %v4289_v31  ;;  %13466 = vst [vmem:[#allocation35_spill] sm:$0xff] %v11131_v8  ;;  %v4302_v11 = vsel %vm1768_vm1, %v4294_v16, %v4301_v36  ;;  %v3217_v42 = vor.u32 %v3215_v14, %v3214_v5  ;;  %v4323_v56 = vshrl.u32 %v3214_v5, 16  ;;  %v11134_v7 = vpop.f32.mrb[89].mxu0  ;;  %v11136_v35 = vpop.f32.mrb[24].mxu1  ;;  %v9799_v8 = vld [vmem:[#allocation2 + $0x338] sm:$0xff] }
 0x29c   : > { %v2206_v57 = vrot.slane %v2204_v52, 7  ;;  %13467 = vst [vmem:[#allocation36_spill] sm:$0xff] %v11134_v7  ;;  %4930 = vmatprep.mubr.bf16.mxu1 %v4302_v11  ;;  %v2217_v12 = vrot.slane %v2215_v24, 7  ;;  %v2208_v62 = vor.u32 %v2207_v58, %v1482_v15  ;;  %v1489_v50 = vshll.u32 %v1318_v44, 16  ;;  %13468 = vst [vmem:[#allocation37_spill] sm:$0xff] %v11136_v35  ;;  %v11138_v33 = vpop.f32.mrb[90].mxu0 }
 0x29d   : > { %5525 = vmatmul.mubr.bf16.gmra.mrb[180].mxu0 %v2178_v25  ;;  %v1492_v55 = vshrl.u32 %v1318_v44, 16  ;;  %13469 = vst [vmem:[#allocation38_spill] sm:$0xff] %v11138_v33  ;;  %4931 = vmatmul.mubr.bf16.gmra.mrb[116].mxu1 %v4290_v26  ;;  %v4325_v31 = vrot.slane %v4323_v56, 7  ;;  %v4327_v59 = vshrl.u32 %v3217_v42, 16  ;;  %v4330_v32 = vshll.u32 %v3217_v42, 16  ;;  %v4750_v37 = vpop.f32.mrb[25].mxu1 }
 0x29e   : > { %v4316_v16 = vshrl.u32 %v2965_v2, 16  ;;  %v11140_v36 = vpop.f32.mrb[91].mxu0  ;;  %v2220_v52 = vor.u32 %v2218_v19, %v2217_v12  ;;  %v2209_v5 = vsel %vm1768_vm1, %v2206_v57, %v2208_v62  ;;  %v1491_v25 = vrot.slane %v1489_v50, 1  ;;  %v1317_v15 = vld [vmem:[#allocation2 + $0x168] sm:$0x80]  ;;  %v11143_v58 = vpop.f32.mrb[26].mxu1 }
 0x29f   : > { %13470 = vst [vmem:[#allocation39_spill] sm:$0xff] %v11140_v36  ;;  %v4319_v24 = vrot.slane %v3215_v14, 7  ;;  %13471 = vst [vmem:[#allocation40_spill] sm:$0xff] %v11143_v58  ;;  %v4329_v44 = vrot.slane %v4327_v59, 7  ;;  %v3219_v33 = vshll.u32 %v9799_v8, 16  ;;  %v3222_v26 = vshrl.u32 %v9799_v8, 16 }
 0x2a0   : > { %v4318_v11 = vrot.slane %v4316_v16, 7  ;;  %v4753_v56 = vpop.f32.mrb[27].mxu1  ;;  %v2221_v42 = vsel %vm1768_vm1, %v2213_v1, %v2220_v52  ;;  %v1494_v2 = vor.u32 %v1492_v55, %v1491_v25  ;;  %v2242_v37 = vshrl.u32 %v1491_v25, 16  ;;  %v2967_v14 = vld [vmem:[#allocation2 + $0x330] sm:$0x80] }
 0x2a1   : > { %v4320_v7 = vor.u32 %v4319_v24, %v3212_v38  ;;  %5532 = vmatprep.mubr.bf16.mxu0 %v2221_v42  ;;  %v4332_v19 = vor.u32 %v4330_v32, %v4329_v44  ;;  %v3221_v12 = vrot.slane %v3219_v33, 1  ;;  %v2235_v57 = vshrl.u32 %v1317_v15, 16  ;;  %v1319_v25 = vld [vmem:[#allocation2 + $0x1b0] sm:$0x80]  ;;  %v11148_v44 = vld [vmem:[#allocation2] sm:$0xff] }
 0x2a2   : > { %v2238_v62 = vrot.slane %v1492_v55, 7  ;;  %v2244_v36 = vrot.slane %v2242_v37, 7  ;;  %v2246_v43 = vshrl.u32 %v1494_v2, 16  ;;  %v2249_v6 = vshll.u32 %v1494_v2, 16 }
 0x2a3   : > { %v4321_v59 = vsel %vm1768_vm1, %v4318_v11, %v4320_v7  ;;  %v4333_v16 = vsel %vm1768_vm1, %v4325_v31, %v4332_v19  ;;  %v3224_v8 = vor.u32 %v3222_v26, %v3221_v12  ;;  %v4354_v56 = vshrl.u32 %v3221_v12, 16  ;;  %v11151_v11 = vld [vmem:[#allocation2 + $0x1d0] sm:$0xff] }
 0x2a4   : > { %v2237_v18 = vrot.slane %v2235_v57, 7  ;;  %4938 = vmatprep.mubr.bf16.mxu1 %v4333_v16  ;;  %v2248_v1 = vrot.slane %v2246_v43, 7  ;;  %v2239_v38 = vor.u32 %v2238_v62, %v1489_v50  ;;  %v4347_v52 = vshrl.u32 %v2967_v14, 16  ;;  %v1351_v43 = vld [vmem:[#allocation2 + $0x10] sm:$0x1]  ;;  %v9766_v16 = vld [vmem:[#allocation10 + $0x218] sm:$0xff]  }
 0x2a5   : > { %5533 = vmatmul.mubr.bf16.gmra.mrb[184].mxu0 %v2209_v5  ;;  %v4350_v32 = vrot.slane %v3222_v26, 7  ;;  %4939 = vmatmul.mubr.bf16.gmra.mrb[120].mxu1 %v4321_v59  ;;  %v4356_v55 = vrot.slane %v4354_v56, 7  ;;  %v4358_v24 = vshrl.u32 %v3224_v8, 16  ;;  %v4361_v15 = vshll.u32 %v3224_v8, 16 }
 0x2a6   : > { %v1496_v7 = vshll.u32 %v11148_v44, 16  ;;  %v2251_v31 = vor.u32 %v2249_v6, %v2248_v1  ;;  %v2240_v42 = vsel %vm1768_vm1, %v2237_v18, %v2239_v38  ;;  %v4349_v2 = vrot.slane %v4347_v52, 7  ;;  %v11155_v12 = vpop.f32.mrb[28].mxu1  ;;  %9517 = vmatprep.subr.bf16.mxu0 %v9766_v16 }
 0x2a7   : > { %v4351_v5 = vor.u32 %v4350_v32, %v3219_v33  ;;  %v4360_v50 = vrot.slane %v4358_v24, 7  ;;  %v1499_v26 = vshrl.u32 %v11148_v44, 16  ;;  %v2266_v19 = vshrl.u32 %v1319_v25, 16  ;;  %13472 = vst [vmem:[#allocation41_spill] sm:$0xff] %v11155_v12  ;;  %v11157_v57 = vpop.f32.mrb[92].mxu0  ;;  %v4758_v59 = vpop.f32.mrb[29].mxu1  ;;  %9518 = vmatpush3.bf16.msra.mxu0 %v9766_v16 }
 0x2a8   : > { %v1498_v37 = vrot.slane %v1496_v7, 1  ;;  %13473 = vst [vmem:[#allocation42_spill] sm:$0xff] %v11157_v57  ;;  %v2252_v62 = vsel %vm1768_vm1, %v2244_v36, %v2251_v31  ;;  %v13344_v6 = vshll.u32 %v11151_v11, 16  ;;  %v13345_v18 = vshrl.u32 %v11151_v11, 16  ;;  %v11163_v33 = vpop.f32.mrb[93].mxu0  ;;  %v11165_v52 = vpop.f32.mrb[30].mxu1 }
 0x2a9   : > { %v4352_v14 = vsel %vm1768_vm1, %v4349_v2, %v4351_v5  ;;  %13474 = vst [vmem:[#allocation43_spill] sm:$0xff] %v11163_v33  ;;  %5540 = vmatprep.mubr.bf16.mxu0 %v2252_v62  ;;  %v4363_v8 = vor.u32 %v4361_v15, %v4360_v50  ;;  %v2268_v38 = vrot.slane %v2266_v19, 7  ;;  %13475 = vst [vmem:[#allocation44_spill] sm:$0xff] %v11165_v52  ;;  %v11167_v32 = vpop.f32.mrb[94].mxu0  ;;  %v2269_v36 = vrot.slane %v1499_v26, 7  ;;  %v4761_v2 = vpop.f32.mrb[31].mxu1 }
 0x2aa   : > { %v1501_v56 = vor.u32 %v1499_v26, %v1498_v37  ;;  %v2273_v1 = vshrl.u32 %v1498_v37, 16  ;;  %13476 = vst [vmem:[#allocation45_spill] sm:$0xff] %v11167_v32  ;;  %v1505_v25 = vrot.slane %v13344_v6, 1  ;;  %v11172_v24 = vrot.slane %v11148_v44, 1  ;;  %v11174_v5 = vpop.f32.mrb[95].mxu0  ;;  %v9801_v57 = vld [vmem:[#allocation2 + $0x20] sm:$0xff] }
 0x2ab   : > { %v1673_v31 = vrot.slane %v1351_v43, 1  ;;  %13477 = vst [vmem:[#allocation46_spill] sm:$0xff] %v11174_v5  ;;  %v4364_v15 = vsel %vm1768_vm1, %v4356_v55, %v4363_v8  ;;  %v2270_v26 = vor.u32 %v2269_v36, %v1496_v7  ;;  %v1352_v2 = vld [vmem:[#allocation2 + $0x28] sm:$0x1]  ;;  %v1321_v36 = vld [vmem:[#allocation2 + $0x1c8] sm:$0x80] }
 0x2ac   : > { %v2275_v50 = vrot.slane %v2273_v1, 7  ;;  %v2277_v37 = vshrl.u32 %v1501_v56, 16  ;;  %v2280_v19 = vshll.u32 %v1501_v56, 16  ;;  %4946 = vmatprep.mubr.bf16.mxu1 %v4364_v15  ;;  %v1508_v62 = vor.u32 %v13345_v18, %v1505_v25  ;;  %v1353_v1 = vld [vmem:[#allocation2 + $0x40] sm:$0x1]  ;;  %v9804_v52 = vld [vmem:[#allocation2 + $0x68] sm:$0xff] }
 0x2ad   : > { %5541 = vmatmul.mubr.bf16.gmra.mrb[188].mxu0 %v2240_v42  ;;  %v2304_v59 = vshrl.u32 %v1505_v25, 16  ;;  %v1674_v43 = vsel %vm1671_vm0, %v11172_v24, %v1673_v31  ;;  %4947 = vmatmul.mubr.bf16.gmra.mrb[124].mxu1 %v4352_v14  ;;  %v1789_v32 = vshrl.u32 %v11172_v24, 16  ;;  %v2271_v16 = vsel %vm1768_vm1, %v2268_v38, %v2270_v26 }
 0x2ae   : > { %v2279_v6 = vrot.slane %v2277_v37, 7  ;;  %v1793_v55 = vshrl.u32 %v1674_v43, 16  ;;  %v1796_v8 = vshll.u32 %v1674_v43, 16  ;;  %v2308_v42 = vshrl.u32 %v1508_v62, 16  ;;  %v9802_v37 = vld [vmem:[#allocation2 + $0x38] sm:$0xff] }
 0x2af   : > { %v2306_v56 = vrot.slane %v2304_v59, 7  ;;  %v2311_v7 = vshll.u32 %v1508_v62, 16  ;;  %v11183_v18 = vrot.slane %v1789_v32, 7  ;;  %v1675_v31 = vrot.slane %v9801_v57, 1  ;;  %v1354_v57 = vld [vmem:[#allocation2 + $0x58] sm:$0x1] }
 0x2b0   : > { %v2282_v15 = vor.u32 %v2280_v19, %v2279_v6  ;;  %v1795_v25 = vrot.slane %v1793_v55, 7  ;;  %v2310_v5 = vrot.slane %v2308_v42, 7  ;;  %v1676_v14 = vrot.slane %v1352_v2, 1  ;;  %v11188_v19 = vld [vmem:[#allocation2 + $0x1e8] sm:$0xff] }
 0x2b1   : > { %v1678_v33 = vrot.slane %v9802_v37, 1  ;;  %v1679_v47 = vrot.slane %v1353_v1, 1  ;;  %v1820_v13 = vshrl.u32 %v1675_v31, 16  ;;  %v2297_v38 = vshrl.u32 %v1321_v36, 16 }
 0x2b2   : > { %v2283_v43 = vsel %vm1768_vm1, %v2275_v50, %v2282_v15  ;;  %v1798_v3 = vor.u32 %v1796_v8, %v1795_v25  ;;  %v2313_v26 = vor.u32 %v2311_v7, %v2310_v5  ;;  %v1677_v62 = vsel %vm1671_vm0, %v1675_v31, %v1676_v14  ;;  %v1355_v50 = vld [vmem:[#allocation2 + $0x70] sm:$0x1]  ;;  %v11192_v8 = vpop.f32.mrb[32].mxu1  ;;  %v9769_v25 = vld [vmem:[#allocation10 + $0x220] sm:$0xff]  }
 0x2b3   : > { %5548 = vmatprep.mubr.bf16.mxu0 %v2283_v43  ;;  %v1680_v6 = vsel %vm1671_vm0, %v1678_v33, %v1679_v47  ;;  %v1851_v32 = vshrl.u32 %v1678_v33, 16  ;;  %v1822_v2 = vrot.slane %v1820_v13, 7  ;;  %v1824_v55 = vshrl.u32 %v1677_v62, 16  ;;  %13478 = vst [vmem:[#allocation47_spill] sm:$0xff] %v11192_v8  ;;  %v11194_v42 = vpop.f32.mrb[96].mxu0  ;;  %v4766_v36 = vpop.f32.mrb[33].mxu1  ;;  %9519 = vmatprep.subr.bf16.mxu0 %v9769_v25 }
 0x2b4   : > { %v1799_v59 = vsel %vm1768_vm1, %v11183_v18, %v1798_v3  ;;  %v1827_v1 = vshll.u32 %v1677_v62, 16  ;;  %v2314_v5 = vsel %vm1768_vm1, %v2306_v56, %v2313_v26  ;;  %v1855_v33 = vshrl.u32 %v1680_v6, 16  ;;  %v11197_v15 = vpop.f32.mrb[97].mxu0  ;;  %v11202_v43 = vpop.f32.mrb[34].mxu1  ;;  %v9803_v62 = vld [vmem:[#allocation2 + $0x50] sm:$0xff]  ;;  %9520 = vmatpush3.bf16.msra.mxu0 %v9769_v25 }
 0x2b5   : > { %5549 = vmatmul.mubr.bf16.gmra.mrb[192].mxu0 %v2271_v16  ;;  %9447 = vmatprep.mubr.bf16.mxu1 %v1799_v59  ;;  %v1853_v47 = vrot.slane %v1851_v32, 7  ;;  %v1858_v7 = vshll.u32 %v1680_v6, 16  ;;  %v1826_v13 = vrot.slane %v1824_v55, 7  ;;  %v2299_v3 = vrot.slane %v2297_v38, 7  ;;  %13480 = vst [vmem:[#allocation48_spill] sm:$0xff] %v11202_v43  ;;  %v11204_v16 = vpop.f32.mrb[98].mxu0 }
 0x2b6   : > { %5556 = vmatprep.mubr.bf16.mxu0 %v2314_v5  ;;  %v13479_v31 = vshrl.u32 %v11151_v11, 16  ;;  %v1510_v37 = vshll.u32 %v11188_v19, 16  ;;  %v1857_v56 = vrot.slane %v1855_v33, 7  ;;  %v1513_v26 = vshrl.u32 %v11188_v19, 16  ;;  %v4769_v59 = vpop.f32.mrb[35].mxu1  ;;  %v11207_v36 = vpop.f32.mrb[99].mxu0 }
 0x2b7   : > { %v1681_v6 = vrot.slane %v9803_v62, 1  ;;  %v1682_v32 = vrot.slane %v1354_v57, 1  ;;  %v1829_v38 = vor.u32 %v1827_v1, %v1826_v13  ;;  %v9752_v55 = vld [vmem:[#allocation10 + $0x180] sm:$0xff]   ;;  %v13481_v5 = vshll.u32 %v11151_v11, 16 }
 0x2b8   : > { %v2300_v14 = vrot.slane %v13479_v31, 7  ;;  %v1512_v8 = vrot.slane %v1510_v37, 1  ;;  %v1684_v43 = vrot.slane %v9804_v52, 1  ;;  %v1860_v21 = vor.u32 %v1858_v7, %v1857_v56  ;;  %v11215_v52 = vld [vmem:[#allocation2 + $0x200] sm:$0xff]  ;;  %v9753_v56 = vld [vmem:[#allocation10 + $0x188] sm:$0xff]  }
 0x2b9   : > { %v1683_v33 = vsel %vm1671_vm0, %v1681_v6, %v1682_v32  ;;  %v1882_v12 = vshrl.u32 %v1681_v6, 16  ;;  %v1685_v45 = vrot.slane %v1355_v50, 1  ;;  %v1830_v57 = vsel %vm1768_vm1, %v1822_v2, %v1829_v38 }
 0x2ba   : > { %v2301_v31 = vor.u32 %v2300_v14, %v13481_v5  ;;  %v1515_v59 = vor.u32 %v1513_v26, %v1512_v8  ;;  %v2335_v58 = vshrl.u32 %v1512_v8, 16  ;;  %9448 = vmatmul.mubr.bf16.vlgmr.msra.gmra.mrb[128].mxu1 %v1830_v57  ;;  %v1861_v1 = vsel %vm1768_vm1, %v1853_v47, %v1860_v21 }
 0x2bb   : > { %v1884_v13 = vrot.slane %v1882_v12, 7  ;;  %v1886_v14 = vshrl.u32 %v1683_v33, 16  ;;  %v1889_v5 = vshll.u32 %v1683_v33, 16  ;;  %7729 = vmatpush1.bf16.msra.mxu1 %v9752_v55  ;;  %9451 = vmatprep.mubr.bf16.mxu1 %v1861_v1  ;;  %v1686_v2 = vsel %vm1671_vm0, %v1684_v43, %v1685_v45  ;;  %v1356_v55 = vld [vmem:[#allocation2 + $0x88] sm:$0x1] }
 0x2bc   : > { %v2302_v62 = vsel %vm1768_vm1, %v2299_v3, %v2301_v31  ;;  %v2337_v7 = vrot.slane %v2335_v58, 7  ;;  %v2339_v25 = vshrl.u32 %v1515_v59, 16  ;;  %v2342_v50 = vshll.u32 %v1515_v59, 16  ;;  %7730 = vmatprep.subr.bf16.mxu1 %v11148_v44 }
 0x2bd   : > { %5557 = vmatmul.mubr.bf16.gmra.mrb[196].mxu0 %v2302_v62  ;;  %v1888_v8 = vrot.slane %v1886_v14, 7  ;;  %v1913_v3 = vshrl.u32 %v1684_v43, 16  ;;  %v1917_v21 = vshrl.u32 %v1686_v2, 16  ;;  %v1920_v12 = vshll.u32 %v1686_v2, 16  ;;  %v9771_v62 = vld [vmem:[#allocation10 + $0x228] sm:$0xff]  }
 0x2be   : > { %v2341_v47 = vrot.slane %v2339_v25, 7  ;;  %v2328_v6 = vshrl.u32 %v1323_v30, 16  ;;  %v2331_v32 = vrot.slane %v1513_v26, 7  ;;  %v13346_v38 = vshll.u32 %v11215_v52, 16  ;;  %v11221_v59 = vpop.f32.mrb[36].mxu1  ;;  %v11223_v45 = vpop.f32.mrb[100].mxu0  ;;  %9521 = vmatprep.subr.bf16.mxu0 %v9771_v62 }
 0x2bf   : > { %v1891_v31 = vor.u32 %v1889_v5, %v1888_v8  ;;  %v1915_v58 = vrot.slane %v1913_v3, 7  ;;  %v1919_v33 = vrot.slane %v1917_v21, 7  ;;  %v1520_v57 = vshrl.u32 %v11215_v52, 16  ;;  %13482 = vst [vmem:[#allocation49_spill] sm:$0xff] %v11221_v59  ;;  %7731 = vmatpush1.bf16.msra.mxu1 %v9753_v56  ;;  %v9754_v26 = vld [vmem:[#allocation10 + $0x190] sm:$0xff]   ;;  %v4774_v25 = vpop.f32.mrb[37].mxu1  ;;  %9522 = vmatpush3.bf16.msra.mxu0 %v9771_v62 }
 0x2c0   : > { %v2344_v1 = vor.u32 %v2342_v50, %v2341_v47  ;;  %v2330_v43 = vrot.slane %v2328_v6, 7  ;;  %v2332_v14 = vor.u32 %v2331_v32, %v1510_v37  ;;  %v1519_v30 = vrot.slane %v13346_v38, 1  ;;  %v11227_v2 = vpop.f32.mrb[101].mxu0  ;;  %7732 = vmatprep.subr.bf16.mxu1 %v11148_v44  ;;  %v9805_v3 = vld [vmem:[#allocation2 + $0x80] sm:$0xff]  ;;  %v11231_v35 = vpop.f32.mrb[38].mxu1  ;;  %v9755_v62 = vld [vmem:[#allocation10 + $0x198] sm:$0xff]  }
 0x2c1   : > { %v1892_v5 = vsel %vm1768_vm1, %v1884_v13, %v1891_v31  ;;  %v1922_v8 = vor.u32 %v1920_v12, %v1919_v33  ;;  %v1687_v21 = vrot.slane %v9805_v3, 1  ;;  %v1688_v59 = vrot.slane %v1356_v55, 1  ;;  %13483 = vst [vmem:[#allocation50_spill] sm:$0xff] %v11231_v35  ;;  %v11233_v50 = vpop.f32.mrb[102].mxu0  ;;  %v1357_v32 = vld [vmem:[#allocation2 + $0xa0] sm:$0x1] }
 0x2c2   : > { %v2345_v37 = vsel %vm1768_vm1, %v2337_v7, %v2344_v1  ;;  %v2333_v56 = vsel %vm1768_vm1, %v2330_v43, %v2332_v14  ;;  %v1522_v47 = vor.u32 %v1520_v57, %v1519_v30  ;;  %v2366_v6 = vshrl.u32 %v1519_v30, 16  ;;  %v4777_v25 = vpop.f32.mrb[39].mxu1  ;;  %v11237_v13 = vpop.f32.mrb[103].mxu0  ;;  %v9772_v12 = vld [vmem:[#allocation10 + $0x230] sm:$0xff]   ;;  %9452 = vmatmul.mubr.bf16.gmra.mrb[132].mxu1 %v1892_v5  ;;  %v9806_v3 = vld [vmem:[#allocation2 + $0x98] sm:$0xff] }
 0x2c3   : > { %5564 = vmatprep.mubr.bf16.mxu0 %v2345_v37  ;;  %v1923_v55 = vsel %vm1768_vm1, %v1915_v58, %v1922_v8  ;;  %v1689_v31 = vsel %vm1671_vm0, %v1687_v21, %v1688_v59  ;;  %v1944_v33 = vshrl.u32 %v1687_v21, 16  ;;  %v1690_v38 = vrot.slane %v9806_v3, 1  ;;  %v1325_v7 = vld [vmem:[#allocation2 + $0x1f8] sm:$0x80]  ;;  %7733 = vmatpush1.bf16.msra.mxu1 %v9754_v26 }
 0x2c4   : > { %9455 = vmatprep.mubr.bf16.mxu1 %v1923_v55  ;;  %v2368_v1 = vrot.slane %v2366_v6, 7  ;;  %v2370_v43 = vshrl.u32 %v1522_v47, 16  ;;  %v2373_v14 = vshll.u32 %v1522_v47, 16  ;;  %v1948_v30 = vshrl.u32 %v1689_v31, 16  ;;  %v11241_v25 = vld [vmem:[#allocation2 + $0x218] sm:$0xff]  ;;  %7734 = vmatprep.subr.bf16.mxu1 %v11148_v44 }
 0x2c5   : > { %5565 = vmatmul.mubr.bf16.gmra.mrb[200].mxu0 %v2333_v56  ;;  %v1946_v37 = vrot.slane %v1944_v33, 7  ;;  %v1951_v5 = vshll.u32 %v1689_v31, 16  ;;  %v1691_v35 = vrot.slane %v1357_v32, 1  ;;  %v1975_v58 = vshrl.u32 %v1690_v38, 16  ;;  %9523 = vmatprep.subr.bf16.mxu0 %v9772_v12 }
 0x2c6   : > { %v2372_v59 = vrot.slane %v2370_v43, 7  ;;  %v1950_v8 = vrot.slane %v1948_v30, 7  ;;  %v2359_v21 = vshrl.u32 %v1325_v7, 16  ;;  %v2362_v3 = vrot.slane %v1520_v57, 7  ;;  %9524 = vmatpush3.bf16.msra.mxu0 %v9772_v12 }
 0x2c7   : > { %v1692_v6 = vsel %vm1671_vm0, %v1690_v38, %v1691_v35  ;;  %v1977_v47 = vrot.slane %v1975_v58, 7  ;;  %v13347_v26 = vshll.u32 %v11241_v25, 16  ;;  %v1527_v55 = vshrl.u32 %v11241_v25, 16  ;;  %7735 = vmatpush1.bf16.msra.mxu1 %v9755_v62  ;;  %v9807_v38 = vld [vmem:[#allocation2 + $0xb0] sm:$0xff] }
 0x2c8   : > { %v2375_v56 = vor.u32 %v2373_v14, %v2372_v59  ;;  %v1953_v31 = vor.u32 %v1951_v5, %v1950_v8  ;;  %v1979_v32 = vshrl.u32 %v1692_v6, 16  ;;  %v1982_v33 = vshll.u32 %v1692_v6, 16  ;;  %v1359_v58 = vld [vmem:[#allocation2 + $0xd0] sm:$0x1]  ;;  %7736 = vmatprep.subr.bf16.mxu1 %v11148_v44  ;;  %v1327_v6 = vld [vmem:[#allocation2 + $0x210] sm:$0x80] }
 0x2c9   : > { %v2361_v43 = vrot.slane %v2359_v21, 7  ;;  %v13484_v7 = vshll.u32 %v11215_v52, 16  ;;  %v1526_v35 = vrot.slane %v13347_v26, 1  ;;  %v1693_v30 = vrot.slane %v9807_v38, 1 }
 0x2ca   : > { %v2376_v12 = vsel %vm1768_vm1, %v2368_v1, %v2375_v56  ;;  %v1954_v14 = vsel %vm1768_vm1, %v1946_v37, %v1953_v31  ;;  %v1981_v5 = vrot.slane %v1979_v32, 7  ;;  %v1694_v59 = vrot.slane %v1358_v4, 1  ;;  %v9808_v1 = vld [vmem:[#allocation2 + $0xc8] sm:$0xff]  ;;  %v11260_v31 = vld [vmem:[#allocation2 + $0x230] sm:$0xff] }
 0x2cb   : > { %v2363_v57 = vor.u32 %v2362_v3, %v13484_v7  ;;  %5572 = vmatprep.mubr.bf16.mxu0 %v2376_v12  ;;  %9456 = vmatmul.mubr.bf16.gmra.mrb[136].mxu1 %v1954_v14  ;;  %v1529_v8 = vor.u32 %v1527_v55, %v1526_v35  ;;  %v2397_v21 = vshrl.u32 %v1526_v35, 16  ;;  %v2006_v3 = vshrl.u32 %v1693_v30, 16  ;;  %v11255_v7 = vpop.f32.mrb[40].mxu1  ;;  %v11257_v38 = vpop.f32.mrb[104].mxu0  ;;  %v9758_v32 = vld [vmem:[#allocation10 + $0x1a8] sm:$0xff]  }
 0x2cc   : > { %13485 = vst [vmem:[#allocation51_spill] sm:$0xff] %v11255_v7  ;;  %13486 = vst [vmem:[#allocation52_spill] sm:$0xff] %v11257_v38  ;;  %v1984_v26 = vor.u32 %v1982_v33, %v1981_v5  ;;  %v1695_v51 = vsel %vm1671_vm0, %v1693_v30, %v1694_v59  ;;  %v1696_v56 = vrot.slane %v9808_v1, 1  ;;  %v1697_v37 = vrot.slane %v1359_v58, 1  ;;  %7737 = vmatpush1.bf16.msra.mxu1 %v9757_v61  ;;  %v4782_v4 = vpop.f32.mrb[41].mxu1 }
 0x2cd   : > { %v2364_v62 = vsel %vm1768_vm1, %v2361_v43, %v2363_v57  ;;  %v11262_v43 = vpop.f32.mrb[105].mxu0  ;;  %v2399_v57 = vrot.slane %v2397_v21, 7  ;;  %v2401_v35 = vshrl.u32 %v1529_v8, 16  ;;  %v2404_v12 = vshll.u32 %v1529_v8, 16  ;;  %v11264_v7 = vpop.f32.mrb[42].mxu1  ;;  %7738 = vmatprep.subr.bf16.mxu1 %v11148_v44 }
 0x2ce   : > { %13487 = vst [vmem:[#allocation53_spill] sm:$0xff] %v11262_v43  ;;  %5573 = vmatmul.mubr.bf16.gmra.mrb[204].mxu0 %v2364_v62  ;;  %v2008_v14 = vrot.slane %v2006_v3, 7  ;;  %13488 = vst [vmem:[#allocation54_spill] sm:$0xff] %v11264_v7  ;;  %v11267_v33 = vpop.f32.mrb[106].mxu0  ;;  %v1985_v30 = vsel %vm1768_vm1, %v1977_v47, %v1984_v26  ;;  %v2010_v58 = vshrl.u32 %v1695_v51, 16  ;;  %v2013_v5 = vshll.u32 %v1695_v51, 16 }
 0x2cf   : > { %13489 = vst [vmem:[#allocation55_spill] sm:$0xff] %v11267_v33  ;;  %v1698_v61 = vsel %vm1671_vm0, %v1696_v56, %v1697_v37  ;;  %v4785_v59 = vpop.f32.mrb[43].mxu1  ;;  %v11271_v1 = vpop.f32.mrb[107].mxu0  ;;  %v9774_v62 = vld [vmem:[#allocation10 + $0x238] sm:$0xff]   ;;  %9459 = vmatprep.mubr.bf16.mxu1 %v1985_v30  ;;  %v2403_v21 = vrot.slane %v2401_v35, 7  ;;  %v2037_v8 = vshrl.u32 %v1696_v56, 16 }
 0x2d0   : > { %13490 = vst [vmem:[#allocation56_spill] sm:$0xff] %v11271_v1  ;;  %v2041_v3 = vshrl.u32 %v1698_v61, 16  ;;  %v2044_v4 = vshll.u32 %v1698_v61, 16  ;;  %v1360_v7 = vld [vmem:[#allocation2 + $0xe8] sm:$0x1]  ;;  %v2012_v38 = vrot.slane %v2010_v58, 7  ;;  %7739 = vmatpush1.bf16.msra.mxu1 %v9758_v32  ;;  %9525 = vmatprep.subr.bf16.mxu0 %v9774_v62 }
 0x2d1   : > { %v2390_v10 = vshrl.u32 %v1327_v6, 16  ;;  %v2393_v43 = vrot.slane %v1527_v55, 7  ;;  %v13348_v33 = vshll.u32 %v11260_v31, 16  ;;  %v9759_v47 = vld [vmem:[#allocation10 + $0x1b0] sm:$0xff]   ;;  %v2406_v51 = vor.u32 %v2404_v12, %v2403_v21  ;;  %7740 = vmatprep.subr.bf16.mxu1 %v11148_v44  ;;  %9526 = vmatpush3.bf16.msra.mxu0 %v9774_v62  ;;  %v9809_v61 = vld [vmem:[#allocation2 + $0xe0] sm:$0xff] }
 0x2d2   : > { %v2039_v26 = vrot.slane %v2037_v8, 7  ;;  %v2043_v37 = vrot.slane %v2041_v3, 7  ;;  %v1534_v59 = vshrl.u32 %v11260_v31, 16  ;;  %v2015_v56 = vor.u32 %v2013_v5, %v2012_v38  ;;  %v9760_v5 = vld [vmem:[#allocation10 + $0x1b8] sm:$0xff]   ;;  %v9811_v1 = vld [vmem:[#allocation2 + $0x110] sm:$0xff] }
 0x2d3   : > { %v2392_v35 = vrot.slane %v2390_v10, 7  ;;  %v13491_v30 = vshll.u32 %v11241_v25, 16  ;;  %v1533_v55 = vrot.slane %v13348_v33, 1  ;;  %v2407_v6 = vsel %vm1768_vm1, %v2399_v57, %v2406_v51  ;;  %v1361_v10 = vld [vmem:[#allocation2 + $0x100] sm:$0x1]  ;;  %v9810_v51 = vld [vmem:[#allocation2 + $0xf8] sm:$0xff] }
 0x2d4   : > { %v2046_v32 = vor.u32 %v2044_v4, %v2043_v37  ;;  %v1699_v12 = vrot.slane %v9809_v61, 1  ;;  %v1700_v21 = vrot.slane %v1360_v7, 1  ;;  %5580 = vmatprep.mubr.bf16.mxu0 %v2407_v6  ;;  %v2016_v8 = vsel %vm1768_vm1, %v2008_v14, %v2015_v56  ;;  %7741 = vmatpush1.bf16.msra.mxu1 %v9759_v47  ;;  %v1329_v7 = vld [vmem:[#allocation2 + $0x228] sm:$0x80]  ;;  %v9762_v61 = vld [vmem:[#allocation10 + $0x1c0] sm:$0xff]  }
 0x2d5   : > { %v2394_v58 = vor.u32 %v2393_v43, %v13491_v30  ;;  %v1536_v62 = vor.u32 %v1534_v59, %v1533_v55  ;;  %v2428_v38 = vshrl.u32 %v1533_v55, 16  ;;  %9460 = vmatmul.mubr.bf16.gmra.mrb[140].mxu1 %v2016_v8  ;;  %v1702_v37 = vrot.slane %v9810_v51, 1  ;;  %7742 = vmatprep.subr.bf16.mxu1 %v11148_v44 }
 0x2d6   : > { %v2047_v43 = vsel %vm1768_vm1, %v2039_v26, %v2046_v32  ;;  %v1701_v57 = vsel %vm1671_vm0, %v1699_v12, %v1700_v21  ;;  %v2068_v4 = vshrl.u32 %v1699_v12, 16  ;;  %v1703_v6 = vrot.slane %v1361_v10, 1  ;;  %v1362_v32 = vld [vmem:[#allocation2 + $0x118] sm:$0x1] }
 0x2d7   : > { %v2395_v3 = vsel %vm1768_vm1, %v2392_v35, %v2394_v58  ;;  %9463 = vmatprep.mubr.bf16.mxu1 %v2047_v43  ;;  %v2430_v30 = vrot.slane %v2428_v38, 7  ;;  %v2432_v14 = vshrl.u32 %v1536_v62, 16  ;;  %v2435_v56 = vshll.u32 %v1536_v62, 16  ;;  %v11285_v58 = vld [vmem:[#allocation2 + $0x248] sm:$0xff]  ;;  %v11290_v38 = vpop.f32.mrb[108].mxu0 }
 0x2d8   : > { %5581 = vmatmul.mubr.bf16.gmra.mrb[208].mxu0 %v2395_v3  ;;  %v2072_v35 = vshrl.u32 %v1701_v57, 16  ;;  %v2070_v47 = vrot.slane %v2068_v4, 7  ;;  %v2075_v55 = vshll.u32 %v1701_v57, 16  ;;  %v2099_v26 = vshrl.u32 %v1702_v37, 16  ;;  %v11288_v51 = vpop.f32.mrb[44].mxu1  ;;  %7743 = vmatpush1.bf16.msra.mxu1 %v9760_v5  ;;  %13493 = vst [vmem:[#allocation58_spill] sm:$0xff] %v11290_v38 }
 0x2d9   : > { %v2434_v21 = vrot.slane %v2432_v14, 7  ;;  %v2421_v8 = vshrl.u32 %v1329_v7, 16  ;;  %v2424_v3 = vrot.slane %v1534_v59, 7  ;;  %13492 = vst [vmem:[#allocation57_spill] sm:$0xff] %v11288_v51  ;;  %v1704_v62 = vsel %vm1671_vm0, %v1702_v37, %v1703_v6  ;;  %v4790_v10 = vpop.f32.mrb[45].mxu1  ;;  %v11295_v4 = vpop.f32.mrb[109].mxu0  ;;  %7744 = vmatprep.subr.bf16.mxu1 %v11148_v44 }
 0x2da   : > { %v2074_v12 = vrot.slane %v2072_v35, 7  ;;  %v2101_v43 = vrot.slane %v2099_v26, 7  ;;  %v13349_v33 = vshll.u32 %v11285_v58, 16  ;;  %v1541_v57 = vshrl.u32 %v11285_v58, 16  ;;  %13494 = vst [vmem:[#allocation59_spill] sm:$0xff] %v11295_v4  ;;  %v11298_v5 = vpop.f32.mrb[46].mxu1 }
 0x2db   : > { %v2437_v14 = vor.u32 %v2435_v56, %v2434_v21  ;;  %v2103_v59 = vshrl.u32 %v1704_v62, 16  ;;  %v2106_v35 = vshll.u32 %v1704_v62, 16  ;;  %v1363_v51 = vld [vmem:[#allocation2 + $0x130] sm:$0x1]  ;;  %13495 = vst [vmem:[#allocation60_spill] sm:$0xff] %v11298_v5  ;;  %v11300_v38 = vpop.f32.mrb[110].mxu0 }
 0x2dc   : > { %v2077_v7 = vor.u32 %v2075_v55, %v2074_v12  ;;  %13496 = vst [vmem:[#allocation61_spill] sm:$0xff] %v11300_v38  ;;  %v2423_v37 = vrot.slane %v2421_v8, 7  ;;  %v13497_v6 = vshll.u32 %v11260_v31, 16  ;;  %v1540_v10 = vrot.slane %v13349_v33, 1  ;;  %v4793_v46 = vpop.f32.mrb[47].mxu1  ;;  %v11306_v49 = vpop.f32.mrb[111].mxu0  ;;  %7745 = vmatpush1.bf16.msra.mxu1 %v9762_v61 }
 0x2dd   : > { %v1705_v4 = vrot.slane %v9811_v1, 1  ;;  %13498 = vst [vmem:[#allocation62_spill] sm:$0xff] %v11306_v49  ;;  %v2438_v56 = vsel %vm1768_vm1, %v2430_v30, %v2437_v14  ;;  %v2105_v21 = vrot.slane %v2103_v59, 7  ;;  %v1706_v12 = vrot.slane %v1362_v32, 1  ;;  %v9763_v62 = vld [vmem:[#allocation10 + $0x1c8] sm:$0xff]   ;;  %7746 = vmatprep.subr.bf16.mxu1 %v11148_v44  ;;  %v11313_v59 = vld [vmem:[#allocation2 + $0x260] sm:$0xff] }
 0x2de   : > { %v2425_v26 = vor.u32 %v2424_v3, %v13497_v6  ;;  %v2078_v55 = vsel %vm1768_vm1, %v2070_v47, %v2077_v7  ;;  %5588 = vmatprep.mubr.bf16.mxu0 %v2438_v56  ;;  %v1543_v3 = vor.u32 %v1541_v57, %v1540_v10  ;;  %v2459_v6 = vshrl.u32 %v1540_v10, 16  ;;  %v9812_v1 = vld [vmem:[#allocation2 + $0x128] sm:$0xff]  ;;  %v1331_v14 = vld [vmem:[#allocation2 + $0x240] sm:$0x80]  ;;  %v1335_v49 = vld [vmem:[#allocation2 + $0x270] sm:$0x80] }
 0x2df   : > { %9464 = vmatmul.mubr.bf16.gmra.mrb[144].mxu1 %v2078_v55  ;;  %v2130_v33 = vshrl.u32 %v1705_v4, 16  ;;  %v2108_v5 = vor.u32 %v2106_v35, %v2105_v21  ;;  %v1707_v46 = vsel %vm1671_vm0, %v1705_v4, %v1706_v12  ;;  %v1708_v38 = vrot.slane %v9812_v1, 1  ;;  %v9764_v4 = vld [vmem:[#allocation10 + $0x1d0] sm:$0xff]  }
 0x2e0   : > { %v2426_v8 = vsel %vm1768_vm1, %v2423_v37, %v2425_v26  ;;  %v1709_v30 = vrot.slane %v1363_v51, 1  ;;  %v2461_v47 = vrot.slane %v2459_v6, 7  ;;  %v2463_v32 = vshrl.u32 %v1543_v3, 16  ;;  %7747 = vmatpush1.bf16.msra.mxu1 %v9763_v62  ;;  %v1364_v6 = vld [vmem:[#allocation2 + $0x148] sm:$0x1] }
 0x2e1   : > { %5589 = vmatmul.mubr.bf16.gmra.mrb[212].mxu0 %v2426_v8  ;;  %v2466_v61 = vshll.u32 %v1543_v3, 16  ;;  %v2132_v7 = vrot.slane %v2130_v33, 7  ;;  %v2109_v37 = vsel %vm1768_vm1, %v2101_v43, %v2108_v5  ;;  %v2134_v26 = vshrl.u32 %v1707_v46, 16  ;;  %7748 = vmatprep.subr.bf16.mxu1 %v11148_v44 }
 0x2e2   : > { %v2137_v10 = vshll.u32 %v1707_v46, 16  ;;  %v1710_v35 = vsel %vm1671_vm0, %v1708_v38, %v1709_v30  ;;  %9467 = vmatprep.mubr.bf16.mxu1 %v2109_v37  ;;  %v2465_v56 = vrot.slane %v2463_v32, 7  ;;  %v2161_v51 = vshrl.u32 %v1708_v38, 16 }
 0x2e3   : > { %v2165_v55 = vshrl.u32 %v1710_v35, 16  ;;  %v2168_v21 = vshll.u32 %v1710_v35, 16  ;;  %v2136_v12 = vrot.slane %v2134_v26, 7  ;;  %v2452_v8 = vshrl.u32 %v1331_v14, 16  ;;  %v11324_v35 = vpop.f32.mrb[48].mxu1 }
 0x2e4   : > { %v2455_v33 = vrot.slane %v1541_v57, 7  ;;  %v13350_v3 = vshll.u32 %v11313_v59, 16  ;;  %v2468_v43 = vor.u32 %v2466_v61, %v2465_v56  ;;  %v2163_v5 = vrot.slane %v2161_v51, 7  ;;  %13500 = vst [vmem:[#allocation63_spill] sm:$0xff] %v11324_v35  ;;  %v11326_v14 = vpop.f32.mrb[112].mxu0  ;;  %7749 = vmatpush1.bf16.msra.mxu1 %v9764_v4  ;;  %v9765_v57 = vld [vmem:[#allocation10 + $0x1d8] sm:$0xff]  }
 0x2e5   : > { %v2167_v46 = vrot.slane %v2165_v55, 7  ;;  %v1548_v1 = vshrl.u32 %v11313_v59, 16  ;;  %v2139_v62 = vor.u32 %v2137_v10, %v2136_v12  ;;  %v2454_v30 = vrot.slane %v2452_v8, 7  ;;  %13501 = vst [vmem:[#allocation64_spill] sm:$0xff] %v11326_v14  ;;  %v9813_v56 = vld [vmem:[#allocation2 + $0x140] sm:$0xff]  ;;  %v4798_v10 = vpop.f32.mrb[49].mxu1  ;;  %7750 = vmatprep.subr.bf16.mxu1 %v11148_v44 }
 0x2e6   : > { %v13499_v32 = vshll.u32 %v11285_v58, 16  ;;  %v1547_v37 = vrot.slane %v13350_v3, 1  ;;  %v2469_v61 = vsel %vm1768_vm1, %v2461_v47, %v2468_v43  ;;  %v1711_v51 = vrot.slane %v9813_v56, 1  ;;  %v11329_v12 = vpop.f32.mrb[113].mxu0  ;;  %v1365_v4 = vld [vmem:[#allocation2 + $0x160] sm:$0x1] }
 0x2e7   : > { %v2170_v26 = vor.u32 %v2168_v21, %v2167_v46  ;;  %v1712_v55 = vrot.slane %v1364_v6, 1  ;;  %13502 = vst [vmem:[#allocation65_spill] sm:$0xff] %v11329_v12  ;;  %5596 = vmatprep.mubr.bf16.mxu0 %v2469_v61  ;;  %v2140_v8 = vsel %vm1768_vm1, %v2132_v7, %v2139_v62  ;;  %v11334_v35 = vpop.f32.mrb[50].mxu1  ;;  %v11336_v47 = vpop.f32.mrb[114].mxu0  ;;  %v9814_v46 = vld [vmem:[#allocation2 + $0x158] sm:$0xff] }
 0x2e8   : > { %v2456_v38 = vor.u32 %v2455_v33, %v13499_v32  ;;  %v1550_v32 = vor.u32 %v1548_v1, %v1547_v37  ;;  %v2490_v3 = vshrl.u32 %v1547_v37, 16  ;;  %13503 = vst [vmem:[#allocation66_spill] sm:$0xff] %v11334_v35  ;;  %13504 = vst [vmem:[#allocation67_spill] sm:$0xff] %v11336_v47  ;;  %9468 = vmatmul.mubr.bf16.gmra.mrb[148].mxu1 %v2140_v8  ;;  %v2192_v43 = vshrl.u32 %v1711_v51, 16  ;;  %v1333_v56 = vld [vmem:[#allocation2 + $0x258] sm:$0x80] }
 0x2e9   : > { %v2171_v21 = vsel %vm1768_vm1, %v2163_v5, %v2170_v26  ;;  %v1713_v6 = vsel %vm1671_vm0, %v1711_v51, %v1712_v55  ;;  %v1714_v61 = vrot.slane %v9814_v46, 1  ;;  %v4801_v7 = vpop.f32.mrb[51].mxu1  ;;  %v11340_v62 = vpop.f32.mrb[115].mxu0  ;;  %v11342_v35 = vld [vmem:[#allocation2 + $0x278] sm:$0xff]  ;;  %7751 = vmatpush1.bf16.msra.mxu1 %v9765_v57  ;;  %v9767_v8 = vld [vmem:[#allocation10 + $0x1e0] sm:$0xff]   ;;  %v2486_v47 = vrot.slane %v1548_v1, 7 }
 0x2ea   : > { %v2457_v33 = vsel %vm1768_vm1, %v2454_v30, %v2456_v38  ;;  %13505 = vst [vmem:[#allocation68_spill] sm:$0xff] %v11340_v62  ;;  %9471 = vmatprep.mubr.bf16.mxu1 %v2171_v21  ;;  %v2492_v30 = vrot.slane %v2490_v3, 7  ;;  %v2494_v38 = vshrl.u32 %v1550_v32, 16  ;;  %v2497_v37 = vshll.u32 %v1550_v32, 16  ;;  %7752 = vmatprep.subr.bf16.mxu1 %v11148_v44  ;;  %v1366_v62 = vld [vmem:[#allocation2 + $0x178] sm:$0x1] }
 0x2eb   : > { %5597 = vmatmul.mubr.bf16.gmra.mrb[216].mxu0 %v2457_v33  ;;  %v2196_v10 = vshrl.u32 %v1713_v6, 16  ;;  %v2194_v5 = vrot.slane %v2192_v43, 7  ;;  %v2199_v26 = vshll.u32 %v1713_v6, 16  ;;  %v1715_v33 = vrot.slane %v1365_v4, 1 }
 0x2ec   : > { %v2223_v55 = vshrl.u32 %v1714_v61, 16  ;;  %v2496_v51 = vrot.slane %v2494_v38, 7  ;;  %v2483_v7 = vshrl.u32 %v1333_v56, 16  ;;  %v1552_v32 = vshll.u32 %v11342_v35, 16  ;;  %v11348_v4 = vpop.f32.mrb[52].mxu1  ;;  %v9768_v38 = vld [vmem:[#allocation10 + $0x1e8] sm:$0xff]  }
 0x2ed   : > { %v2198_v46 = vrot.slane %v2196_v10, 7  ;;  %v1716_v21 = vsel %vm1671_vm0, %v1714_v61, %v1715_v33  ;;  %v1555_v14 = vshrl.u32 %v11342_v35, 16  ;;  %13506 = vst [vmem:[#allocation69_spill] sm:$0xff] %v11348_v4  ;;  %7753 = vmatpush1.bf16.msra.mxu1 %v9767_v8  ;;  %v13507_v1 = vshll.u32 %v11313_v59, 16  ;;  %v9815_v33 = vld [vmem:[#allocation2 + $0x170] sm:$0xff]  ;;  %v4806_v22 = vpop.f32.mrb[53].mxu1 }
 0x2ee   : > { %v2225_v3 = vrot.slane %v2223_v55, 7  ;;  %v2499_v57 = vor.u32 %v2497_v37, %v2496_v51  ;;  %v2227_v43 = vshrl.u32 %v1716_v21, 16  ;;  %v2230_v6 = vshll.u32 %v1716_v21, 16  ;;  %v11352_v27 = vpop.f32.mrb[116].mxu0  ;;  %7754 = vmatprep.subr.bf16.mxu1 %v11148_v44  ;;  %v11357_v8 = vpop.f32.mrb[54].mxu1  ;;  %v11362_v4 = vld [vmem:[#allocation2 + $0x290] sm:$0xff] }
 0x2ef   : > { %v2201_v12 = vor.u32 %v2199_v26, %v2198_v46  ;;  %v2485_v10 = vrot.slane %v2483_v7, 7  ;;  %v2487_v56 = vor.u32 %v2486_v47, %v13507_v1  ;;  %v1554_v61 = vrot.slane %v1552_v32, 1  ;;  %13508 = vst [vmem:[#allocation70_spill] sm:$0xff] %v11352_v27  ;;  %13509 = vst [vmem:[#allocation71_spill] sm:$0xff] %v11357_v8  ;;  %v11359_v7 = vpop.f32.mrb[117].mxu0 }
 0x2f0   : > { %v1717_v55 = vrot.slane %v9815_v33, 1  ;;  %v2500_v37 = vsel %vm1768_vm1, %v2492_v30, %v2499_v57  ;;  %v2229_v51 = vrot.slane %v2227_v43, 7  ;;  %v1718_v46 = vrot.slane %v1366_v62, 1  ;;  %v4809_v33 = vpop.f32.mrb[55].mxu1  ;;  %v11364_v27 = vpop.f32.mrb[118].mxu0 }
 0x2f1   : > { %v2202_v26 = vsel %vm1768_vm1, %v2194_v5, %v2201_v12  ;;  %5604 = vmatprep.mubr.bf16.mxu0 %v2500_v37  ;;  %v2488_v47 = vsel %vm1768_vm1, %v2485_v10, %v2487_v56  ;;  %v1557_v21 = vor.u32 %v1555_v14, %v1554_v61  ;;  %v2521_v22 = vshrl.u32 %v1554_v61, 16  ;;  %13510 = vst [vmem:[#allocation72_spill] sm:$0xff] %v11364_v27  ;;  %v1367_v57 = vld [vmem:[#allocation2 + $0x1c0] sm:$0x1]  ;;  %v11367_v43 = vpop.f32.mrb[119].mxu0  ;;  %v9770_v37 = vld [vmem:[#allocation10 + $0x1f0] sm:$0xff]  }
 0x2f2   : > { %9472 = vmatmul.mubr.bf16.gmra.mrb[152].mxu1 %v2202_v26  ;;  %v2254_v1 = vshrl.u32 %v1717_v55, 16  ;;  %v2232_v30 = vor.u32 %v2230_v6, %v2229_v51  ;;  %v1719_v12 = vsel %vm1671_vm0, %v1717_v55, %v1718_v46  ;;  %v2514_v62 = vshrl.u32 %v1335_v49, 16  ;;  %13511 = vst [vmem:[#allocation73_spill] sm:$0xff] %v11367_v43  ;;  %v1368_v33 = vld [vmem:[#allocation2 + $0x1d8] sm:$0x1] }
 0x2f3   : > { %5605 = vmatmul.mubr.bf16.gmra.mrb[220].mxu0 %v2488_v47  ;;  %v2517_v5 = vrot.slane %v1555_v14, 7  ;;  %7755 = vmatpush1.bf16.msra.mxu1 %v9768_v38  ;;  %v2523_v10 = vrot.slane %v2521_v22, 7  ;;  %v2525_v56 = vshrl.u32 %v1557_v21, 16  ;;  %v2528_v61 = vshll.u32 %v1557_v21, 16  ;;  %v9773_v27 = vld [vmem:[#allocation10 + $0x1f8] sm:$0xff]  }
 0x2f4   : > { %v2256_v26 = vrot.slane %v2254_v1, 7  ;;  %7756 = vmatprep.subr.bf16.mxu1 %v11148_v44  ;;  %v2233_v8 = vsel %vm1768_vm1, %v2225_v3, %v2232_v30  ;;  %v2258_v6 = vshrl.u32 %v1719_v12, 16  ;;  %v2261_v51 = vshll.u32 %v1719_v12, 16 }
 0x2f5   : > { %v2516_v47 = vrot.slane %v2514_v62, 7  ;;  %9475 = vmatprep.mubr.bf16.mxu1 %v2233_v8  ;;  %v2527_v49 = vrot.slane %v2525_v56, 7  ;;  %v2518_v14 = vor.u32 %v2517_v5, %v1552_v32  ;;  %v13351_v55 = vshll.u32 %v11362_v4, 16  ;;  %v11378_v32 = vpop.f32.mrb[56].mxu1 }
 0x2f6   : > { %v1562_v38 = vshrl.u32 %v11362_v4, 16  ;;  %v2260_v46 = vrot.slane %v2258_v6, 7  ;;  %v1721_v22 = vrot.slane %v1367_v57, 1  ;;  %v1723_v21 = vrot.slane %v11151_v11, 1  ;;  %13512 = vst [vmem:[#allocation74_spill] sm:$0xff] %v11378_v32 }
 0x2f7   : > { %v1724_v1 = vrot.slane %v1368_v33, 1  ;;  %7757 = vmatpush1.bf16.msra.mxu1 %v9770_v37  ;;  %v2530_v43 = vor.u32 %v2528_v61, %v2527_v49  ;;  %v2519_v3 = vsel %vm1768_vm1, %v2516_v47, %v2518_v14  ;;  %v1561_v30 = vrot.slane %v13351_v55, 1  ;;  %v1369_v57 = vld [vmem:[#allocation2 + $0x1f0] sm:$0x1]  ;;  %v4814_v37 = vpop.f32.mrb[57].mxu1  ;;  %v11387_v49 = vpop.f32.mrb[120].mxu0 }
 0x2f8   : > { %v1726_v8 = vrot.slane %v11188_v19, 1  ;;  %7758 = vmatprep.subr.bf16.mxu1 %v11148_v44  ;;  %v2263_v12 = vor.u32 %v2261_v51, %v2260_v46  ;;  %v1722_v62 = vsel %vm1671_vm0, %v11172_v24, %v1721_v22  ;;  %v2316_v5 = vshrl.u32 %v1723_v21, 16  ;;  %v11385_v47 = vpop.f32.mrb[58].mxu1  ;;  %v1337_v19 = vld [vmem:[#allocation2 + $0x288] sm:$0x80]  ;;  %v11390_v22 = vpop.f32.mrb[121].mxu0 }
 0x2f9   : > { %v1725_v11 = vsel %vm1671_vm0, %v1723_v21, %v1724_v1  ;;  %v2531_v56 = vsel %vm1768_vm1, %v2523_v10, %v2530_v43  ;;  %v1564_v61 = vor.u32 %v1562_v38, %v1561_v30  ;;  %v2552_v33 = vshrl.u32 %v1561_v30, 16  ;;  %13513 = vst [vmem:[#allocation75_spill] sm:$0xff] %v11385_v47  ;;  %v4817_v46 = vpop.f32.mrb[59].mxu1  ;;  %v11392_v30 = vld [vmem:[#allocation2 + $0x2a8] sm:$0xff]  ;;  %v11394_v37 = vpop.f32.mrb[122].mxu0 }
 0x2fa   : > { %v2289_v6 = vshrl.u32 %v1722_v62, 16  ;;  %5612 = vmatprep.mubr.bf16.mxu0 %v2531_v56  ;;  %v2264_v44 = vsel %vm1768_vm1, %v2256_v26, %v2263_v12  ;;  %v2292_v51 = vshll.u32 %v1722_v62, 16  ;;  %v2318_v24 = vrot.slane %v2316_v5, 7  ;;  %13514 = vst [vmem:[#allocation76_spill] sm:$0xff] %v11394_v37  ;;  %v11396_v62 = vpop.f32.mrb[123].mxu0 }
 0x2fb   : > { %v2320_v14 = vshrl.u32 %v1725_v11, 16  ;;  %7759 = vmatpush1.bf16.msra.mxu1 %v9773_v27  ;;  %5613 = vmatmul.mubr.bf16.gmra.mrb[224].mxu0 %v2519_v3  ;;  %v2554_v43 = vrot.slane %v2552_v33, 7  ;;  %v2556_v10 = vshrl.u32 %v1564_v61, 16  ;;  %v2559_v21 = vshll.u32 %v1564_v61, 16  ;;  %v1371_v37 = vld [vmem:[#allocation2 + $0x220] sm:$0x1] }
 0x2fc   : > { %9476 = vmatmul.mubr.bf16.gmra.mrb[156].mxu1 %v2264_v44  ;;  %v2291_v1 = vrot.slane %v2289_v6, 7  ;;  %v2323_v55 = vshll.u32 %v1725_v11, 16  ;;  %v1727_v26 = vrot.slane %v1369_v57, 1  ;;  %v2347_v12 = vshrl.u32 %v1726_v8, 16  ;;  %v1370_v57 = vld [vmem:[#allocation2 + $0x208] sm:$0x1] }
 0x2fd   : > { %v2322_v56 = vrot.slane %v2320_v14, 7  ;;  %v2558_v5 = vrot.slane %v2556_v10, 7  ;;  %v2545_v47 = vshrl.u32 %v1337_v19, 16  ;;  %v2548_v27 = vrot.slane %v1562_v38, 7  ;;  %v11407_v19 = vpop.f32.mrb[60].mxu1 }
 0x2fe   : > { %v2294_v46 = vor.u32 %v2292_v51, %v2291_v1  ;;  %v1728_v3 = vsel %vm1671_vm0, %v1726_v8, %v1727_v26  ;;  %v2349_v33 = vrot.slane %v2347_v12, 7  ;;  %v13352_v61 = vshll.u32 %v11392_v30, 16  ;;  %13516 = vst [vmem:[#allocation77_spill] sm:$0xff] %v11407_v19  ;;  %v11412_v12 = vpop.f32.mrb[124].mxu0 }
 0x2ff   : > { %v2325_v44 = vor.u32 %v2323_v55, %v2322_v56  ;;  %v2561_v6 = vor.u32 %v2559_v21, %v2558_v5  ;;  %v2351_v14 = vshrl.u32 %v1728_v3, 16  ;;  %v2354_v11 = vshll.u32 %v1728_v3, 16  ;;  %v1339_v21 = vld [vmem:[#allocation2 + $0x2a0] sm:$0x80]  ;;  %13517 = vst [vmem:[#allocation78_spill] sm:$0xff] %v11412_v12 }
 0x300   : > { %v2295_v32 = vsel %vm1768_vm1, %v11183_v18, %v2294_v46  ;;  %v2547_v51 = vrot.slane %v2545_v47, 7  ;;  %v13515_v38 = vshll.u32 %v11362_v4, 16  ;;  %v1568_v8 = vrot.slane %v13352_v61, 1 }
 0x301   : > { %9479 = vmatprep.mubr.bf16.mxu1 %v2295_v32  ;;  %v2326_v10 = vsel %vm1768_vm1, %v2318_v24, %v2325_v44  ;;  %v2562_v1 = vsel %vm1768_vm1, %v2554_v43, %v2561_v6  ;;  %v2353_v18 = vrot.slane %v2351_v14, 7  ;;  %v1569_v56 = vshrl.u32 %v11392_v30, 16  ;;  %v4822_v32 = vpop.f32.mrb[61].mxu1  ;;  %v11418_v44 = vpop.f32.mrb[125].mxu0 }
 0x302   : > { %v2549_v55 = vor.u32 %v2548_v27, %v13515_v38  ;;  %v1729_v26 = vrot.slane %v11215_v52, 1  ;;  %5620 = vmatprep.mubr.bf16.mxu0 %v2562_v1  ;;  %v2583_v24 = vshrl.u32 %v1568_v8, 16  ;;  %v1730_v5 = vrot.slane %v1370_v57, 1  ;;  %v11416_v27 = vpop.f32.mrb[62].mxu1  ;;  %v11420_v38 = vpop.f32.mrb[126].mxu0 }
 0x303   : > { %v1732_v46 = vrot.slane %v11241_v25, 1  ;;  %13518 = vst [vmem:[#allocation79_spill] sm:$0xff] %v11416_v27  ;;  %v2356_v43 = vor.u32 %v2354_v11, %v2353_v18  ;;  %v1571_v3 = vor.u32 %v1569_v56, %v1568_v8  ;;  %v1733_v52 = vrot.slane %v1371_v37, 1  ;;  %v4825_v14 = vpop.f32.mrb[63].mxu1  ;;  %13519 = vst [vmem:[#allocation80_spill] sm:$0xff] %v11420_v38  ;;  %v11423_v32 = vpop.f32.mrb[127].mxu0 }
 0x304   : > { %v2550_v47 = vsel %vm1768_vm1, %v2547_v51, %v2549_v55  ;;  %9480 = vmatmul.mubr.bf16.gmra.mrb[160].mxu1 %v2326_v10  ;;  %v2378_v6 = vshrl.u32 %v1729_v26, 16  ;;  %v2585_v1 = vrot.slane %v2583_v24, 7  ;;  %v1731_v51 = vsel %vm1671_vm0, %v1729_v26, %v1730_v5  ;;  %v11426_v11 = vld [vmem:[#allocation2 + $0x2c0] sm:$0xff] }
 0x305   : > { %5621 = vmatmul.mubr.bf16.gmra.mrb[228].mxu0 %v2550_v47  ;;  %v2409_v55 = vshrl.u32 %v1732_v46, 16  ;;  %v2576_v57 = vshrl.u32 %v1339_v21, 16  ;;  %v2357_v25 = vsel %vm1768_vm1, %v2349_v33, %v2356_v43  ;;  %v2587_v61 = vshrl.u32 %v1571_v3, 16  ;;  %v1372_v21 = vld [vmem:[#allocation2 + $0x238] sm:$0x1] }
 0x306   : > { %v2590_v12 = vshll.u32 %v1571_v3, 16  ;;  %v2380_v10 = vrot.slane %v2378_v6, 7  ;;  %9483 = vmatprep.mubr.bf16.mxu1 %v2357_v25  ;;  %v2382_v8 = vshrl.u32 %v1731_v51, 16  ;;  %v2385_v37 = vshll.u32 %v1731_v51, 16 }
 0x307   : > { %v1734_v18 = vsel %vm1671_vm0, %v1732_v46, %v1733_v52  ;;  %v2411_v47 = vrot.slane %v2409_v55, 7  ;;  %v2589_v24 = vrot.slane %v2587_v61, 7  ;;  %v2578_v5 = vrot.slane %v2576_v57, 7 }
 0x308   : > { %v2413_v14 = vshrl.u32 %v1734_v18, 16  ;;  %v2416_v26 = vshll.u32 %v1734_v18, 16  ;;  %v2384_v38 = vrot.slane %v2382_v8, 7  ;;  %v2579_v27 = vrot.slane %v1569_v56, 7  ;;  %v5422_v57 = vpop.f32.mrb[128].mxu0  ;;  %v4828_v8 = vpop.f32.mrb[64].mxu1 }
 0x309   : > { %v13353_v33 = vshll.u32 %v11426_v11, 16  ;;  %v1576_v43 = vshrl.u32 %v11426_v11, 16  ;;  %v2592_v3 = vor.u32 %v2590_v12, %v2589_v24  ;;  %v4990_v25 = vadd.f32 %v11007_v60, %v11016_v28  ;;  %v4830_v60 = vpop.f32.mrb[65].mxu1 }
 0x30a   : > { %v2415_v6 = vrot.slane %v2413_v14, 7  ;;  %v1735_v51 = vrot.slane %v11260_v31, 1  ;;  %v2387_v46 = vor.u32 %v2385_v37, %v2384_v38  ;;  %v13520_v61 = vshll.u32 %v11392_v30, 16  ;;  %v5424_v14 = vpop.f32.mrb[129].mxu0  ;;  %v1373_v37 = vld [vmem:[#allocation2 + $0x250] sm:$0x1] }
 0x30b   : > { %v1575_v55 = vrot.slane %v13353_v33, 1  ;;  %v1736_v56 = vrot.slane %v1372_v21, 1  ;;  %v2593_v18 = vsel %vm1768_vm1, %v2585_v1, %v2592_v3  ;;  %v11439_v12 = vadd.f32 %v5422_v57, %v4990_v25  ;;  %v4831_v33 = vpop.f32.mrb[66].mxu1 }
 0x30c   : > { %v2580_v52 = vor.u32 %v2579_v27, %v13520_v61  ;;  %v2418_v19 = vor.u32 %v2416_v26, %v2415_v6  ;;  %v2440_v24 = vshrl.u32 %v1735_v51, 16  ;;  %5628 = vmatprep.mubr.bf16.mxu0 %v2593_v18  ;;  %v2388_v28 = vsel %vm1768_vm1, %v2380_v10, %v2387_v46  ;;  %v5425_v61 = vpop.f32.mrb[130].mxu0  ;;  %v4833_v6 = vpop.f32.mrb[67].mxu1 }
 0x30d   : > { %v1578_v27 = vor.u32 %v1576_v43, %v1575_v55  ;;  %v2614_v38 = vshrl.u32 %v1575_v55, 16  ;;  %9484 = vmatmul.mubr.bf16.gmra.mrb[164].mxu1 %v2388_v28  ;;  %v1737_v1 = vsel %vm1671_vm0, %v1735_v51, %v1736_v56  ;;  %v1738_v3 = vrot.slane %v11285_v58, 1  ;;  %v5427_v25 = vpop.f32.mrb[131].mxu0  ;;  %v1341_v55 = vld [vmem:[#allocation2 + $0x2b8] sm:$0x80] }
 0x30e   : > { %v2581_v31 = vsel %vm1768_vm1, %v2578_v5, %v2580_v52  ;;  %v2419_v21 = vsel %vm1768_vm1, %v2411_v47, %v2418_v19  ;;  %v2442_v26 = vrot.slane %v2440_v24, 7  ;;  %v2444_v52 = vshrl.u32 %v1737_v1, 16  ;;  %v11454_v56 = vld [vmem:[#allocation2 + $0x2d8] sm:$0xff]  ;;  %v1375_v6 = vld [vmem:[#allocation2 + $0x280] sm:$0x1] }
 0x30f   : > { %5629 = vmatmul.mubr.bf16.gmra.mrb[232].mxu0 %v2581_v31  ;;  %9487 = vmatprep.mubr.bf16.mxu1 %v2419_v21  ;;  %v2616_v10 = vrot.slane %v2614_v38, 7  ;;  %v2618_v46 = vshrl.u32 %v1578_v27, 16  ;;  %v2621_v5 = vshll.u32 %v1578_v27, 16  ;;  %v2447_v57 = vshll.u32 %v1737_v1, 16  ;;  %v1374_v38 = vld [vmem:[#allocation2 + $0x268] sm:$0x1] }
 0x310   : > { %v1739_v18 = vrot.slane %v1373_v37, 1  ;;  %v2471_v14 = vshrl.u32 %v1738_v3, 16  ;;  %v4993_v19 = vadd.f32 %v11012_v23, %v11019_v20  ;;  %v2446_v60 = vrot.slane %v2444_v52, 7  ;;  %v5430_v1 = vpop.f32.mrb[132].mxu0 }
 0x311   : > { %v2620_v47 = vrot.slane %v2618_v46, 7  ;;  %v11449_v51 = vadd.f32 %v11197_v15, %v4828_v8  ;;  %v11452_v58 = vadd.f32 %v11207_v36, %v4831_v33  ;;  %v2607_v27 = vshrl.u32 %v1341_v55, 16  ;;  %v5432_v25 = vpop.f32.mrb[133].mxu0  ;;  %v4836_v46 = vpop.f32.mrb[68].mxu1 }
 0x312   : > { %v1740_v24 = vsel %vm1671_vm0, %v1738_v3, %v1739_v18  ;;  %v2473_v28 = vrot.slane %v2471_v14, 7  ;;  %v11457_v31 = vadd.f32 %v5425_v61, %v4993_v19  ;;  %v2449_v21 = vor.u32 %v2447_v57, %v2446_v60  ;;  %v5433_v55 = vpop.f32.mrb[134].mxu0  ;;  %v4838_v57 = vpop.f32.mrb[69].mxu1 }
 0x313   : > { %v2623_v37 = vor.u32 %v2621_v5, %v2620_v47  ;;  %v2475_v23 = vshrl.u32 %v1740_v24, 16  ;;  %v2478_v20 = vshll.u32 %v1740_v24, 16  ;;  %v2609_v15 = vrot.slane %v2607_v27, 7  ;;  %v4839_v60 = vpop.f32.mrb[70].mxu1 }
 0x314   : > { %v2610_v8 = vrot.slane %v1576_v43, 7  ;;  %v1580_v36 = vshll.u32 %v11454_v56, 16  ;;  %v1583_v33 = vshrl.u32 %v11454_v56, 16  ;;  %v2450_v61 = vsel %vm1768_vm1, %v2442_v26, %v2449_v21  ;;  %v4841_v27 = vpop.f32.mrb[71].mxu1 }
 0x315   : > { %v2624_v3 = vsel %vm1768_vm1, %v2616_v10, %v2623_v37  ;;  %v2477_v52 = vrot.slane %v2475_v23, 7  ;;  %v4998_v5 = vadd.f32 %v11004_v41, %v11029_v63  ;;  %9488 = vmatmul.mubr.bf16.gmra.mrb[168].mxu1 %v2450_v61  ;;  %v13521_v43 = vshll.u32 %v11426_v11, 16  ;;  %v5435_v10 = vpop.f32.mrb[135].mxu0 }
 0x316   : > { %5636 = vmatprep.mubr.bf16.mxu0 %v2624_v3  ;;  %v1582_v14 = vrot.slane %v1580_v36, 1  ;;  %v1741_v19 = vrot.slane %v11313_v59, 1  ;;  %v1742_v47 = vrot.slane %v1374_v38, 1  ;;  %v1744_v41 = vrot.slane %v11342_v35, 1 }
 0x317   : > { %v2611_v18 = vor.u32 %v2610_v8, %v13521_v43  ;;  %v2480_v26 = vor.u32 %v2478_v20, %v2477_v52  ;;  %v11470_v24 = vadd.f32 %v5430_v1, %v4998_v5  ;;  %v1745_v63 = vrot.slane %v1375_v6, 1  ;;  %v1343_v6 = vld [vmem:[#allocation2 + $0x2d0] sm:$0x80] }
 0x318   : > { %v1585_v21 = vor.u32 %v1583_v33, %v1582_v14  ;;  %v2645_v23 = vshrl.u32 %v1582_v14, 16  ;;  %v1743_v8 = vsel %vm1671_vm0, %v1741_v19, %v1742_v47  ;;  %v2502_v59 = vshrl.u32 %v1741_v19, 16  ;;  %v5438_v43 = vpop.f32.mrb[136].mxu0  ;;  %v11482_v47 = vld [vmem:[#allocation2 + $0x2f0] sm:$0xff] }
 0x319   : > { %v2612_v37 = vsel %vm1768_vm1, %v2609_v15, %v2611_v18  ;;  %v2481_v25 = vsel %vm1768_vm1, %v2473_v28, %v2480_v26  ;;  %v2506_v38 = vshrl.u32 %v1743_v8, 16  ;;  %v2509_v3 = vshll.u32 %v1743_v8, 16  ;;  %v5440_v10 = vpop.f32.mrb[137].mxu0  ;;  %v11484_v26 = vpop.f32.mrb[72].mxu1 }
 0x31a   : > { %5637 = vmatmul.mubr.bf16.gmra.mrb[236].mxu0 %v2612_v37  ;;  %9491 = vmatprep.mubr.bf16.mxu1 %v2481_v25  ;;  %v2647_v20 = vrot.slane %v2645_v23, 7  ;;  %v2649_v1 = vshrl.u32 %v1585_v21, 16  ;;  %v2652_v61 = vshll.u32 %v1585_v21, 16  ;;  %v1746_v35 = vsel %vm1671_vm0, %v1744_v41, %v1745_v63  ;;  %v11489_v21 = vpop.f32.mrb[138].mxu0  ;;  %v4846_v23 = vpop.f32.mrb[73].mxu1 }
 0x31b   : > { %v2504_v52 = vrot.slane %v2502_v59, 7  ;;  %v2508_v5 = vrot.slane %v2506_v38, 7  ;;  %v2533_v15 = vshrl.u32 %v1744_v41, 16  ;;  %v2537_v57 = vshrl.u32 %v1746_v35, 16  ;;  %v4847_v59 = vpop.f32.mrb[74].mxu1 }
 0x31c   : > { %v2651_v18 = vrot.slane %v2649_v1, 7  ;;  %v2540_v14 = vshll.u32 %v1746_v35, 16  ;;  %v5001_v28 = vadd.f32 %v11009_v53, %v11036_v0  ;;  %v11480_v19 = vadd.f32 %v11194_v42, %v4836_v46  ;;  %v1376_v42 = vld [vmem:[#allocation2 + $0x298] sm:$0x1]  ;;  %v5443_v46 = vpop.f32.mrb[139].mxu0 }
 0x31d   : > { %v2511_v63 = vor.u32 %v2509_v3, %v2508_v5  ;;  %v2535_v27 = vrot.slane %v2533_v15, 7  ;;  %v2539_v37 = vrot.slane %v2537_v57, 7  ;;  %v11487_v41 = vadd.f32 %v11204_v16, %v4839_v60  ;;  %v1377_v16 = vld [vmem:[#allocation2 + $0x2b0] sm:$0x1]  ;;  %v4849_v60 = vpop.f32.mrb[75].mxu1 }
 0x31e   : > { %v2654_v8 = vor.u32 %v2652_v61, %v2651_v18  ;;  %v11491_v25 = vadd.f32 %v5433_v55, %v5001_v28  ;;  %v2638_v53 = vshrl.u32 %v1343_v6, 16  ;;  %v2641_v0 = vrot.slane %v1583_v33, 7 }
 0x31f   : > { %13522 = vst [vmem:[#allocation81_spill] sm:$0xff] %v11487_v41  ;;  %v2512_v38 = vsel %vm1768_vm1, %v2504_v52, %v2511_v63  ;;  %v2542_v1 = vor.u32 %v2540_v14, %v2539_v37  ;;  %v1587_v3 = vshll.u32 %v11482_v47, 16  ;;  %v1590_v35 = vshrl.u32 %v11482_v47, 16  ;;  %v1345_v63 = vld [vmem:[#allocation2 + $0x2e8] sm:$0x80] }
 0x320   : > { %v2655_v5 = vsel %vm1768_vm1, %v2647_v20, %v2654_v8  ;;  %9492 = vmatmul.mubr.bf16.gmra.mrb[172].mxu1 %v2512_v38  ;;  %v2640_v61 = vrot.slane %v2638_v53, 7  ;;  %v2642_v55 = vor.u32 %v2641_v0, %v1580_v36  ;;  %v5006_v33 = vadd.f32 %v11034_v17, %v11051_v9  ;;  %v11509_v53 = vld [vmem:[#allocation2 + $0x308] sm:$0xff]  ;;  %v11511_v0 = vpop.f32.mrb[76].mxu1 }
 0x321   : > { %5644 = vmatprep.mubr.bf16.mxu0 %v2655_v5  ;;  %v2543_v6 = vsel %vm1768_vm1, %v2535_v27, %v2542_v1  ;;  %v1589_v52 = vrot.slane %v1587_v3, 1  ;;  %v1747_v15 = vrot.slane %v11362_v4, 1  ;;  %v1748_v57 = vrot.slane %v1376_v42, 1  ;;  %v5446_v27 = vpop.f32.mrb[140].mxu0 }
 0x322   : > { %9495 = vmatprep.mubr.bf16.mxu1 %v2543_v6  ;;  %v2643_v18 = vsel %vm1768_vm1, %v2640_v61, %v2642_v55  ;;  %v11504_v14 = vadd.f32 %v5438_v43, %v5006_v33  ;;  %v1750_v20 = vrot.slane %v11392_v30, 1  ;;  %v1751_v28 = vrot.slane %v1377_v16, 1  ;;  %v5448_v43 = vpop.f32.mrb[141].mxu0  ;;  %v4854_v16 = vpop.f32.mrb[77].mxu1 }
 0x323   : > { %5645 = vmatmul.mubr.bf16.gmra.mrb[240].mxu0 %v2643_v18  ;;  %v1592_v36 = vor.u32 %v1590_v35, %v1589_v52  ;;  %v2676_v10 = vshrl.u32 %v1589_v52, 16  ;;  %v1749_v17 = vsel %vm1671_vm0, %v1747_v15, %v1748_v57  ;;  %v2564_v9 = vshrl.u32 %v1747_v15, 16  ;;  %v11513_v1 = vpop.f32.mrb[142].mxu0  ;;  %v11515_v6 = vpop.f32.mrb[78].mxu1 }
 0x324   : > { %13523 = vst [vmem:[#allocation82_spill] sm:$0xff] %v11504_v14  ;;  %v2568_v37 = vshrl.u32 %v1749_v17, 16  ;;  %v2571_v23 = vshll.u32 %v1749_v17, 16  ;;  %v1752_v4 = vsel %vm1671_vm0, %v1750_v20, %v1751_v28  ;;  %v2595_v8 = vshrl.u32 %v1750_v20, 16  ;;  %v5451_v33 = vpop.f32.mrb[143].mxu0  ;;  %v4857_v20 = vpop.f32.mrb[79].mxu1 }
 0x325   : > { %v2678_v30 = vrot.slane %v2676_v10, 7  ;;  %v2680_v42 = vshrl.u32 %v1592_v36, 16  ;;  %v2683_v46 = vshll.u32 %v1592_v36, 16  ;;  %v2566_v38 = vrot.slane %v2564_v9, 7 }
 0x326   : > { %v2570_v60 = vrot.slane %v2568_v37, 7  ;;  %v2597_v5 = vrot.slane %v2595_v8, 7  ;;  %v2599_v61 = vshrl.u32 %v1752_v4, 16  ;;  %v2602_v55 = vshll.u32 %v1752_v4, 16 }
 0x327   : > { %v2682_v52 = vrot.slane %v2680_v42, 7  ;;  %v5009_v15 = vadd.f32 %v11042_v34, %v11058_v54  ;;  %v11521_v57 = vadd.f32 %v11227_v2, %v11484_v26  ;;  %v11524_v18 = vadd.f32 %v11237_v13, %v4847_v59  ;;  %v1378_v54 = vld [vmem:[#allocation2 + $0x2c8] sm:$0x1] }
 0x328   : > { %v2573_v28 = vor.u32 %v2571_v23, %v2570_v60  ;;  %v2601_v36 = vrot.slane %v2599_v61, 7  ;;  %v2669_v10 = vshrl.u32 %v1345_v63, 16  ;;  %v2672_v17 = vrot.slane %v1590_v35, 7  ;;  %v1379_v23 = vld [vmem:[#allocation2 + $0x2e0] sm:$0x1]  ;;  %v11538_v43 = vpop.f32.mrb[144].mxu0 }
 0x329   : > { %13524 = vst [vmem:[#allocation83_spill] sm:$0xff] %v11521_v57  ;;  %13525 = vst [vmem:[#allocation84_spill] sm:$0xff] %v11524_v18  ;;  %v2685_v9 = vor.u32 %v2683_v46, %v2682_v52  ;;  %v11527_v37 = vadd.f32 %v11489_v21, %v5009_v15  ;;  %v1594_v4 = vshll.u32 %v11509_v53, 16  ;;  %v1597_v34 = vshrl.u32 %v11509_v53, 16  ;;  %v11543_v16 = vpop.f32.mrb[80].mxu1 }
 0x32a   : > { %v2574_v2 = vsel %vm1768_vm1, %v2566_v38, %v2573_v28  ;;  %v2604_v26 = vor.u32 %v2602_v55, %v2601_v36  ;;  %v2671_v8 = vrot.slane %v2669_v10, 7  ;;  %v2673_v13 = vor.u32 %v2672_v17, %v1587_v3  ;;  %v5456_v38 = vpop.f32.mrb[145].mxu0  ;;  %v4862_v55 = vpop.f32.mrb[81].mxu1  ;;  %v1347_v15 = vld [vmem:[#allocation2 + $0x300] sm:$0x80] }
 0x32b   : > { %13526 = vst [vmem:[#allocation85_spill] sm:$0xff] %v11527_v37  ;;  %v2686_v59 = vsel %vm1768_vm1, %v2678_v30, %v2685_v9  ;;  %9496 = vmatmul.mubr.bf16.gmra.mrb[176].mxu1 %v2574_v2  ;;  %v1596_v35 = vrot.slane %v1594_v4, 1  ;;  %v5014_v21 = vadd.f32 %v11032_v29, %v11066_v39  ;;  %v1753_v63 = vrot.slane %v11426_v11, 1  ;;  %v11547_v61 = vpop.f32.mrb[146].mxu0  ;;  %v11552_v28 = vpop.f32.mrb[82].mxu1 }
 0x32c   : > { %5652 = vmatprep.mubr.bf16.mxu0 %v2686_v59  ;;  %v2605_v42 = vsel %vm1768_vm1, %v2597_v5, %v2604_v26  ;;  %v2674_v46 = vsel %vm1768_vm1, %v2671_v8, %v2673_v13  ;;  %v1754_v3 = vrot.slane %v1378_v54, 1  ;;  %v1756_v30 = vrot.slane %v11454_v56, 1  ;;  %v5459_v20 = vpop.f32.mrb[147].mxu0  ;;  %v4865_v9 = vpop.f32.mrb[83].mxu1  ;;  %v11555_v13 = vld [vmem:[#allocation2 + $0x320] sm:$0xff] }
 0x32d   : > { %9499 = vmatprep.mubr.bf16.mxu1 %v2605_v42  ;;  %5653 = vmatmul.mubr.bf16.gmra.mrb[244].mxu0 %v2674_v46  ;;  %v1599_v60 = vor.u32 %v1597_v34, %v1596_v35  ;;  %v2707_v29 = vshrl.u32 %v1596_v35, 16  ;;  %v11545_v39 = vadd.f32 %v5446_v27, %v5014_v21  ;;  %v2626_v11 = vshrl.u32 %v1753_v63, 16 }
 0x32e   : > { %v1755_v5 = vsel %vm1671_vm0, %v1753_v63, %v1754_v3  ;;  %v1757_v33 = vrot.slane %v1379_v23, 1  ;;  %v2657_v52 = vshrl.u32 %v1756_v30, 16  ;;  %v5017_v56 = vadd.f32 %v11039_v40, %v11073_v48 }
 0x32f   : > { %13527 = vst [vmem:[#allocation86_spill] sm:$0xff] %v11545_v39  ;;  %v2709_v36 = vrot.slane %v2707_v29, 7  ;;  %v2711_v10 = vshrl.u32 %v1599_v60, 16  ;;  %v2714_v17 = vshll.u32 %v1599_v60, 16  ;;  %v2628_v27 = vrot.slane %v2626_v11, 7 }
 0x330   : > { %v2630_v54 = vshrl.u32 %v1755_v5, 16  ;;  %v2633_v2 = vshll.u32 %v1755_v5, 16  ;;  %v1758_v26 = vsel %vm1671_vm0, %v1756_v30, %v1757_v33  ;;  %v2659_v8 = vrot.slane %v2657_v52, 7  ;;  %v1380_v60 = vld [vmem:[#allocation2 + $0x2f8] sm:$0x1]  ;;  %v11569_v29 = vpop.f32.mrb[148].mxu0 }
 0x331   : > { %v2713_v59 = vrot.slane %v2711_v10, 7  ;;  %v2661_v35 = vshrl.u32 %v1758_v26, 16  ;;  %v2664_v21 = vshll.u32 %v1758_v26, 16  ;;  %v11558_v40 = vadd.f32 %v11513_v1, %v5017_v56  ;;  %v13531_v5 = vld [vmem:[#allocation25_spill] sm:$0xff]  ;;  %v5464_v33 = vpop.f32.mrb[149].mxu0  ;;  %v11574_v52 = vpop.f32.mrb[84].mxu1 }
 0x332   : > { %v2632_v48 = vrot.slane %v2630_v54, 7  ;;  %v11562_v63 = vadd.f32 %v11223_v45, %v11511_v0  ;;  %v11566_v23 = vadd.f32 %v11233_v50, %v11515_v6  ;;  %v2700_v42 = vshrl.u32 %v1347_v15, 16  ;;  %v13532_v45 = vld [vmem:[#allocation16_spill] sm:$0xff]  ;;  %v1381_v15 = vld [vmem:[#allocation2 + $0x310] sm:$0x1]  ;;  %v11581_v20 = vpop.f32.mrb[150].mxu0 }
 0x333   : > { %13528 = vst [vmem:[#allocation87_spill] sm:$0xff] %v11558_v40  ;;  %v2716_v46 = vor.u32 %v2714_v17, %v2713_v59  ;;  %v2663_v3 = vrot.slane %v2661_v35, 7  ;;  %v2703_v30 = vrot.slane %v1597_v34, 7  ;;  %v1601_v38 = vshll.u32 %v11555_v13, 16  ;;  %v4870_v10 = vpop.f32.mrb[85].mxu1 }
 0x334   : > { %13529 = vst [vmem:[#allocation88_spill] sm:$0xff] %v11562_v63  ;;  %13530 = vst [vmem:[#allocation89_spill] sm:$0xff] %v11566_v23  ;;  %v2635_v1 = vor.u32 %v2633_v2, %v2632_v48  ;;  %v2702_v11 = vrot.slane %v2700_v42, 7  ;;  %v1604_v55 = vshrl.u32 %v11555_v13, 16  ;;  %v5022_v0 = vadd.f32 %v13532_v45, %v13531_v5  ;;  %v5467_v2 = vpop.f32.mrb[151].mxu0  ;;  %v11588_v26 = vpop.f32.mrb[86].mxu1 }
 0x335   : > { %v2717_v50 = vsel %vm1768_vm1, %v2709_v36, %v2716_v46  ;;  %v2666_v6 = vor.u32 %v2664_v21, %v2663_v3  ;;  %v2704_v34 = vor.u32 %v2703_v30, %v1594_v4  ;;  %v1603_v56 = vrot.slane %v1601_v38, 1  ;;  %v4873_v48 = vpop.f32.mrb[87].mxu1 }
 0x336   : > { %5660 = vmatprep.mubr.bf16.mxu0 %v2717_v50  ;;  %v2636_v17 = vsel %vm1768_vm1, %v2628_v27, %v2635_v1  ;;  %v11585_v9 = vadd.f32 %v11538_v43, %v5022_v0  ;;  %v1759_v54 = vrot.slane %v11482_v47, 1  ;;  %v1760_v36 = vrot.slane %v1380_v60, 1  ;;  %v6031_v1 = vld [vmem:[#allocation2 + $0x40] sm:$0x1]  ;;  %v1349_v0 = vld [vmem:[#allocation2 + $0x318] sm:$0x80] }
 0x337   : > { %9500 = vmatmul.mubr.bf16.gmra.mrb[180].mxu1 %v2636_v17  ;;  %v2667_v4 = vsel %vm1768_vm1, %v2659_v8, %v2666_v6  ;;  %v2705_v59 = vsel %vm1768_vm1, %v2702_v11, %v2704_v34  ;;  %v1606_v35 = vor.u32 %v1604_v55, %v1603_v56  ;;  %v2738_v21 = vshrl.u32 %v1603_v56, 16  ;;  %v11595_v56 = vld [vmem:[#allocation2 + $0x38] sm:$0xff] }
 0x338   : > { %13533 = vst [vmem:[#allocation25_spill] sm:$0xff] %v11585_v9  ;;  %9503 = vmatprep.mubr.bf16.mxu1 %v2667_v4  ;;  %5661 = vmatmul.mubr.bf16.gmra.mrb[248].mxu0 %v2705_v59  ;;  %v1761_v27 = vsel %vm1671_vm0, %v1759_v54, %v1760_v36  ;;  %v2688_v43 = vshrl.u32 %v1759_v54, 16  ;;  %v1762_v42 = vrot.slane %v11509_v53, 1  ;;  %v1763_v47 = vrot.slane %v1381_v15, 1  ;;  %v11597_v10 = vpop.f32.mrb[152].mxu0  ;;  %v13534_v15 = vld [vmem:[#allocation28_spill] sm:$0xff] }
 0x339   : > { %v2740_v46 = vrot.slane %v2738_v21, 7  ;;  %v2742_v3 = vshrl.u32 %v1606_v35, 16  ;;  %v2745_v30 = vshll.u32 %v1606_v35, 16  ;;  %v2692_v60 = vshrl.u32 %v1761_v27, 16  ;;  %v13535_v17 = vld [vmem:[#allocation18_spill] sm:$0xff]  ;;  %v13536_v36 = vld [vmem:[#allocation53_spill] sm:$0xff] }
 0x33a   : > { %v2690_v5 = vrot.slane %v2688_v43, 7  ;;  %v2695_v8 = vshll.u32 %v1761_v27, 16  ;;  %v1764_v11 = vsel %vm1671_vm0, %v1762_v42, %v1763_v47  ;;  %v2719_v45 = vshrl.u32 %v1762_v42, 16  ;;  %v13538_v4 = vld [vmem:[#allocation56_spill] sm:$0xff]  ;;  %v5472_v35 = vpop.f32.mrb[153].mxu0  ;;  %v11609_v21 = vpop.f32.mrb[88].mxu1 }
 0x33b   : > { %v2744_v33 = vrot.slane %v2742_v3, 7  ;;  %v2694_v50 = vrot.slane %v2692_v60, 7  ;;  %v2723_v6 = vshrl.u32 %v1764_v11, 16  ;;  %v2726_v34 = vshll.u32 %v1764_v11, 16  ;;  %v11611_v47 = vpop.f32.mrb[154].mxu0  ;;  %v4878_v3 = vpop.f32.mrb[89].mxu1 }
 0x33c   : > { %v2721_v53 = vrot.slane %v2719_v45, 7  ;;  %v5025_v54 = vadd.f32 %v13535_v17, %v13534_v15  ;;  %v11603_v2 = vadd.f32 %v13536_v36, %v11543_v16  ;;  %v11607_v59 = vadd.f32 %v13538_v4, %v11552_v28  ;;  %v5475_v15 = vpop.f32.mrb[155].mxu0  ;;  %v11617_v28 = vpop.f32.mrb[90].mxu1  ;;  %v11729_v9 = vld [vmem:[#allocation2 + $0xb0] sm:$0xff] }
 0x33d   : > { %v2747_v48 = vor.u32 %v2745_v30, %v2744_v33  ;;  %v2697_v27 = vor.u32 %v2695_v8, %v2694_v50  ;;  %v2725_v43 = vrot.slane %v2723_v6, 7  ;;  %v2731_v42 = vshrl.u32 %v1349_v0, 16  ;;  %v1382_v0 = vld [vmem:[#allocation2 + $0x328] sm:$0x1]  ;;  %v4881_v50 = vpop.f32.mrb[91].mxu1  ;;  %v13544_v15 = vld [vmem:[#allocation30_spill] sm:$0xff] }
 0x33e   : > { %13537 = vst [vmem:[#allocation16_spill] sm:$0xff] %v11603_v2  ;;  %13539 = vst [vmem:[#allocation28_spill] sm:$0xff] %v11607_v59  ;;  %v11614_v60 = vadd.f32 %v11547_v61, %v5025_v54  ;;  %v2734_v11 = vrot.slane %v1604_v55, 7  ;;  %v6351_v16 = vrot.slane %v11595_v56, 1  ;;  %v6352_v45 = vrot.slane %v6031_v1, 1  ;;  %v13541_v1 = vld [vmem:[#allocation29_spill] sm:$0xff] }
 0x33f   : > { %v2748_v17 = vsel %vm1768_vm1, %v2740_v46, %v2747_v48  ;;  %v2698_v30 = vsel %vm1768_vm1, %v2690_v5, %v2697_v27  ;;  %v2728_v8 = vor.u32 %v2726_v34, %v2725_v43  ;;  %v2733_v33 = vrot.slane %v2731_v42, 7  ;;  %v13542_v54 = vld [vmem:[#allocation15_spill] sm:$0xff]  ;;  %v6032_v43 = vld [vmem:[#allocation2 + $0x58] sm:$0x1]  ;;  %v11649_v50 = vld [vmem:[#allocation2 + $0x68] sm:$0xff] }
 0x340   : > { %13540 = vst [vmem:[#allocation18_spill] sm:$0xff] %v11614_v60  ;;  %5668 = vmatprep.mubr.bf16.mxu0 %v2748_v17  ;;  %9504 = vmatmul.mubr.bf16.gmra.mrb[184].mxu1 %v2698_v30  ;;  %v2735_v61 = vor.u32 %v2734_v11, %v1601_v38  ;;  %v6353_v55 = vsel %vm1671_vm0, %v6351_v16, %v6352_v45  ;;  %v6467_v6 = vshrl.u32 %v6351_v16, 16  ;;  %v1765_v5 = vrot.slane %v11555_v13, 1  ;;  %v11634_v16 = vld [vmem:[#allocation2 + $0x50] sm:$0xff]  ;;  %v11636_v45 = vpop.f32.mrb[156].mxu0 }
 0x341   : > { %v5030_v36 = vadd.f32 %v13542_v54, %v13541_v1  ;;  %v2729_v4 = vsel %vm1768_vm1, %v2721_v53, %v2728_v8  ;;  %v6471_v46 = vshrl.u32 %v6353_v55, 16  ;;  %v6474_v35 = vshll.u32 %v6353_v55, 16  ;;  %v13545_v17 = vld [vmem:[#allocation17_spill] sm:$0xff]  ;;  %v5480_v55 = vpop.f32.mrb[157].mxu0 }
 0x342   : > { %9507 = vmatprep.mubr.bf16.mxu1 %v2729_v4  ;;  %v2736_v34 = vsel %vm1768_vm1, %v2733_v33, %v2735_v61  ;;  %v6469_v48 = vrot.slane %v6467_v6, 7  ;;  %v1766_v38 = vrot.slane %v1382_v0, 1  ;;  %v2750_v3 = vshrl.u32 %v1765_v5, 16  ;;  %v13548_v33 = vld [vmem:[#allocation55_spill] sm:$0xff]  ;;  %v6033_v61 = vld [vmem:[#allocation2 + $0x70] sm:$0x1] }
 0x343   : > { %v11630_v27 = vadd.f32 %v11569_v29, %v5030_v36  ;;  %5669 = vmatmul.mubr.bf16.gmra.mrb[252].mxu0 %v2736_v34  ;;  %v6473_v42 = vrot.slane %v6471_v46, 7  ;;  %v13354_v11 = vshll.u32 %v11595_v56, 16  ;;  %v6067_v53 = vshrl.u32 %v11595_v56, 16  ;;  %v13546_v29 = vld [vmem:[#allocation52_spill] sm:$0xff]  ;;  %v11651_v6 = vpop.f32.mrb[92].mxu1  ;;  %v11653_v46 = vpop.f32.mrb[158].mxu0 }
 0x344   : > { %v1767_v13 = vsel %vm1671_vm0, %v1765_v5, %v1766_v38  ;;  %v5033_v30 = vadd.f32 %v13545_v17, %v13544_v15  ;;  %v11643_v8 = vadd.f32 %v13546_v29, %v11574_v52  ;;  %v11647_v0 = vadd.f32 %v13548_v33, %v11588_v26  ;;  %v4886_v5 = vpop.f32.mrb[93].mxu1  ;;  %v5483_v15 = vpop.f32.mrb[159].mxu0 }
 0x345   : > { %13543 = vst [vmem:[#allocation53_spill] sm:$0xff] %v11630_v27  ;;  %v6476_v1 = vor.u32 %v6474_v35, %v6473_v42  ;;  %v2752_v54 = vrot.slane %v2750_v3, 7  ;;  %v2754_v36 = vshrl.u32 %v1767_v13, 16  ;;  %v2757_v4 = vshll.u32 %v1767_v13, 16  ;;  %v11661_v17 = vpop.f32.mrb[94].mxu1 }
 0x346   : > { %13547 = vst [vmem:[#allocation56_spill] sm:$0xff] %v11643_v8  ;;  %13549 = vst [vmem:[#allocation29_spill] sm:$0xff] %v11647_v0  ;;  %v6066_v52 = vrot.slane %v13354_v11, 1  ;;  %v11658_v34 = vadd.f32 %v11581_v20, %v5033_v30  ;;  %v6354_v26 = vrot.slane %v11634_v16, 1  ;;  %v6355_v38 = vrot.slane %v6032_v43, 1  ;;  %v4889_v29 = vpop.f32.mrb[95].mxu1 }
 0x347   : > { %v6477_v35 = vsel %vm1768_vm1, %v6469_v48, %v6476_v1  ;;  %v2756_v42 = vrot.slane %v2754_v36, 7  ;;  %v6357_v3 = vrot.slane %v11649_v50, 1  ;;  %v6358_v13 = vrot.slane %v6033_v61, 1  ;;  %v5967_v15 = vld [vmem:[#allocation2 + $0x30] sm:$0x80] }
 0x348   : > { %13550 = vst [vmem:[#allocation15_spill] sm:$0xff] %v11658_v34  ;;  %9527 = vmatprep.mubr.bf16.mxu0 %v6477_v35  ;;  %v6069_v33 = vor.u32 %v6067_v53, %v6066_v52  ;;  %v6455_v55 = vshrl.u32 %v6066_v52, 16  ;;  %v6356_v5 = vsel %vm1671_vm0, %v6354_v26, %v6355_v38  ;;  %v6498_v20 = vshrl.u32 %v6354_v26, 16  ;;  %v11668_v2 = vpop.f32.mrb[160].mxu0  ;;  %v13552_v38 = vld [vmem:[#allocation20_spill] sm:$0xff]  ;;  %v11672_v23 = vpop.f32.mrb[96].mxu1 }
 0x349   : > { %v2759_v30 = vor.u32 %v2757_v4, %v2756_v42  ;;  %v6502_v11 = vshrl.u32 %v6356_v5, 16  ;;  %v6505_v0 = vshll.u32 %v6356_v5, 16  ;;  %v6359_v43 = vsel %vm1671_vm0, %v6357_v3, %v6358_v13  ;;  %v13551_v4 = vld [vmem:[#allocation37_spill] sm:$0xff]  ;;  %v5488_v13 = vpop.f32.mrb[161].mxu0 }
 0x34a   : > { %v6457_v8 = vrot.slane %v6455_v55, 7  ;;  %v6459_v59 = vshrl.u32 %v6069_v33, 16  ;;  %v6462_v48 = vshll.u32 %v6069_v33, 16  ;;  %v6500_v1 = vrot.slane %v6498_v20, 7 }
 0x34b   : > { %v2760_v36 = vsel %vm1768_vm1, %v2752_v54, %v2759_v30  ;;  %v6504_v61 = vrot.slane %v6502_v11, 7  ;;  %v6529_v29 = vshrl.u32 %v6357_v3, 16  ;;  %v6533_v35 = vshrl.u32 %v6359_v43, 16  ;;  %v11674_v54 = vpop.f32.mrb[162].mxu0  ;;  %v4894_v11 = vpop.f32.mrb[97].mxu1 }
 0x34c   : > { %9508 = vmatmul.mubr.bf16.gmra.mrb[188].mxu1 %v2760_v36  ;;  %v6461_v52 = vrot.slane %v6459_v59, 7  ;;  %v6536_v26 = vshll.u32 %v6359_v43, 16  ;;  %v5038_v42 = vadd.f32 %v13552_v38, %v13551_v4  ;;  %v6448_v5 = vshrl.u32 %v5967_v15, 16  ;;  %v11680_v36 = vld [vmem:[#allocation2 + $0x80] sm:$0xff]  ;;  %v5491_v15 = vpop.f32.mrb[163].mxu0  ;;  %v11682_v4 = vpop.f32.mrb[98].mxu1 }
 0x34d   : > { %v6507_v55 = vor.u32 %v6505_v0, %v6504_v61  ;;  %v6531_v33 = vrot.slane %v6529_v29, 7  ;;  %v6535_v20 = vrot.slane %v6533_v35, 7  ;;  %v6451_v63 = vrot.slane %v6067_v53, 7  ;;  %v13557_v11 = vld [vmem:[#allocation59_spill] sm:$0xff] }
 0x34e   : > { %v6464_v3 = vor.u32 %v6462_v48, %v6461_v52  ;;  %v11677_v30 = vadd.f32 %v11597_v10, %v5038_v42  ;;  %v6450_v59 = vrot.slane %v6448_v5, 7  ;;  %v13355_v43 = vshll.u32 %v11634_v16, 16  ;;  %v6034_v48 = vld [vmem:[#allocation2 + $0x88] sm:$0x1]  ;;  %v4897_v52 = vpop.f32.mrb[99].mxu1  ;;  %v13556_v5 = vld [vmem:[#allocation22_spill] sm:$0xff] }
 0x34f   : > { %v6508_v0 = vsel %vm1768_vm1, %v6500_v1, %v6507_v55  ;;  %v6538_v61 = vor.u32 %v6536_v26, %v6535_v20  ;;  %v13554_v53 = vshll.u32 %v11595_v56, 16  ;;  %v6074_v35 = vshrl.u32 %v11634_v16, 16  ;;  %v13555_v42 = vld [vmem:[#allocation40_spill] sm:$0xff]  ;;  %v11697_v26 = vld [vmem:[#allocation2 + $0x98] sm:$0xff] }
 0x350   : > { %13553 = vst [vmem:[#allocation30_spill] sm:$0xff] %v11677_v30  ;;  %v6465_v10 = vsel %vm1768_vm1, %v6457_v8, %v6464_v3  ;;  %9528 = vmatmul.mubr.bf16.vlgmr.msra.gmra.mrb[0].mxu0 %v6508_v0  ;;  %v6073_v38 = vrot.slane %v13355_v43, 1  ;;  %v5041_v13 = vadd.f32 %v13556_v5, %v13555_v42  ;;  %v11695_v1 = vadd.f32 %v13557_v11, %v11609_v21  ;;  %v13559_v8 = vld [vmem:[#allocation62_spill] sm:$0xff]  ;;  %v11712_v5 = vpop.f32.mrb[164].mxu0 }
 0x351   : > { %v6452_v29 = vor.u32 %v6451_v63, %v13554_v53  ;;  %v6035_v63 = vld [vmem:[#allocation2 + $0xa0] sm:$0x1]  ;;  %7760 = vmatprep.mubr.bf16.mxu1 %v6465_v10  ;;  %v6539_v56 = vsel %vm1768_vm1, %v6531_v33, %v6538_v61  ;;  %v11703_v20 = vadd.f32 %v13559_v8, %v11617_v28  ;;  %v6360_v3 = vrot.slane %v11680_v36, 1  ;;  %v13562_v33 = vld [vmem:[#allocation41_spill] sm:$0xff]  ;;  %v5496_v8 = vpop.f32.mrb[165].mxu0 }
 0x352   : > { %13558 = vst [vmem:[#allocation17_spill] sm:$0xff] %v11695_v1  ;;  %9531 = vmatprep.mubr.bf16.mxu0 %v6539_v56  ;;  %v6076_v15 = vor.u32 %v6074_v35, %v6073_v38  ;;  %v6486_v0 = vshrl.u32 %v6073_v38, 16  ;;  %v11707_v21 = vadd.f32 %v11611_v47, %v5041_v13  ;;  %v6361_v53 = vrot.slane %v6034_v48, 1  ;;  %v13563_v61 = vld [vmem:[#allocation19_spill] sm:$0xff]  ;;  %v11715_v47 = vpop.f32.mrb[100].mxu1 }
 0x353   : > { %v6453_v55 = vsel %vm1768_vm1, %v6450_v59, %v6452_v29  ;;  %13560 = vst [vmem:[#allocation52_spill] sm:$0xff] %v11703_v20  ;;  %v6560_v52 = vshrl.u32 %v6360_v3, 16  ;;  %v6363_v10 = vrot.slane %v11697_v26, 1  ;;  %v6364_v42 = vrot.slane %v6035_v63, 1  ;;  %v5969_v29 = vld [vmem:[#allocation2 + $0x48] sm:$0x80] }
 0x354   : > { %13561 = vst [vmem:[#allocation55_spill] sm:$0xff] %v11707_v21  ;;  %v5046_v59 = vadd.f32 %v13563_v61, %v13562_v33  ;;  %7761 = vmatmul.mubr.bf16.vlgmr.msra.gmra.mrb[192].mxu1 %v6453_v55  ;;  %v6488_v28 = vrot.slane %v6486_v0, 7  ;;  %v6490_v11 = vshrl.u32 %v6076_v15, 16  ;;  %v6493_v56 = vshll.u32 %v6076_v15, 16  ;;  %v11718_v20 = vpop.f32.mrb[166].mxu0  ;;  %v4902_v33 = vpop.f32.mrb[101].mxu1 }
 0x355   : > { %v6362_v38 = vsel %vm1671_vm0, %v6360_v3, %v6361_v53  ;;  %v6562_v48 = vrot.slane %v6560_v52, 7  ;;  %v6365_v63 = vsel %vm1671_vm0, %v6363_v10, %v6364_v42  ;;  %v6591_v1 = vshrl.u32 %v6363_v10, 16  ;;  %v5499_v0 = vpop.f32.mrb[167].mxu0  ;;  %v11720_v30 = vpop.f32.mrb[102].mxu1 }
 0x356   : > { %v6564_v13 = vshrl.u32 %v6362_v38, 16  ;;  %v6567_v43 = vshll.u32 %v6362_v38, 16  ;;  %v6492_v61 = vrot.slane %v6490_v11, 7  ;;  %v6595_v21 = vshrl.u32 %v6365_v63, 16  ;;  %v4905_v8 = vpop.f32.mrb[103].mxu1 }
 0x357   : > { %v6598_v55 = vshll.u32 %v6365_v63, 16  ;;  %v11723_v3 = vadd.f32 %v11636_v45, %v5046_v59  ;;  %v6479_v53 = vshrl.u32 %v5969_v29, 16  ;;  %v6482_v52 = vrot.slane %v6074_v35, 7  ;;  %v13566_v29 = vld [vmem:[#allocation44_spill] sm:$0xff] }
 0x358   : > { %v6566_v15 = vrot.slane %v6564_v13, 7  ;;  %v6495_v38 = vor.u32 %v6493_v56, %v6492_v61  ;;  %v6593_v60 = vrot.slane %v6591_v1, 7  ;;  %v6597_v42 = vrot.slane %v6595_v21, 7  ;;  %v13567_v1 = vld [vmem:[#allocation21_spill] sm:$0xff]  ;;  %v6036_v56 = vld [vmem:[#allocation2 + $0xb8] sm:$0x1] }
 0x359   : > { %13564 = vst [vmem:[#allocation37_spill] sm:$0xff] %v11723_v3  ;;  %v13356_v34 = vshll.u32 %v11649_v50, 16  ;;  %v6481_v11 = vrot.slane %v6479_v53, 7  ;;  %v13565_v10 = vshll.u32 %v11634_v16, 16  ;;  %v6081_v0 = vshrl.u32 %v11649_v50, 16  ;;  %v11736_v13 = vld [vmem:[#allocation2 + $0xc8] sm:$0xff] }
 0x35a   : > { %v6569_v33 = vor.u32 %v6567_v43, %v6566_v15  ;;  %v6496_v45 = vsel %vm1768_vm1, %v6488_v28, %v6495_v38  ;;  %v6600_v59 = vor.u32 %v6598_v55, %v6597_v42  ;;  %v5049_v21 = vadd.f32 %v13567_v1, %v13566_v29  ;;  %v6037_v43 = vld [vmem:[#allocation2 + $0xd0] sm:$0x1]  ;;  %v13568_v15 = vld [vmem:[#allocation58_spill] sm:$0xff] }
 0x35b   : > { %v6483_v63 = vor.u32 %v6482_v52, %v13565_v10  ;;  %v6080_v35 = vrot.slane %v13356_v34, 1  ;;  %7768 = vmatprep.mubr.bf16.mxu1 %v6496_v45  ;;  %v11742_v53 = vadd.f32 %v13568_v15, %v11651_v6  ;;  %v13570_v28 = vld [vmem:[#allocation61_spill] sm:$0xff]  ;;  %v11748_v52 = vpop.f32.mrb[168].mxu0  ;;  %v6366_v6 = vrot.slane %v11729_v9, 1 }
 0x35c   : > { %v6570_v16 = vsel %vm1768_vm1, %v6562_v48, %v6569_v33  ;;  %v11746_v55 = vadd.f32 %v13570_v28, %v11661_v17  ;;  %v6601_v8 = vsel %vm1768_vm1, %v6593_v60, %v6600_v59  ;;  %v11752_v48 = vadd.f32 %v11653_v46, %v5049_v21  ;;  %v5504_v33 = vpop.f32.mrb[169].mxu0 }
 0x35d   : > { %v6484_v61 = vsel %vm1768_vm1, %v6481_v11, %v6483_v63  ;;  %13569 = vst [vmem:[#allocation20_spill] sm:$0xff] %v11742_v53  ;;  %9532 = vmatmul.mubr.bf16.gmra.mrb[4].mxu0 %v6570_v16  ;;  %v6083_v38 = vor.u32 %v6081_v0, %v6080_v35  ;;  %v6517_v42 = vshrl.u32 %v6080_v35, 16  ;;  %v11754_v11 = vpop.f32.mrb[104].mxu1  ;;  %v6367_v10 = vrot.slane %v6036_v56, 1  ;;  %v11758_v45 = vpop.f32.mrb[170].mxu0  ;;  %v13573_v35 = vld [vmem:[#allocation47_spill] sm:$0xff] }
 0x35e   : > { %13571 = vst [vmem:[#allocation40_spill] sm:$0xff] %v11746_v55  ;;  %7769 = vmatmul.mubr.bf16.gmra.mrb[196].mxu1 %v6484_v61  ;;  %13572 = vst [vmem:[#allocation22_spill] sm:$0xff] %v11752_v48  ;;  %9535 = vmatprep.mubr.bf16.mxu0 %v6601_v8  ;;  %v6369_v17 = vrot.slane %v11736_v13, 1  ;;  %v6370_v63 = vrot.slane %v6037_v43, 1  ;;  %v4910_v29 = vpop.f32.mrb[105].mxu1  ;;  %v13574_v16 = vld [vmem:[#allocation24_spill] sm:$0xff] }
 0x35f   : > { %v6519_v60 = vrot.slane %v6517_v42, 7  ;;  %v6521_v59 = vshrl.u32 %v6083_v38, 16  ;;  %v6524_v1 = vshll.u32 %v6083_v38, 16  ;;  %v5054_v46 = vadd.f32 %v13574_v16, %v13573_v35  ;;  %v5507_v21 = vpop.f32.mrb[171].mxu0  ;;  %v11762_v61 = vpop.f32.mrb[106].mxu1 }
 0x360   : > { %v6368_v15 = vsel %vm1671_vm0, %v6366_v6, %v6367_v10  ;;  %v6622_v28 = vshrl.u32 %v6366_v6, 16  ;;  %v6371_v56 = vsel %vm1671_vm0, %v6369_v17, %v6370_v63  ;;  %v6653_v8 = vshrl.u32 %v6369_v17, 16  ;;  %v5971_v33 = vld [vmem:[#allocation2 + $0x60] sm:$0x80]  ;;  %v4913_v43 = vpop.f32.mrb[107].mxu1 }
 0x361   : > { %v6523_v34 = vrot.slane %v6521_v59, 7  ;;  %v6626_v55 = vshrl.u32 %v6368_v15, 16  ;;  %v6629_v29 = vshll.u32 %v6368_v15, 16  ;;  %v6657_v42 = vshrl.u32 %v6371_v56, 16  ;;  %v13576_v43 = vld [vmem:[#allocation48_spill] sm:$0xff]  ;;  %v13577_v59 = vld [vmem:[#allocation27_spill] sm:$0xff] }
 0x362   : > { %v6624_v53 = vrot.slane %v6622_v28, 7  ;;  %v6655_v38 = vrot.slane %v6653_v8, 7  ;;  %v6660_v48 = vshll.u32 %v6371_v56, 16  ;;  %v11767_v35 = vadd.f32 %v11668_v2, %v5054_v46  ;;  %v11773_v15 = vld [vmem:[#allocation2 + $0xe0] sm:$0xff]  ;;  %v11775_v28 = vpop.f32.mrb[172].mxu0  ;;  %v11778_v8 = vpop.f32.mrb[108].mxu1 }
 0x363   : > { %v6526_v16 = vor.u32 %v6524_v1, %v6523_v34  ;;  %v6628_v21 = vrot.slane %v6626_v55, 7  ;;  %v6659_v3 = vrot.slane %v6657_v42, 7  ;;  %v6510_v10 = vshrl.u32 %v5971_v33, 16  ;;  %v6038_v55 = vld [vmem:[#allocation2 + $0xe8] sm:$0x1]  ;;  %v5512_v1 = vpop.f32.mrb[173].mxu0 }
 0x364   : > { %13575 = vst [vmem:[#allocation59_spill] sm:$0xff] %v11767_v35  ;;  %v6513_v6 = vrot.slane %v6081_v0, 7  ;;  %v13357_v63 = vshll.u32 %v11680_v36, 16  ;;  %v6088_v17 = vshrl.u32 %v11680_v36, 16  ;;  %v5057_v27 = vadd.f32 %v13577_v59, %v13576_v43  ;;  %v13580_v59 = vld [vmem:[#allocation65_spill] sm:$0xff] }
 0x365   : > { %v6527_v56 = vsel %vm1768_vm1, %v6519_v60, %v6526_v16  ;;  %v6631_v2 = vor.u32 %v6629_v29, %v6628_v21  ;;  %v6662_v46 = vor.u32 %v6660_v48, %v6659_v3  ;;  %v6512_v34 = vrot.slane %v6510_v10, 7  ;;  %v11791_v3 = vld [vmem:[#allocation2 + $0xf8] sm:$0xff]  ;;  %v6039_v48 = vld [vmem:[#allocation2 + $0x100] sm:$0x1]  ;;  %v11793_v29 = vpop.f32.mrb[174].mxu0  ;;  %v4918_v16 = vpop.f32.mrb[109].mxu1 }
 0x366   : > { %7776 = vmatprep.mubr.bf16.mxu1 %v6527_v56  ;;  %v13578_v0 = vshll.u32 %v11649_v50, 16  ;;  %v6087_v42 = vrot.slane %v13357_v63, 1  ;;  %v11785_v43 = vadd.f32 %v11674_v54, %v5057_v27  ;;  %v11789_v60 = vadd.f32 %v13580_v59, %v11672_v23  ;;  %v13582_v10 = vld [vmem:[#allocation68_spill] sm:$0xff]  ;;  %v5515_v54 = vpop.f32.mrb[175].mxu0  ;;  %v11802_v56 = vpop.f32.mrb[110].mxu1 }
 0x367   : > { %v6632_v21 = vsel %vm1768_vm1, %v6624_v53, %v6631_v2  ;;  %v6663_v50 = vsel %vm1768_vm1, %v6655_v38, %v6662_v46  ;;  %v6372_v27 = vrot.slane %v11773_v15, 1  ;;  %v6373_v59 = vrot.slane %v6038_v55, 1  ;;  %v4921_v16 = vpop.f32.mrb[111].mxu1  ;;  %v13585_v46 = vld [vmem:[#allocation23_spill] sm:$0xff] }
 0x368   : > { %v6514_v33 = vor.u32 %v6513_v6, %v13578_v0  ;;  %13579 = vst [vmem:[#allocation62_spill] sm:$0xff] %v11785_v43  ;;  %13581 = vst [vmem:[#allocation41_spill] sm:$0xff] %v11789_v60  ;;  %v11799_v6 = vadd.f32 %v13582_v10, %v11682_v4  ;;  %9536 = vmatmul.mubr.bf16.gmra.mrb[8].mxu0 %v6632_v21  ;;  %v6090_v1 = vor.u32 %v6088_v17, %v6087_v42  ;;  %v13584_v4 = vld [vmem:[#allocation49_spill] sm:$0xff]  ;;  %v5973_v60 = vld [vmem:[#allocation2 + $0x78] sm:$0x80]  ;;  %v11810_v35 = vpop.f32.mrb[176].mxu0 }
 0x369   : > { %v6548_v0 = vshrl.u32 %v6087_v42, 16  ;;  %9539 = vmatprep.mubr.bf16.mxu0 %v6663_v50  ;;  %v6684_v53 = vshrl.u32 %v6372_v27, 16  ;;  %v6375_v38 = vrot.slane %v11791_v3, 1  ;;  %v6376_v2 = vrot.slane %v6039_v48, 1 }
 0x36a   : > { %13583 = vst [vmem:[#allocation19_spill] sm:$0xff] %v11799_v6  ;;  %v6515_v23 = vsel %vm1768_vm1, %v6512_v34, %v6514_v33  ;;  %v5062_v10 = vadd.f32 %v13585_v46, %v13584_v4  ;;  %v6552_v54 = vshrl.u32 %v6090_v1, 16  ;;  %v6555_v6 = vshll.u32 %v6090_v1, 16  ;;  %v5520_v46 = vpop.f32.mrb[177].mxu0 }
 0x36b   : > { %7777 = vmatmul.mubr.bf16.gmra.mrb[200].mxu1 %v6515_v23  ;;  %v6550_v63 = vrot.slane %v6548_v0, 7  ;;  %v6374_v21 = vsel %vm1671_vm0, %v6372_v27, %v6373_v59  ;;  %v6686_v34 = vrot.slane %v6684_v53, 7  ;;  %v6377_v55 = vsel %vm1671_vm0, %v6375_v38, %v6376_v2  ;;  %v11815_v27 = vpop.f32.mrb[112].mxu1 }
 0x36c   : > { %v6688_v33 = vshrl.u32 %v6374_v21, 16  ;;  %v6691_v42 = vshll.u32 %v6374_v21, 16  ;;  %v6554_v50 = vrot.slane %v6552_v54, 7  ;;  %v6715_v23 = vshrl.u32 %v6375_v38, 16  ;;  %v11818_v54 = vpop.f32.mrb[178].mxu0  ;;  %v4926_v38 = vpop.f32.mrb[113].mxu1 }
 0x36d   : > { %v6719_v16 = vshrl.u32 %v6377_v55, 16  ;;  %v6722_v43 = vshll.u32 %v6377_v55, 16  ;;  %v11813_v4 = vadd.f32 %v11712_v5, %v5062_v10  ;;  %v6541_v0 = vshrl.u32 %v5973_v60, 16  ;;  %v11823_v60 = vld [vmem:[#allocation2 + $0x110] sm:$0xff]  ;;  %v5523_v10 = vpop.f32.mrb[179].mxu0 }
 0x36e   : > { %v6690_v48 = vrot.slane %v6688_v33, 7  ;;  %v6544_v1 = vrot.slane %v6088_v17, 7  ;;  %v6557_v59 = vor.u32 %v6555_v6, %v6554_v50  ;;  %v6717_v53 = vrot.slane %v6715_v23, 7  ;;  %v11825_v17 = vld [vmem:[#allocation2 + $0x128] sm:$0xff]  ;;  %v11827_v6 = vpop.f32.mrb[114].mxu1 }
 0x36f   : > { %13586 = vst [vmem:[#allocation44_spill] sm:$0xff] %v11813_v4  ;;  %v6721_v21 = vrot.slane %v6719_v16, 7  ;;  %v13358_v2 = vshll.u32 %v11697_v26, 16  ;;  %v6543_v18 = vrot.slane %v6541_v0, 7  ;;  %v13587_v33 = vshll.u32 %v11680_v36, 16  ;;  %v4929_v46 = vpop.f32.mrb[115].mxu1 }
 0x370   : > { %v6693_v55 = vor.u32 %v6691_v42, %v6690_v48  ;;  %v6095_v5 = vshrl.u32 %v11697_v26, 16  ;;  %v6558_v50 = vsel %vm1768_vm1, %v6550_v63, %v6557_v59  ;;  %v13588_v42 = vld [vmem:[#allocation50_spill] sm:$0xff]  ;;  %v13590_v10 = vld [vmem:[#allocation64_spill] sm:$0xff]  ;;  %v13592_v63 = vld [vmem:[#allocation67_spill] sm:$0xff]  ;;  %v6102_v14 = vshrl.u32 %v11729_v9, 16 }
 0x371   : > { %v6545_v57 = vor.u32 %v6544_v1, %v13587_v33  ;;  %v6724_v23 = vor.u32 %v6722_v43, %v6721_v21  ;;  %v6094_v16 = vrot.slane %v13358_v2, 1  ;;  %v13589_v48 = vld [vmem:[#allocation26_spill] sm:$0xff]  ;;  %v6041_v1 = vld [vmem:[#allocation2 + $0x130] sm:$0x1]  ;;  %7784 = vmatprep.mubr.bf16.mxu1 %v6558_v50  ;;  %v11838_v4 = vadd.f32 %v13590_v10, %v11715_v47  ;;  %v13595_v46 = vld [vmem:[#allocation51_spill] sm:$0xff] }
 0x372   : > { %v5065_v0 = vadd.f32 %v13589_v48, %v13588_v42  ;;  %v6040_v36 = vld [vmem:[#allocation2 + $0x118] sm:$0x1]  ;;  %v6694_v38 = vsel %vm1768_vm1, %v6686_v34, %v6693_v55  ;;  %v11842_v43 = vadd.f32 %v13592_v63, %v11720_v30  ;;  %v6381_v47 = vrot.slane %v11825_v17, 1 }
 0x373   : > { %v6546_v33 = vsel %vm1768_vm1, %v6543_v18, %v6545_v57  ;;  %13591 = vst [vmem:[#allocation21_spill] sm:$0xff] %v11838_v4  ;;  %9540 = vmatmul.mubr.bf16.gmra.mrb[12].mxu0 %v6694_v38  ;;  %v6725_v59 = vsel %vm1768_vm1, %v6717_v53, %v6724_v23  ;;  %v6097_v21 = vor.u32 %v6095_v5, %v6094_v16  ;;  %v6579_v42 = vshrl.u32 %v6094_v16, 16  ;;  %v13596_v38 = vld [vmem:[#allocation32_spill] sm:$0xff]  ;;  %v11852_v53 = vpop.f32.mrb[180].mxu0 }
 0x374   : > { %13593 = vst [vmem:[#allocation58_spill] sm:$0xff] %v11842_v43  ;;  %7785 = vmatmul.mubr.bf16.gmra.mrb[204].mxu1 %v6546_v33  ;;  %v11846_v50 = vadd.f32 %v11718_v20, %v5065_v0  ;;  %9543 = vmatprep.mubr.bf16.mxu0 %v6725_v59  ;;  %v6378_v57 = vrot.slane %v11823_v60, 1  ;;  %v6379_v18 = vrot.slane %v6040_v36, 1  ;;  %v6382_v34 = vrot.slane %v6041_v1, 1  ;;  %v5975_v33 = vld [vmem:[#allocation2 + $0x90] sm:$0x80] }
 0x375   : > { %v6581_v55 = vrot.slane %v6579_v42, 7  ;;  %v6583_v48 = vshrl.u32 %v6097_v21, 16  ;;  %v6586_v30 = vshll.u32 %v6097_v21, 16  ;;  %v5070_v10 = vadd.f32 %v13596_v38, %v13595_v46  ;;  %v5528_v63 = vpop.f32.mrb[181].mxu0  ;;  %v11856_v36 = vpop.f32.mrb[116].mxu1 }
 0x376   : > { %13594 = vst [vmem:[#allocation61_spill] sm:$0xff] %v11846_v50  ;;  %v6380_v23 = vsel %vm1671_vm0, %v6378_v57, %v6379_v18  ;;  %v6746_v16 = vshrl.u32 %v6378_v57, 16  ;;  %v6383_v20 = vsel %vm1671_vm0, %v6381_v47, %v6382_v34  ;;  %v6777_v0 = vshrl.u32 %v6381_v47, 16  ;;  %v11858_v21 = vpop.f32.mrb[182].mxu0  ;;  %v4934_v43 = vpop.f32.mrb[117].mxu1 }
 0x377   : > { %v6585_v59 = vrot.slane %v6583_v48, 7  ;;  %v6750_v1 = vshrl.u32 %v6380_v23, 16  ;;  %v6753_v42 = vshll.u32 %v6380_v23, 16  ;;  %v6781_v2 = vshrl.u32 %v6383_v20, 16  ;;  %v5531_v57 = vpop.f32.mrb[183].mxu0  ;;  %v11863_v34 = vpop.f32.mrb[118].mxu1 }
 0x378   : > { %v6748_v46 = vrot.slane %v6746_v16, 7  ;;  %v6779_v38 = vrot.slane %v6777_v0, 7  ;;  %v6784_v4 = vshll.u32 %v6383_v20, 16  ;;  %v11861_v18 = vadd.f32 %v11748_v52, %v5070_v10  ;;  %v4937_v48 = vpop.f32.mrb[119].mxu1  ;;  %v13598_v43 = vld [vmem:[#allocation54_spill] sm:$0xff]  ;;  %v11869_v20 = vld [vmem:[#allocation2 + $0x140] sm:$0xff] }
 0x379   : > { %v6588_v47 = vor.u32 %v6586_v30, %v6585_v59  ;;  %v6752_v63 = vrot.slane %v6750_v1, 7  ;;  %v6783_v50 = vrot.slane %v6781_v2, 7  ;;  %v6572_v37 = vshrl.u32 %v5975_v33, 16  ;;  %v13599_v16 = vld [vmem:[#allocation34_spill] sm:$0xff]  ;;  %v6042_v30 = vld [vmem:[#allocation2 + $0x148] sm:$0x1] }
 0x37a   : > { %13597 = vst [vmem:[#allocation47_spill] sm:$0xff] %v11861_v18  ;;  %v6575_v40 = vrot.slane %v6095_v5, 7  ;;  %v6099_v23 = vshll.u32 %v11729_v9, 16  ;;  %v5073_v0 = vadd.f32 %v13599_v16, %v13598_v43  ;;  %v13600_v2 = vshll.u32 %v11697_v26, 16  ;;  %v11881_v1 = vld [vmem:[#allocation2 + $0x158] sm:$0xff]  ;;  %v11890_v26 = vpop.f32.mrb[184].mxu0 }
 0x37b   : > { %v6589_v52 = vsel %vm1768_vm1, %v6581_v55, %v6588_v47  ;;  %v6755_v10 = vor.u32 %v6753_v42, %v6752_v63  ;;  %v6786_v57 = vor.u32 %v6784_v4, %v6783_v50  ;;  %v6574_v18 = vrot.slane %v6572_v37, 7  ;;  %v6043_v48 = vld [vmem:[#allocation2 + $0x160] sm:$0x1]  ;;  %v13603_v4 = vld [vmem:[#allocation73_spill] sm:$0xff]  ;;  %v5977_v47 = vld [vmem:[#allocation2 + $0xa8] sm:$0x80] }
 0x37c   : > { %7792 = vmatprep.mubr.bf16.mxu1 %v6589_v52  ;;  %v6576_v33 = vor.u32 %v6575_v40, %v13600_v2  ;;  %v6101_v5 = vrot.slane %v6099_v23, 1  ;;  %v11875_v59 = vadd.f32 %v11758_v45, %v5073_v0  ;;  %v11879_v9 = vadd.f32 %v11359_v7, %v11754_v11  ;;  %v5536_v63 = vpop.f32.mrb[185].mxu0  ;;  %v11893_v43 = vpop.f32.mrb[120].mxu1  ;;  %v13605_v16 = vld [vmem:[#allocation57_spill] sm:$0xff]  ;;  %v13606_v0 = vld [vmem:[#allocation31_spill] sm:$0xff] }
 0x37d   : > { %v6756_v55 = vsel %vm1768_vm1, %v6748_v46, %v6755_v10  ;;  %v6787_v37 = vsel %vm1768_vm1, %v6779_v38, %v6786_v57  ;;  %v11887_v50 = vadd.f32 %v13603_v4, %v11762_v61  ;;  %v6384_v40 = vrot.slane %v11869_v20, 1  ;;  %v11898_v10 = vpop.f32.mrb[186].mxu0  ;;  %v4942_v57 = vpop.f32.mrb[121].mxu1 }
 0x37e   : > { %13601 = vst [vmem:[#allocation24_spill] sm:$0xff] %v11875_v59  ;;  %13602 = vst [vmem:[#allocation48_spill] sm:$0xff] %v11879_v9  ;;  %9544 = vmatmul.mubr.bf16.gmra.mrb[16].mxu0 %v6756_v55  ;;  %v6577_v45 = vsel %vm1768_vm1, %v6574_v18, %v6576_v33  ;;  %v6104_v7 = vor.u32 %v6102_v14, %v6101_v5  ;;  %v6610_v11 = vshrl.u32 %v6101_v5, 16  ;;  %v6385_v42 = vrot.slane %v6042_v30, 1  ;;  %v5539_v5 = vpop.f32.mrb[187].mxu0  ;;  %v11901_v55 = vpop.f32.mrb[122].mxu1 }
 0x37f   : > { %13604 = vst [vmem:[#allocation27_spill] sm:$0xff] %v11887_v50  ;;  %9547 = vmatprep.mubr.bf16.mxu0 %v6787_v37  ;;  %7793 = vmatmul.mubr.bf16.gmra.mrb[208].mxu1 %v6577_v45  ;;  %v6808_v46 = vshrl.u32 %v6384_v40, 16  ;;  %v6387_v61 = vrot.slane %v11881_v1, 1  ;;  %v6388_v38 = vrot.slane %v6043_v48, 1  ;;  %v5078_v52 = vadd.f32 %v13606_v0, %v13605_v16  ;;  %v4945_v48 = vpop.f32.mrb[123].mxu1 }
 0x380   : > { %v6612_v18 = vrot.slane %v6610_v11, 7  ;;  %v6614_v2 = vshrl.u32 %v6104_v7, 16  ;;  %v6617_v33 = vshll.u32 %v6104_v7, 16  ;;  %v6386_v30 = vsel %vm1671_vm0, %v6384_v40, %v6385_v42 }
 0x381   : > { %v6810_v37 = vrot.slane %v6808_v46, 7  ;;  %v6812_v4 = vshrl.u32 %v6386_v30, 16  ;;  %v6815_v45 = vshll.u32 %v6386_v30, 16  ;;  %v6389_v63 = vsel %vm1671_vm0, %v6387_v61, %v6388_v38 }
 0x382   : > { %v6616_v50 = vrot.slane %v6614_v2, 7  ;;  %v6839_v9 = vshrl.u32 %v6387_v61, 16  ;;  %v6843_v16 = vshrl.u32 %v6389_v63, 16  ;;  %v6846_v0 = vshll.u32 %v6389_v63, 16  ;;  %v11909_v2 = vld [vmem:[#allocation2 + $0x170] sm:$0xff]  ;;  %v11911_v63 = vpop.f32.mrb[188].mxu0 }
 0x383   : > { %v6814_v59 = vrot.slane %v6812_v4, 7  ;;  %v11905_v11 = vadd.f32 %v11775_v28, %v5078_v52  ;;  %v6603_v7 = vshrl.u32 %v5977_v47, 16  ;;  %v6606_v57 = vrot.slane %v6102_v14, 7  ;;  %v6044_v61 = vld [vmem:[#allocation2 + $0x178] sm:$0x1]  ;;  %v11920_v4 = vpop.f32.mrb[124].mxu1 }
 0x384   : > { %v6619_v40 = vor.u32 %v6617_v33, %v6616_v50  ;;  %v6841_v42 = vrot.slane %v6839_v9, 7  ;;  %v6845_v5 = vrot.slane %v6843_v16, 7  ;;  %v13359_v46 = vshll.u32 %v11736_v13, 16  ;;  %v13608_v9 = vld [vmem:[#allocation60_spill] sm:$0xff]  ;;  %v13609_v50 = vld [vmem:[#allocation33_spill] sm:$0xff] }
 0x385   : > { %13607 = vst [vmem:[#allocation65_spill] sm:$0xff] %v11905_v11  ;;  %v6817_v39 = vor.u32 %v6815_v45, %v6814_v59  ;;  %v6605_v30 = vrot.slane %v6603_v7, 7  ;;  %v6607_v41 = vor.u32 %v6606_v57, %v6099_v23  ;;  %v6109_v38 = vshrl.u32 %v11736_v13, 16  ;;  %v11918_v33 = vld [vmem:[#allocation2 + $0x188] sm:$0xff]  ;;  %v6045_v59 = vld [vmem:[#allocation2 + $0x190] sm:$0x1] }
 0x386   : > { %v6620_v28 = vsel %vm1768_vm1, %v6612_v18, %v6619_v40  ;;  %v6848_v52 = vor.u32 %v6846_v0, %v6845_v5  ;;  %v6108_v14 = vrot.slane %v13359_v46, 1  ;;  %v5081_v47 = vadd.f32 %v13609_v50, %v13608_v9  ;;  %13610 = vst [vmem:[#allocation68_spill] sm:$0xff] %v11918_v33  ;;  %v5544_v23 = vpop.f32.mrb[189].mxu0  ;;  %v13611_v18 = vld [vmem:[#allocation70_spill] sm:$0xff]  ;;  %v13613_v0 = vld [vmem:[#allocation72_spill] sm:$0xff]  ;;  %v4950_v40 = vpop.f32.mrb[125].mxu1 }
 0x387   : > { %7800 = vmatprep.mubr.bf16.mxu1 %v6620_v28  ;;  %v6818_v45 = vsel %vm1768_vm1, %v6810_v37, %v6817_v39  ;;  %v6608_v48 = vsel %vm1768_vm1, %v6605_v30, %v6607_v41  ;;  %v11926_v16 = vadd.f32 %v13611_v18, %v11778_v8  ;;  %v11930_v7 = vadd.f32 %v13613_v0, %v11802_v56  ;;  %v11932_v57 = vpop.f32.mrb[190].mxu0  ;;  %v11938_v37 = vpop.f32.mrb[126].mxu1  ;;  %v13620_v11 = vld [vmem:[#allocation39_spill] sm:$0xff] }
 0x388   : > { %9548 = vmatmul.mubr.bf16.gmra.mrb[20].mxu0 %v6818_v45  ;;  %v6849_v5 = vsel %vm1768_vm1, %v6841_v42, %v6848_v52  ;;  %7801 = vmatmul.mubr.bf16.gmra.mrb[212].mxu1 %v6608_v48  ;;  %v6111_v28 = vor.u32 %v6109_v38, %v6108_v14  ;;  %v6641_v9 = vshrl.u32 %v6108_v14, 16  ;;  %v11936_v39 = vadd.f32 %v11793_v29, %v5081_v47  ;;  %v5547_v41 = vpop.f32.mrb[191].mxu0  ;;  %v4953_v23 = vpop.f32.mrb[127].mxu1  ;;  %v13616_v52 = vld [vmem:[#allocation63_spill] sm:$0xff]  ;;  %v13617_v48 = vld [vmem:[#allocation36_spill] sm:$0xff] }
 0x389   : > { %13612 = vst [vmem:[#allocation49_spill] sm:$0xff] %v11926_v16  ;;  %13614 = vst [vmem:[#allocation23_spill] sm:$0xff] %v11930_v7  ;;  %9551 = vmatprep.mubr.bf16.mxu0 %v6849_v5  ;;  %v6390_v8 = vrot.slane %v11909_v2, 1  ;;  %v6391_v56 = vrot.slane %v6044_v61, 1  ;;  %v6393_v30 = vrot.slane %v11918_v33, 1  ;;  %v6394_v50 = vrot.slane %v6045_v59, 1 }
 0x38a   : > { %13615 = vst [vmem:[#allocation50_spill] sm:$0xff] %v11936_v39  ;;  %v6643_v45 = vrot.slane %v6641_v9, 7  ;;  %v6645_v18 = vshrl.u32 %v6111_v28, 16  ;;  %v6648_v42 = vshll.u32 %v6111_v28, 16  ;;  %v5086_v14 = vadd.f32 %v13617_v48, %v13616_v52  ;;  %v5979_v5 = vld [vmem:[#allocation2 + $0xc0] sm:$0x80] }
 0x38b   : > { %v6392_v29 = vsel %vm1671_vm0, %v6390_v8, %v6391_v56  ;;  %v6870_v47 = vshrl.u32 %v6390_v8, 16  ;;  %v6395_v0 = vsel %vm1671_vm0, %v6393_v30, %v6394_v50  ;;  %v6901_v40 = vshrl.u32 %v6393_v30, 16  ;;  %v11949_v28 = vpop.f32.mrb[192].mxu0  ;;  %v6048_v33 = vld [vmem:[#allocation2 + $0x208] sm:$0x1] }
 0x38c   : > { %v6647_v41 = vrot.slane %v6645_v18, 7  ;;  %v6874_v46 = vshrl.u32 %v6392_v29, 16  ;;  %v6877_v61 = vshll.u32 %v6392_v29, 16  ;;  %v6905_v7 = vshrl.u32 %v6395_v0, 16  ;;  %v5552_v39 = vpop.f32.mrb[193].mxu0  ;;  %v13619_v29 = vld [vmem:[#allocation66_spill] sm:$0xff] }
 0x38d   : > { %v6872_v16 = vrot.slane %v6870_v47, 7  ;;  %v6903_v59 = vrot.slane %v6901_v40, 7  ;;  %v6908_v23 = vshll.u32 %v6395_v0, 16  ;;  %v11947_v9 = vadd.f32 %v11810_v35, %v5086_v14  ;;  %v11955_v40 = vpop.f32.mrb[194].mxu0 }
 0x38e   : > { %v6650_v52 = vor.u32 %v6648_v42, %v6647_v41  ;;  %v6876_v48 = vrot.slane %v6874_v46, 7  ;;  %v6907_v56 = vrot.slane %v6905_v7, 7  ;;  %v6634_v8 = vshrl.u32 %v5979_v5, 16  ;;  %v6046_v42 = vld [vmem:[#allocation2 + $0x1a8] sm:$0x1]  ;;  %v5555_v46 = vpop.f32.mrb[195].mxu0 }
 0x38f   : > { %13618 = vst [vmem:[#allocation26_spill] sm:$0xff] %v11947_v9  ;;  %v6637_v50 = vrot.slane %v6109_v38, 7  ;;  %v13360_v30 = vshll.u32 %v11773_v15, 16  ;;  %v6116_v18 = vshrl.u32 %v11773_v15, 16  ;;  %v5089_v47 = vadd.f32 %v13620_v11, %v13619_v29  ;;  %v6047_v41 = vld [vmem:[#allocation2 + $0x1f0] sm:$0x1] }
 0x390   : > { %v6651_v35 = vsel %vm1768_vm1, %v6643_v45, %v6650_v52  ;;  %v6879_v14 = vor.u32 %v6877_v61, %v6876_v48  ;;  %v6910_v0 = vor.u32 %v6908_v23, %v6907_v56  ;;  %v6636_v9 = vrot.slane %v6634_v8, 7  ;;  %v11969_v45 = vld [vmem:[#allocation2 + $0x1e8] sm:$0xff]  ;;  %v11977_v52 = vld [vmem:[#allocation2] sm:$0xff]  ;;  %v11981_v8 = vpop.f32.mrb[128].mxu1 }
 0x391   : > { %7808 = vmatprep.mubr.bf16.mxu1 %v6651_v35  ;;  %v13621_v7 = vshll.u32 %v11736_v13, 16  ;;  %v6115_v39 = vrot.slane %v13360_v30, 1  ;;  %v11963_v5 = vadd.f32 %v11818_v54, %v5089_v47  ;;  %v11967_v11 = vadd.f32 %v11390_v22, %v11815_v27  ;;  %13624 = vst [vmem:[#allocation51_spill] sm:$0xff] %v11969_v45  ;;  %13626 = vst [vmem:[#allocation54_spill] sm:$0xff] %v11977_v52  ;;  %v5981_v47 = vld [vmem:[#allocation2 + $0xd8] sm:$0x80] }
 0x392   : > { %v6880_v61 = vsel %vm1768_vm1, %v6872_v16, %v6879_v14  ;;  %v6911_v23 = vsel %vm1768_vm1, %v6903_v59, %v6910_v0  ;;  %v11975_v13 = vadd.f32 %v11396_v62, %v11827_v6  ;;  %v6396_v54 = vrot.slane %v11977_v52, 1  ;;  %v13627_v62 = vld [vmem:[#allocation69_spill] sm:$0xff]  ;;  %v13628_v6 = vld [vmem:[#allocation35_spill] sm:$0xff]  ;;  %v11986_v35 = vpop.f32.mrb[129].mxu1 }
 0x393   : > { %v6638_v38 = vor.u32 %v6637_v50, %v13621_v7  ;;  %13622 = vst [vmem:[#allocation64_spill] sm:$0xff] %v11963_v5  ;;  %13623 = vst [vmem:[#allocation67_spill] sm:$0xff] %v11967_v11  ;;  %9552 = vmatmul.mubr.bf16.gmra.mrb[24].mxu0 %v6880_v61  ;;  %v6118_v22 = vor.u32 %v6116_v18, %v6115_v39  ;;  %v6672_v27 = vshrl.u32 %v6115_v39, 16  ;;  %v6397_v56 = vrot.slane %v6046_v42, 1  ;;  %v11989_v42 = vpop.f32.mrb[130].mxu1  ;;  %v11991_v7 = vpop.f32.mrb[196].mxu0 }
 0x394   : > { %13625 = vst [vmem:[#allocation32_spill] sm:$0xff] %v11975_v13  ;;  %9555 = vmatprep.mubr.bf16.mxu0 %v6911_v23  ;;  %v6932_v16 = vshrl.u32 %v6396_v54, 16  ;;  %v6399_v59 = vrot.slane %v11969_v45, 1  ;;  %v6400_v50 = vrot.slane %v6047_v41, 1  ;;  %v5094_v29 = vadd.f32 %v13628_v6, %v13627_v62  ;;  %v11994_v23 = vpop.f32.mrb[131].mxu1 }
 0x395   : > { %v6639_v48 = vsel %vm1768_vm1, %v6636_v9, %v6638_v38  ;;  %v6674_v14 = vrot.slane %v6672_v27, 7  ;;  %v6676_v0 = vshrl.u32 %v6118_v22, 16  ;;  %v6679_v9 = vshll.u32 %v6118_v22, 16 }
 0x396   : > { %7809 = vmatmul.mubr.bf16.gmra.mrb[216].mxu1 %v6639_v48  ;;  %v6398_v46 = vsel %vm1671_vm0, %v6396_v54, %v6397_v56  ;;  %v6934_v38 = vrot.slane %v6932_v16, 7  ;;  %v6401_v41 = vsel %vm1671_vm0, %v6399_v59, %v6400_v50  ;;  %v5560_v48 = vpop.f32.mrb[197].mxu0  ;;  %v6963_v6 = vshrl.u32 %v6399_v59, 16 }
 0x397   : > { %v6936_v39 = vshrl.u32 %v6398_v46, 16  ;;  %v6939_v61 = vshll.u32 %v6398_v46, 16  ;;  %v6678_v62 = vrot.slane %v6676_v0, 7  ;;  %v6967_v30 = vshrl.u32 %v6401_v41, 16  ;;  %v11996_v13 = vpop.f32.mrb[198].mxu0 }
 0x398   : > { %v6970_v27 = vshll.u32 %v6401_v41, 16  ;;  %v11999_v54 = vadd.f32 %v11852_v53, %v5094_v29  ;;  %v6665_v56 = vshrl.u32 %v5981_v47, 16  ;;  %v6668_v11 = vrot.slane %v6116_v18, 7  ;;  %v5563_v16 = vpop.f32.mrb[199].mxu0  ;;  %v13631_v29 = vld [vmem:[#allocation71_spill] sm:$0xff]  ;;  %v13632_v47 = vld [vmem:[#allocation38_spill] sm:$0xff] }
 0x399   : > { %v6938_v22 = vrot.slane %v6936_v39, 7  ;;  %v6681_v5 = vor.u32 %v6679_v9, %v6678_v62  ;;  %v6965_v46 = vrot.slane %v6963_v6, 7  ;;  %v6969_v45 = vrot.slane %v6967_v30, 7  ;;  %v12010_v30 = vld [vmem:[#allocation2 + $0x200] sm:$0xff]  ;;  %v12012_v62 = vld [vmem:[#allocation2 + $0x218] sm:$0xff]  ;;  %v12014_v6 = vpop.f32.mrb[132].mxu1 }
 0x39a   : > { %13629 = vst [vmem:[#allocation34_spill] sm:$0xff] %v11999_v54  ;;  %v13367_v50 = vshll.u32 %v11791_v3, 16  ;;  %v6667_v48 = vrot.slane %v6665_v56, 7  ;;  %v13630_v59 = vshll.u32 %v11773_v15, 16  ;;  %v6123_v41 = vshrl.u32 %v11791_v3, 16  ;;  %13633 = vst [vmem:[#allocation73_spill] sm:$0xff] %v12010_v30 }
 0x39b   : > { %v6941_v52 = vor.u32 %v6939_v61, %v6938_v22  ;;  %v6682_v39 = vsel %vm1768_vm1, %v6674_v14, %v6681_v5  ;;  %v6972_v53 = vor.u32 %v6970_v27, %v6969_v45  ;;  %v5097_v9 = vadd.f32 %v13632_v47, %v13631_v29  ;;  %13634 = vst [vmem:[#allocation57_spill] sm:$0xff] %v12012_v62  ;;  %v6049_v61 = vld [vmem:[#allocation2 + $0x220] sm:$0x1]  ;;  %v13636_v45 = vld [vmem:[#allocation76_spill] sm:$0xff]  ;;  %v12026_v27 = vpop.f32.mrb[133].mxu1  ;;  %v13639_v29 = vld [vmem:[#allocation74_spill] sm:$0xff] }
 0x39c   : > { %v6669_v0 = vor.u32 %v6668_v11, %v13630_v59  ;;  %v6122_v18 = vrot.slane %v13367_v50, 1  ;;  %7816 = vmatprep.mubr.bf16.mxu1 %v6682_v39  ;;  %v12020_v5 = vadd.f32 %v11387_v49, %v11856_v36  ;;  %v12024_v14 = vadd.f32 %v13636_v45, %v11863_v34 }
 0x39d   : > { %v6942_v15 = vsel %vm1768_vm1, %v6934_v38, %v6941_v52  ;;  %v6973_v22 = vsel %vm1768_vm1, %v6965_v46, %v6972_v53  ;;  %v12030_v52 = vadd.f32 %v11858_v21, %v5097_v9  ;;  %v12032_v38 = vpop.f32.mrb[134].mxu1  ;;  %v6402_v49 = vrot.slane %v12010_v30, 1  ;;  %v13640_v21 = vld [vmem:[#allocation43_spill] sm:$0xff] }
 0x39e   : > { %v6670_v11 = vsel %vm1768_vm1, %v6667_v48, %v6669_v0  ;;  %13635 = vst [vmem:[#allocation31_spill] sm:$0xff] %v12020_v5  ;;  %13637 = vst [vmem:[#allocation60_spill] sm:$0xff] %v12024_v14  ;;  %9556 = vmatmul.mubr.bf16.gmra.mrb[28].mxu0 %v6942_v15  ;;  %v6125_v56 = vor.u32 %v6123_v41, %v6122_v18  ;;  %v6703_v16 = vshrl.u32 %v6122_v18, 16  ;;  %v12034_v48 = vpop.f32.mrb[200].mxu0  ;;  %v6403_v36 = vrot.slane %v6048_v33, 1  ;;  %v12038_v0 = vpop.f32.mrb[135].mxu1 }
 0x39f   : > { %7817 = vmatmul.mubr.bf16.gmra.mrb[220].mxu1 %v6670_v11  ;;  %13638 = vst [vmem:[#allocation33_spill] sm:$0xff] %v12030_v52  ;;  %9559 = vmatprep.mubr.bf16.mxu0 %v6973_v22  ;;  %v6405_v34 = vrot.slane %v12012_v62, 1  ;;  %v6406_v59 = vrot.slane %v6049_v61, 1  ;;  %v5568_v46 = vpop.f32.mrb[201].mxu0  ;;  %v5102_v47 = vadd.f32 %v13640_v21, %v13639_v29  ;;  %v6994_v11 = vshrl.u32 %v6402_v49, 16 }
 0x3a0   : > { %v6705_v39 = vrot.slane %v6703_v16, 7  ;;  %v6707_v53 = vshrl.u32 %v6125_v56, 16  ;;  %v6710_v18 = vshll.u32 %v6125_v56, 16  ;;  %v12042_v9 = vpop.f32.mrb[202].mxu0  ;;  %v6404_v15 = vsel %vm1671_vm0, %v6402_v49, %v6403_v36  ;;  %v5983_v22 = vld [vmem:[#allocation2 + $0xf0] sm:$0x80] }
 0x3a1   : > { %v6407_v45 = vsel %vm1671_vm0, %v6405_v34, %v6406_v59  ;;  %v7025_v33 = vshrl.u32 %v6405_v34, 16  ;;  %v5571_v50 = vpop.f32.mrb[203].mxu0  ;;  %v6998_v14 = vshrl.u32 %v6404_v15, 16  ;;  %v7001_v5 = vshll.u32 %v6404_v15, 16  ;;  %v12049_v49 = vpop.f32.mrb[136].mxu1  ;;  %v13643_v15 = vld [vmem:[#allocation46_spill] sm:$0xff] }
 0x3a2   : > { %v6709_v61 = vrot.slane %v6707_v53, 7  ;;  %v7029_v46 = vshrl.u32 %v6407_v45, 16  ;;  %v6996_v16 = vrot.slane %v6994_v11, 7  ;;  %v7032_v56 = vshll.u32 %v6407_v45, 16  ;;  %v13642_v53 = vld [vmem:[#allocation75_spill] sm:$0xff]  ;;  %v12055_v11 = vld [vmem:[#allocation2 + $0x230] sm:$0xff] }
 0x3a3   : > { %v7027_v62 = vrot.slane %v7025_v33, 7  ;;  %v12047_v52 = vadd.f32 %v11890_v26, %v5102_v47  ;;  %v7000_v21 = vrot.slane %v6998_v14, 7  ;;  %v6696_v36 = vshrl.u32 %v5983_v22, 16  ;;  %13644 = vst [vmem:[#allocation72_spill] sm:$0xff] %v12055_v11  ;;  %v12057_v45 = vpop.f32.mrb[137].mxu1 }
 0x3a4   : > { %v6712_v29 = vor.u32 %v6710_v18, %v6709_v61  ;;  %v7031_v54 = vrot.slane %v7029_v46, 7  ;;  %v6699_v59 = vrot.slane %v6123_v41, 7  ;;  %v13372_v34 = vshll.u32 %v11823_v60, 16  ;;  %v6050_v33 = vld [vmem:[#allocation2 + $0x238] sm:$0x1]  ;;  %v12060_v22 = vpop.f32.mrb[138].mxu1 }
 0x3a5   : > { %13641 = vst [vmem:[#allocation70_spill] sm:$0xff] %v12047_v52  ;;  %v6130_v50 = vshrl.u32 %v11823_v60, 16  ;;  %v5105_v30 = vadd.f32 %v13643_v15, %v13642_v53  ;;  %v7003_v18 = vor.u32 %v7001_v5, %v7000_v21  ;;  %v6698_v47 = vrot.slane %v6696_v36, 7  ;;  %v12062_v41 = vpop.f32.mrb[204].mxu0  ;;  %v13655_v52 = vld [vmem:[#allocation79_spill] sm:$0xff] }
 0x3a6   : > { %v6713_v26 = vsel %vm1768_vm1, %v6705_v39, %v6712_v29  ;;  %v7034_v14 = vor.u32 %v7032_v56, %v7031_v54  ;;  %v13645_v61 = vshll.u32 %v11791_v3, 16  ;;  %v6129_v53 = vrot.slane %v13372_v34, 1  ;;  %v12075_v54 = vld [vmem:[#allocation2 + $0x248] sm:$0xff]  ;;  %v6051_v39 = vld [vmem:[#allocation2 + $0x250] sm:$0x1]  ;;  %v12077_v56 = vpop.f32.mrb[139].mxu1 }
 0x3a7   : > { %7824 = vmatprep.mubr.bf16.mxu1 %v6713_v26  ;;  %v12069_v15 = vadd.f32 %v11898_v10, %v5105_v30  ;;  %v12073_v5 = vadd.f32 %v11418_v44, %v11893_v43  ;;  %13648 = vst [vmem:[#allocation66_spill] sm:$0xff] %v12075_v54  ;;  %v5576_v29 = vpop.f32.mrb[205].mxu0  ;;  %v7004_v21 = vsel %vm1768_vm1, %v6996_v16, %v7003_v18  ;;  %v6408_v10 = vrot.slane %v12055_v11, 1 }
 0x3a8   : > { %v6700_v46 = vor.u32 %v6699_v59, %v13645_v61  ;;  %v7035_v3 = vsel %vm1768_vm1, %v7027_v62, %v7034_v14  ;;  %v12083_v36 = vadd.f32 %v11423_v32, %v11901_v55  ;;  %v12086_v30 = vpop.f32.mrb[206].mxu0  ;;  %9560 = vmatmul.mubr.bf16.gmra.mrb[32].mxu0 %v7004_v21  ;;  %v6132_v43 = vor.u32 %v6130_v50, %v6129_v53  ;;  %v13650_v14 = vld [vmem:[#allocation77_spill] sm:$0xff]  ;;  %v13651_v32 = vld [vmem:[#allocation42_spill] sm:$0xff] }
 0x3a9   : > { %13646 = vst [vmem:[#allocation63_spill] sm:$0xff] %v12069_v15  ;;  %13647 = vst [vmem:[#allocation36_spill] sm:$0xff] %v12073_v5  ;;  %v6734_v59 = vshrl.u32 %v6129_v53, 16  ;;  %v6409_v26 = vrot.slane %v6050_v33, 1  ;;  %v5579_v61 = vpop.f32.mrb[207].mxu0  ;;  %9563 = vmatprep.mubr.bf16.mxu0 %v7035_v3  ;;  %v7056_v16 = vshrl.u32 %v6408_v10, 16  ;;  %v5110_v55 = vadd.f32 %v13651_v32, %v13650_v14 }
 0x3aa   : > { %13649 = vst [vmem:[#allocation39_spill] sm:$0xff] %v12083_v36  ;;  %v6701_v44 = vsel %vm1768_vm1, %v6698_v47, %v6700_v46  ;;  %v6411_v62 = vrot.slane %v12075_v54, 1  ;;  %v6412_v18 = vrot.slane %v6051_v39, 1  ;;  %v6738_v34 = vshrl.u32 %v6132_v43, 16  ;;  %v5985_v5 = vld [vmem:[#allocation2 + $0x108] sm:$0x80] }
 0x3ab   : > { %7825 = vmatmul.mubr.bf16.gmra.mrb[224].mxu1 %v6701_v44  ;;  %v6736_v29 = vrot.slane %v6734_v59, 7  ;;  %v6741_v36 = vshll.u32 %v6132_v43, 16  ;;  %v6410_v21 = vsel %vm1671_vm0, %v6408_v10, %v6409_v26  ;;  %v7058_v47 = vrot.slane %v7056_v16, 7  ;;  %v12097_v32 = vpop.f32.mrb[140].mxu1  ;;  %v12099_v43 = vpop.f32.mrb[208].mxu0 }
 0x3ac   : > { %v7060_v46 = vshrl.u32 %v6410_v21, 16  ;;  %v7063_v53 = vshll.u32 %v6410_v21, 16  ;;  %v6413_v33 = vsel %vm1671_vm0, %v6411_v62, %v6412_v18  ;;  %v6740_v3 = vrot.slane %v6738_v34, 7  ;;  %v12102_v18 = vld [vmem:[#allocation2 + $0x260] sm:$0xff]  ;;  %v12104_v34 = vpop.f32.mrb[141].mxu1 }
 0x3ad   : > { %v7087_v44 = vshrl.u32 %v6411_v62, 16  ;;  %v7091_v61 = vshrl.u32 %v6413_v33, 16  ;;  %v7094_v11 = vshll.u32 %v6413_v33, 16  ;;  %v12095_v39 = vadd.f32 %v11911_v63, %v5110_v55  ;;  %13653 = vst [vmem:[#allocation35_spill] sm:$0xff] %v12102_v18  ;;  %v5584_v62 = vpop.f32.mrb[209].mxu0  ;;  %v12109_v15 = vpop.f32.mrb[142].mxu1 }
 0x3ae   : > { %v7062_v54 = vrot.slane %v7060_v46, 7  ;;  %v6727_v14 = vshrl.u32 %v5985_v5, 16  ;;  %v6730_v59 = vrot.slane %v6130_v50, 7  ;;  %v6743_v10 = vor.u32 %v6741_v36, %v6740_v3  ;;  %v6052_v55 = vld [vmem:[#allocation2 + $0x268] sm:$0x1]  ;;  %v12111_v36 = vpop.f32.mrb[210].mxu0 }
 0x3af   : > { %13652 = vst [vmem:[#allocation69_spill] sm:$0xff] %v12095_v39  ;;  %v7089_v26 = vrot.slane %v7087_v44, 7  ;;  %v7093_v16 = vrot.slane %v7091_v61, 7  ;;  %v13377_v21 = vshll.u32 %v11825_v17, 16  ;;  %v13654_v63 = vshll.u32 %v11823_v60, 16  ;;  %v13656_v62 = vld [vmem:[#allocation45_spill] sm:$0xff] }
 0x3b0   : > { %v7065_v46 = vor.u32 %v7063_v53, %v7062_v54  ;;  %v6729_v33 = vrot.slane %v6727_v14, 7  ;;  %v6137_v50 = vshrl.u32 %v11825_v17, 16  ;;  %v6744_v3 = vsel %vm1768_vm1, %v6736_v29, %v6743_v10  ;;  %v12118_v53 = vld [vmem:[#allocation2 + $0x278] sm:$0xff]  ;;  %v6053_v60 = vld [vmem:[#allocation2 + $0x280] sm:$0x1]  ;;  %v12120_v14 = vpop.f32.mrb[143].mxu1 }
 0x3b1   : > { %v6731_v5 = vor.u32 %v6730_v59, %v13654_v63  ;;  %v7096_v44 = vor.u32 %v7094_v11, %v7093_v16  ;;  %v6136_v61 = vrot.slane %v13377_v21, 1  ;;  %v5113_v54 = vadd.f32 %v13656_v62, %v13655_v52  ;;  %13657 = vst [vmem:[#allocation71_spill] sm:$0xff] %v12118_v53  ;;  %v5587_v59 = vpop.f32.mrb[211].mxu0  ;;  %7832 = vmatprep.mubr.bf16.mxu1 %v6744_v3  ;;  %v13658_v29 = vld [vmem:[#allocation78_spill] sm:$0xff]  ;;  %v13660_v10 = vld [vmem:[#allocation80_spill] sm:$0xff] }
 0x3b2   : > { %v7066_v63 = vsel %vm1768_vm1, %v7058_v47, %v7065_v46  ;;  %v12126_v11 = vadd.f32 %v13658_v29, %v11920_v4  ;;  %v12130_v16 = vadd.f32 %v13660_v10, %v11938_v37  ;;  %v6414_v47 = vrot.slane %v12102_v18, 1 }
 0x3b3   : > { %v6732_v39 = vsel %vm1768_vm1, %v6729_v33, %v6731_v5  ;;  %9564 = vmatmul.mubr.bf16.gmra.mrb[36].mxu0 %v7066_v63  ;;  %v7097_v52 = vsel %vm1768_vm1, %v7089_v26, %v7096_v44  ;;  %v6139_v62 = vor.u32 %v6137_v50, %v6136_v61  ;;  %v6765_v21 = vshrl.u32 %v6136_v61, 16 }
 0x3b4   : > { %13659 = vst [vmem:[#allocation38_spill] sm:$0xff] %v12126_v11  ;;  %13661 = vst [vmem:[#allocation76_spill] sm:$0xff] %v12130_v16  ;;  %7833 = vmatmul.mubr.bf16.gmra.mrb[228].mxu1 %v6732_v39  ;;  %v12134_v3 = vadd.f32 %v11932_v57, %v5113_v54  ;;  %9567 = vmatprep.mubr.bf16.mxu0 %v7097_v52  ;;  %v6415_v46 = vrot.slane %v6052_v55, 1  ;;  %v6417_v4 = vrot.slane %v12118_v53, 1  ;;  %v6418_v33 = vrot.slane %v6053_v60, 1  ;;  %v12144_v54 = vpop.f32.mrb[144].mxu1 }
 0x3b5   : > { %v6767_v5 = vrot.slane %v6765_v21, 7  ;;  %v6769_v59 = vshrl.u32 %v6139_v62, 16  ;;  %v6772_v37 = vshll.u32 %v6139_v62, 16  ;;  %v12140_v63 = vadd.f32 %v11949_v28, %v11449_v51  ;;  %v5987_v39 = vld [vmem:[#allocation2 + $0x120] sm:$0x80]  ;;  %v12146_v21 = vpop.f32.mrb[145].mxu1 }
 0x3b6   : > { %13662 = vst [vmem:[#allocation74_spill] sm:$0xff] %v12134_v3  ;;  %v6416_v26 = vsel %vm1671_vm0, %v6414_v47, %v6415_v46  ;;  %v7118_v44 = vshrl.u32 %v6414_v47, 16  ;;  %v6419_v57 = vsel %vm1671_vm0, %v6417_v4, %v6418_v33  ;;  %v7149_v61 = vshrl.u32 %v6417_v4, 16  ;;  %v12148_v52 = vpop.f32.mrb[212].mxu0  ;;  %v12150_v11 = vpop.f32.mrb[146].mxu1 }
 0x3b7   : > { %13663 = vst [vmem:[#allocation43_spill] sm:$0xff] %v12140_v63  ;;  %v6771_v55 = vrot.slane %v6769_v59, 7  ;;  %v7122_v29 = vshrl.u32 %v6416_v26, 16  ;;  %v7125_v10 = vshll.u32 %v6416_v26, 16  ;;  %v7153_v60 = vshrl.u32 %v6419_v57, 16  ;;  %v5592_v47 = vpop.f32.mrb[213].mxu0 }
 0x3b8   : > { %v7120_v62 = vrot.slane %v7118_v44, 7  ;;  %v7151_v51 = vrot.slane %v7149_v61, 7  ;;  %v7156_v28 = vshll.u32 %v6419_v57, 16  ;;  %v6758_v16 = vshrl.u32 %v5987_v39, 16  ;;  %v12152_v18 = vpop.f32.mrb[147].mxu1  ;;  %v12154_v59 = vpop.f32.mrb[214].mxu0 }
 0x3b9   : > { %v6774_v46 = vor.u32 %v6772_v37, %v6771_v55  ;;  %v7124_v33 = vrot.slane %v7122_v29, 7  ;;  %v7155_v4 = vrot.slane %v7153_v60, 7  ;;  %v6761_v53 = vrot.slane %v6137_v50, 7  ;;  %v12162_v39 = vld [vmem:[#allocation2 + $0x290] sm:$0xff]  ;;  %v5595_v57 = vpop.f32.mrb[215].mxu0 }
 0x3ba   : > { %v6760_v26 = vrot.slane %v6758_v16, 7  ;;  %v13382_v63 = vshll.u32 %v11869_v20, 16  ;;  %v6144_v3 = vshrl.u32 %v11869_v20, 16  ;;  %v12160_v44 = vadd.f32 %v11955_v40, %v11452_v58  ;;  %13664 = vst [vmem:[#allocation75_spill] sm:$0xff] %v12162_v39  ;;  %v6054_v60 = vld [vmem:[#allocation2 + $0x298] sm:$0x1] }
 0x3bb   : > { %v6775_v37 = vsel %vm1768_vm1, %v6767_v5, %v6774_v46  ;;  %v7127_v61 = vor.u32 %v7125_v10, %v7124_v33  ;;  %v7158_v50 = vor.u32 %v7156_v28, %v7155_v4  ;;  %v13665_v55 = vshll.u32 %v11825_v17, 16  ;;  %v12181_v5 = vld [vmem:[#allocation2 + $0x2a8] sm:$0xff]  ;;  %v6055_v17 = vld [vmem:[#allocation2 + $0x2b0] sm:$0x1]  ;;  %v5989_v33 = vld [vmem:[#allocation2 + $0x138] sm:$0x80] }
 0x3bc   : > { %7840 = vmatprep.mubr.bf16.mxu1 %v6775_v37  ;;  %v6143_v16 = vrot.slane %v13382_v63, 1  ;;  %v12171_v47 = vadd.f32 %v11981_v8, %v11470_v24  ;;  %v12175_v58 = vadd.f32 %v11986_v35, %v11439_v12  ;;  %v12179_v40 = vadd.f32 %v11989_v42, %v11491_v25  ;;  %13669 = vst [vmem:[#allocation79_spill] sm:$0xff] %v12181_v5 }
 0x3bd   : > { %v6762_v29 = vor.u32 %v6761_v53, %v13665_v55  ;;  %v7128_v53 = vsel %vm1768_vm1, %v7120_v62, %v7127_v61  ;;  %v7159_v10 = vsel %vm1768_vm1, %v7151_v51, %v7158_v50  ;;  %v6420_v24 = vrot.slane %v12162_v39, 1  ;;  %v12197_v61 = vpop.f32.mrb[148].mxu1 }
 0x3be   : > { %13666 = vst [vmem:[#allocation46_spill] sm:$0xff] %v12171_v47  ;;  %13667 = vst [vmem:[#allocation77_spill] sm:$0xff] %v12175_v58  ;;  %9568 = vmatmul.mubr.bf16.gmra.mrb[40].mxu0 %v7128_v53  ;;  %v6146_v8 = vor.u32 %v6144_v3, %v6143_v16  ;;  %v6796_v12 = vshrl.u32 %v6143_v16, 16  ;;  %v6421_v35 = vrot.slane %v6054_v60, 1  ;;  %v12189_v25 = vadd.f32 %v11994_v23, %v11457_v31  ;;  %v12199_v50 = vpop.f32.mrb[216].mxu0  ;;  %v12202_v60 = vpop.f32.mrb[149].mxu1 }
 0x3bf   : > { %13668 = vst [vmem:[#allocation42_spill] sm:$0xff] %v12179_v40  ;;  %v6763_v28 = vsel %vm1768_vm1, %v6760_v26, %v6762_v29  ;;  %9571 = vmatprep.mubr.bf16.mxu0 %v7159_v10  ;;  %v7180_v42 = vshrl.u32 %v6420_v24, 16  ;;  %v6423_v46 = vrot.slane %v12181_v5, 1  ;;  %v6424_v62 = vrot.slane %v6055_v17, 1  ;;  %v5600_v16 = vpop.f32.mrb[217].mxu0  ;;  %v12204_v10 = vpop.f32.mrb[150].mxu1 }
 0x3c0   : > { %7841 = vmatmul.mubr.bf16.gmra.mrb[232].mxu1 %v6763_v28  ;;  %13670 = vst [vmem:[#allocation45_spill] sm:$0xff] %v12189_v25  ;;  %v12194_v51 = vadd.f32 %v11991_v7, %v11480_v19  ;;  %v6798_v4 = vrot.slane %v6796_v12, 7  ;;  %v6800_v26 = vshrl.u32 %v6146_v8, 16  ;;  %v6803_v57 = vshll.u32 %v6146_v8, 16  ;;  %v12206_v28 = vpop.f32.mrb[218].mxu0  ;;  %v13673_v58 = vld [vmem:[#allocation81_spill] sm:$0xff] }
 0x3c1   : > { %v6422_v37 = vsel %vm1671_vm0, %v6420_v24, %v6421_v35  ;;  %v7182_v31 = vrot.slane %v7180_v42, 7  ;;  %v6425_v29 = vsel %vm1671_vm0, %v6423_v46, %v6424_v62  ;;  %v7211_v7 = vshrl.u32 %v6423_v46, 16  ;;  %v12209_v42 = vpop.f32.mrb[151].mxu1 }
 0x3c2   : > { %v7184_v23 = vshrl.u32 %v6422_v37, 16  ;;  %v7187_v55 = vshll.u32 %v6422_v37, 16  ;;  %v6802_v19 = vrot.slane %v6800_v26, 7  ;;  %v7215_v17 = vshrl.u32 %v6425_v29, 16  ;;  %v5603_v37 = vpop.f32.mrb[219].mxu0 }
 0x3c3   : > { %v7218_v53 = vshll.u32 %v6425_v29, 16  ;;  %v6789_v8 = vshrl.u32 %v5989_v33, 16  ;;  %v6792_v12 = vrot.slane %v6144_v3, 7  ;;  %v13383_v35 = vshll.u32 %v11881_v1, 16  ;;  %v12216_v33 = vld [vmem:[#allocation2 + $0x2c0] sm:$0xff] }
 0x3c4   : > { %v7186_v24 = vrot.slane %v7184_v23, 7  ;;  %v6805_v62 = vor.u32 %v6803_v57, %v6802_v19  ;;  %v7213_v63 = vrot.slane %v7211_v7, 7  ;;  %v7217_v40 = vrot.slane %v7215_v17, 7  ;;  %13672 = vst [vmem:[#allocation78_spill] sm:$0xff] %v12216_v33  ;;  %v13674_v19 = vld [vmem:[#allocation86_spill] sm:$0xff] }
 0x3c5   : > { %v6151_v26 = vshrl.u32 %v11881_v1, 16  ;;  %v6791_v16 = vrot.slane %v6789_v8, 7  ;;  %v13671_v29 = vshll.u32 %v11869_v20, 16  ;;  %v6150_v23 = vrot.slane %v13383_v35, 1  ;;  %v12241_v37 = vpop.f32.mrb[152].mxu1 }
 0x3c6   : > { %v7189_v46 = vor.u32 %v7187_v55, %v7186_v24  ;;  %v6806_v3 = vsel %vm1768_vm1, %v6798_v4, %v6805_v62  ;;  %v7220_v25 = vor.u32 %v7218_v53, %v7217_v40  ;;  %v12221_v57 = vadd.f32 %v11996_v13, %v13673_v58  ;;  %v6056_v55 = vld [vmem:[#allocation2 + $0x2c8] sm:$0x1]  ;;  %v6057_v4 = vld [vmem:[#allocation2 + $0x2e0] sm:$0x1]  ;;  %v13677_v13 = vld [vmem:[#allocation82_spill] sm:$0xff] }
 0x3c7   : > { %v6793_v47 = vor.u32 %v6792_v12, %v13671_v29  ;;  %v12225_v7 = vadd.f32 %v12014_v6, %v13674_v19  ;;  %7848 = vmatprep.mubr.bf16.mxu1 %v6806_v3  ;;  %v6153_v24 = vor.u32 %v6151_v26, %v6150_v23  ;;  %v6827_v8 = vshrl.u32 %v6150_v23, 16  ;;  %v12229_v12 = vld [vmem:[#allocation2 + $0x2d8] sm:$0xff]  ;;  %v13679_v6 = vld [vmem:[#allocation87_spill] sm:$0xff]  ;;  %v13681_v23 = vld [vmem:[#allocation85_spill] sm:$0xff] }
 0x3c8   : > { %v7190_v20 = vsel %vm1768_vm1, %v7182_v31, %v7189_v46  ;;  %13676 = vst [vmem:[#allocation81_spill] sm:$0xff] %v12229_v12  ;;  %v7221_v40 = vsel %vm1768_vm1, %v7213_v63, %v7220_v25  ;;  %v12234_v58 = vadd.f32 %v12026_v27, %v13677_v13  ;;  %v12238_v53 = vadd.f32 %v12032_v38, %v13679_v6  ;;  %v12243_v63 = vpop.f32.mrb[153].mxu1  ;;  %v12245_v25 = vpop.f32.mrb[220].mxu0 }
 0x3c9   : > { %13675 = vst [vmem:[#allocation80_spill] sm:$0xff] %v12225_v7  ;;  %v6794_v17 = vsel %vm1768_vm1, %v6791_v16, %v6793_v47  ;;  %9572 = vmatmul.mubr.bf16.gmra.mrb[44].mxu0 %v7190_v20  ;;  %v6426_v31 = vrot.slane %v12216_v33, 1  ;;  %v5991_v47 = vld [vmem:[#allocation2 + $0x150] sm:$0x80]  ;;  %v6829_v62 = vrot.slane %v6827_v8, 7  ;;  %v6831_v46 = vshrl.u32 %v6153_v24, 16 }
 0x3ca   : > { %7849 = vmatmul.mubr.bf16.gmra.mrb[236].mxu1 %v6794_v17  ;;  %13678 = vst [vmem:[#allocation86_spill] sm:$0xff] %v12234_v58  ;;  %13680 = vst [vmem:[#allocation82_spill] sm:$0xff] %v12238_v53  ;;  %9575 = vmatprep.mubr.bf16.mxu0 %v7221_v40  ;;  %v6834_v16 = vshll.u32 %v6153_v24, 16  ;;  %v6427_v29 = vrot.slane %v6056_v55, 1  ;;  %v12249_v3 = vadd.f32 %v12038_v0, %v13681_v23  ;;  %v6429_v38 = vrot.slane %v12229_v12, 1  ;;  %v12252_v20 = vpop.f32.mrb[154].mxu1 }
 0x3cb   : > { %v7242_v27 = vshrl.u32 %v6426_v31, 16  ;;  %v6430_v19 = vrot.slane %v6057_v4, 1  ;;  %v5608_v17 = vpop.f32.mrb[221].mxu0  ;;  %v6833_v40 = vrot.slane %v6831_v46, 7  ;;  %v13683_v24 = vld [vmem:[#allocation83_spill] sm:$0xff]  ;;  %v6820_v13 = vshrl.u32 %v5991_v47, 16 }
 0x3cc   : > { %13682 = vst [vmem:[#allocation87_spill] sm:$0xff] %v12249_v3  ;;  %v6428_v8 = vsel %vm1671_vm0, %v6426_v31, %v6427_v29  ;;  %v12257_v55 = vadd.f32 %v12034_v48, %v13683_v24  ;;  %v12259_v6 = vpop.f32.mrb[155].mxu1  ;;  %v12261_v35 = vpop.f32.mrb[222].mxu0  ;;  %v7273_v17 = vshrl.u32 %v6429_v38, 16  ;;  %v6823_v12 = vrot.slane %v6151_v26, 7 }
 0x3cd   : > { %v7244_v0 = vrot.slane %v7242_v27, 7  ;;  %v7246_v23 = vshrl.u32 %v6428_v8, 16  ;;  %v7249_v53 = vshll.u32 %v6428_v8, 16  ;;  %v6431_v4 = vsel %vm1671_vm0, %v6429_v38, %v6430_v19  ;;  %v5611_v7 = vpop.f32.mrb[223].mxu0  ;;  %v13686_v38 = vld [vmem:[#allocation84_spill] sm:$0xff] }
 0x3ce   : > { %13684 = vst [vmem:[#allocation85_spill] sm:$0xff] %v12257_v55  ;;  %v6836_v3 = vor.u32 %v6834_v16, %v6833_v40  ;;  %v7277_v46 = vshrl.u32 %v6431_v4, 16  ;;  %v7280_v58 = vshll.u32 %v6431_v4, 16  ;;  %v6822_v29 = vrot.slane %v6820_v13, 7  ;;  %v12273_v13 = vld [vmem:[#allocation2 + $0x2f0] sm:$0xff]  ;;  %v12317_v55 = vld [vmem:[#allocation2 + $0x320] sm:$0xff] }
 0x3cf   : > { %v7248_v31 = vrot.slane %v7246_v23, 7  ;;  %v6155_v48 = vshll.u32 %v11909_v2, 16  ;;  %v7275_v24 = vrot.slane %v7273_v17, 7  ;;  %v6158_v27 = vshrl.u32 %v11909_v2, 16  ;;  %13688 = vst [vmem:[#allocation84_spill] sm:$0xff] %v12273_v13  ;;  %v13689_v4 = vld [vmem:[#allocation53_spill] sm:$0xff] }
 0x3d0   : > { %v6837_v47 = vsel %vm1768_vm1, %v6829_v62, %v6836_v3  ;;  %v7279_v33 = vrot.slane %v7277_v46, 7  ;;  %v13685_v19 = vshll.u32 %v11881_v1, 16  ;;  %v12271_v40 = vadd.f32 %v12042_v9, %v13686_v38  ;;  %v6058_v26 = vld [vmem:[#allocation2 + $0x2f8] sm:$0x1]  ;;  %v13691_v3 = vld [vmem:[#allocation25_spill] sm:$0xff] }
 0x3d1   : > { %7856 = vmatprep.mubr.bf16.mxu1 %v6837_v47  ;;  %v7251_v8 = vor.u32 %v7249_v53, %v7248_v31  ;;  %v6157_v16 = vrot.slane %v6155_v48, 1  ;;  %v12277_v62 = vadd.f32 %v12049_v49, %v13689_v4  ;;  %v12281_v2 = vadd.f32 %v12057_v45, %v13691_v3  ;;  %v13693_v53 = vld [vmem:[#allocation15_spill] sm:$0xff]  ;;  %v12291_v31 = vpop.f32.mrb[156].mxu1  ;;  %v12293_v49 = vpop.f32.mrb[224].mxu0 }
 0x3d2   : > { %v6824_v7 = vor.u32 %v6823_v12, %v13685_v19  ;;  %13687 = vst [vmem:[#allocation83_spill] sm:$0xff] %v12271_v40  ;;  %v7282_v23 = vor.u32 %v7280_v58, %v7279_v33  ;;  %v12285_v1 = vadd.f32 %v12060_v22, %v13693_v53  ;;  %v12287_v12 = vld [vmem:[#allocation2 + $0x308] sm:$0xff]  ;;  %v6059_v58 = vld [vmem:[#allocation2 + $0x310] sm:$0x1]  ;;  %v6432_v22 = vrot.slane %v12273_v13, 1  ;;  %v13696_v19 = vld [vmem:[#allocation18_spill] sm:$0xff] }
 0x3d3   : > { %13690 = vst [vmem:[#allocation53_spill] sm:$0xff] %v12277_v62  ;;  %13692 = vst [vmem:[#allocation25_spill] sm:$0xff] %v12281_v2  ;;  %v7252_v9 = vsel %vm1768_vm1, %v7244_v0, %v7251_v8  ;;  %v6160_v46 = vor.u32 %v6158_v27, %v6157_v16  ;;  %v6858_v33 = vshrl.u32 %v6157_v16, 16  ;;  %v6433_v47 = vrot.slane %v6058_v26, 1  ;;  %v5993_v0 = vld [vmem:[#allocation2 + $0x168] sm:$0x80] }
 0x3d4   : > { %13694 = vst [vmem:[#allocation15_spill] sm:$0xff] %v12285_v1  ;;  %13695 = vst [vmem:[#allocation90_spill] sm:$0xff] %v12287_v12  ;;  %v6825_v17 = vsel %vm1768_vm1, %v6822_v29, %v6824_v7  ;;  %9576 = vmatmul.mubr.bf16.gmra.mrb[48].mxu0 %v7252_v9  ;;  %v7283_v45 = vsel %vm1768_vm1, %v7275_v24, %v7282_v23  ;;  %v12299_v38 = vadd.f32 %v12077_v56, %v13696_v19  ;;  %v12301_v29 = vpop.f32.mrb[157].mxu1  ;;  %v5616_v8 = vpop.f32.mrb[225].mxu0  ;;  %v13698_v56 = vld [vmem:[#allocation88_spill] sm:$0xff] }
 0x3d5   : > { %7857 = vmatmul.mubr.bf16.gmra.mrb[240].mxu1 %v6825_v17  ;;  %9579 = vmatprep.mubr.bf16.mxu0 %v7283_v45  ;;  %v6860_v7 = vrot.slane %v6858_v33, 7  ;;  %v6862_v16 = vshrl.u32 %v6160_v46, 16  ;;  %v6865_v4 = vshll.u32 %v6160_v46, 16  ;;  %v6435_v3 = vrot.slane %v12287_v12, 1  ;;  %v12304_v53 = vpop.f32.mrb[158].mxu1  ;;  %v12306_v24 = vpop.f32.mrb[226].mxu0 }
 0x3d6   : > { %13697 = vst [vmem:[#allocation18_spill] sm:$0xff] %v12299_v38  ;;  %v6434_v26 = vsel %vm1671_vm0, %v6432_v22, %v6433_v47  ;;  %v7304_v23 = vshrl.u32 %v6432_v22, 16  ;;  %v6436_v9 = vrot.slane %v6059_v58, 1  ;;  %v12311_v17 = vadd.f32 %v12062_v41, %v13698_v56  ;;  %v12313_v19 = vpop.f32.mrb[159].mxu1  ;;  %v5619_v45 = vpop.f32.mrb[227].mxu0  ;;  %v13699_v56 = vld [vmem:[#allocation68_spill] sm:$0xff] }
 0x3d7   : > { %v6864_v33 = vrot.slane %v6862_v16, 7  ;;  %v7308_v8 = vshrl.u32 %v6434_v26, 16  ;;  %v7311_v46 = vshll.u32 %v6434_v26, 16  ;;  %v7335_v1 = vshrl.u32 %v6435_v3, 16  ;;  %13700 = vst [vmem:[#allocation88_spill] sm:$0xff] %v12317_v55 }
 0x3d8   : > { %v7306_v62 = vrot.slane %v7304_v23, 7  ;;  %v6437_v38 = vsel %vm1671_vm0, %v6435_v3, %v6436_v9  ;;  %v6851_v2 = vshrl.u32 %v5993_v0, 16  ;;  %v6854_v12 = vrot.slane %v6158_v27, 7  ;;  %v6060_v3 = vld [vmem:[#allocation2 + $0x328] sm:$0x1]  ;;  %v12321_v0 = vpop.f32.mrb[160].mxu1 }
 0x3d9   : > { %v6867_v13 = vor.u32 %v6865_v4, %v6864_v33  ;;  %v7310_v47 = vrot.slane %v7308_v8, 7  ;;  %v7337_v22 = vrot.slane %v7335_v1, 7  ;;  %v7339_v58 = vshrl.u32 %v6437_v38, 16  ;;  %v12323_v27 = vpop.f32.mrb[228].mxu0  ;;  %v6061_v4 = vld [vmem:[#allocation2 + $0x340] sm:$0x1] }
 0x3da   : > { %v7342_v5 = vshll.u32 %v6437_v38, 16  ;;  %v6853_v39 = vrot.slane %v6851_v2, 7  ;;  %v6855_v41 = vor.u32 %v6854_v12, %v6155_v48  ;;  %v13396_v40 = vshll.u32 %v13699_v56, 16  ;;  %v13701_v2 = vld [vmem:[#allocation89_spill] sm:$0xff]  ;;  %v12336_v9 = vpop.f32.mrb[161].mxu1  ;;  %v5624_v33 = vpop.f32.mrb[229].mxu0 }
 0x3db   : > { %v6868_v16 = vsel %vm1768_vm1, %v6860_v7, %v6867_v13  ;;  %v7313_v26 = vor.u32 %v7311_v46, %v7310_v47  ;;  %v7341_v45 = vrot.slane %v7339_v58, 7  ;;  %v6165_v23 = vshrl.u32 %v13699_v56, 16  ;;  %v13703_v13 = vld [vmem:[#allocation37_spill] sm:$0xff]  ;;  %v6028_v7 = vld [vmem:[#allocation2 + $0x338] sm:$0xff] }
 0x3dc   : > { %7864 = vmatprep.mubr.bf16.mxu1 %v6868_v16  ;;  %v6856_v1 = vsel %vm1768_vm1, %v6853_v39, %v6855_v41  ;;  %v6164_v48 = vrot.slane %v13396_v40, 1  ;;  %v12330_v12 = vadd.f32 %v12086_v30, %v13701_v2  ;;  %v12334_v38 = vadd.f32 %v12097_v32, %v13703_v13  ;;  %v13705_v39 = vld [vmem:[#allocation30_spill] sm:$0xff]  ;;  %v12347_v41 = vpop.f32.mrb[162].mxu1  ;;  %v12349_v32 = vpop.f32.mrb[230].mxu0  ;;  %v5995_v40 = vld [vmem:[#allocation2 + $0x180] sm:$0x80] }
 0x3dd   : > { %v7314_v8 = vsel %vm1768_vm1, %v7306_v62, %v7313_v26  ;;  %v7344_v46 = vor.u32 %v7342_v5, %v7341_v45  ;;  %7865 = vmatmul.mubr.bf16.gmra.mrb[244].mxu1 %v6856_v1  ;;  %v12341_v47 = vadd.f32 %v12104_v34, %v13705_v39  ;;  %v13707_v58 = vld [vmem:[#allocation22_spill] sm:$0xff]  ;;  %v6438_v13 = vrot.slane %v12317_v55, 1  ;;  %v12352_v5 = vpop.f32.mrb[163].mxu1  ;;  %v5627_v26 = vpop.f32.mrb[231].mxu0  ;;  %v13709_v45 = vld [vmem:[#allocation55_spill] sm:$0xff] }
 0x3de   : > { %13702 = vst [vmem:[#allocation68_spill] sm:$0xff] %v12330_v12  ;;  %13704 = vst [vmem:[#allocation89_spill] sm:$0xff] %v12334_v38  ;;  %v12345_v30 = vadd.f32 %v12109_v15, %v13707_v58  ;;  %9580 = vmatmul.mubr.bf16.gmra.mrb[52].mxu0 %v7314_v8  ;;  %v6167_v16 = vor.u32 %v6165_v23, %v6164_v48  ;;  %v6889_v2 = vshrl.u32 %v6164_v48, 16  ;;  %v6439_v62 = vrot.slane %v6060_v3, 1 }
 0x3df   : > { %13706 = vst [vmem:[#allocation37_spill] sm:$0xff] %v12341_v47  ;;  %v7345_v34 = vsel %vm1768_vm1, %v7337_v22, %v7344_v46  ;;  %v12357_v1 = vadd.f32 %v12120_v14, %v13709_v45  ;;  %v6441_v15 = vrot.slane %v6028_v7, 1  ;;  %v6442_v33 = vrot.slane %v6061_v4, 1  ;;  %v13711_v7 = vld [vmem:[#allocation16_spill] sm:$0xff] }
 0x3e0   : > { %13708 = vst [vmem:[#allocation30_spill] sm:$0xff] %v12345_v30  ;;  %9583 = vmatprep.mubr.bf16.mxu0 %v7345_v34  ;;  %v6891_v39 = vrot.slane %v6889_v2, 7  ;;  %v6893_v58 = vshrl.u32 %v6167_v16, 16  ;;  %v6896_v8 = vshll.u32 %v6167_v16, 16  ;;  %v6440_v48 = vsel %vm1671_vm0, %v6438_v13, %v6439_v62 }
 0x3e1   : > { %13710 = vst [vmem:[#allocation22_spill] sm:$0xff] %v12357_v1  ;;  %v7366_v30 = vshrl.u32 %v6438_v13, 16  ;;  %v7370_v3 = vshrl.u32 %v6440_v48, 16  ;;  %v7373_v38 = vshll.u32 %v6440_v48, 16  ;;  %v6443_v26 = vsel %vm1671_vm0, %v6441_v15, %v6442_v33  ;;  %v13712_v48 = vld [vmem:[#allocation28_spill] sm:$0xff] }
 0x3e2   : > { %v6895_v47 = vrot.slane %v6893_v58, 7  ;;  %v7397_v22 = vshrl.u32 %v6441_v15, 16  ;;  %v7401_v46 = vshrl.u32 %v6443_v26, 16  ;;  %v7404_v55 = vshll.u32 %v6443_v26, 16  ;;  %v13713_v15 = vld [vmem:[#allocation44_spill] sm:$0xff] }
 0x3e3   : > { %v7368_v14 = vrot.slane %v7366_v30, 7  ;;  %v7372_v45 = vrot.slane %v7370_v3, 7  ;;  %v12363_v4 = vadd.f32 %v12099_v43, %v13711_v7  ;;  %v6882_v2 = vshrl.u32 %v5995_v40, 16  ;;  %v12373_v30 = vpop.f32.mrb[164].mxu1  ;;  %v12375_v3 = vpop.f32.mrb[232].mxu0 }
 0x3e4   : > { %v6898_v16 = vor.u32 %v6896_v8, %v6895_v47  ;;  %v7399_v34 = vrot.slane %v7397_v22, 7  ;;  %v7403_v62 = vrot.slane %v7401_v46, 7  ;;  %v6885_v1 = vrot.slane %v6165_v23, 7  ;;  %v12384_v26 = vpop.f32.mrb[165].mxu1  ;;  %v5632_v22 = vpop.f32.mrb[233].mxu0  ;;  %v13718_v46 = vld [vmem:[#allocation61_spill] sm:$0xff] }
 0x3e5   : > { %v7375_v13 = vor.u32 %v7373_v38, %v7372_v45  ;;  %v6884_v12 = vrot.slane %v6882_v2, 7  ;;  %v12367_v33 = vadd.f32 %v12111_v36, %v13712_v48  ;;  %v12371_v58 = vadd.f32 %v12144_v54, %v13713_v15  ;;  %v13716_v38 = vld [vmem:[#allocation59_spill] sm:$0xff]  ;;  %v5997_v36 = vld [vmem:[#allocation2 + $0x198] sm:$0x80]  ;;  %v12396_v7 = vpop.f32.mrb[166].mxu1 }
 0x3e6   : > { %v6899_v43 = vsel %vm1768_vm1, %v6891_v39, %v6898_v16  ;;  %v7406_v40 = vor.u32 %v7404_v55, %v7403_v62  ;;  %v13715_v47 = vshll.u32 %v13699_v56, 16  ;;  %v12382_v8 = vadd.f32 %v12146_v21, %v13716_v38  ;;  %v13720_v39 = vld [vmem:[#allocation62_spill] sm:$0xff]  ;;  %v12398_v21 = vpop.f32.mrb[234].mxu0  ;;  %v13723_v62 = vld [vmem:[#allocation56_spill] sm:$0xff]  ;;  %v13728_v22 = vld [vmem:[#allocation47_spill] sm:$0xff] }
 0x3e7   : > { %13714 = vst [vmem:[#allocation55_spill] sm:$0xff] %v12371_v58  ;;  %7872 = vmatprep.mubr.bf16.mxu1 %v6899_v43  ;;  %v7376_v54 = vsel %vm1768_vm1, %v7368_v14, %v7375_v13  ;;  %v12389_v45 = vadd.f32 %v12150_v11, %v13718_v46  ;;  %v12393_v55 = vadd.f32 %v12152_v18, %v13720_v39  ;;  %v13722_v56 = vld [vmem:[#allocation54_spill] sm:$0xff]  ;;  %v12407_v13 = vpop.f32.mrb[167].mxu1  ;;  %v5635_v18 = vpop.f32.mrb[235].mxu0  ;;  %v6913_v15 = vshrl.u32 %v5997_v36, 16  ;;  %v13724_v43 = vld [vmem:[#allocation51_spill] sm:$0xff] }
 0x3e8   : > { %v6886_v23 = vor.u32 %v6885_v1, %v13715_v47  ;;  %13717 = vst [vmem:[#allocation16_spill] sm:$0xff] %v12382_v8  ;;  %v6169_v1 = vshll.u32 %v13722_v56, 16  ;;  %9584 = vmatmul.mubr.bf16.gmra.mrb[56].mxu0 %v7376_v54  ;;  %v7407_v2 = vsel %vm1768_vm1, %v7399_v34, %v7406_v40  ;;  %v6172_v14 = vshrl.u32 %v13722_v56, 16  ;;  %v13725_v40 = vld [vmem:[#allocation29_spill] sm:$0xff]  ;;  %v13730_v56 = vld [vmem:[#allocation50_spill] sm:$0xff] }
 0x3e9   : > { %13719 = vst [vmem:[#allocation28_spill] sm:$0xff] %v12389_v45  ;;  %13721 = vst [vmem:[#allocation44_spill] sm:$0xff] %v12393_v55  ;;  %v12405_v11 = vadd.f32 %v12148_v52, %v13723_v62  ;;  %9587 = vmatprep.mubr.bf16.mxu0 %v7407_v2  ;;  %v6176_v47 = vshll.u32 %v13724_v43, 16  ;;  %v6179_v38 = vshrl.u32 %v13724_v43, 16  ;;  %v12421_v54 = vadd.f32 %v12202_v60, %v13728_v22  ;;  %v13734_v22 = vld [vmem:[#allocation17_spill] sm:$0xff]  ;;  %v13738_v45 = vld [vmem:[#allocation34_spill] sm:$0xff] }
 0x3ea   : > { %v6887_v16 = vsel %vm1768_vm1, %v6884_v12, %v6886_v23  ;;  %v6171_v48 = vrot.slane %v6169_v1, 1  ;;  %v6916_v34 = vrot.slane %v6172_v14, 7  ;;  %v12413_v12 = vadd.f32 %v12154_v59, %v13725_v40  ;;  %v13726_v23 = vld [vmem:[#allocation65_spill] sm:$0xff]  ;;  %v13740_v8 = vld [vmem:[#allocation26_spill] sm:$0xff] }
 0x3eb   : > { %7873 = vmatmul.mubr.bf16.gmra.mrb[248].mxu1 %v6887_v16  ;;  %v12417_v52 = vadd.f32 %v12197_v61, %v13726_v23  ;;  %13729 = vst [vmem:[#allocation61_spill] sm:$0xff] %v12421_v54  ;;  %v6178_v36 = vrot.slane %v6176_v47, 1  ;;  %v12425_v2 = vadd.f32 %v12204_v10, %v13730_v56  ;;  %v13732_v16 = vld [vmem:[#allocation24_spill] sm:$0xff]  ;;  %v12431_v61 = vpop.f32.mrb[168].mxu1  ;;  %v6915_v40 = vrot.slane %v6913_v15, 7 }
 0x3ec   : > { %v6174_v46 = vor.u32 %v6172_v14, %v6171_v48  ;;  %v6920_v39 = vshrl.u32 %v6171_v48, 16  ;;  %v12429_v62 = vadd.f32 %v12209_v42, %v13732_v16  ;;  %v6917_v23 = vor.u32 %v6916_v34, %v6169_v1  ;;  %v5999_v48 = vld [vmem:[#allocation2 + $0x1e0] sm:$0x80]  ;;  %v13736_v1 = vld [vmem:[#allocation52_spill] sm:$0xff] }
 0x3ed   : > { %13727 = vst [vmem:[#allocation59_spill] sm:$0xff] %v12417_v52  ;;  %13731 = vst [vmem:[#allocation62_spill] sm:$0xff] %v12425_v2  ;;  %v6181_v43 = vor.u32 %v6179_v38, %v6178_v36  ;;  %v6951_v60 = vshrl.u32 %v6178_v36, 16  ;;  %v12435_v14 = vadd.f32 %v12199_v50, %v13734_v22  ;;  %v12437_v52 = vpop.f32.mrb[169].mxu1  ;;  %v12445_v34 = vadd.f32 %v12206_v28, %v13736_v1  ;;  %v12449_v36 = vpop.f32.mrb[236].mxu0  ;;  %v13741_v1 = vld [vmem:[#allocation33_spill] sm:$0xff] }
 0x3ee   : > { %13733 = vst [vmem:[#allocation54_spill] sm:$0xff] %v12429_v62  ;;  %v6924_v59 = vshrl.u32 %v6174_v46, 16  ;;  %v6927_v18 = vshll.u32 %v6174_v46, 16  ;;  %v6922_v10 = vrot.slane %v6920_v39, 7  ;;  %v12439_v16 = vpop.f32.mrb[170].mxu1  ;;  %v6947_v46 = vrot.slane %v6179_v38, 7 }
 0x3ef   : > { %v6955_v2 = vshrl.u32 %v6181_v43, 16  ;;  %v6958_v42 = vshll.u32 %v6181_v43, 16  ;;  %v13735_v62 = vld [vmem:[#allocation73_spill] sm:$0xff]  ;;  %13737 = vst [vmem:[#allocation56_spill] sm:$0xff] %v12445_v34  ;;  %v12447_v50 = vpop.f32.mrb[171].mxu1  ;;  %v6953_v39 = vrot.slane %v6951_v60, 7  ;;  %v12453_v43 = vadd.f32 %v12241_v37, %v13738_v45 }
 0x3f0   : > { %v6926_v56 = vrot.slane %v6924_v59, 7  ;;  %v6186_v15 = vshrl.u32 %v13735_v62, 16  ;;  %v5640_v38 = vpop.f32.mrb[237].mxu0  ;;  %v6918_v54 = vsel %vm1768_vm1, %v6915_v40, %v6917_v23  ;;  %v13739_v58 = vshll.u32 %v13735_v62, 16  ;;  %v13743_v60 = vld [vmem:[#allocation64_spill] sm:$0xff] }
 0x3f1   : > { %v6957_v59 = vrot.slane %v6955_v2, 7  ;;  %v12460_v28 = vadd.f32 %v12243_v63, %v13740_v8  ;;  %v12464_v34 = vadd.f32 %v12252_v20, %v13741_v1  ;;  %v6944_v45 = vshrl.u32 %v5999_v48, 16  ;;  %v13745_v38 = vld [vmem:[#allocation57_spill] sm:$0xff] }
 0x3f2   : > { %v6929_v22 = vor.u32 %v6927_v18, %v6926_v56  ;;  %v6185_v55 = vrot.slane %v13739_v58, 1  ;;  %v12466_v18 = vpop.f32.mrb[238].mxu0  ;;  %v12471_v40 = vadd.f32 %v12259_v6, %v13743_v60  ;;  %v13744_v56 = vld [vmem:[#allocation20_spill] sm:$0xff]  ;;  %v13399_v1 = vshll.u32 %v13745_v38, 16  ;;  %v6001_v60 = vld [vmem:[#allocation2 + $0x1f8] sm:$0x80] }
 0x3f3   : > { %13742 = vst [vmem:[#allocation51_spill] sm:$0xff] %v12464_v34  ;;  %v6960_v37 = vor.u32 %v6958_v42, %v6957_v59  ;;  %v5643_v23 = vpop.f32.mrb[239].mxu0  ;;  %v12475_v63 = vadd.f32 %v12245_v25, %v13744_v56  ;;  %v13746_v6 = vld [vmem:[#allocation40_spill] sm:$0xff]  ;;  %v6948_v59 = vor.u32 %v6947_v46, %v6176_v47  ;;  %v13751_v56 = vld [vmem:[#allocation74_spill] sm:$0xff]  ;;  %v13753_v47 = vld [vmem:[#allocation63_spill] sm:$0xff] }
 0x3f4   : > { %v6930_v2 = vsel %vm1768_vm1, %v6922_v10, %v6929_v22  ;;  %v6188_v58 = vor.u32 %v6186_v15, %v6185_v55  ;;  %v6982_v8 = vshrl.u32 %v6185_v55, 16  ;;  %v6193_v10 = vshrl.u32 %v13745_v38, 16  ;;  %v12490_v55 = vpop.f32.mrb[172].mxu1  ;;  %v13749_v23 = vld [vmem:[#allocation70_spill] sm:$0xff] }
 0x3f5   : > { %7880 = vmatprep.mubr.bf16.mxu1 %v6930_v2  ;;  %v6961_v20 = vsel %vm1768_vm1, %v6953_v39, %v6960_v37  ;;  %v12482_v22 = vadd.f32 %v12261_v35, %v13746_v6  ;;  %v6946_v2 = vrot.slane %v6944_v45, 7  ;;  %v6192_v25 = vrot.slane %v13399_v1, 1  ;;  %v12504_v45 = vpop.f32.mrb[173].mxu1  ;;  %v13755_v1 = vld [vmem:[#allocation41_spill] sm:$0xff] }
 0x3f6   : > { %7881 = vmatmul.mubr.bf16.gmra.mrb[252].mxu1 %v6918_v54  ;;  %v6986_v48 = vshrl.u32 %v6188_v58, 16  ;;  %v6989_v42 = vshll.u32 %v6188_v58, 16  ;;  %v13747_v54 = vld [vmem:[#allocation69_spill] sm:$0xff]  ;;  %v12494_v58 = vadd.f32 %v12301_v29, %v13749_v23  ;;  %v12498_v35 = vadd.f32 %v12304_v53, %v13751_v56  ;;  %v12506_v6 = vpop.f32.mrb[174].mxu1  ;;  %v13756_v23 = vld [vmem:[#allocation72_spill] sm:$0xff]  ;;  %v12515_v56 = vpop.f32.mrb[240].mxu0 }
 0x3f7   : > { %7888 = vmatprep.mubr.bf16.mxu1 %v6961_v20  ;;  %v12488_v39 = vadd.f32 %v12291_v31, %v13747_v54  ;;  %v12502_v46 = vadd.f32 %v12313_v19, %v13753_v47  ;;  %v6984_v31 = vrot.slane %v6982_v8, 7  ;;  %v6195_v20 = vor.u32 %v6193_v10, %v6192_v25  ;;  %v12513_v53 = vpop.f32.mrb[175].mxu1 }
 0x3f8   : > { %v6988_v37 = vrot.slane %v6986_v48, 7  ;;  %13750 = vst [vmem:[#allocation65_spill] sm:$0xff] %v12494_v58  ;;  %13752 = vst [vmem:[#allocation47_spill] sm:$0xff] %v12498_v35  ;;  %v6978_v48 = vrot.slane %v6186_v15, 7  ;;  %v12510_v29 = vadd.f32 %v12293_v49, %v13755_v1  ;;  %v6949_v19 = vsel %vm1768_vm1, %v6946_v2, %v6948_v59  ;;  %v13757_v49 = vld [vmem:[#allocation19_spill] sm:$0xff] }
 0x3f9   : > { %13748 = vst [vmem:[#allocation29_spill] sm:$0xff] %v12488_v39  ;;  %13754 = vst [vmem:[#allocation50_spill] sm:$0xff] %v12502_v46  ;;  %v13400_v39 = vshll.u32 %v13756_v23, 16  ;;  %v6975_v47 = vshrl.u32 %v6001_v60, 16  ;;  %v7017_v35 = vshrl.u32 %v6195_v20, 16  ;;  %v13402_v8 = vshrl.u32 %v13756_v23, 16 }
 0x3fa   : > { %v6991_v54 = vor.u32 %v6989_v42, %v6988_v37  ;;  %v5648_v46 = vpop.f32.mrb[241].mxu0  ;;  %v7013_v58 = vshrl.u32 %v6192_v25, 16  ;;  %v7020_v15 = vshll.u32 %v6195_v20, 16  ;;  %v12523_v1 = vadd.f32 %v12306_v24, %v13757_v49  ;;  %v13758_v60 = vld [vmem:[#allocation43_spill] sm:$0xff]  ;;  %v6003_v49 = vld [vmem:[#allocation2 + $0x210] sm:$0x80] }
 0x3fb   : > { %v6199_v42 = vrot.slane %v13400_v39, 1  ;;  %v12525_v37 = vpop.f32.mrb[242].mxu0  ;;  %v7019_v59 = vrot.slane %v7017_v35, 7  ;;  %v12530_v2 = vadd.f32 %v12321_v0, %v12194_v51  ;;  %v12534_v25 = vadd.f32 %v12336_v9, %v13758_v60 }
 0x3fc   : > { %v6992_v34 = vsel %vm1768_vm1, %v6984_v31, %v6991_v54  ;;  %v5651_v46 = vpop.f32.mrb[243].mxu0  ;;  %v12540_v20 = vadd.f32 %v12347_v41, %v12221_v57  ;;  %v12544_v35 = vadd.f32 %v12352_v5, %v12160_v44  ;;  %v13759_v31 = vld [vmem:[#allocation21_spill] sm:$0xff]  ;;  %v13760_v0 = vshll.u32 %v13735_v62, 16  ;;  %v13762_v41 = vld [vmem:[#allocation58_spill] sm:$0xff] }
 0x3fd   : > { %v6202_v24 = vor.u32 %v13402_v8, %v6199_v42  ;;  %v12548_v51 = vadd.f32 %v12323_v27, %v13759_v31  ;;  %v6977_v54 = vrot.slane %v6975_v47, 7  ;;  %v13761_v46 = vld [vmem:[#allocation66_spill] sm:$0xff]  ;;  %v12556_v44 = vadd.f32 %v12349_v32, %v13762_v41  ;;  %v13764_v62 = vld [vmem:[#allocation85_spill] sm:$0xff]  ;;  %v13767_v32 = vld [vmem:[#allocation83_spill] sm:$0xff] }
 0x3fe   : > { %7889 = vmatmul.mubr.bf16.gmra.mrb[0].mxu1 %v6949_v19  ;;  %v6979_v9 = vor.u32 %v6978_v48, %v13760_v0  ;;  %v7022_v19 = vor.u32 %v7020_v15, %v7019_v59  ;;  %v13401_v39 = vshll.u32 %v13761_v46, 16  ;;  %v13403_v57 = vshrl.u32 %v13761_v46, 16  ;;  %v13765_v59 = vld [vmem:[#allocation68_spill] sm:$0xff] }
 0x3ff   : > { %7896 = vmatprep.mubr.bf16.mxu1 %v6992_v34  ;;  %v7015_v34 = vrot.slane %v7013_v58, 7  ;;  %v7048_v60 = vshrl.u32 %v6202_v24, 16  ;;  %v7009_v5 = vrot.slane %v6193_v10, 7  ;;  %v12560_v27 = vadd.f32 %v12373_v30, %v12311_v17  ;;  %v12566_v58 = vpop.f32.mrb[176].mxu1  ;;  %v13768_v41 = vld [vmem:[#allocation48_spill] sm:$0xff] }
 0x400   : > { %v12564_v48 = vadd.f32 %v12384_v26, %v13764_v62  ;;  %v7006_v47 = vshrl.u32 %v6003_v49, 16  ;;  %v6206_v15 = vrot.slane %v13401_v39, 1  ;;  %v12572_v31 = vadd.f32 %v12396_v7, %v13765_v59  ;;  %v12578_v17 = vpop.f32.mrb[177].mxu1  ;;  %v12587_v39 = vpop.f32.mrb[244].mxu0 }
 0x401   : > { %13763 = vst [vmem:[#allocation24_spill] sm:$0xff] %v12560_v27  ;;  %v12576_v10 = vadd.f32 %v12407_v13, %v13767_v32  ;;  %v6980_v30 = vsel %vm1768_vm1, %v6977_v54, %v6979_v9  ;;  %v7044_v26 = vshrl.u32 %v6199_v42, 16  ;;  %v7051_v0 = vshll.u32 %v6202_v24, 16  ;;  %v12585_v62 = vpop.f32.mrb[178].mxu1  ;;  %v13769_v32 = vld [vmem:[#allocation35_spill] sm:$0xff]  ;;  %v5656_v42 = vpop.f32.mrb[245].mxu0 }
 0x402   : > { %13766 = vst [vmem:[#allocation17_spill] sm:$0xff] %v12572_v31  ;;  %v12583_v49 = vadd.f32 %v12375_v3, %v13768_v41  ;;  %v7023_v7 = vsel %vm1768_vm1, %v7015_v34, %v7022_v19  ;;  %v7050_v59 = vrot.slane %v7048_v60, 7  ;;  %v6209_v13 = vor.u32 %v13403_v57, %v6206_v15  ;;  %v12593_v9 = vpop.f32.mrb[179].mxu1  ;;  %v13770_v24 = vld [vmem:[#allocation27_spill] sm:$0xff]  ;;  %v12599_v54 = vpop.f32.mrb[246].mxu0 }
 0x403   : > { %v13405_v8 = vshll.u32 %v13769_v32, 16  ;;  %v12597_v3 = vadd.f32 %v12398_v21, %v13770_v24  ;;  %v7008_v34 = vrot.slane %v7006_v47, 7  ;;  %v6005_v19 = vld [vmem:[#allocation2 + $0x228] sm:$0x80]  ;;  %v6214_v60 = vshrl.u32 %v13769_v32, 16  ;;  %v5659_v57 = vpop.f32.mrb[247].mxu0 }
 0x404   : > { %v7079_v31 = vshrl.u32 %v6209_v13, 16  ;;  %v12612_v21 = vadd.f32 %v12437_v52, %v12363_v4  ;;  %v7046_v42 = vrot.slane %v7044_v26, 7  ;;  %v13772_v57 = vshrl.u32 %v13756_v23, 16 }
 0x405   : > { %v6213_v27 = vrot.slane %v13405_v8, 1  ;;  %v7037_v24 = vshrl.u32 %v6005_v19, 16  ;;  %v7075_v52 = vshrl.u32 %v6206_v15, 16  ;;  %v13776_v15 = vshll.u32 %v13756_v23, 16 }
 0x406   : > { %7897 = vmatmul.mubr.bf16.gmra.mrb[4].mxu1 %v6980_v30  ;;  %v13771_v30 = vshll.u32 %v13745_v38, 16  ;;  %v7053_v38 = vor.u32 %v7051_v0, %v7050_v59  ;;  %v7040_v47 = vrot.slane %v13772_v57, 7  ;;  %v7081_v26 = vrot.slane %v7079_v31, 7  ;;  %v13775_v57 = vld [vmem:[#allocation71_spill] sm:$0xff] }
 0x407   : > { %7904 = vmatprep.mubr.bf16.mxu1 %v7023_v7  ;;  %v12608_v7 = vadd.f32 %v12431_v61, %v12405_v11  ;;  %v13773_v11 = vld [vmem:[#allocation49_spill] sm:$0xff]  ;;  %v7082_v0 = vshll.u32 %v6209_v13, 16  ;;  %v7039_v13 = vrot.slane %v7037_v24, 7 }
 0x408   : > { %v7010_v41 = vor.u32 %v7009_v5, %v13771_v30  ;;  %v12616_v5 = vadd.f32 %v12439_v16, %v12413_v12  ;;  %v12622_v30 = vadd.f32 %v12447_v50, %v12367_v33  ;;  %v5639_v61 = vadd.f32 %v12449_v36, %v13773_v11  ;;  %v13774_v16 = vld [vmem:[#allocation23_spill] sm:$0xff] }
 0x409   : > { %v6216_v12 = vor.u32 %v6214_v60, %v6213_v27  ;;  %v5642_v59 = vadd.f32 %v12466_v18, %v13774_v16  ;;  %v7054_v19 = vsel %vm1768_vm1, %v7046_v42, %v7053_v38  ;;  %v13404_v33 = vshll.u32 %v13775_v57, 16  ;;  %v13779_v16 = vld [vmem:[#allocation32_spill] sm:$0xff] }
 0x40a   : > { %v7011_v4 = vsel %vm1768_vm1, %v7008_v34, %v7010_v41  ;;  %v12635_v50 = vadd.f32 %v12490_v55, %v12475_v63  ;;  %v12639_v36 = vadd.f32 %v12504_v45, %v12435_v14  ;;  %v7041_v31 = vor.u32 %v7040_v47, %v13776_v15  ;;  %v9501_v41 = vpop.f32.mrb[180].mxu1  ;;  %v13777_v34 = vld [vmem:[#allocation56_spill] sm:$0xff]  ;;  %v13778_v63 = vld [vmem:[#allocation67_spill] sm:$0xff] }
 0x40b   : > { %v12645_v18 = vadd.f32 %v12506_v6, %v12482_v22  ;;  %v12649_v42 = vadd.f32 %v12513_v53, %v13777_v34  ;;  %v12653_v55 = vadd.f32 %v12515_v56, %v13778_v63  ;;  %v5919_v14 = vpop.f32.mrb[181].mxu1  ;;  %v5662_v45 = vpop.f32.mrb[248].mxu0  ;;  %v7077_v38 = vrot.slane %v7075_v52, 7  ;;  %v6007_v47 = vld [vmem:[#allocation2 + $0x240] sm:$0x80] }
 0x40c   : > { %v7084_v23 = vor.u32 %v7082_v0, %v7081_v26  ;;  %v7110_v11 = vshrl.u32 %v6216_v12, 16  ;;  %v9502_v24 = vpop.f32.mrb[182].mxu1  ;;  %v6220_v22 = vrot.slane %v13404_v33, 1  ;;  %v13406_v6 = vshrl.u32 %v13775_v57, 16 }
 0x40d   : > { %v5650_v53 = vadd.f32 %v12525_v37, %v13779_v16  ;;  %v7042_v56 = vsel %vm1768_vm1, %v7039_v13, %v7041_v31  ;;  %v13780_v34 = vshrl.u32 %v13761_v46, 16  ;;  %v7068_v0 = vshrl.u32 %v6007_v47, 16  ;;  %v13783_v13 = vld [vmem:[#allocation75_spill] sm:$0xff] }
 0x40e   : > { %7905 = vmatmul.mubr.bf16.gmra.mrb[8].mxu1 %v7011_v4  ;;  %v5664_v4 = vpop.f32.mrb[249].mxu0  ;;  %v7106_v63 = vshrl.u32 %v6213_v27, 16  ;;  %v12669_v33 = vadd.f32 %v12578_v17, %v12510_v29  ;;  %v7085_v37 = vsel %vm1768_vm1, %v7077_v38, %v7084_v23  ;;  %v7112_v16 = vrot.slane %v7110_v11, 7  ;;  %v13784_v29 = vld [vmem:[#allocation31_spill] sm:$0xff] }
 0x40f   : > { %7912 = vmatprep.mubr.bf16.mxu1 %v7054_v19  ;;  %v5922_v19 = vpop.f32.mrb[183].mxu1  ;;  %v5665_v15 = vpop.f32.mrb[250].mxu0  ;;  %v7071_v52 = vrot.slane %v13780_v34, 7  ;;  %v12665_v4 = vadd.f32 %v12566_v58, %v12548_v51  ;;  %v7113_v8 = vshll.u32 %v6216_v12, 16  ;;  %v12674_v31 = vadd.f32 %v12585_v62, %v12556_v44  ;;  %v13786_v44 = vld [vmem:[#allocation60_spill] sm:$0xff] }
 0x410   : > { %v5667_v26 = vpop.f32.mrb[251].mxu0  ;;  %v6223_v27 = vor.u32 %v13406_v6, %v6220_v22  ;;  %v13407_v47 = vshll.u32 %v13783_v13, 16  ;;  %v12681_v51 = vadd.f32 %v12593_v9, %v12523_v1  ;;  %v5655_v58 = vadd.f32 %v12587_v39, %v13784_v29  ;;  %v6009_v9 = vld [vmem:[#allocation2 + $0x258] sm:$0x80] }
 0x411   : > { %13781 = vst [vmem:[#allocation73_spill] sm:$0xff] %v12665_v4  ;;  %13782 = vst [vmem:[#allocation52_spill] sm:$0xff] %v12674_v31  ;;  %v13785_v17 = vshll.u32 %v13761_v46, 16  ;;  %v7070_v38 = vrot.slane %v7068_v0, 7  ;;  %v5658_v62 = vadd.f32 %v12599_v54, %v13786_v44  ;;  %v7108_v11 = vrot.slane %v7106_v63, 7 }
 0x412   : > { %v12689_v34 = vadd.f32 %v9501_v41, %v5639_v61  ;;  %v12692_v26 = vadd.f32 %v5919_v14, %v12583_v49  ;;  %v7141_v6 = vshrl.u32 %v6223_v27, 16  ;;  %v6227_v39 = vrot.slane %v13407_v47, 1 }
 0x413   : > { %v7072_v12 = vor.u32 %v7071_v52, %v13785_v17  ;;  %v9505_v23 = vpop.f32.mrb[184].mxu1  ;;  %v6228_v46 = vshrl.u32 %v13783_v13, 16  ;;  %v12697_v52 = vadd.f32 %v9502_v24, %v5642_v59  ;;  %v12700_v54 = vadd.f32 %v5922_v19, %v12597_v3  ;;  %v13792_v59 = vld [vmem:[#allocation39_spill] sm:$0xff] }
 0x414   : > { %13787 = vst [vmem:[#allocation34_spill] sm:$0xff] %v12689_v34  ;;  %13788 = vst [vmem:[#allocation26_spill] sm:$0xff] %v12692_v26  ;;  %v5935_v1 = vpop.f32.mrb[185].mxu1  ;;  %v7102_v14 = vrot.slane %v6214_v60, 7  ;;  %v7099_v29 = vshrl.u32 %v6009_v9, 16  ;;  %v7137_v17 = vshrl.u32 %v6220_v22, 16  ;;  %v5666_v24 = vadd.f32 %v5665_v15, %v13792_v59 }
 0x415   : > { %13789 = vst [vmem:[#allocation33_spill] sm:$0xff] %v12697_v52  ;;  %v9506_v0 = vpop.f32.mrb[186].mxu1  ;;  %13790 = vst [vmem:[#allocation64_spill] sm:$0xff] %v12700_v54  ;;  %v7073_v49 = vsel %vm1768_vm1, %v7070_v38, %v7072_v12  ;;  %v7143_v3 = vrot.slane %v7141_v6, 7  ;;  %v7144_v19 = vshll.u32 %v6223_v27, 16  ;;  %v12711_v38 = vadd.f32 %v9505_v23, %v5655_v58  ;;  %v13836_v26 = vld [vmem:[#allocation18_spill] sm:$0xff] }
 0x416   : > { %7913 = vmatmul.mubr.bf16.gmra.mrb[12].mxu1 %v7042_v56  ;;  %v7115_v56 = vor.u32 %v7113_v8, %v7112_v16  ;;  %v13791_v8 = vld [vmem:[#allocation36_spill] sm:$0xff]  ;;  %v5938_v41 = vpop.f32.mrb[187].mxu1  ;;  %v5670_v63 = vpop.f32.mrb[252].mxu0  ;;  %v12714_v60 = vadd.f32 %v5935_v1, %v12653_v55  ;;  %v13796_v22 = vshll.u32 %v13769_v32, 16  ;;  %v12718_v15 = vadd.f32 %v9506_v0, %v5658_v62  ;;  %v6011_v27 = vld [vmem:[#allocation2 + $0x270] sm:$0x80] }
 0x417   : > { %7920 = vmatprep.mubr.bf16.mxu1 %v7085_v37  ;;  %v5663_v61 = vadd.f32 %v5662_v45, %v13791_v8  ;;  %v5672_v37 = vpop.f32.mrb[253].mxu0  ;;  %v6230_v45 = vor.u32 %v6228_v46, %v6227_v39  ;;  %v13793_v8 = vld [vmem:[#allocation79_spill] sm:$0xff]  ;;  %13794 = vst [vmem:[#allocation20_spill] sm:$0xff] %v12711_v38  ;;  %v7139_v6 = vrot.slane %v7137_v17, 7  ;;  %v12720_v9 = vadd.f32 %v5938_v41, %v5650_v53  ;;  %v13801_v1 = vld [vmem:[#allocation76_spill] sm:$0xff] }
 0x418   : > { %v7116_v16 = vsel %vm1768_vm1, %v7108_v11, %v7115_v56  ;;  %v5673_v44 = vpop.f32.mrb[254].mxu0  ;;  %v13408_v47 = vshll.u32 %v13793_v8, 16  ;;  %13795 = vst [vmem:[#allocation57_spill] sm:$0xff] %v12714_v60  ;;  %v7103_v11 = vor.u32 %v7102_v14, %v13796_v22  ;;  %13797 = vst [vmem:[#allocation40_spill] sm:$0xff] %v12718_v15  ;;  %v7101_v56 = vrot.slane %v7099_v29, 7  ;;  %v13802_v14 = vld [vmem:[#allocation78_spill] sm:$0xff] }
 0x419   : > { %v5675_v12 = vpop.f32.mrb[255].mxu0  ;;  %13798 = vst [vmem:[#allocation69_spill] sm:$0xff] %v12720_v9  ;;  %v7146_v59 = vor.u32 %v7144_v19, %v7143_v3  ;;  %v6235_v55 = vshrl.u32 %v13793_v8, 16  ;;  %v13800_v23 = vshrl.u32 %v13775_v57, 16  ;;  %v5674_v62 = vadd.f32 %v5673_v44, %v13801_v1 }
 0x41a   : > { %v7172_v12 = vshrl.u32 %v6230_v45, 16  ;;  %v6234_v58 = vrot.slane %v13408_v47, 1  ;;  %v7130_v0 = vshrl.u32 %v6011_v27, 16  ;;  %v7104_v53 = vsel %vm1768_vm1, %v7101_v56, %v7103_v11 }
 0x41b   : > { %v7133_v32 = vrot.slane %v13800_v23, 7  ;;  %v7168_v41 = vshrl.u32 %v6227_v39, 16  ;;  %v7147_v19 = vsel %vm1768_vm1, %v7139_v6, %v7146_v59  ;;  %v13805_v44 = vshll.u32 %v13775_v57, 16 }
 0x41c   : > { %v7174_v22 = vrot.slane %v7172_v12, 7  ;;  %v7132_v39 = vrot.slane %v7130_v0, 7  ;;  %v13410_v56 = vshrl.u32 %v13802_v14, 16 }
 0x41d   : > { %v7134_v27 = vor.u32 %v7133_v32, %v13805_v44  ;;  %v7170_v59 = vrot.slane %v7168_v41, 7  ;;  %v7199_v44 = vshrl.u32 %v6234_v58, 16 }
 0x41e   : > { %7921 = vmatmul.mubr.bf16.gmra.mrb[16].mxu1 %v7073_v49  ;;  %v13799_v49 = vld [vmem:[#allocation38_spill] sm:$0xff] }
 0x41f   : > { %7928 = vmatprep.mubr.bf16.mxu1 %v7116_v16  ;;  %v5671_v37 = vadd.f32 %v5670_v63, %v13799_v49  ;;  %v13409_v16 = vshll.u32 %v13802_v14, 16  ;;  %v9509_v29 = vpop.f32.mrb[188].mxu1  ;;  %v7175_v63 = vshll.u32 %v6230_v45, 16  ;;  %v6237_v49 = vor.u32 %v6235_v55, %v6234_v58 }
 0x420   : > { %v5951_v3 = vpop.f32.mrb[189].mxu1  ;;  %v13810_v58 = vshll.u32 %v13783_v13, 16 }
 0x421   : > { %v12731_v17 = vadd.f32 %v9509_v29, %v5671_v37  ;;  %v12734_v47 = vadd.f32 %v5951_v3, %v5663_v61  ;;  %v9510_v23 = vpop.f32.mrb[190].mxu1  ;;  %v12742_v45 = vrot.slane %v13409_v16, 1  ;;  %v7177_v12 = vor.u32 %v7175_v63, %v7174_v22  ;;  %v6013_v29 = vld [vmem:[#allocation2 + $0x288] sm:$0x80]  ;;  %v6015_v3 = vld [vmem:[#allocation2 + $0x2a0] sm:$0x80] }
 0x422   : > { %v12738_v1 = vadd.f32 %v9510_v23, %v5674_v62  ;;  %v5954_v11 = vpop.f32.mrb[191].mxu1  ;;  %v7203_v57 = vshrl.u32 %v6237_v49, 16  ;;  %v7135_v62 = vsel %vm1768_vm1, %v7132_v39, %v7134_v27  ;;  %v7161_v23 = vshrl.u32 %v6013_v29, 16 }
 0x423   : > { %13803 = vst [vmem:[#allocation70_spill] sm:$0xff] %v12731_v17  ;;  %13804 = vst [vmem:[#allocation74_spill] sm:$0xff] %v12734_v47  ;;  %v12745_v6 = vadd.f32 %v5954_v11, %v5666_v24  ;;  %v9529_v37 = vpop.f32.mrb[0].mxu0  ;;  %v6244_v0 = vor.u32 %v13410_v56, %v12742_v45  ;;  %v7164_v24 = vrot.slane %v6228_v46, 7  ;;  %v7178_v63 = vsel %vm1768_vm1, %v7170_v59, %v7177_v12  ;;  %v13809_v56 = vld [vmem:[#allocation77_spill] sm:$0xff] }
 0x424   : > { %13806 = vst [vmem:[#allocation63_spill] sm:$0xff] %v12738_v1  ;;  %v8051_v61 = vpop.f32.mrb[1].mxu0  ;;  %v7205_v22 = vrot.slane %v7203_v57, 7  ;;  %v7206_v16 = vshll.u32 %v6237_v49, 16  ;;  %v13808_v1 = vld [vmem:[#allocation81_spill] sm:$0xff]  ;;  %v7195_v17 = vrot.slane %v6235_v55, 7 }
 0x425   : > { %13807 = vst [vmem:[#allocation41_spill] sm:$0xff] %v12745_v6  ;;  %v9530_v32 = vpop.f32.mrb[2].mxu0  ;;  %v13411_v27 = vshll.u32 %v13808_v1, 16  ;;  %v7192_v6 = vshrl.u32 %v6015_v3, 16  ;;  %v7234_v46 = vshrl.u32 %v6244_v0, 16  ;;  %v7163_v29 = vrot.slane %v7161_v23, 7 }
 0x426   : > { %7929 = vmatmul.mubr.bf16.gmra.mrb[20].mxu1 %v7104_v53  ;;  %v8054_v53 = vpop.f32.mrb[3].mxu0  ;;  %v12761_v59 = vld [vmem:[%s13337_s5] ss:$0 sm:$0xff]  ;;  %v13811_v49 = vld [vmem:[#allocation45_spill] sm:$0xff]  ;;  %v7201_v57 = vrot.slane %v7199_v44, 7  ;;  %v7230_v3 = vshrl.u32 %v12742_v45, 16 }
 0x427   : > { %7936 = vmatprep.mubr.bf16.mxu1 %v7147_v19  ;;  %v7762_v19 = vpop.f32.mrb[192].mxu1  ;;  %v12766_v55 = vrot.slane %v13411_v27, 1  ;;  %v12779_v44 = vld [vmem:[%s13338_s6] ss:$0 sm:$0xff] }
 0x428   : > { %v8052_v11 = vadd.f32 %v8051_v61, %v7762_v19  ;;  %v7764_v41 = vpop.f32.mrb[193].mxu1  ;;  %v7165_v61 = vor.u32 %v7164_v24, %v13810_v58  ;;  %v7236_v19 = vrot.slane %v7234_v46, 7  ;;  %v7237_v24 = vshll.u32 %v6244_v0, 16  ;;  %v6017_v58 = vld [vmem:[#allocation2 + $0x2b8] sm:$0x80] }
 0x429   : > { %v7765_v39 = vpop.f32.mrb[194].mxu1 }
 0x42a   : > { %v8306_v47 = vadd.f32 %v8052_v11, %v13809_v56  ;;  %v8055_v15 = vadd.f32 %v8054_v53, %v7765_v39  ;;  %v7767_v38 = vpop.f32.mrb[195].mxu1  ;;  %v13812_v56 = vshll.u32 %v13793_v8, 16  ;;  %v7194_v53 = vrot.slane %v7192_v6, 7  ;;  %v13813_v6 = vld [vmem:[#allocation84_spill] sm:$0xff]  ;;  %v6062_v39 = vld [vmem:[#allocation2 + $0x358] sm:$0x1] }
 0x42b   : > { %v13412_v38 = vshrl.u32 %v13808_v1, 16 }
 0x42c   : > { %v8307_v12 = vadd.f32 %v8055_v15, %v13811_v49  ;;  %v7196_v13 = vor.u32 %v7195_v17, %v13812_v56  ;;  %v8377_v23 = vmul.f32 %v12761_v59, %v8306_v47  ;;  %v13815_v56 = vshrl.u32 %v13802_v14, 16 }
 0x42d   : > { %v12787_v47 = vor.u32 %v13412_v38, %v12766_v55 }
 0x42e   : > { %7937 = vmatmul.mubr.bf16.gmra.mrb[24].mxu1 %v7135_v62  ;;  %v7208_v62 = vor.u32 %v7206_v16, %v7205_v22  ;;  %v7166_v16 = vsel %vm1768_vm1, %v7163_v29, %v7165_v61  ;;  %v7197_v46 = vsel %vm1768_vm1, %v7194_v53, %v7196_v13  ;;  %v13814_v61 = vld [vmem:[#allocation46_spill] sm:$0xff]  ;;  %v8448_v27 = vadd.f32 %v12779_v44, %v8377_v23  ;;  %v12800_v13 = vld [vmem:[#allocation2] sm:$0xff] }
 0x42f   : > { %7944 = vmatprep.mubr.bf16.mxu1 %v7178_v63  ;;  %v6445_v53 = vrot.slane %v6062_v39, 1  ;;  %v7261_v39 = vshrl.u32 %v12766_v55, 16 }
 0x430   : > { %v12773_v11 = vpop.f32.mrb[4].mxu0  ;;  %v7209_v45 = vsel %vm1768_vm1, %v7201_v57, %v7208_v62 }
 0x431   : > { %v7770_v15 = vpop.f32.mrb[196].mxu1  ;;  %v12781_v41 = vpop.f32.mrb[5].mxu0 }
 0x432   : > { %v8060_v8 = vadd.f32 %v9529_v37, %v7770_v15  ;;  %v7772_v17 = vpop.f32.mrb[197].mxu1  ;;  %v12790_v63 = vpop.f32.mrb[6].mxu0  ;;  %v8378_v37 = vmul.f32 %v12761_v59, %v8307_v12  ;;  %v7226_v15 = vrot.slane %v13815_v56, 7  ;;  %v6444_v12 = vrot.slane %v12800_v13, 1 }
 0x433   : > { %v7773_v22 = vpop.f32.mrb[198].mxu1  ;;  %v8070_v49 = vpop.f32.mrb[7].mxu0  ;;  %v7239_v17 = vor.u32 %v7237_v24, %v7236_v19 }
 0x434   : > { %v8308_v29 = vadd.f32 %v8060_v8, %v13814_v61  ;;  %v8063_v57 = vadd.f32 %v9530_v32, %v7773_v22  ;;  %v7775_v62 = vpop.f32.mrb[199].mxu1  ;;  %v7223_v8 = vshrl.u32 %v6017_v58, 16  ;;  %v7265_v32 = vshrl.u32 %v12787_v47, 16 }
 0x435   : > { %v13817_v22 = vshll.u32 %v13813_v6, 16  ;;  %v8449_v19 = vadd.f32 %v12779_v44, %v8378_v37  ;;  %v7268_v58 = vshll.u32 %v12787_v47, 16  ;;  %v13818_v62 = vld [vmem:[#allocation90_spill] sm:$0xff]  ;;  %v7428_v9 = vshrl.u32 %v6444_v12, 16 }
 0x436   : > { %7945 = vmatmul.mubr.bf16.gmra.mrb[28].mxu1 %v7166_v16  ;;  %v7232_v16 = vrot.slane %v7230_v3, 7  ;;  %v8379_v38 = vmul.f32 %v12761_v59, %v8308_v29  ;;  %v6446_v29 = vsel %vm1671_vm0, %v6444_v12, %v6445_v53  ;;  %v7267_v37 = vrot.slane %v7265_v32, 7 }
 0x437   : > { %7952 = vmatprep.mubr.bf16.mxu1 %v7209_v45  ;;  %v13816_v45 = vld [vmem:[#allocation42_spill] sm:$0xff]  ;;  %v12806_v61 = vrot.slane %v13817_v22, 1  ;;  %v7432_v53 = vshrl.u32 %v6446_v29, 16  ;;  %v7435_v60 = vshll.u32 %v6446_v29, 16  ;;  %v8513_v55 = vmax.f32 %v8449_v19, 0.0 }
 0x438   : > { %v8309_v0 = vadd.f32 %v8063_v57, %v13816_v45  ;;  %v8450_v24 = vadd.f32 %v12779_v44, %v8379_v38  ;;  %v7240_v57 = vsel %vm1768_vm1, %v7232_v16, %v7239_v17  ;;  %v8512_v45 = vmax.f32 %v8448_v27, 0.0  ;;  %v6019_v16 = vld [vmem:[#allocation2 + $0x2d0] sm:$0x80] }
 0x439   : > { %v13819_v38 = vshrl.u32 %v13813_v6, 16  ;;  %v13820_v27 = vshll.u32 %v13802_v14, 16  ;;  %v7430_v32 = vrot.slane %v7428_v9, 7  ;;  %v7434_v56 = vrot.slane %v7432_v53, 7 }
 0x43a   : > { %v8380_v23 = vmul.f32 %v12761_v59, %v8309_v0  ;;  %v8514_v22 = vmax.f32 %v8450_v24, 0.0  ;;  %v7254_v54 = vshrl.u32 %v6019_v16, 16 }
 0x43b   : > { %v6258_v0 = vor.u32 %v13819_v38, %v12806_v61  ;;  %v12821_v52 = vpop.f32.mrb[8].mxu0  ;;  %v7227_v24 = vor.u32 %v7226_v15, %v13820_v27  ;;  %v13821_v38 = vshll.u32 %v13818_v62, 16  ;;  %v7263_v15 = vrot.slane %v7261_v39, 7 }
 0x43c   : > { %v8451_v3 = vadd.f32 %v12779_v44, %v8380_v23  ;;  %v8705_v17 = vadd.f32 %v8514_v22, %v8512_v45  ;;  %v7225_v23 = vrot.slane %v7223_v8, 7  ;;  %v12825_v12 = vpop.f32.mrb[9].mxu0  ;;  %v7270_v8 = vor.u32 %v7268_v58, %v7267_v37 }
 0x43d   : > { %v12829_v34 = vrot.slane %v13821_v38, 1  ;;  %v7296_v45 = vshrl.u32 %v6258_v0, 16  ;;  %v7437_v53 = vor.u32 %v7435_v60, %v7434_v56  ;;  %v13822_v27 = vshrl.u32 %v13808_v1, 16  ;;  %v13825_v60 = vld [vmem:[#allocation88_spill] sm:$0xff] }
 0x43e   : > { %7953 = vmatmul.mubr.bf16.gmra.mrb[32].mxu1 %v7197_v46  ;;  %v8515_v47 = vmax.f32 %v8451_v3, 0.0  ;;  %v7778_v46 = vpop.f32.mrb[200].mxu1  ;;  %8737 = vst [vmem:[#allocation4] sm:$0xff] %v8705_v17  ;;  %v12832_v3 = vpop.f32.mrb[10].mxu0  ;;  %v13823_v17 = vld [vmem:[#allocation86_spill] sm:$0xff]  ;;  %v7292_v58 = vshrl.u32 %v12806_v61, 16 }
 0x43f   : > { %7960 = vmatprep.mubr.bf16.mxu1 %v7240_v57  ;;  %v8068_v57 = vadd.f32 %v12781_v41, %v7778_v46  ;;  %v7780_v14 = vpop.f32.mrb[201].mxu1  ;;  %v12835_v22 = vpop.f32.mrb[11].mxu0  ;;  %v7257_v38 = vrot.slane %v13822_v27, 7  ;;  %v7228_v41 = vsel %vm1768_vm1, %v7225_v23, %v7227_v24  ;;  %v7438_v39 = vsel %vm1768_vm1, %v7430_v32, %v7437_v53  ;;  %v6021_v32 = vld [vmem:[#allocation2 + $0x2e8] sm:$0x80] }
 0x440   : > { %v8706_v19 = vadd.f32 %v8515_v47, %v8513_v55  ;;  %v7781_v9 = vpop.f32.mrb[202].mxu1  ;;  %v13824_v37 = vshrl.u32 %v13818_v62, 16  ;;  %v13413_v56 = vshll.u32 %v13825_v60, 16  ;;  %v13826_v14 = vld [vmem:[#allocation87_spill] sm:$0xff]  ;;  %9588 = vmatmul.mubr.bf16.gmra.mrb[60].mxu0 %v7438_v39  ;;  %v13827_v24 = vshll.u32 %v13808_v1, 16 }
 0x441   : > { %v8310_v55 = vadd.f32 %v8068_v57, %v13823_v17  ;;  %v8071_v47 = vadd.f32 %v8070_v49, %v7781_v9  ;;  %v7783_v29 = vpop.f32.mrb[203].mxu1  ;;  %v7271_v49 = vsel %vm1768_vm1, %v7263_v15, %v7270_v8  ;;  %v7256_v61 = vrot.slane %v7254_v54, 7 }
 0x442   : > { %8738 = vst [vmem:[#allocation4 + $0x8] sm:$0xff] %v8706_v19  ;;  %v6265_v46 = vor.u32 %v13824_v37, %v12829_v34  ;;  %v7298_v29 = vrot.slane %v7296_v45, 7  ;;  %v7299_v19 = vshll.u32 %v6258_v0, 16  ;;  %v7258_v23 = vor.u32 %v7257_v38, %v13827_v24  ;;  %v13829_v24 = vld [vmem:[#allocation80_spill] sm:$0xff] }
 0x443   : > { %v8311_v16 = vadd.f32 %v8071_v47, %v13826_v14  ;;  %v7294_v57 = vrot.slane %v7292_v58, 7  ;;  %v12854_v53 = vrot.slane %v13413_v56, 1  ;;  %v8381_v1 = vmul.f32 %v12761_v59, %v8310_v55 }
 0x444   : > { %v7327_v9 = vshrl.u32 %v6265_v46, 16  ;;  %v7301_v15 = vor.u32 %v7299_v19, %v7298_v29  ;;  %v13828_v39 = vshrl.u32 %v13813_v6, 16  ;;  %v7285_v37 = vshrl.u32 %v6021_v32, 16 }
 0x445   : > { %v7323_v19 = vshrl.u32 %v12829_v34, 16  ;;  %v8382_v55 = vmul.f32 %v12761_v59, %v8311_v16  ;;  %v13830_v32 = vshrl.u32 %v13825_v60, 16 }
 0x446   : > { %7961 = vmatmul.mubr.bf16.gmra.mrb[36].mxu1 %v7228_v41  ;;  %v12857_v17 = vpop.f32.mrb[12].mxu0  ;;  %v7259_v41 = vsel %vm1768_vm1, %v7256_v61, %v7258_v23  ;;  %v7288_v58 = vrot.slane %v13828_v39, 7  ;;  %v7329_v23 = vrot.slane %v7327_v9, 7  ;;  %v7330_v61 = vshll.u32 %v6265_v46, 16  ;;  %v13831_v9 = vld [vmem:[#allocation82_spill] sm:$0xff] }
 0x447   : > { %7968 = vmatprep.mubr.bf16.mxu1 %v7271_v49  ;;  %v7786_v47 = vpop.f32.mrb[204].mxu1  ;;  %v12860_v45 = vpop.f32.mrb[13].mxu0  ;;  %v6272_v34 = vor.u32 %v13830_v32, %v12854_v53  ;;  %v7325_v32 = vrot.slane %v7323_v19, 7 }
 0x448   : > { %v8076_v54 = vadd.f32 %v12773_v11, %v7786_v47  ;;  %v7788_v38 = vpop.f32.mrb[205].mxu1  ;;  %v12866_v49 = vpop.f32.mrb[14].mxu0 }
 0x449   : > { %v8769_v8 = vld [vmem:[#allocation4] ss:$2 sm:$0xff]  ;;  %v8801_v0 = vld [vmem:[#allocation4 + $0x1] ss:$2 sm:$0xff]  ;;  %v7789_v29 = vpop.f32.mrb[206].mxu1  ;;  %v12871_v27 = vpop.f32.mrb[15].mxu0 }
 0x44a   : > { %v8832_v14 = vadd.f32 %v8801_v0, %v8769_v8  ;;  %v8312_v56 = vadd.f32 %v8076_v54, %v13829_v24  ;;  %v8079_v11 = vadd.f32 %v12790_v63, %v7789_v29  ;;  %v7791_v47 = vpop.f32.mrb[207].mxu1  ;;  %v12882_v8 = vld [vmem:[#allocation2 + $0x338] sm:$0xff]  ;;  %v7302_v0 = vsel %vm1768_vm1, %v7294_v57, %v7301_v15  ;;  %v6023_v29 = vld [vmem:[#allocation2 + $0x300] sm:$0x80] }
 0x44b   : > { %v13414_v16 = vshll.u32 %v12882_v8, 16  ;;  %v8452_v63 = vadd.f32 %v12779_v44, %v8381_v1  ;;  %v13832_v38 = vshll.u32 %v13813_v6, 16  ;;  %v8453_v24 = vadd.f32 %v12779_v44, %v8382_v55 }
 0x44c   : > { %8848 = vst [vmem:[%s12876_s30] sm:$0xff] %v8832_v14  ;;  %v8383_v46 = vmul.f32 %v12761_v59, %v8312_v56  ;;  %v8313_v54 = vadd.f32 %v8079_v11, %v13831_v9  ;;  %v7287_v14 = vrot.slane %v7285_v37, 7  ;;  %v7332_v57 = vor.u32 %v7330_v61, %v7329_v23 }
 0x44d   : > { %v7289_v39 = vor.u32 %v7288_v58, %v13832_v38  ;;  %v7358_v15 = vshrl.u32 %v6272_v34, 16  ;;  %v12896_v56 = vrot.slane %v13414_v16, 1  ;;  %v8516_v1 = vmax.f32 %v8452_v63, 0.0 }
 0x44e   : > { %7969 = vmatmul.mubr.bf16.gmra.mrb[40].mxu1 %v7259_v41  ;;  %v8454_v47 = vadd.f32 %v12779_v44, %v8383_v46  ;;  %v8384_v41 = vmul.f32 %v12761_v59, %v8313_v54  ;;  %v13415_v6 = vshrl.u32 %v12882_v8, 16  ;;  %v13833_v11 = vshrl.u32 %v13818_v62, 16 }
 0x44f   : > { %7976 = vmatprep.mubr.bf16.mxu1 %v7302_v0  ;;  %v7316_v0 = vshrl.u32 %v6023_v29, 16  ;;  %v8517_v46 = vmax.f32 %v8453_v24, 0.0  ;;  %v13416_v23 = vshll.u32 %v12800_v13, 16  ;;  %v7290_v61 = vsel %vm1768_vm1, %v7287_v14, %v7289_v39  ;;  %v6025_v29 = vld [vmem:[#allocation2 + $0x318] sm:$0x80] }
 0x450   : > { %v8518_v58 = vmax.f32 %v8454_v47, 0.0  ;;  %v8455_v37 = vadd.f32 %v12779_v44, %v8384_v41  ;;  %v7319_v55 = vrot.slane %v13833_v11, 7  ;;  %v7333_v63 = vsel %vm1768_vm1, %v7325_v32, %v7332_v57  ;;  %v13834_v32 = vld [vmem:[#allocation25_spill] sm:$0xff] }
 0x451   : > { %v12902_v19 = vpop.f32.mrb[16].mxu0  ;;  %v7354_v38 = vshrl.u32 %v12854_v53, 16  ;;  %v7361_v47 = vshll.u32 %v6272_v34, 16  ;;  %v7360_v11 = vrot.slane %v7358_v15, 7  ;;  %v6279_v24 = vor.u32 %v13415_v6, %v12896_v56 }
 0x452   : > { %v8707_v9 = vadd.f32 %v8518_v58, %v8516_v1  ;;  %v8519_v54 = vmax.f32 %v8455_v37, 0.0  ;;  %v12908_v16 = vpop.f32.mrb[17].mxu0  ;;  %v7794_v41 = vpop.f32.mrb[208].mxu1 }
 0x453   : > { %v12913_v58 = vpop.f32.mrb[18].mxu0  ;;  %v8084_v39 = vadd.f32 %v12825_v12, %v7794_v41  ;;  %v7796_v14 = vpop.f32.mrb[209].mxu1  ;;  %v7318_v12 = vrot.slane %v7316_v0, 7  ;;  %v7347_v41 = vshrl.u32 %v6025_v29, 16  ;;  %v7389_v6 = vshrl.u32 %v6279_v24, 16 }
 0x454   : > { %8739 = vst [vmem:[#allocation4 + $0x10] sm:$0xff] %v8707_v9  ;;  %v8708_v1 = vadd.f32 %v8519_v54, %v8517_v46  ;;  %v12916_v53 = vpop.f32.mrb[19].mxu0  ;;  %v7797_v34 = vpop.f32.mrb[210].mxu1  ;;  %v13417_v46 = vshrl.u32 %v12800_v13, 16  ;;  %v13835_v9 = vshll.u32 %v13818_v62, 16  ;;  %v7363_v14 = vor.u32 %v7361_v47, %v7360_v11 }
 0x455   : > { %v8314_v57 = vadd.f32 %v8084_v39, %v13834_v32  ;;  %v8087_v15 = vadd.f32 %v12835_v22, %v7797_v34  ;;  %v7799_v37 = vpop.f32.mrb[211].mxu1  ;;  %v13837_v39 = vshrl.u32 %v13825_v60, 16  ;;  %v7391_v0 = vrot.slane %v7389_v6, 7 }
 0x456   : > { %7977 = vmatmul.mubr.bf16.gmra.mrb[44].mxu1 %v7290_v61  ;;  %8740 = vst [vmem:[#allocation4 + $0x18] sm:$0xff] %v8708_v1  ;;  %v6283_v61 = vrot.slane %v13416_v23, 1  ;;  %v7320_v54 = vor.u32 %v7319_v55, %v13835_v9  ;;  %v7349_v37 = vrot.slane %v7347_v41, 7  ;;  %v7385_v55 = vshrl.u32 %v12896_v56, 16 }
 0x457   : > { %7984 = vmatprep.mubr.bf16.mxu1 %v7333_v63  ;;  %v7356_v63 = vrot.slane %v7354_v38, 7  ;;  %v8315_v1 = vadd.f32 %v8087_v15, %v13836_v26  ;;  %v7350_v32 = vrot.slane %v13837_v39, 7  ;;  %v7392_v38 = vshll.u32 %v6279_v24, 16 }
 0x458   : > { %v6286_v22 = vor.u32 %v13417_v46, %v6283_v61  ;;  %v7321_v34 = vsel %vm1768_vm1, %v7318_v12, %v7320_v54  ;;  %v13838_v26 = vshll.u32 %v13825_v60, 16  ;;  %v8385_v54 = vmul.f32 %v12761_v59, %v8314_v57  ;;  %v13839_v60 = vld [vmem:[#allocation53_spill] sm:$0xff] }
 0x459   : > { %v7364_v62 = vsel %vm1768_vm1, %v7356_v63, %v7363_v14  ;;  %v8386_v39 = vmul.f32 %v12761_v59, %v8315_v1  ;;  %v7387_v57 = vrot.slane %v7385_v55, 7  ;;  %v7394_v23 = vor.u32 %v7392_v38, %v7391_v0  ;;  %v6027_v46 = vld [vmem:[#allocation2 + $0x330] sm:$0x80] }
 0x45a   : > { %v7351_v29 = vor.u32 %v7350_v32, %v13838_v26  ;;  %v7420_v6 = vshrl.u32 %v6286_v22, 16  ;;  %v13841_v1 = vshrl.u32 %v12882_v8, 16  ;;  %v7423_v4 = vshll.u32 %v6286_v22, 16 }
 0x45b   : > { %v12933_v47 = vpop.f32.mrb[20].mxu0  ;;  %v7802_v11 = vpop.f32.mrb[212].mxu1  ;;  %v8457_v55 = vadd.f32 %v12779_v44, %v8386_v39 }
 0x45c   : > { %v12938_v12 = vpop.f32.mrb[21].mxu0  ;;  %v8092_v41 = vadd.f32 %v12821_v52, %v7802_v11  ;;  %v7804_v63 = vpop.f32.mrb[213].mxu1  ;;  %v7352_v52 = vsel %vm1768_vm1, %v7349_v37, %v7351_v29  ;;  %v8456_v11 = vadd.f32 %v12779_v44, %v8385_v54  ;;  %v7422_v31 = vrot.slane %v7420_v6, 7 }
 0x45d   : > { %v8771_v15 = vld [vmem:[#allocation4 + $0x10] ss:$2 sm:$0xff]  ;;  %v8803_v9 = vld [vmem:[#allocation4 + $0x11] ss:$2 sm:$0xff]  ;;  %v12941_v24 = vpop.f32.mrb[22].mxu0  ;;  %v7805_v14 = vpop.f32.mrb[214].mxu1  ;;  %v7395_v37 = vsel %vm1768_vm1, %v7387_v57, %v7394_v23 }
 0x45e   : > { %7985 = vmatmul.mubr.bf16.gmra.mrb[48].mxu1 %v7321_v34  ;;  %v8833_v56 = vadd.f32 %v8803_v9, %v8771_v15  ;;  %v8316_v32 = vadd.f32 %v8092_v41, %v13839_v60  ;;  %v12945_v34 = vpop.f32.mrb[23].mxu0  ;;  %v7807_v26 = vpop.f32.mrb[215].mxu1  ;;  %v13840_v9 = vld [vmem:[#allocation15_spill] sm:$0xff]  ;;  %v7381_v41 = vrot.slane %v13841_v1, 7  ;;  %v7416_v60 = vshrl.u32 %v6283_v61, 16 }
 0x45f   : > { %7992 = vmatprep.mubr.bf16.mxu1 %v7364_v62  ;;  %v8095_v62 = vadd.f32 %v12832_v3, %v7805_v14  ;;  %v7378_v3 = vshrl.u32 %v6027_v46, 16  ;;  %v8520_v29 = vmax.f32 %v8456_v11, 0.0  ;;  %v13842_v14 = vshll.u32 %v12882_v8, 16  ;;  %v6029_v46 = vld [vmem:[#allocation2 + $0x348] sm:$0x80] }
 0x460   : > { %8849 = vst [vmem:[%s12876_s30 + $0x8] sm:$0xff] %v8833_v56  ;;  %v8387_v15 = vmul.f32 %v12761_v59, %v8316_v32  ;;  %v7418_v6 = vrot.slane %v7416_v60, 7  ;;  %v7425_v22 = vor.u32 %v7423_v4, %v7422_v31  ;;  %v8521_v39 = vmax.f32 %v8457_v55, 0.0  ;;  %v13844_v55 = vld [vmem:[#allocation37_spill] sm:$0xff] }
 0x461   : > { %v8317_v63 = vadd.f32 %v8095_v62, %v13840_v9  ;;  %v7382_v61 = vor.u32 %v7381_v41, %v13842_v14  ;;  %v7380_v32 = vrot.slane %v7378_v3, 7  ;;  %v13843_v57 = vshrl.u32 %v12800_v13, 16 }
 0x462   : > { %v8458_v0 = vadd.f32 %v12779_v44, %v8387_v15  ;;  %v7409_v9 = vshrl.u32 %v6029_v46, 16  ;;  %v7426_v1 = vsel %vm1768_vm1, %v7418_v6, %v7425_v22 }
 0x463   : > { %v8388_v38 = vmul.f32 %v12761_v59, %v8317_v63  ;;  %v7412_v11 = vrot.slane %v13843_v57, 7  ;;  %v7383_v3 = vsel %vm1768_vm1, %v7380_v32, %v7382_v61 }
 0x464   : > { %v8522_v54 = vmax.f32 %v8458_v0, 0.0 }
 0x465   : > { %v8459_v56 = vadd.f32 %v12779_v44, %v8388_v38 }
 0x466   : > { %7993 = vmatmul.mubr.bf16.gmra.mrb[52].mxu1 %v7352_v52  ;;  %v8709_v62 = vadd.f32 %v8522_v54, %v8520_v29  ;;  %v12962_v15 = vpop.f32.mrb[24].mxu0  ;;  %v13845_v29 = vshll.u32 %v12800_v13, 16 }
 0x467   : > { %8000 = vmatprep.mubr.bf16.mxu1 %v7395_v37  ;;  %v8523_v26 = vmax.f32 %v8459_v56, 0.0  ;;  %v12964_v52 = vpop.f32.mrb[25].mxu0  ;;  %v13846_v56 = vld [vmem:[#allocation22_spill] sm:$0xff] }
 0x468   : > { %8741 = vst [vmem:[#allocation4 + $0x20] sm:$0xff] %v8709_v62  ;;  %v12968_v8 = vpop.f32.mrb[26].mxu0  ;;  %v7413_v54 = vor.u32 %v7412_v11, %v13845_v29 }
 0x469   : > { %v7810_v23 = vpop.f32.mrb[216].mxu1  ;;  %v8710_v63 = vadd.f32 %v8523_v26, %v8521_v39  ;;  %v12972_v41 = vpop.f32.mrb[27].mxu0 }
 0x46a   : > { %v8100_v4 = vadd.f32 %v12860_v45, %v7810_v23  ;;  %v7812_v31 = vpop.f32.mrb[217].mxu1  ;;  %v7411_v45 = vrot.slane %v7409_v9, 7  ;;  %v13847_v9 = vld [vmem:[#allocation89_spill] sm:$0xff] }
 0x46b   : > { %v7813_v60 = vpop.f32.mrb[218].mxu1  ;;  %8742 = vst [vmem:[#allocation4 + $0x28] sm:$0xff] %v8710_v63 }
 0x46c   : > { %v8318_v0 = vadd.f32 %v8100_v4, %v13844_v55  ;;  %v8103_v38 = vadd.f32 %v12871_v27, %v7813_v60  ;;  %v7815_v37 = vpop.f32.mrb[219].mxu1  ;;  %v7414_v6 = vsel %vm1768_vm1, %v7411_v45, %v7413_v54 }
 0x46e   : > { %8001 = vmatmul.mubr.bf16.gmra.mrb[56].mxu1 %v7383_v3  ;;  %v8319_v14 = vadd.f32 %v8103_v38, %v13846_v56  ;;  %v8389_v39 = vmul.f32 %v12761_v59, %v8318_v0  ;;  %v13848_v3 = vld [vmem:[#allocation30_spill] sm:$0xff] }
 0x46f   : > { %8008 = vmatprep.mubr.bf16.mxu1 %v7426_v1 }
 0x470   : > { %v8390_v11 = vmul.f32 %v12761_v59, %v8319_v14 }
 0x471   : > { %v12981_v46 = vpop.f32.mrb[28].mxu0 }
 0x472   : > { %v7818_v22 = vpop.f32.mrb[220].mxu1  ;;  %v8773_v61 = vld [vmem:[#allocation4 + $0x20] ss:$2 sm:$0xff]  ;;  %v8805_v32 = vld [vmem:[#allocation4 + $0x21] ss:$2 sm:$0xff]  ;;  %v12985_v26 = vpop.f32.mrb[29].mxu0  ;;  %v8461_v0 = vadd.f32 %v12779_v44, %v8390_v11 }
 0x473   : > { %v8108_v27 = vadd.f32 %v12857_v17, %v7818_v22  ;;  %v7820_v62 = vpop.f32.mrb[221].mxu1  ;;  %v8834_v13 = vadd.f32 %v8805_v32, %v8773_v61  ;;  %v12987_v57 = vpop.f32.mrb[30].mxu0  ;;  %v8460_v17 = vadd.f32 %v12779_v44, %v8389_v39  ;;  %v13849_v11 = vld [vmem:[#allocation16_spill] sm:$0xff] }
 0x474   : > { %v7821_v23 = vpop.f32.mrb[222].mxu1  ;;  %v12992_v1 = vpop.f32.mrb[31].mxu0  ;;  %v8525_v45 = vmax.f32 %v8461_v0, 0.0 }
 0x475   : > { %v8320_v63 = vadd.f32 %v8108_v27, %v13847_v9  ;;  %v8111_v4 = vadd.f32 %v12866_v49, %v7821_v23  ;;  %v7823_v31 = vpop.f32.mrb[223].mxu1  ;;  %8850 = vst [vmem:[%s12876_s30 + $0x10] sm:$0xff] %v8834_v13  ;;  %v8524_v29 = vmax.f32 %v8460_v17, 0.0 }
 0x476   : > { %8009 = vmatmul.mubr.bf16.gmra.mrb[60].mxu1 %v7414_v6  ;;  %v13850_v31 = vld [vmem:[#allocation44_spill] sm:$0xff] }
 0x477   : > { %v8391_v60 = vmul.f32 %v12761_v59, %v8320_v63  ;;  %v8321_v55 = vadd.f32 %v8111_v4, %v13848_v3 }
 0x479   : > { %v8462_v38 = vadd.f32 %v12779_v44, %v8391_v60  ;;  %v8392_v37 = vmul.f32 %v12761_v59, %v8321_v55 }
 0x47b   : > { %v8526_v54 = vmax.f32 %v8462_v38, 0.0  ;;  %v8463_v49 = vadd.f32 %v12779_v44, %v8392_v37  ;;  %v13002_v6 = vpop.f32.mrb[32].mxu0 }
 0x47c   : > { %v13004_v22 = vpop.f32.mrb[33].mxu0 }
 0x47d   : > { %v8711_v56 = vadd.f32 %v8526_v54, %v8524_v29  ;;  %v8527_v14 = vmax.f32 %v8463_v49, 0.0  ;;  %v13006_v39 = vpop.f32.mrb[34].mxu0 }
 0x47e   : > { %v7826_v61 = vpop.f32.mrb[224].mxu1  ;;  %v13009_v13 = vpop.f32.mrb[35].mxu0 }
 0x47f   : > { %8743 = vst [vmem:[#allocation4 + $0x30] sm:$0xff] %v8711_v56  ;;  %v8712_v32 = vadd.f32 %v8527_v14, %v8525_v45  ;;  %v8116_v27 = vadd.f32 %v12908_v16, %v7826_v61  ;;  %v7828_v62 = vpop.f32.mrb[225].mxu1  ;;  %v13851_v56 = vld [vmem:[#allocation55_spill] sm:$0xff] }
 0x480   : > { %v7829_v23 = vpop.f32.mrb[226].mxu1 }
 0x481   : > { %8744 = vst [vmem:[#allocation4 + $0x38] sm:$0xff] %v8712_v32  ;;  %v8322_v9 = vadd.f32 %v8116_v27, %v13849_v11  ;;  %v8119_v63 = vadd.f32 %v12916_v53, %v7829_v23  ;;  %v7831_v4 = vpop.f32.mrb[227].mxu1 }
 0x483   : > { %v8323_v17 = vadd.f32 %v8119_v63, %v13850_v31  ;;  %v8393_v16 = vmul.f32 %v12761_v59, %v8322_v9 }
 0x485   : > { %v8394_v45 = vmul.f32 %v12761_v59, %v8323_v17  ;;  %v8464_v62 = vadd.f32 %v12779_v44, %v8393_v16 }
 0x486   : > { %v13014_v60 = vpop.f32.mrb[36].mxu0 }
 0x487   : > { %v7834_v3 = vpop.f32.mrb[228].mxu1  ;;  %v13017_v38 = vpop.f32.mrb[37].mxu0  ;;  %v8465_v9 = vadd.f32 %v12779_v44, %v8394_v45  ;;  %v8528_v31 = vmax.f32 %v8464_v62, 0.0 }
 0x488   : > { %v8775_v55 = vld [vmem:[#allocation4 + $0x30] ss:$2 sm:$0xff]  ;;  %v8807_v0 = vld [vmem:[#allocation4 + $0x31] ss:$2 sm:$0xff]  ;;  %v8124_v37 = vadd.f32 %v12902_v19, %v7834_v3  ;;  %v7836_v29 = vpop.f32.mrb[229].mxu1  ;;  %v13020_v49 = vpop.f32.mrb[38].mxu0 }
 0x489   : > { %v8835_v54 = vadd.f32 %v8807_v0, %v8775_v55  ;;  %v7837_v53 = vpop.f32.mrb[230].mxu1  ;;  %v13024_v61 = vpop.f32.mrb[39].mxu0  ;;  %v13852_v19 = vld [vmem:[#allocation28_spill] sm:$0xff]  ;;  %v8529_v55 = vmax.f32 %v8465_v9, 0.0 }
 0x48a   : > { %v8324_v14 = vadd.f32 %v8124_v37, %v13851_v56  ;;  %v8127_v32 = vadd.f32 %v12913_v58, %v7837_v53  ;;  %v7839_v27 = vpop.f32.mrb[231].mxu1 }
 0x48b   : > { %8851 = vst [vmem:[%s12876_s30 + $0x18] sm:$0xff] %v8835_v54 }
 0x48c   : > { %v8395_v23 = vmul.f32 %v12761_v59, %v8324_v14  ;;  %v8325_v11 = vadd.f32 %v8127_v32, %v13852_v19  ;;  %v13853_v32 = vld [vmem:[#allocation61_spill] sm:$0xff] }
 0x48e   : > { %v8466_v63 = vadd.f32 %v12779_v44, %v8395_v23  ;;  %v8396_v4 = vmul.f32 %v12761_v59, %v8325_v11  ;;  %v13854_v11 = vld [vmem:[#allocation54_spill] sm:$0xff] }
 0x490   : > { %v8530_v17 = vmax.f32 %v8466_v63, 0.0  ;;  %v8467_v3 = vadd.f32 %v12779_v44, %v8396_v4 }
 0x491   : > { %v13035_v37 = vpop.f32.mrb[40].mxu0 }
 0x492   : > { %v8713_v58 = vadd.f32 %v8530_v17, %v8528_v31  ;;  %v8531_v0 = vmax.f32 %v8467_v3, 0.0  ;;  %v13037_v29 = vpop.f32.mrb[41].mxu0 }
 0x493   : > { %v7842_v16 = vpop.f32.mrb[232].mxu1  ;;  %v13040_v56 = vpop.f32.mrb[42].mxu0 }
 0x494   : > { %v8132_v54 = vadd.f32 %v12938_v12, %v7842_v16  ;;  %v7844_v53 = vpop.f32.mrb[233].mxu1  ;;  %8745 = vst [vmem:[#allocation4 + $0x40] sm:$0xff] %v8713_v58  ;;  %v8714_v45 = vadd.f32 %v8531_v0, %v8529_v55  ;;  %v13043_v62 = vpop.f32.mrb[43].mxu0  ;;  %v13855_v16 = vld [vmem:[#allocation59_spill] sm:$0xff] }
 0x495   : > { %v7845_v14 = vpop.f32.mrb[234].mxu1 }
 0x496   : > { %v8326_v27 = vadd.f32 %v8132_v54, %v13853_v32  ;;  %v8135_v23 = vadd.f32 %v12945_v34, %v7845_v14  ;;  %v7847_v19 = vpop.f32.mrb[235].mxu1  ;;  %8746 = vst [vmem:[#allocation4 + $0x48] sm:$0xff] %v8714_v45 }
 0x498   : > { %v8327_v9 = vadd.f32 %v8135_v23, %v13854_v11  ;;  %v8397_v17 = vmul.f32 %v12761_v59, %v8326_v27 }
 0x49a   : > { %v8398_v14 = vmul.f32 %v12761_v59, %v8327_v9  ;;  %v8468_v27 = vadd.f32 %v12779_v44, %v8397_v17 }
 0x49c   : > { %v13047_v63 = vpop.f32.mrb[44].mxu0 }
 0x49d   : > { %v7850_v12 = vpop.f32.mrb[236].mxu1  ;;  %v8777_v4 = vld [vmem:[#allocation4 + $0x40] ss:$2 sm:$0xff]  ;;  %v8809_v31 = vld [vmem:[#allocation4 + $0x41] ss:$2 sm:$0xff]  ;;  %v13050_v3 = vpop.f32.mrb[45].mxu0 }
 0x49e   : > { %v8140_v55 = vadd.f32 %v12933_v47, %v7850_v12  ;;  %v8836_v58 = vadd.f32 %v8809_v31, %v8777_v4  ;;  %v13053_v0 = vpop.f32.mrb[46].mxu0  ;;  %v7852_v34 = vpop.f32.mrb[237].mxu1  ;;  %v13856_v47 = vld [vmem:[#allocation62_spill] sm:$0xff]  ;;  %v8469_v4 = vadd.f32 %v12779_v44, %v8398_v14 }
 0x49f   : > { %v13056_v53 = vpop.f32.mrb[47].mxu0  ;;  %v7853_v45 = vpop.f32.mrb[238].mxu1 }
 0x4a0   : > { %v8328_v54 = vadd.f32 %v8140_v55, %v13855_v16  ;;  %8852 = vst [vmem:[%s12876_s30 + $0x20] sm:$0xff] %v8836_v58  ;;  %v8143_v32 = vadd.f32 %v12941_v24, %v7853_v45  ;;  %v7855_v23 = vpop.f32.mrb[239].mxu1  ;;  %v8532_v55 = vmax.f32 %v8468_v27, 0.0  ;;  %v8533_v45 = vmax.f32 %v8469_v4, 0.0 }
 0x4a2   : > { %v8399_v19 = vmul.f32 %v12761_v59, %v8328_v54  ;;  %v8329_v11 = vadd.f32 %v8143_v32, %v13856_v47 }
 0x4a4   : > { %v8470_v12 = vadd.f32 %v12779_v44, %v8399_v19  ;;  %v8400_v31 = vmul.f32 %v12761_v59, %v8329_v11 }
 0x4a6   : > { %v8534_v34 = vmax.f32 %v8470_v12, 0.0  ;;  %v8471_v58 = vadd.f32 %v12779_v44, %v8400_v31 }
 0x4a7   : > { %v13068_v16 = vpop.f32.mrb[48].mxu0 }
 0x4a8   : > { %v8715_v9 = vadd.f32 %v8534_v34, %v8532_v55  ;;  %v7858_v24 = vpop.f32.mrb[240].mxu1  ;;  %v8535_v17 = vmax.f32 %v8471_v58, 0.0  ;;  %v13070_v23 = vpop.f32.mrb[49].mxu0 }
 0x4a9   : > { %v8148_v54 = vadd.f32 %v12964_v52, %v7858_v24  ;;  %v7860_v32 = vpop.f32.mrb[241].mxu1  ;;  %v13073_v19 = vpop.f32.mrb[50].mxu0 }
 0x4aa   : > { %8747 = vst [vmem:[#allocation4 + $0x50] sm:$0xff] %v8715_v9  ;;  %v7861_v14 = vpop.f32.mrb[242].mxu1  ;;  %v8716_v47 = vadd.f32 %v8535_v17, %v8533_v45  ;;  %v13076_v11 = vpop.f32.mrb[51].mxu0 }
 0x4ab   : > { %v8330_v27 = vadd.f32 %v8148_v54, %v12460_v28  ;;  %v8151_v12 = vadd.f32 %v12972_v41, %v7861_v14  ;;  %v7863_v31 = vpop.f32.mrb[243].mxu1 }
 0x4ac   : > { %8748 = vst [vmem:[#allocation4 + $0x58] sm:$0xff] %v8716_v47  ;;  %v13858_v31 = vld [vmem:[#allocation51_spill] sm:$0xff] }
 0x4ad   : > { %v8331_v4 = vadd.f32 %v8151_v12, %v12471_v40  ;;  %v8401_v34 = vmul.f32 %v12761_v59, %v8330_v27 }
 0x4af   : > { %v8402_v41 = vmul.f32 %v12761_v59, %v8331_v4 }
 0x4b0   : > { %v7866_v55 = vpop.f32.mrb[244].mxu1 }
 0x4b1   : > { %v13081_v52 = vpop.f32.mrb[52].mxu0  ;;  %v8156_v58 = vadd.f32 %v12962_v15, %v7866_v55  ;;  %v7868_v9 = vpop.f32.mrb[245].mxu1  ;;  %v8472_v15 = vadd.f32 %v12779_v44, %v8401_v34 }
 0x4b2   : > { %v13084_v24 = vpop.f32.mrb[53].mxu0  ;;  %v7869_v28 = vpop.f32.mrb[246].mxu1  ;;  %v8473_v9 = vadd.f32 %v12779_v44, %v8402_v41 }
 0x4b3   : > { %v8779_v45 = vld [vmem:[#allocation4 + $0x50] ss:$2 sm:$0xff]  ;;  %v8811_v17 = vld [vmem:[#allocation4 + $0x51] ss:$2 sm:$0xff]  ;;  %v13087_v54 = vpop.f32.mrb[54].mxu0  ;;  %v8332_v40 = vadd.f32 %v8156_v58, %v12453_v43  ;;  %v8159_v32 = vadd.f32 %v12968_v8, %v7869_v28  ;;  %v7871_v14 = vpop.f32.mrb[247].mxu1 }
 0x4b4   : > { %13857 = vst [vmem:[#allocation72_spill] sm:$0xff] %v13087_v54  ;;  %v8837_v47 = vadd.f32 %v8811_v17, %v8779_v45  ;;  %v13091_v27 = vpop.f32.mrb[55].mxu0  ;;  %v8536_v43 = vmax.f32 %v8472_v15, 0.0  ;;  %v8537_v28 = vmax.f32 %v8473_v9, 0.0 }
 0x4b5   : > { %v8403_v12 = vmul.f32 %v12761_v59, %v8332_v40  ;;  %v8333_v55 = vadd.f32 %v8159_v32, %v13858_v31 }
 0x4b6   : > { %8853 = vst [vmem:[%s12876_s30 + $0x28] sm:$0xff] %v8837_v47 }
 0x4b7   : > { %v8474_v4 = vadd.f32 %v12779_v44, %v8403_v12  ;;  %v8404_v54 = vmul.f32 %v12761_v59, %v8333_v55 }
 0x4b9   : > { %v8538_v58 = vmax.f32 %v8474_v4, 0.0  ;;  %v8475_v8 = vadd.f32 %v12779_v44, %v8404_v54  ;;  %v13861_v54 = vld [vmem:[#allocation65_spill] sm:$0xff] }
 0x4bb   : > { %v8717_v45 = vadd.f32 %v8538_v58, %v8536_v43  ;;  %v8539_v17 = vmax.f32 %v8475_v8, 0.0  ;;  %v13101_v14 = vpop.f32.mrb[56].mxu0  ;;  %v13862_v43 = vld [vmem:[#allocation50_spill] sm:$0xff] }
 0x4bc   : > { %13859 = vst [vmem:[#allocation19_spill] sm:$0xff] %v13101_v14  ;;  %v13103_v34 = vpop.f32.mrb[57].mxu0 }
 0x4bd   : > { %8749 = vst [vmem:[#allocation4 + $0x60] sm:$0xff] %v8717_v45  ;;  %v8718_v32 = vadd.f32 %v8539_v17, %v8537_v28  ;;  %v13105_v41 = vpop.f32.mrb[58].mxu0 }
 0x4be   : > { %v7874_v40 = vpop.f32.mrb[248].mxu1  ;;  %13860 = vst [vmem:[#allocation43_spill] sm:$0xff] %v13105_v41  ;;  %v13108_v15 = vpop.f32.mrb[59].mxu0  ;;  %v13863_v41 = vld [vmem:[#allocation29_spill] sm:$0xff] }
 0x4bf   : > { %v8164_v47 = vadd.f32 %v12985_v26, %v7874_v40  ;;  %v7876_v12 = vpop.f32.mrb[249].mxu1  ;;  %8750 = vst [vmem:[#allocation4 + $0x68] sm:$0xff] %v8718_v32 }
 0x4c0   : > { %v7877_v31 = vpop.f32.mrb[250].mxu1 }
 0x4c1   : > { %v8334_v55 = vadd.f32 %v8164_v47, %v13861_v54  ;;  %v8167_v9 = vadd.f32 %v12992_v1, %v7877_v31  ;;  %v7879_v4 = vpop.f32.mrb[251].mxu1 }
 0x4c2   : > { %v13864_v4 = vld [vmem:[#allocation47_spill] sm:$0xff] }
 0x4c3   : > { %v8335_v58 = vadd.f32 %v8167_v9, %v13862_v43  ;;  %v8405_v17 = vmul.f32 %v12761_v59, %v8334_v55 }
 0x4c5   : > { %v8406_v12 = vmul.f32 %v12761_v59, %v8335_v58  ;;  %v8476_v54 = vadd.f32 %v12779_v44, %v8405_v17 }
 0x4c6   : > { %v8781_v8 = vld [vmem:[#allocation4 + $0x60] ss:$2 sm:$0xff]  ;;  %v8813_v45 = vld [vmem:[#allocation4 + $0x61] ss:$2 sm:$0xff] }
 0x4c7   : > { %v8838_v14 = vadd.f32 %v8813_v45, %v8781_v8  ;;  %v8540_v58 = vmax.f32 %v8476_v54, 0.0 }
 0x4c9   : > { %v7882_v28 = vpop.f32.mrb[252].mxu1  ;;  %8854 = vst [vmem:[%s12876_s30 + $0x30] sm:$0xff] %v8838_v14  ;;  %v8477_v14 = vadd.f32 %v12779_v44, %v8406_v12 }
 0x4ca   : > { %v8172_v26 = vadd.f32 %v12981_v46, %v7882_v28  ;;  %v7884_v40 = vpop.f32.mrb[253].mxu1 }
 0x4cb   : > { %v7885_v32 = vpop.f32.mrb[254].mxu1 }
 0x4cc   : > { %v8336_v47 = vadd.f32 %v8172_v26, %v13863_v41  ;;  %v8175_v1 = vadd.f32 %v12987_v57, %v7885_v32  ;;  %v7887_v31 = vpop.f32.mrb[255].mxu1  ;;  %v8541_v26 = vmax.f32 %v8477_v14, 0.0 }
 0x4ce   : > { %v8407_v9 = vmul.f32 %v12761_v59, %v8336_v47  ;;  %v8337_v43 = vadd.f32 %v8175_v1, %v13864_v4 }
 0x4d0   : > { %v8478_v55 = vadd.f32 %v12779_v44, %v8407_v9  ;;  %v8408_v46 = vmul.f32 %v12761_v59, %v8337_v43 }
 0x4d1   : > { %v7890_v8 = vpop.f32.mrb[0].mxu1 }
 0x4d2   : > { %v8542_v45 = vmax.f32 %v8478_v55, 0.0  ;;  %v8479_v41 = vadd.f32 %v12779_v44, %v8408_v46  ;;  %v8180_v57 = vadd.f32 %v13004_v22, %v7890_v8  ;;  %v7892_v28 = vpop.f32.mrb[1].mxu1 }
 0x4d3   : > { %v7893_v17 = vpop.f32.mrb[2].mxu1 }
 0x4d4   : > { %v8719_v40 = vadd.f32 %v8542_v45, %v8540_v58  ;;  %v8543_v32 = vmax.f32 %v8479_v41, 0.0  ;;  %v8338_v47 = vadd.f32 %v8180_v57, %v12534_v25  ;;  %v8183_v12 = vadd.f32 %v13009_v13, %v7893_v17  ;;  %v7895_v1 = vpop.f32.mrb[3].mxu1 }
 0x4d6   : > { %8751 = vst [vmem:[#allocation4 + $0x70] sm:$0xff] %v8719_v40  ;;  %v8720_v31 = vadd.f32 %v8543_v32, %v8541_v26  ;;  %v8339_v9 = vadd.f32 %v8183_v12, %v12544_v35  ;;  %v8409_v4 = vmul.f32 %v12761_v59, %v8338_v47 }
 0x4d8   : > { %8752 = vst [vmem:[#allocation4 + $0x78] sm:$0xff] %v8720_v31  ;;  %v8410_v14 = vmul.f32 %v12761_v59, %v8339_v9  ;;  %v8480_v8 = vadd.f32 %v12779_v44, %v8409_v4 }
 0x4d9   : > { %v7898_v54 = vpop.f32.mrb[4].mxu1 }
 0x4da   : > { %v8188_v22 = vadd.f32 %v13002_v6, %v7898_v54  ;;  %v7900_v43 = vpop.f32.mrb[5].mxu1  ;;  %v8481_v6 = vadd.f32 %v12779_v44, %v8410_v14 }
 0x4db   : > { %v7901_v55 = vpop.f32.mrb[6].mxu1 }
 0x4dc   : > { %v8340_v25 = vadd.f32 %v8188_v22, %v12530_v2  ;;  %v8191_v13 = vadd.f32 %v13006_v39, %v7901_v55  ;;  %v7903_v46 = vpop.f32.mrb[7].mxu1  ;;  %v8544_v2 = vmax.f32 %v8480_v8, 0.0  ;;  %v8545_v12 = vmax.f32 %v8481_v6, 0.0  ;;  %v13160_v8 = vld [vmem:[%s13338_s6] ss:$0 sm:$0xff] }
 0x4de   : > { %v8411_v35 = vmul.f32 %v12761_v59, %v8340_v25  ;;  %v8341_v58 = vadd.f32 %v8191_v13, %v12540_v20  ;;  %v13865_v25 = vld [vmem:[#allocation24_spill] sm:$0xff] }
 0x4df   : > { %v8783_v45 = vld [vmem:[#allocation4 + $0x70] ss:$2 sm:$0xff]  ;;  %v8815_v41 = vld [vmem:[#allocation4 + $0x71] ss:$2 sm:$0xff] }
 0x4e0   : > { %v8839_v57 = vadd.f32 %v8815_v41, %v8783_v45  ;;  %v8482_v28 = vadd.f32 %v12779_v44, %v8411_v35  ;;  %v8412_v26 = vmul.f32 %v12761_v59, %v8341_v58 }
 0x4e1   : > { %v7906_v17 = vpop.f32.mrb[8].mxu1 }
 0x4e2   : > { %8855 = vst [vmem:[%s12876_s30 + $0x38] sm:$0xff] %v8839_v57  ;;  %v8546_v39 = vmax.f32 %v8482_v28, 0.0  ;;  %v8483_v40 = vadd.f32 %v12779_v44, %v8412_v26  ;;  %v8196_v32 = vadd.f32 %v13017_v38, %v7906_v17  ;;  %v7908_v47 = vpop.f32.mrb[9].mxu1  ;;  %v13150_v44 = vld [vmem:[%s13337_s5] ss:$0 sm:$0xff] }
 0x4e3   : > { %v7909_v20 = vpop.f32.mrb[10].mxu1 }
 0x4e4   : > { %v8721_v1 = vadd.f32 %v8546_v39, %v8544_v2  ;;  %v8547_v31 = vmax.f32 %v8483_v40, 0.0  ;;  %v8342_v9 = vadd.f32 %v8196_v32, %v12564_v48  ;;  %v8199_v54 = vadd.f32 %v13024_v61, %v7909_v20  ;;  %v7911_v4 = vpop.f32.mrb[11].mxu1 }
 0x4e6   : > { %8753 = vst [vmem:[#allocation4 + $0x80] sm:$0xff] %v8721_v1  ;;  %v8722_v59 = vadd.f32 %v8547_v31, %v8545_v12  ;;  %v8343_v22 = vadd.f32 %v8199_v54, %v12576_v10  ;;  %v8413_v38 = vmul.f32 %v13150_v44, %v8342_v9 }
 0x4e8   : > { %8754 = vst [vmem:[#allocation4 + $0x88] sm:$0xff] %v8722_v59  ;;  %v8414_v48 = vmul.f32 %v13150_v44, %v8343_v22  ;;  %v8484_v35 = vadd.f32 %v13160_v8, %v8413_v38 }
 0x4e9   : > { %v7914_v43 = vpop.f32.mrb[12].mxu1 }
 0x4ea   : > { %v8204_v14 = vadd.f32 %v13014_v60, %v7914_v43  ;;  %v7916_v55 = vpop.f32.mrb[13].mxu1  ;;  %v13866_v60 = vld [vmem:[#allocation17_spill] sm:$0xff]  ;;  %v8485_v57 = vadd.f32 %v13160_v8, %v8414_v48  ;;  %v8548_v2 = vmax.f32 %v8484_v35, 0.0 }
 0x4eb   : > { %v7917_v61 = vpop.f32.mrb[14].mxu1 }
 0x4ec   : > { %v8344_v13 = vadd.f32 %v8204_v14, %v13865_v25  ;;  %v8207_v10 = vadd.f32 %v13020_v49, %v7917_v61  ;;  %v7919_v46 = vpop.f32.mrb[15].mxu1  ;;  %v8549_v12 = vmax.f32 %v8485_v57, 0.0 }
 0x4ee   : > { %v8415_v58 = vmul.f32 %v13150_v44, %v8344_v13  ;;  %v8345_v45 = vadd.f32 %v8207_v10, %v13866_v60 }
 0x4ef   : > { %v8785_v41 = vld [vmem:[#allocation4 + $0x80] ss:$2 sm:$0xff]  ;;  %v8817_v6 = vld [vmem:[#allocation4 + $0x81] ss:$2 sm:$0xff] }
 0x4f0   : > { %v8840_v28 = vadd.f32 %v8817_v6, %v8785_v41  ;;  %v8486_v26 = vadd.f32 %v13160_v8, %v8415_v58  ;;  %v8416_v49 = vmul.f32 %v13150_v44, %v8345_v45 }
 0x4f1   : > { %v7922_v17 = vpop.f32.mrb[16].mxu1 }
 0x4f2   : > { %8856 = vst [vmem:[%s12876_s30 + $0x40] sm:$0xff] %v8840_v28  ;;  %v8550_v39 = vmax.f32 %v8486_v26, 0.0  ;;  %v8487_v40 = vadd.f32 %v13160_v8, %v8416_v49  ;;  %v8212_v32 = vadd.f32 %v13037_v29, %v7922_v17  ;;  %v7924_v47 = vpop.f32.mrb[17].mxu1 }
 0x4f3   : > { %v7925_v20 = vpop.f32.mrb[18].mxu1 }
 0x4f4   : > { %v8723_v1 = vadd.f32 %v8550_v39, %v8548_v2  ;;  %v8551_v31 = vmax.f32 %v8487_v40, 0.0  ;;  %v8346_v9 = vadd.f32 %v8212_v32, %v12612_v21  ;;  %v8215_v54 = vadd.f32 %v13043_v62, %v7925_v20  ;;  %v7927_v4 = vpop.f32.mrb[19].mxu1 }
 0x4f6   : > { %8755 = vst [vmem:[#allocation4 + $0x90] sm:$0xff] %v8723_v1  ;;  %v8724_v59 = vadd.f32 %v8551_v31, %v8549_v12  ;;  %v8347_v22 = vadd.f32 %v8215_v54, %v12622_v30  ;;  %v8417_v38 = vmul.f32 %v13150_v44, %v8346_v9 }
 0x4f8   : > { %8756 = vst [vmem:[#allocation4 + $0x98] sm:$0xff] %v8724_v59  ;;  %v8418_v55 = vmul.f32 %v13150_v44, %v8347_v22  ;;  %v8488_v25 = vadd.f32 %v13160_v8, %v8417_v38 }
 0x4f9   : > { %v7930_v43 = vpop.f32.mrb[20].mxu1 }
 0x4fa   : > { %v8220_v29 = vadd.f32 %v13035_v37, %v7930_v43  ;;  %v7932_v14 = vpop.f32.mrb[21].mxu1  ;;  %v8489_v37 = vadd.f32 %v13160_v8, %v8418_v55 }
 0x4fb   : > { %v7933_v48 = vpop.f32.mrb[22].mxu1 }
 0x4fc   : > { %v8348_v21 = vadd.f32 %v8220_v29, %v12608_v7  ;;  %v8223_v62 = vadd.f32 %v13040_v56, %v7933_v48  ;;  %v7935_v61 = vpop.f32.mrb[23].mxu1  ;;  %v8552_v7 = vmax.f32 %v8488_v25, 0.0  ;;  %v8553_v28 = vmax.f32 %v8489_v37, 0.0 }
 0x4fe   : > { %v8419_v30 = vmul.f32 %v13150_v44, %v8348_v21  ;;  %v8349_v13 = vadd.f32 %v8223_v62, %v12616_v5 }
 0x4ff   : > { %v8787_v10 = vld [vmem:[#allocation4 + $0x90] ss:$2 sm:$0xff]  ;;  %v8819_v46 = vld [vmem:[#allocation4 + $0x91] ss:$2 sm:$0xff] }
 0x500   : > { %v8841_v35 = vadd.f32 %v8819_v46, %v8787_v10  ;;  %v8490_v58 = vadd.f32 %v13160_v8, %v8419_v30  ;;  %v8420_v60 = vmul.f32 %v13150_v44, %v8349_v13 }
 0x501   : > { %v7938_v45 = vpop.f32.mrb[24].mxu1 }
 0x502   : > { %8857 = vst [vmem:[%s12876_s30 + $0x48] sm:$0xff] %v8841_v35  ;;  %v8554_v56 = vmax.f32 %v8490_v58, 0.0  ;;  %v8491_v41 = vadd.f32 %v13160_v8, %v8420_v60  ;;  %v8228_v6 = vadd.f32 %v13050_v3, %v7938_v45  ;;  %v7940_v57 = vpop.f32.mrb[25].mxu1 }
 0x503   : > { %v7941_v5 = vpop.f32.mrb[26].mxu1 }
 0x504   : > { %v8725_v26 = vadd.f32 %v8554_v56, %v8552_v7  ;;  %v8555_v49 = vmax.f32 %v8491_v41, 0.0  ;;  %v8350_v17 = vadd.f32 %v8228_v6, %v12639_v36  ;;  %v8231_v2 = vadd.f32 %v13056_v53, %v7941_v5  ;;  %v7943_v39 = vpop.f32.mrb[27].mxu1 }
 0x506   : > { %8757 = vst [vmem:[#allocation4 + $0xa0] sm:$0xff] %v8725_v26  ;;  %v8726_v40 = vadd.f32 %v8555_v49, %v8553_v28  ;;  %v8351_v32 = vadd.f32 %v8231_v2, %v12649_v42  ;;  %v8421_v12 = vmul.f32 %v13150_v44, %v8350_v17  ;;  %v13868_v49 = vld [vmem:[#allocation52_spill] sm:$0xff] }
 0x508   : > { %8758 = vst [vmem:[#allocation4 + $0xa8] sm:$0xff] %v8726_v40  ;;  %v8422_v1 = vmul.f32 %v13150_v44, %v8351_v32  ;;  %v8492_v54 = vadd.f32 %v13160_v8, %v8421_v12 }
 0x509   : > { %v7946_v47 = vpop.f32.mrb[28].mxu1 }
 0x50a   : > { %v8236_v3 = vadd.f32 %v13047_v63, %v7946_v47  ;;  %v7948_v20 = vpop.f32.mrb[29].mxu1  ;;  %v8493_v63 = vadd.f32 %v13160_v8, %v8422_v1 }
 0x50b   : > { %v7949_v31 = vpop.f32.mrb[30].mxu1 }
 0x50c   : > { %v8352_v36 = vadd.f32 %v8236_v3, %v12635_v50  ;;  %v8239_v53 = vadd.f32 %v13053_v0, %v7949_v31  ;;  %v7951_v9 = vpop.f32.mrb[31].mxu1  ;;  %v8556_v50 = vmax.f32 %v8492_v54, 0.0  ;;  %v8557_v62 = vmax.f32 %v8493_v63, 0.0 }
 0x50e   : > { %v8423_v42 = vmul.f32 %v13150_v44, %v8352_v36  ;;  %v8353_v4 = vadd.f32 %v8239_v53, %v12645_v18 }
 0x50f   : > { %v8789_v59 = vld [vmem:[#allocation4 + $0xa0] ss:$2 sm:$0xff]  ;;  %v8821_v22 = vld [vmem:[#allocation4 + $0xa1] ss:$2 sm:$0xff] }
 0x510   : > { %v8842_v43 = vadd.f32 %v8821_v22, %v8789_v59  ;;  %v8494_v38 = vadd.f32 %v13160_v8, %v8423_v42  ;;  %v8424_v29 = vmul.f32 %v13150_v44, %v8353_v4  ;;  %v13869_v42 = vld [vmem:[#allocation26_spill] sm:$0xff] }
 0x511   : > { %v7954_v14 = vpop.f32.mrb[32].mxu1 }
 0x512   : > { %8858 = vst [vmem:[%s12876_s30 + $0x50] sm:$0xff] %v8842_v43  ;;  %v8558_v0 = vmax.f32 %v8494_v38, 0.0  ;;  %v8495_v55 = vadd.f32 %v13160_v8, %v8424_v29  ;;  %v8244_v48 = vadd.f32 %v13070_v23, %v7954_v14  ;;  %v7956_v21 = vpop.f32.mrb[33].mxu1  ;;  %v13870_v43 = vld [vmem:[#allocation64_spill] sm:$0xff] }
 0x513   : > { %v7957_v18 = vpop.f32.mrb[34].mxu1  ;;  %v13208_v35 = vpop.f32.mrb[60].mxu0 }
 0x514   : > { %v8727_v61 = vadd.f32 %v8558_v0, %v8556_v50  ;;  %v8559_v25 = vmax.f32 %v8495_v55, 0.0  ;;  %v8354_v30 = vadd.f32 %v8244_v48, %v12669_v33  ;;  %v8247_v13 = vadd.f32 %v13076_v11, %v7957_v18  ;;  %v7959_v10 = vpop.f32.mrb[35].mxu1  ;;  %v13210_v60 = vpop.f32.mrb[61].mxu0  ;;  %v13871_v48 = vld [vmem:[#allocation34_spill] sm:$0xff] }
 0x515   : > { %v13214_v56 = vpop.f32.mrb[62].mxu0 }
 0x516   : > { %8759 = vst [vmem:[#allocation4 + $0xb0] sm:$0xff] %v8727_v61  ;;  %v8728_v46 = vadd.f32 %v8559_v25, %v8557_v62  ;;  %v8355_v37 = vadd.f32 %v8247_v13, %v12681_v51  ;;  %v8425_v23 = vmul.f32 %v13150_v44, %v8354_v30  ;;  %v13217_v41 = vpop.f32.mrb[63].mxu0  ;;  %v13867_v51 = vld [vmem:[#allocation73_spill] sm:$0xff]  ;;  %v13872_v62 = vld [vmem:[#allocation72_spill] sm:$0xff] }
 0x517   : > { %v13873_v30 = vld [vmem:[#allocation33_spill] sm:$0xff] }
 0x518   : > { %8760 = vst [vmem:[#allocation4 + $0xb8] sm:$0xff] %v8728_v46  ;;  %v8426_v33 = vmul.f32 %v13150_v44, %v8355_v37  ;;  %v8496_v5 = vadd.f32 %v13160_v8, %v8425_v23 }
 0x519   : > { %v7962_v58 = vpop.f32.mrb[36].mxu1 }
 0x51a   : > { %v8252_v45 = vadd.f32 %v13068_v16, %v7962_v58  ;;  %v7964_v7 = vpop.f32.mrb[37].mxu1  ;;  %v8497_v39 = vadd.f32 %v13160_v8, %v8426_v33  ;;  %v8560_v3 = vmax.f32 %v8496_v5, 0.0 }
 0x51b   : > { %v7965_v11 = vpop.f32.mrb[38].mxu1 }
 0x51c   : > { %v8356_v6 = vadd.f32 %v8252_v45, %v13867_v51  ;;  %v8255_v57 = vadd.f32 %v13073_v19, %v7965_v11  ;;  %v7967_v28 = vpop.f32.mrb[39].mxu1  ;;  %v8561_v36 = vmax.f32 %v8497_v39, 0.0 }
 0x51e   : > { %v8427_v26 = vmul.f32 %v13150_v44, %v8356_v6  ;;  %v8357_v16 = vadd.f32 %v8255_v57, %v13868_v49  ;;  %v13874_v49 = vld [vmem:[#allocation57_spill] sm:$0xff] }
 0x51f   : > { %v8791_v17 = vld [vmem:[#allocation4 + $0xb0] ss:$2 sm:$0xff]  ;;  %v8823_v2 = vld [vmem:[#allocation4 + $0xb1] ss:$2 sm:$0xff] }
 0x520   : > { %v8843_v40 = vadd.f32 %v8823_v2, %v8791_v17  ;;  %v8498_v32 = vadd.f32 %v13160_v8, %v8427_v26  ;;  %v8428_v47 = vmul.f32 %v13150_v44, %v8357_v16 }
 0x521   : > { %v7970_v12 = vpop.f32.mrb[40].mxu1 }
 0x522   : > { %8859 = vst [vmem:[%s12876_s30 + $0x58] sm:$0xff] %v8843_v40  ;;  %v8562_v19 = vmax.f32 %v8498_v32, 0.0  ;;  %v8499_v20 = vadd.f32 %v13160_v8, %v8428_v47  ;;  %v8260_v1 = vadd.f32 %v13084_v24, %v7970_v12  ;;  %v7972_v31 = vpop.f32.mrb[41].mxu1  ;;  %v13875_v40 = vld [vmem:[#allocation69_spill] sm:$0xff] }
 0x523   : > { %v7973_v53 = vpop.f32.mrb[42].mxu1  ;;  %v13877_v31 = vld [vmem:[#allocation20_spill] sm:$0xff] }
 0x524   : > { %v8729_v9 = vadd.f32 %v8562_v19, %v8560_v3  ;;  %v8563_v54 = vmax.f32 %v8499_v20, 0.0  ;;  %v8358_v4 = vadd.f32 %v8260_v1, %v13869_v42  ;;  %v8263_v59 = vadd.f32 %v13091_v27, %v7973_v53  ;;  %v7975_v22 = vpop.f32.mrb[43].mxu1  ;;  %v13876_v3 = vld [vmem:[#allocation19_spill] sm:$0xff] }
 0x525   : > { %v13878_v53 = vld [vmem:[#allocation43_spill] sm:$0xff] }
 0x526   : > { %8761 = vst [vmem:[#allocation4 + $0xc0] sm:$0xff] %v8729_v9  ;;  %v8730_v63 = vadd.f32 %v8563_v54, %v8561_v36  ;;  %v8359_v38 = vadd.f32 %v8263_v59, %v13870_v43  ;;  %v8429_v14 = vmul.f32 %v13150_v44, %v8358_v4  ;;  %v13879_v4 = vld [vmem:[#allocation40_spill] sm:$0xff] }
 0x528   : > { %8762 = vst [vmem:[#allocation4 + $0xc8] sm:$0xff] %v8730_v63  ;;  %v8430_v0 = vmul.f32 %v13150_v44, %v8359_v38  ;;  %v8500_v61 = vadd.f32 %v13160_v8, %v8429_v14 }
 0x529   : > { %v7978_v29 = vpop.f32.mrb[44].mxu1 }
 0x52a   : > { %v8268_v24 = vadd.f32 %v13081_v52, %v7978_v29  ;;  %v7980_v50 = vpop.f32.mrb[45].mxu1  ;;  %v8501_v52 = vadd.f32 %v13160_v8, %v8430_v0  ;;  %v8564_v7 = vmax.f32 %v8500_v61, 0.0 }
 0x52b   : > { %v7981_v55 = vpop.f32.mrb[46].mxu1 }
 0x52c   : > { %v8360_v21 = vadd.f32 %v8268_v24, %v13871_v48  ;;  %v8271_v27 = vadd.f32 %v13872_v62, %v7981_v55  ;;  %v7983_v18 = vpop.f32.mrb[47].mxu1  ;;  %v8565_v57 = vmax.f32 %v8501_v52, 0.0  ;;  %v13881_v52 = vld [vmem:[#allocation41_spill] sm:$0xff] }
 0x52e   : > { %v8431_v25 = vmul.f32 %v13150_v44, %v8360_v21  ;;  %v8361_v13 = vadd.f32 %v8271_v27, %v13873_v30 }
 0x52f   : > { %v8793_v10 = vld [vmem:[#allocation4 + $0xc0] ss:$2 sm:$0xff]  ;;  %v8825_v46 = vld [vmem:[#allocation4 + $0xc1] ss:$2 sm:$0xff] }
 0x530   : > { %v8844_v37 = vadd.f32 %v8825_v46, %v8793_v10  ;;  %v8502_v58 = vadd.f32 %v13160_v8, %v8431_v25  ;;  %v8432_v23 = vmul.f32 %v13150_v44, %v8361_v13  ;;  %v13880_v25 = vld [vmem:[#allocation74_spill] sm:$0xff] }
 0x531   : > { %v7986_v45 = vpop.f32.mrb[48].mxu1 }
 0x532   : > { %8860 = vst [vmem:[%s12876_s30 + $0x60] sm:$0xff] %v8844_v37  ;;  %v8566_v33 = vmax.f32 %v8502_v58, 0.0  ;;  %v8503_v11 = vadd.f32 %v13160_v8, %v8432_v23  ;;  %v8276_v51 = vadd.f32 %v13103_v34, %v7986_v45  ;;  %v7988_v6 = vpop.f32.mrb[49].mxu1 }
 0x533   : > { %v7989_v28 = vpop.f32.mrb[50].mxu1 }
 0x534   : > { %v8731_v5 = vadd.f32 %v8566_v33, %v8564_v7  ;;  %v8567_v26 = vmax.f32 %v8503_v11, 0.0  ;;  %v8362_v16 = vadd.f32 %v8276_v51, %v13874_v49  ;;  %v8279_v17 = vadd.f32 %v13108_v15, %v7989_v28  ;;  %v7991_v2 = vpop.f32.mrb[51].mxu1  ;;  %v13882_v11 = vld [vmem:[#allocation70_spill] sm:$0xff] }
 0x536   : > { %8763 = vst [vmem:[#allocation4 + $0xd0] sm:$0xff] %v8731_v5  ;;  %v8732_v39 = vadd.f32 %v8567_v26, %v8565_v57  ;;  %v8363_v32 = vadd.f32 %v8279_v17, %v13875_v40  ;;  %v8433_v12 = vmul.f32 %v13150_v44, %v8362_v16  ;;  %v13883_v5 = vld [vmem:[#allocation63_spill] sm:$0xff] }
 0x538   : > { %8764 = vst [vmem:[#allocation4 + $0xd8] sm:$0xff] %v8732_v39  ;;  %v8434_v20 = vmul.f32 %v13150_v44, %v8363_v32  ;;  %v8504_v54 = vadd.f32 %v13160_v8, %v8433_v12 }
 0x539   : > { %v7994_v47 = vpop.f32.mrb[52].mxu1 }
 0x53a   : > { %v8284_v34 = vadd.f32 %v13876_v3, %v7994_v47  ;;  %v7996_v19 = vpop.f32.mrb[53].mxu1  ;;  %v8505_v43 = vadd.f32 %v13160_v8, %v8434_v20  ;;  %v8568_v50 = vmax.f32 %v8504_v54, 0.0 }
 0x53b   : > { %v7997_v1 = vpop.f32.mrb[54].mxu1 }
 0x53c   : > { %v8364_v36 = vadd.f32 %v8284_v34, %v13877_v31  ;;  %v8287_v15 = vadd.f32 %v13878_v53, %v7997_v1  ;;  %v7999_v9 = vpop.f32.mrb[55].mxu1  ;;  %v8569_v62 = vmax.f32 %v8505_v43, 0.0 }
 0x53e   : > { %v8435_v42 = vmul.f32 %v13150_v44, %v8364_v36  ;;  %v8365_v59 = vadd.f32 %v8287_v15, %v13879_v4 }
 0x53f   : > { %v8795_v22 = vld [vmem:[#allocation4 + $0xd0] ss:$2 sm:$0xff]  ;;  %v8827_v63 = vld [vmem:[#allocation4 + $0xd1] ss:$2 sm:$0xff] }
 0x540   : > { %v8845_v38 = vadd.f32 %v8827_v63, %v8795_v22  ;;  %v8506_v29 = vadd.f32 %v13160_v8, %v8435_v42  ;;  %v8436_v14 = vmul.f32 %v13150_v44, %v8365_v59 }
 0x541   : > { %v8002_v24 = vpop.f32.mrb[56].mxu1 }
 0x542   : > { %8861 = vst [vmem:[%s12876_s30 + $0x68] sm:$0xff] %v8845_v38  ;;  %v8570_v0 = vmax.f32 %v8506_v29, 0.0  ;;  %v8507_v55 = vadd.f32 %v13160_v8, %v8436_v14  ;;  %v8292_v48 = vadd.f32 %v13210_v60, %v8002_v24  ;;  %v8004_v21 = vpop.f32.mrb[57].mxu1 }
 0x543   : > { %v8005_v27 = vpop.f32.mrb[58].mxu1 }
 0x544   : > { %v8733_v18 = vadd.f32 %v8570_v0, %v8568_v50  ;;  %v8571_v61 = vmax.f32 %v8507_v55, 0.0  ;;  %v8366_v30 = vadd.f32 %v8292_v48, %v13880_v25  ;;  %v8295_v13 = vadd.f32 %v13217_v41, %v8005_v27  ;;  %v8007_v10 = vpop.f32.mrb[59].mxu1 }
 0x546   : > { %8765 = vst [vmem:[#allocation4 + $0xe0] sm:$0xff] %v8733_v18  ;;  %v8734_v46 = vadd.f32 %v8571_v61, %v8569_v62  ;;  %v8367_v37 = vadd.f32 %v8295_v13, %v13881_v52  ;;  %v8437_v23 = vmul.f32 %v13150_v44, %v8366_v30 }
 0x548   : > { %8766 = vst [vmem:[#allocation4 + $0xe8] sm:$0xff] %v8734_v46  ;;  %v8438_v33 = vmul.f32 %v13150_v44, %v8367_v37  ;;  %v8508_v57 = vadd.f32 %v13160_v8, %v8437_v23 }
 0x549   : > { %v8010_v58 = vpop.f32.mrb[60].mxu1 }
 0x54a   : > { %v8300_v60 = vadd.f32 %v13208_v35, %v8010_v58  ;;  %v8012_v45 = vpop.f32.mrb[61].mxu1  ;;  %v8509_v17 = vadd.f32 %v13160_v8, %v8438_v33 }
 0x54b   : > { %v8013_v7 = vpop.f32.mrb[62].mxu1 }
 0x54c   : > { %v8368_v51 = vadd.f32 %v8300_v60, %v13882_v11  ;;  %v8303_v41 = vadd.f32 %v13214_v56, %v8013_v7  ;;  %v8015_v6 = vpop.f32.mrb[63].mxu1  ;;  %v8572_v56 = vmax.f32 %v8508_v57, 0.0  ;;  %v8573_v47 = vmax.f32 %v8509_v17, 0.0 }
 0x54e   : > { %v8439_v28 = vmul.f32 %v13150_v44, %v8368_v51  ;;  %v8369_v26 = vadd.f32 %v8303_v41, %v13883_v5 }
 0x54f   : > { %v8797_v49 = vld [vmem:[#allocation4 + $0xe0] ss:$2 sm:$0xff]  ;;  %v8829_v16 = vld [vmem:[#allocation4 + $0xe1] ss:$2 sm:$0xff] }
 0x550   : > { %v8846_v35 = vadd.f32 %v8829_v16, %v8797_v49  ;;  %v8510_v2 = vadd.f32 %v13160_v8, %v8439_v28  ;;  %v8440_v39 = vmul.f32 %v13150_v44, %v8369_v26 }
 0x552   : > { %8862 = vst [vmem:[%s12876_s30 + $0x70] sm:$0xff] %v8846_v35  ;;  %v8574_v40 = vmax.f32 %v8510_v2, 0.0  ;;  %v8511_v32 = vadd.f32 %v13160_v8, %v8440_v39 }
 0x554   : > { %v8735_v12 = vadd.f32 %v8574_v40, %v8572_v56  ;;  %v8575_v3 = vmax.f32 %v8511_v32, 0.0 }
 0x556   : > { %8767 = vst [vmem:[#allocation4 + $0xf0] sm:$0xff] %v8735_v12  ;;  %v8736_v34 = vadd.f32 %v8575_v3, %v8573_v47 }
 0x558   : > { %8768 = vst [vmem:[#allocation4 + $0xf8] sm:$0xff] %v8736_v34 }
 0x55f   : > { %v8799_v19 = vld [vmem:[#allocation4 + $0xf0] ss:$2 sm:$0xff]  ;;  %v8831_v20 = vld [vmem:[#allocation4 + $0xf1] ss:$2 sm:$0xff] }
 0x560   : > { %v8847_v44 = vadd.f32 %v8831_v20, %v8799_v19 }
 0x562   : > { %8863 = vst [vmem:[%s12876_s30 + $0x78] sm:$0xff] %v8847_v44 }
 0x563   : > { %9920 = shalt.err (!%p9917_p1)
}
 0x564   : > { %s9921_s30 = scalar_lea.hbm %s13285_s23, 2048  ;;  %s9925_s10 = scalar_lea.hbm %s13339_s7, 4096 }
 0x565   : > { %p9922_p13 = scmp.ne.s32.totalorder %s13285_s23, %s9921_s30  ;;  %p9926_p4 = scmp.lt.u32.totalorder %s13285_s23, %s13339_s7 }
 0x566   : > { %p9927_p5 = scmp.lt.u32.totalorder %s9925_s10, %s9921_s30  ;;  %p9929_p11 = scmp.lt.u32.totalorder %s9921_s30, %s13285_s23 }
 0x567   : > { %p9923_p6 = pnand %p9922_p13, %p13884_p0 }
 0x568   : > { %p9928_p8 = por %p9927_p5, %p9926_p4 }
 0x569   : > { %p9924_p10 = pneg %p9923_p6 }
 0x56a   : > { %p9930_p2 = por %p9929_p11, %p9928_p8 }
 0x56c   : > { %p9931_p3 = pnand %p9930_p2, %p9924_p10 }
 0x56e   : > { %9934 = shalt.err (!%p9931_p3)
}
 0x56f   : > { %s9986_s21 = smov 128   ;;  %s9987_s18 = smov 8  }
 0x570   : > { %9601 = dma.vmem_to_hbm [thread:$0]  (%p13884_p0), %s13287_s15, 2048, %s13285_s23, %s8865_s22, %s9986_s21, %s9986_s21, %s9987_s18  }
 0x571 PF: > { %s8894_s28 = sand.u32 1, %s9965_s24   ;;  %p13885_p7 = scmp.ne.s32.totalorder %s13419_s8, 0 }
 0x572   : > { %p13886_p9 = scmp.ge.s32.totalorder %s9977_s27, 2  ;;  %s8895_s19 = scalar_lea.sflag [#allocation7], %s8894_s28 }
 0x574   : > { %p9615_p12 = pnand %p13886_p9, %p13885_p7 }
 0x576   : > { %9960 = dma.done.wait (!%p9615_p12), %s8895_s19, 2048  }
 0x577   : > { %9962 = vsyncadd (!%p9615_p12), %s8895_s19, 4294965248  ;;  %p21_p1 = scmp.ge.s32.totalorder %s10144_s12, 4   ;;  %s13887_s24 = smov %s9969_s25 }
 0x578   : > { %s13888_s25 = smov %s9973_s26  ;;  %s13889_s26 = smov %s10160_s17 }
 0x579   : > { %s13890_s27 = smov %s10144_s12  ;;  %23 = sbr.rel (!%p21_p1) target bundleno = 6 (0x6), region = 138 }
 0x580   :  { %8900 = vsyncpa [#allocation6], 1 }
 0x581   :  { %8902 = vsyncpa [#allocation6 + $0x1], 1 }
 0x582   :  { %8903 = vsyncpa [#allocation9], 1 }
 0x583   :  { %8904 = vsyncpa [#allocation7], 1 }
 0x584   :  { %8906 = vsyncpa [#allocation7 + $0x1], 1 }

</bundles_post_ra>
